<compile_context>
chip_gen: v7x
topology: tpu7x:2x2x1
jax: 0.10.0
libtpu: 0.0.40
codegen_flags: <defaults>
</compile_context>

<pallas_src>
import functools

import jax
import jax.numpy as jnp
from jax import lax
from jax.experimental import pallas as pl
from jax.experimental.pallas import tpu as pltpu

_LB = 128            # lane block per direction / per gate


# ----------------------------------------------------------------------------
# Pass 1: AdaptiveAvgPool3d((None,1,1))  ==  mean over H*W, x viewed (B*C*D, HW)
# ----------------------------------------------------------------------------
def _pool_kernel(x_ref, o_ref, *, inv_hw):
    xs = jnp.sum(x_ref[...].astype(jnp.float32), axis=-1, keepdims=True)
    o_ref[...] = xs * inv_hw


# ----------------------------------------------------------------------------
# Pass 2: 2-layer bidirectional LSTM over pooled sequences + excitation MLP
#         -> per-(b, c) sigmoid gates.  Runs once for the whole batch.
# ----------------------------------------------------------------------------
def _rnn_mlp_kernel(xf_ref, xb_ref, l0vec_ref, whh0_ref, wih1f_ref, wih1b_ref,
                    whh1f_ref, l1vec_ref, w1_ref, w2_ref, gates_ref,
                    h0seq_scr, c1f_scr, *, B, C, D, mid, NP):
    f32 = jnp.float32
    LB = _LB

    def gates_from(pre, w):
        i = jax.nn.sigmoid(pre[:, 0 * w:1 * w])
        f = jax.nn.sigmoid(pre[:, 1 * w:2 * w])
        g = jnp.tanh(pre[:, 2 * w:3 * w])
        o = jax.nn.sigmoid(pre[:, 3 * w:4 * w])
        return i, f, g, o

    # ---- layer 0: both directions merged on lanes (one fused dot / step) ----
    def l0_body(t, carry):
        h, c = carry
        xf = xf_ref[t]                                   # (NP, 1) pooled @ t
        xb = xb_ref[t]                                   # (NP, 1) pooled @ D-1-t
        pre = (xf * l0vec_ref[0] + xb * l0vec_ref[1] + l0vec_ref[2]
               + jnp.dot(h, whh0_ref[...], preferred_element_type=f32))
        i, f, g, o = gates_from(pre, 2 * LB)
        c = f * c + i * g
        h = o * jnp.tanh(c)
        # layer-1 input at time t is [h_fwd(t) | h_bwd(t)]; the bwd half of this
        # merged step belongs to time D-1-t, so scatter the two lane halves.
        row_f = pl.multiple_of(t * NP, 8)
        row_b = pl.multiple_of((D - 1 - t) * NP, 8)
        h0seq_scr[pl.ds(row_f, NP), 0:LB] = h[:, 0:LB]
        h0seq_scr[pl.ds(row_b, NP), LB:2 * LB] = h[:, LB:2 * LB]
        return h, c

    z0 = jnp.zeros((NP, 2 * LB), f32)
    lax.fori_loop(0, D, l0_body, (z0, z0), unroll=(D <= 8))

    # ---- layer-1 forward input contributions: one matmul OFF the serial chain
    c1f_scr[...] = jnp.dot(h0seq_scr[...], wih1f_ref[...],
                           preferred_element_type=f32)           # (D*NP, 512)

    # ---- layer 1, forward recurrence (one fused dot / step) ------------------
    def l1_body(t, carry):
        h, c = carry
        row = pl.multiple_of(t * NP, 8)
        pre = (c1f_scr[pl.ds(row, NP), :] + l1vec_ref[0]
               + jnp.dot(h, whh1f_ref[...], preferred_element_type=f32))
        i, f, g, o = gates_from(pre, LB)
        c = f * c + i * g
        h = o * jnp.tanh(c)
        return h, c

    z1 = jnp.zeros((NP, LB), f32)
    h1f_last, _ = lax.fori_loop(0, D, l1_body, (z1, z1), unroll=(D <= 8))

    # ---- layer 1, backward direction: only its first step feeds y[:, -1, :] --
    pre_b = (jnp.dot(h0seq_scr[(D - 1) * NP:D * NP, :], wih1b_ref[...],
                     preferred_element_type=f32) + l1vec_ref[1])
    i, f, g, o = gates_from(pre_b, LB)
    h1b_last = o * jnp.tanh(i * g)

    h1cat = jnp.concatenate([h1f_last, h1b_last], axis=1)        # (NP, 256)

    # ---- excitation MLP: sigmoid(W2 @ relu(W1 @ feat)), once per forward -----
    def full_sum(a):
        return jnp.sum(jnp.sum(a, axis=-1, keepdims=True), axis=-2,
                       keepdims=True)

    gate_blocks = []
    for b in range(B):              # TODO(synk): switch to fori_loop if B*mid grows large
        hb = h1cat[b * C:(b + 1) * C, :]                         # (C, 256)
        accb = jnp.zeros((C, 1), jnp.float32)
        for m in range(mid):
            zm = jnp.maximum(full_sum(w1_ref[m] * hb), 0.0)      # (1, 1)
            accb = accb + zm * w2_ref[m]                         # (C, 1)
        gate_blocks.append(accb)
    gates_ref[...] = jax.nn.sigmoid(jnp.concatenate(gate_blocks, axis=0))


# ----------------------------------------------------------------------------
# Pass 3: apply per-(b, c) gate to x viewed as (B*C, D*H*W) lane-dense rows
# ----------------------------------------------------------------------------
def _apply_kernel(x_ref, g_ref, o_ref):
    o_ref[...] = x_ref[...] * g_ref[...].astype(x_ref.dtype)


# ----------------------------------------------------------------------------
# Wrapper-side weight packing (PyTorch layout -> fused, 128-lane-padded layouts)
# ----------------------------------------------------------------------------
def _prepare_weights(p, C, hid):
    f32 = jnp.float32
    LB = _LB
    W0 = 8 * LB          # layer-0 merged gate width: 4 gates x (fwd|bwd) x 128
    W1 = 4 * LB          # layer-1 per-direction gate width
    mid = p['fc1'].shape[0]

    def gsl(w, g):
        return w[g * hid:(g + 1) * hid]

    # layer-0 broadcast rows (input size 1) + merged bias
    w0f = jnp.zeros((1, W0), f32)
    w0b = jnp.zeros((1, W0), f32)
    b0 = jnp.zeros((1, W0), f32)
    for g in range(4):
        base = g * 2 * LB
        w0f = w0f.at[0, base:base + hid].set(gsl(p['w_ih_l0'], g)[:, 0])
        w0b = w0b.at[0, base + LB:base + LB + hid].set(gsl(p['w_ih_l0_r'], g)[:, 0])
        b0 = b0.at[0, base:base + hid].set(gsl(p['b_ih_l0'] + p['b_hh_l0'], g))
        b0 = b0.at[0, base + LB:base + LB + hid].set(
            gsl(p['b_ih_l0_r'] + p['b_hh_l0_r'], g))
    l0vec = jnp.stack([w0f, w0b, b0], axis=0)                     # (3, 1, W0)

    # layer-0 recurrent weights, block-diagonal over directions
    whh0 = jnp.zeros((2 * LB, W0), f32)
    for g in range(4):
        base = g * 2 * LB
        whh0 = whh0.at[0:hid, base:base + hid].set(gsl(p['w_hh_l0'], g).T)
        whh0 = whh0.at[LB:LB + hid, base + LB:base + LB + hid].set(
            gsl(p['w_hh_l0_r'], g).T)

    # layer-1 input-to-hidden (per direction); input lanes = layer-0 (fwd|bwd)
    def pack_wih1(w):
        m = jnp.zeros((2 * LB, W1), f32)
        for g in range(4):
            base = g * LB
            m = m.at[0:hid, base:base + hid].set(gsl(w, g)[:, 0:hid].T)
            m = m.at[LB:LB + hid, base:base + hid].set(gsl(w, g)[:, hid:2 * hid].T)
        return m
    wih1f = pack_wih1(p['w_ih_l1'])                               # (256, W1)
    wih1b = pack_wih1(p['w_ih_l1_r'])                             # (256, W1)

    whh1f = jnp.zeros((LB, W1), f32)
    for g in range(4):
        base = g * LB
        whh1f = whh1f.at[0:hid, base:base + hid].set(gsl(p['w_hh_l1'], g).T)

    b1f = jnp.zeros((1, W1), f32)
    b1b = jnp.zeros((1, W1), f32)
    for g in range(4):
        base = g * LB
        b1f = b1f.at[0, base:base + hid].set(gsl(p['b_ih_l1'] + p['b_hh_l1'], g))
        b1b = b1b.at[0, base:base + hid].set(
            gsl(p['b_ih_l1_r'] + p['b_hh_l1_r'], g))
    l1vec = jnp.stack([b1f, b1b], axis=0)                         # (2, 1, W1)

    # excitation MLP weights, per-channel lane-padded layout
    w1r = p['fc1'].reshape(mid, C, 2 * hid)
    w1cat = jnp.zeros((mid, C, 2 * LB), f32)
    w1cat = w1cat.at[:, :, 0:hid].set(w1r[:, :, 0:hid])
    w1cat = w1cat.at[:, :, LB:LB + hid].set(w1r[:, :, hid:2 * hid])
    w2cat = p['fc2'].T.reshape(mid, C, 1)

    return (l0vec, whh0, wih1f, wih1b, whh1f, l1vec, w1cat, w2cat), mid


# ----------------------------------------------------------------------------
# Tiling helpers (byte-budgeted so blocks also fit v7x's smaller VMEM)
# ----------------------------------------------------------------------------
def _pick_row_tile(rows, lanes, itemsize, max_bytes=4 * 1024 * 1024):
    if rows % 8 != 0:
        return rows
    cap = max(8, (max_bytes // max(1, lanes * itemsize)) // 8 * 8)
    t = min(rows, cap)
    while t >= 8:
        if rows % t == 0:
            return t
        t -= 8
    return rows


def _pick_lane_tile(lanes, rows, itemsize, max_bytes=4 * 1024 * 1024):
    if lanes % _LB != 0:
        return lanes
    cap = max(_LB, (max_bytes // max(1, rows * itemsize)) // _LB * _LB)
    t = min(lanes, cap)
    while t >= _LB:
        if lanes % t == 0:
            return t
        t -= _LB
    return lanes


def _full_spec(a):
    shape = a.shape
    zeros = (0,) * a.ndim
    return pl.BlockSpec(shape, lambda i: zeros)


# ----------------------------------------------------------------------------
# Public wrapper
# ----------------------------------------------------------------------------
def se_block_rnn(x, params, *, hidden):
    """x: (B, C, D, H, W); params: PyTorch-layout LSTM + fc weights."""
    B, C, D, HS, WS = x.shape
    HW = HS * WS
    N = B * C
    NP = max(8, ((N + 7) // 8) * 8)          # sublane-padded sequence count
    itemsize = x.dtype.itemsize

    # -------- pass 1: pooling over H*W --------------------------------------
    R = B * C * D
    xp = x.reshape(R, HW)
    tr = _pick_row_tile(R, HW, itemsize)
    pooled = pl.pallas_call(
        functools.partial(_pool_kernel, inv_hw=1.0 / float(HW)),
        out_shape=jax.ShapeDtypeStruct((R, 1), jnp.float32),
        grid=(pl.cdiv(R, tr),),
        in_specs=[pl.BlockSpec((tr, HW), lambda i: (i, 0))],
        out_specs=pl.BlockSpec((tr, 1), lambda i: (i, 0)),
        compiler_params=pltpu.CompilerParams(
            dimension_semantics=("parallel",)),
    )(xp)

    # -------- tiny layout plumbing for the recurrence (free, wrapper side) ---
    pooled2 = pooled.reshape(N, D)
    xf_seq = jnp.zeros((D, NP, 1), jnp.float32).at[:, :N, 0].set(pooled2.T)
    xb_seq = xf_seq[::-1]                                 # time-reversed input

    weights, mid = _prepare_weights(params, C, hidden)
    (l0vec, whh0, wih1f, wih1b, whh1f, l1vec, w1cat, w2cat) = weights

    # -------- pass 2: bi-LSTM + MLP -> per-(b, c) gates ----------------------
    kernel2 = functools.partial(_rnn_mlp_kernel, B=B, C=C, D=D, mid=mid, NP=NP)
    args2 = (xf_seq, xb_seq, l0vec, whh0, wih1f, wih1b, whh1f, l1vec,
             w1cat, w2cat)
    gates = pl.pallas_call(
        kernel2,
        out_shape=jax.ShapeDtypeStruct((N, 1), jnp.float32),
        grid=(1,),
        in_specs=[_full_spec(a) for a in args2],
        out_specs=pl.BlockSpec((N, 1), lambda i: (0, 0)),
        scratch_shapes=[pltpu.VMEM((D * NP, 2 * _LB), jnp.float32),
                        pltpu.VMEM((D * NP, 4 * _LB), jnp.float32)],
        compiler_params=pltpu.CompilerParams(
            dimension_semantics=("arbitrary",)),
    )(*args2)

    # -------- pass 3: stream x and apply the per-channel gate ----------------
    L = D * HW
    xa = x.reshape(N, L)
    tl = _pick_lane_tile(L, N, itemsize)
    out2 = pl.pallas_call(
        _apply_kernel,
        out_shape=jax.ShapeDtypeStruct((N, L), x.dtype),
        grid=(pl.cdiv(L, tl),),
        in_specs=[pl.BlockSpec((N, tl), lambda j: (0, j)),
                  pl.BlockSpec((N, 1), lambda j: (0, 0))],
        out_specs=pl.BlockSpec((N, tl), lambda j: (0, j)),
        compiler_params=pltpu.CompilerParams(
            dimension_semantics=("parallel",)),
    )(xa, gates)
    return out2.reshape(B, C, D, HS, WS)


# ----------------------------------------------------------------------------
# Pure-JAX reference with exact PyTorch SE_BlockRNN.forward semantics
# ----------------------------------------------------------------------------
def _lstm_dir_ref(seq, w_ih, w_hh, b_ih, b_hh, hid, reverse):
    N, T, _ = seq.shape
    h = jnp.zeros((N, hid), jnp.float32)
    c = jnp.zeros((N, hid), jnp.float32)
    outs = [None] * T
    order = range(T - 1, -1, -1) if reverse else range(T)
    for t in order:
        x_t = seq[:, t, :]
        gates = x_t @ w_ih.T + h @ w_hh.T + b_ih + b_hh
        i = jax.nn.sigmoid(gates[:, 0:hid])
        f = jax.nn.sigmoid(gates[:, hid:2 * hid])
        g = jnp.tanh(gates[:, 2 * hid:3 * hid])
        o = jax.nn.sigmoid(gates[:, 3 * hid:4 * hid])
        c = f * c + i * g
        h = o * jnp.tanh(c)
        outs[t] = h
    return jnp.stack(outs, axis=1)


def ref_forward(x, p, hid):
    B, C, D, HS, WS = x.shape
    y = jnp.mean(x, axis=(3, 4))                       # squeeze -> (B, C, D)
    seq = y.reshape(B * C, D, 1)
    f0 = _lstm_dir_ref(seq, p['w_ih_l0'], p['w_hh_l0'], p['b_ih_l0'], p['b_hh_l0'], hid, False)
    r0 = _lstm_dir_ref(seq, p['w_ih_l0_r'], p['w_hh_l0_r'], p['b_ih_l0_r'], p['b_hh_l0_r'], hid, True)
    seq1 = jnp.concatenate([f0, r0], axis=-1)          # (B*C, D, 2*hid)
    f1 = _lstm_dir_ref(seq1, p['w_ih_l1'], p['w_hh_l1'], p['b_ih_l1'], p['b_hh_l1'], hid, False)
    r1 = _lstm_dir_ref(seq1, p['w_ih_l1_r'], p['w_hh_l1_r'], p['b_ih_l1_r'], p['b_hh_l1_r'], hid, True)
    y_last = jnp.concatenate([f1[:, -1, :], r1[:, -1, :]], axis=-1)  # (B*C, 2*hid)
    feat = y_last.reshape(B, C * 2 * hid)
    z = jax.nn.relu(feat @ p['fc1'].T)
    gate = jax.nn.sigmoid(z @ p['fc2'].T)              # (B, C)
    return x * gate[:, :, None, None, None]


# ----------------------------------------------------------------------------
if __name__ == "__main__":
    B, C, D, HS, WS = 2, 8, 4, 8, 16                   # H*W = 128 -> lane-dense
    hidden_rnn = 4
    r = 16
    feat = 2 * hidden_rnn * C                          # 64
    mid = feat // r                                    # 4

    key = jax.random.PRNGKey(0)
    ks = list(jax.random.split(key, 19))

    def rnd(k, shape, scale=0.3):
        return jax.random.normal(k, shape, dtype=jnp.float32) * scale

    G = 4 * hidden_rnn
    params = {
        'w_ih_l0':   rnd(ks[0],  (G, 1)),
        'w_hh_l0':   rnd(ks[1],  (G, hidden_rnn)),
        'b_ih_l0':   rnd(ks[2],  (G,), 0.1),
        'b_hh_l0':   rnd(ks[3],  (G,), 0.1),
        'w_ih_l0_r': rnd(ks[4],  (G, 1)),
        'w_hh_l0_r': rnd(ks[5],  (G, hidden_rnn)),
        'b_ih_l0_r': rnd(ks[6],  (G,), 0.1),
        'b_hh_l0_r': rnd(ks[7],  (G,), 0.1),
        'w_ih_l1':   rnd(ks[8],  (G, 2 * hidden_rnn)),
        'w_hh_l1':   rnd(ks[9],  (G, hidden_rnn)),
        'b_ih_l1':   rnd(ks[10], (G,), 0.1),
        'b_hh_l1':   rnd(ks[11], (G,), 0.1),
        'w_ih_l1_r': rnd(ks[12], (G, 2 * hidden_rnn)),
        'w_hh_l1_r': rnd(ks[13], (G, hidden_rnn)),
        'b_ih_l1_r': rnd(ks[14], (G,), 0.1),
        'b_hh_l1_r': rnd(ks[15], (G,), 0.1),
        'fc1':       rnd(ks[16], (mid, feat)),
        'fc2':       rnd(ks[17], (C, mid)),
    }
    x = jax.random.normal(ks[18], (B, C, D, HS, WS), dtype=jnp.float32)

    fwd = jax.jit(functools.partial(se_block_rnn, hidden=hidden_rnn))
    out = jax.block_until_ready(fwd(x, params))
    ref = ref_forward(x, params, hidden_rnn)

    assert out.shape == x.shape and out.dtype == x.dtype
    max_err = float(jnp.max(jnp.abs(out - ref)))
    assert max_err < 5e-4, f"max_err={max_err}"
    print("KERNEL_OK")
</pallas_src>

<mosaic_0001>
module attributes {stable_mosaic.version = 11 : i64} {
  func.func @_pool_kernel(%arg0: i32, %arg1: memref<64x128xf32, #tpu.memory_space<vmem>>, %arg2: memref<64x1xf32, #tpu.memory_space<vmem>>) attributes {dimension_semantics = [#tpu.dimension_semantics<parallel>], iteration_bounds = array<i64: 1>, scalar_prefetch = 0 : i64, scratch_operands = 0 : i64, tpu.core_type = #tpu.core_type<tc>, window_params = [{transform_indices = @transform_0, window_bounds = array<i64: 64, 128>}, {transform_indices = @transform_1, window_bounds = array<i64: 64, 1>}]} {
    %c0 = arith.constant 0 : index
    %c0_0 = arith.constant 0 : index
    %0 = vector.load %arg1[%c0, %c0_0] : memref<64x128xf32, #tpu.memory_space<vmem>>, vector<64x128xf32>
    %cst = arith.constant dense<0.000000e+00> : vector<64xf32>
    %1 = vector.multi_reduction <add>, %0, %cst [1] : vector<64x128xf32> to vector<64xf32>
    %2 = vector.shape_cast %1 : vector<64xf32> to vector<64x1xf32>
    %cst_1 = arith.constant 7.812500e-03 : f32
    %3 = vector.broadcast %cst_1 : f32 to vector<64x1xf32>
    %4 = arith.mulf %2, %3 : vector<64x1xf32>
    %c0_2 = arith.constant 0 : index
    %c0_3 = arith.constant 0 : index
    %5 = vector.load %arg2[%c0_2, %c0_3] : memref<64x1xf32, #tpu.memory_space<vmem>>, vector<64x1xf32>
    tpu.vector_store %arg2[%c0_2, %c0_3], %4 {strides = array<i32>} : memref<64x1xf32, #tpu.memory_space<vmem>>, vector<64x1xf32>,
    return
  }
  func.func @transform_0(%arg0: i32) -> (i32, i32) {
    %c0_i32 = arith.constant 0 : i32
    %c0_i32_0 = arith.constant 0 : i32
    return %arg0, %c0_i32 : i32, i32
  }
  func.func @transform_1(%arg0: i32) -> (i32, i32) {
    %c0_i32 = arith.constant 0 : i32
    %c0_i32_0 = arith.constant 0 : i32
    return %arg0, %c0_i32 : i32, i32
  }
}

module attributes {stable_mosaic.version = 11 : i64} {
  func.func @_apply_kernel(%arg0: i32, %arg1: memref<16x512xf32, #tpu.memory_space<vmem>>, %arg2: memref<16x1xf32, #tpu.memory_space<vmem>>, %arg3: memref<16x512xf32, #tpu.memory_space<vmem>>) attributes {dimension_semantics = [#tpu.dimension_semantics<parallel>], iteration_bounds = array<i64: 1>, scalar_prefetch = 0 : i64, scratch_operands = 0 : i64, tpu.core_type = #tpu.core_type<tc>, window_params = [{transform_indices = @transform_0, window_bounds = array<i64: 16, 512>}, {pipeline_mode = #tpu.pipeline_mode<synchronous>, transform_indices = @transform_1, window_bounds = array<i64: 16, 1>}, {transform_indices = @transform_2, window_bounds = array<i64: 16, 512>}]} {
    %c0 = arith.constant 0 : index
    %c0_0 = arith.constant 0 : index
    %0 = vector.load %arg1[%c0, %c0_0] : memref<16x512xf32, #tpu.memory_space<vmem>>, vector<16x512xf32>
    %c0_1 = arith.constant 0 : index
    %c0_2 = arith.constant 0 : index
    %1 = vector.load %arg2[%c0_1, %c0_2] : memref<16x1xf32, #tpu.memory_space<vmem>>, vector<16x1xf32>
    %2 = vector.broadcast %1 : vector<16x1xf32> to vector<16x512xf32>
    %3 = arith.mulf %0, %2 : vector<16x512xf32>
    %c0_3 = arith.constant 0 : index
    %c0_4 = arith.constant 0 : index
    %4 = vector.load %arg3[%c0_3, %c0_4] : memref<16x512xf32, #tpu.memory_space<vmem>>, vector<16x512xf32>
    tpu.vector_store %arg3[%c0_3, %c0_4], %3 {strides = array<i32>} : memref<16x512xf32, #tpu.memory_space<vmem>>, vector<16x512xf32>,
    return
  }
  func.func @transform_0(%arg0: i32) -> (i32, i32) {
    %c0_i32 = arith.constant 0 : i32
    %c0_i32_0 = arith.constant 0 : i32
    return %c0_i32, %arg0 : i32, i32
  }
  func.func @transform_1(%arg0: i32) -> (i32, i32) {
    %c0_i32 = arith.constant 0 : i32
    %c0_i32_0 = arith.constant 0 : i32
    %c0_i32_1 = arith.constant 0 : i32
    return %c0_i32, %c0_i32_0 : i32, i32
  }
  func.func @transform_2(%arg0: i32) -> (i32, i32) {
    %c0_i32 = arith.constant 0 : i32
    %c0_i32_0 = arith.constant 0 : i32
    return %c0_i32, %arg0 : i32, i32
  }
}

module attributes {stable_mosaic.version = 11 : i64} {
  func.func @_rnn_mlp_kernel(%arg0: i32, %arg1: memref<4x16x1xf32, #tpu.memory_space<vmem>>, %arg2: memref<4x16x1xf32, #tpu.memory_space<vmem>>, %arg3: memref<3x1x1024xf32, #tpu.memory_space<vmem>>, %arg4: memref<256x1024xf32, #tpu.memory_space<vmem>>, %arg5: memref<256x512xf32, #tpu.memory_space<vmem>>, %arg6: memref<256x512xf32, #tpu.memory_space<vmem>>, %arg7: memref<128x512xf32, #tpu.memory_space<vmem>>, %arg8: memref<2x1x512xf32, #tpu.memory_space<vmem>>, %arg9: memref<4x8x256xf32, #tpu.memory_space<vmem>>, %arg10: memref<4x8x1xf32, #tpu.memory_space<vmem>>, %arg11: memref<16x1xf32, #tpu.memory_space<vmem>>, %arg12: memref<64x256xf32, #tpu.memory_space<vmem>>, %arg13: memref<64x512xf32, #tpu.memory_space<vmem>>) attributes {dimension_semantics = [#tpu.dimension_semantics<arbitrary>], iteration_bounds = array<i64: 1>, scalar_prefetch = 0 : i64, scratch_operands = 2 : i64, tpu.core_type = #tpu.core_type<tc>, window_params = [{pipeline_mode = #tpu.pipeline_mode<synchronous>, transform_indices = @transform_0, window_bounds = array<i64: 4, 16, 1>}, {pipeline_mode = #tpu.pipeline_mode<synchronous>, transform_indices = @transform_1, window_bounds = array<i64: 4, 16, 1>}, {pipeline_mode = #tpu.pipeline_mode<synchronous>, transform_indices = @transform_2, window_bounds = array<i64: 3, 1, 1024>}, {pipeline_mode = #tpu.pipeline_mode<synchronous>, transform_indices = @transform_3, window_bounds = array<i64: 256, 1024>}, {pipeline_mode = #tpu.pipeline_mode<synchronous>, transform_indices = @transform_4, window_bounds = array<i64: 256, 512>}, {pipeline_mode = #tpu.pipeline_mode<synchronous>, transform_indices = @transform_5, window_bounds = array<i64: 256, 512>}, {pipeline_mode = #tpu.pipeline_mode<synchronous>, transform_indices = @transform_6, window_bounds = array<i64: 128, 512>}, {pipeline_mode = #tpu.pipeline_mode<synchronous>, transform_indices = @transform_7, window_bounds = array<i64: 2, 1, 512>}, {pipeline_mode = #tpu.pipeline_mode<synchronous>, transform_indices = @transform_8, window_bounds = array<i64: 4, 8, 256>}, {pipeline_mode = #tpu.pipeline_mode<synchronous>, transform_indices = @transform_9, window_bounds = array<i64: 4, 8, 1>}, {pipeline_mode = #tpu.pipeline_mode<synchronous>, transform_indices = @transform_10, window_bounds = array<i64: 16, 1>}]} {
    %cst = arith.constant 0.000000e+00 : f32
    %0 = vector.broadcast %cst : f32 to vector<16x256xf32>
    %c0_i32 = arith.constant 0 : i32
    %1 = arith.index_cast %c0_i32 : i32 to index
    %c0 = arith.constant 0 : index
    %c0_0 = arith.constant 0 : index
    %2 = vector.load %arg1[%1, %c0, %c0_0] : memref<4x16x1xf32, #tpu.memory_space<vmem>>, vector<1x16x1xf32>
    %3 = vector.shape_cast %2 : vector<1x16x1xf32> to vector<16x1xf32>
    %4 = arith.index_cast %c0_i32 : i32 to index
    %c0_1 = arith.constant 0 : index
    %c0_2 = arith.constant 0 : index
    %5 = vector.load %arg2[%4, %c0_1, %c0_2] : memref<4x16x1xf32, #tpu.memory_space<vmem>>, vector<1x16x1xf32>
    %6 = vector.shape_cast %5 : vector<1x16x1xf32> to vector<16x1xf32>
    %c0_3 = arith.constant 0 : index
    %c0_4 = arith.constant 0 : index
    %c0_5 = arith.constant 0 : index
    %7 = vector.load %arg3[%c0_3, %c0_4, %c0_5] : memref<3x1x1024xf32, #tpu.memory_space<vmem>>, vector<1x1x1024xf32>
    %8 = vector.shape_cast %7 : vector<1x1x1024xf32> to vector<1x1024xf32>
    %9 = vector.broadcast %3 : vector<16x1xf32> to vector<16x1024xf32>
    %10 = vector.broadcast %8 : vector<1x1024xf32> to vector<16x1024xf32>
    %11 = arith.mulf %9, %10 : vector<16x1024xf32>
    %c1 = arith.constant 1 : index
    %c0_6 = arith.constant 0 : index
    %c0_7 = arith.constant 0 : index
    %12 = vector.load %arg3[%c1, %c0_6, %c0_7] : memref<3x1x1024xf32, #tpu.memory_space<vmem>>, vector<1x1x1024xf32>
    %13 = vector.shape_cast %12 : vector<1x1x1024xf32> to vector<1x1024xf32>
    %14 = vector.broadcast %6 : vector<16x1xf32> to vector<16x1024xf32>
    %15 = vector.broadcast %13 : vector<1x1024xf32> to vector<16x1024xf32>
    %16 = arith.mulf %14, %15 : vector<16x1024xf32>
    %17 = arith.addf %11, %16 : vector<16x1024xf32>
    %c2 = arith.constant 2 : index
    %c0_8 = arith.constant 0 : index
    %c0_9 = arith.constant 0 : index
    %18 = vector.load %arg3[%c2, %c0_8, %c0_9] : memref<3x1x1024xf32, #tpu.memory_space<vmem>>, vector<1x1x1024xf32>
    %19 = vector.shape_cast %18 : vector<1x1x1024xf32> to vector<1x1024xf32>
    %20 = vector.broadcast %19 : vector<1x1024xf32> to vector<16x1024xf32>
    %21 = arith.addf %17, %20 : vector<16x1024xf32>
    %c0_10 = arith.constant 0 : index
    %c0_11 = arith.constant 0 : index
    %22 = vector.load %arg4[%c0_10, %c0_11] : memref<256x1024xf32, #tpu.memory_space<vmem>>, vector<256x1024xf32>
    %cst_12 = arith.constant dense<0.000000e+00> : vector<16x1024xf32>
    %23 = tpu.matmul %0, %22, %cst_12 {dimension_numbers = #tpu.dot_dimension_numbers<[1], [0], [0], [1], [0, 0, 1, 1], [], []>} : vector<16x256xf32>, vector<256x1024xf32>, vector<16x1024xf32> -> vector<16x1024xf32>
    %24 = arith.addf %21, %23 : vector<16x1024xf32>
    %25 = vector.extract_strided_slice %24 {offsets = [0, 0], sizes = [16, 256], strides = [1, 1]} : vector<16x1024xf32> to vector<16x256xf32>
    %26 = arith.negf %25 : vector<16x256xf32>
    %27 = math.exp %26 : vector<16x256xf32>
    %cst_13 = arith.constant 1.000000e+00 : f32
    %28 = vector.broadcast %cst_13 : f32 to vector<16x256xf32>
    %29 = arith.addf %28, %27 : vector<16x256xf32>
    %30 = arith.divf %28, %29 : vector<16x256xf32>
    %31 = vector.extract_strided_slice %24 {offsets = [0, 256], sizes = [16, 256], strides = [1, 1]} : vector<16x1024xf32> to vector<16x256xf32>
    %32 = arith.negf %31 : vector<16x256xf32>
    %33 = math.exp %32 : vector<16x256xf32>
    %cst_14 = arith.constant 1.000000e+00 : f32
    %34 = vector.broadcast %cst_14 : f32 to vector<16x256xf32>
    %35 = arith.addf %34, %33 : vector<16x256xf32>
    %36 = arith.divf %34, %35 : vector<16x256xf32>
    %37 = vector.extract_strided_slice %24 {offsets = [0, 512], sizes = [16, 256], strides = [1, 1]} : vector<16x1024xf32> to vector<16x256xf32>
    %38 = math.tanh %37 : vector<16x256xf32>
    %39 = vector.extract_strided_slice %24 {offsets = [0, 768], sizes = [16, 256], strides = [1, 1]} : vector<16x1024xf32> to vector<16x256xf32>
    %40 = arith.negf %39 : vector<16x256xf32>
    %41 = math.exp %40 : vector<16x256xf32>
    %cst_15 = arith.constant 1.000000e+00 : f32
    %42 = vector.broadcast %cst_15 : f32 to vector<16x256xf32>
    %43 = arith.addf %42, %41 : vector<16x256xf32>
    %44 = arith.divf %42, %43 : vector<16x256xf32>
    %45 = arith.mulf %36, %0 : vector<16x256xf32>
    %46 = arith.mulf %30, %38 : vector<16x256xf32>
    %47 = arith.addf %45, %46 : vector<16x256xf32>
    %48 = math.tanh %47 : vector<16x256xf32>
    %49 = arith.mulf %44, %48 : vector<16x256xf32>
    %c16_i32 = arith.constant 16 : i32
    %50 = arith.muli %c0_i32, %c16_i32 : i32
    %51 = tpu.assume_multiple %50, 8 : i32
    %c3_i32 = arith.constant 3 : i32
    %52 = arith.subi %c3_i32, %c0_i32 : i32
    %c16_i32_16 = arith.constant 16 : i32
    %53 = arith.muli %52, %c16_i32_16 : i32
    %54 = tpu.assume_multiple %53, 8 : i32
    %55 = vector.extract_strided_slice %49 {offsets = [0, 0], sizes = [16, 128], strides = [1, 1]} : vector<16x256xf32> to vector<16x128xf32>
    %56 = arith.index_cast %51 : i32 to index
    %c0_17 = arith.constant 0 : index
    %57 = vector.load %arg12[%56, %c0_17] : memref<64x256xf32, #tpu.memory_space<vmem>>, vector<16x128xf32>
    tpu.vector_store %arg12[%56, %c0_17], %55 {strides = array<i32>} : memref<64x256xf32, #tpu.memory_space<vmem>>, vector<16x128xf32>,
    %58 = vector.extract_strided_slice %49 {offsets = [0, 128], sizes = [16, 128], strides = [1, 1]} : vector<16x256xf32> to vector<16x128xf32>
    %59 = arith.index_cast %54 : i32 to index
    %c128 = arith.constant 128 : index
    %60 = vector.load %arg12[%59, %c128] : memref<64x256xf32, #tpu.memory_space<vmem>>, vector<16x128xf32>
    tpu.vector_store %arg12[%59, %c128], %58 {strides = array<i32>} : memref<64x256xf32, #tpu.memory_space<vmem>>, vector<16x128xf32>,
    %c1_i32 = arith.constant 1 : i32
    %61 = arith.index_cast %c1_i32 : i32 to index
    %c0_18 = arith.constant 0 : index
    %c0_19 = arith.constant 0 : index
    %62 = vector.load %arg1[%61, %c0_18, %c0_19] : memref<4x16x1xf32, #tpu.memory_space<vmem>>, vector<1x16x1xf32>
    %63 = vector.shape_cast %62 : vector<1x16x1xf32> to vector<16x1xf32>
    %64 = arith.index_cast %c1_i32 : i32 to index
    %c0_20 = arith.constant 0 : index
    %c0_21 = arith.constant 0 : index
    %65 = vector.load %arg2[%64, %c0_20, %c0_21] : memref<4x16x1xf32, #tpu.memory_space<vmem>>, vector<1x16x1xf32>
    %66 = vector.shape_cast %65 : vector<1x16x1xf32> to vector<16x1xf32>
    %c0_22 = arith.constant 0 : index
    %c0_23 = arith.constant 0 : index
    %c0_24 = arith.constant 0 : index
    %67 = vector.load %arg3[%c0_22, %c0_23, %c0_24] : memref<3x1x1024xf32, #tpu.memory_space<vmem>>, vector<1x1x1024xf32>
    %68 = vector.shape_cast %67 : vector<1x1x1024xf32> to vector<1x1024xf32>
    %69 = vector.broadcast %63 : vector<16x1xf32> to vector<16x1024xf32>
    %70 = vector.broadcast %68 : vector<1x1024xf32> to vector<16x1024xf32>
    %71 = arith.mulf %69, %70 : vector<16x1024xf32>
    %c1_25 = arith.constant 1 : index
    %c0_26 = arith.constant 0 : index
    %c0_27 = arith.constant 0 : index
    %72 = vector.load %arg3[%c1_25, %c0_26, %c0_27] : memref<3x1x1024xf32, #tpu.memory_space<vmem>>, vector<1x1x1024xf32>
    %73 = vector.shape_cast %72 : vector<1x1x1024xf32> to vector<1x1024xf32>
    %74 = vector.broadcast %66 : vector<16x1xf32> to vector<16x1024xf32>
    %75 = vector.broadcast %73 : vector<1x1024xf32> to vector<16x1024xf32>
    %76 = arith.mulf %74, %75 : vector<16x1024xf32>
    %77 = arith.addf %71, %76 : vector<16x1024xf32>
    %c2_28 = arith.constant 2 : index
    %c0_29 = arith.constant 0 : index
    %c0_30 = arith.constant 0 : index
    %78 = vector.load %arg3[%c2_28, %c0_29, %c0_30] : memref<3x1x1024xf32, #tpu.memory_space<vmem>>, vector<1x1x1024xf32>
    %79 = vector.shape_cast %78 : vector<1x1x1024xf32> to vector<1x1024xf32>
    %80 = vector.broadcast %79 : vector<1x1024xf32> to vector<16x1024xf32>
    %81 = arith.addf %77, %80 : vector<16x1024xf32>
    %c0_31 = arith.constant 0 : index
    %c0_32 = arith.constant 0 : index
    %82 = vector.load %arg4[%c0_31, %c0_32] : memref<256x1024xf32, #tpu.memory_space<vmem>>, vector<256x1024xf32>
    %cst_33 = arith.constant dense<0.000000e+00> : vector<16x1024xf32>
    %83 = tpu.matmul %49, %82, %cst_33 {dimension_numbers = #tpu.dot_dimension_numbers<[1], [0], [0], [1], [0, 0, 1, 1], [], []>} : vector<16x256xf32>, vector<256x1024xf32>, vector<16x1024xf32> -> vector<16x1024xf32>
    %84 = arith.addf %81, %83 : vector<16x1024xf32>
    %85 = vector.extract_strided_slice %84 {offsets = [0, 0], sizes = [16, 256], strides = [1, 1]} : vector<16x1024xf32> to vector<16x256xf32>
    %86 = arith.negf %85 : vector<16x256xf32>
    %87 = math.exp %86 : vector<16x256xf32>
    %cst_34 = arith.constant 1.000000e+00 : f32
    %88 = vector.broadcast %cst_34 : f32 to vector<16x256xf32>
    %89 = arith.addf %88, %87 : vector<16x256xf32>
    %90 = arith.divf %88, %89 : vector<16x256xf32>
    %91 = vector.extract_strided_slice %84 {offsets = [0, 256], sizes = [16, 256], strides = [1, 1]} : vector<16x1024xf32> to vector<16x256xf32>
    %92 = arith.negf %91 : vector<16x256xf32>
    %93 = math.exp %92 : vector<16x256xf32>
    %cst_35 = arith.constant 1.000000e+00 : f32
    %94 = vector.broadcast %cst_35 : f32 to vector<16x256xf32>
    %95 = arith.addf %94, %93 : vector<16x256xf32>
    %96 = arith.divf %94, %95 : vector<16x256xf32>
    %97 = vector.extract_strided_slice %84 {offsets = [0, 512], sizes = [16, 256], strides = [1, 1]} : vector<16x1024xf32> to vector<16x256xf32>
    %98 = math.tanh %97 : vector<16x256xf32>
    %99 = vector.extract_strided_slice %84 {offsets = [0, 768], sizes = [16, 256], strides = [1, 1]} : vector<16x1024xf32> to vector<16x256xf32>
    %100 = arith.negf %99 : vector<16x256xf32>
    %101 = math.exp %100 : vector<16x256xf32>
    %cst_36 = arith.constant 1.000000e+00 : f32
    %102 = vector.broadcast %cst_36 : f32 to vector<16x256xf32>
    %103 = arith.addf %102, %101 : vector<16x256xf32>
    %104 = arith.divf %102, %103 : vector<16x256xf32>
    %105 = arith.mulf %96, %47 : vector<16x256xf32>
    %106 = arith.mulf %90, %98 : vector<16x256xf32>
    %107 = arith.addf %105, %106 : vector<16x256xf32>
    %108 = math.tanh %107 : vector<16x256xf32>
    %109 = arith.mulf %104, %108 : vector<16x256xf32>
    %c16_i32_37 = arith.constant 16 : i32
    %110 = arith.muli %c1_i32, %c16_i32_37 : i32
    %111 = tpu.assume_multiple %110, 8 : i32
    %c3_i32_38 = arith.constant 3 : i32
    %112 = arith.subi %c3_i32_38, %c1_i32 : i32
    %c16_i32_39 = arith.constant 16 : i32
    %113 = arith.muli %112, %c16_i32_39 : i32
    %114 = tpu.assume_multiple %113, 8 : i32
    %115 = vector.extract_strided_slice %109 {offsets = [0, 0], sizes = [16, 128], strides = [1, 1]} : vector<16x256xf32> to vector<16x128xf32>
    %116 = arith.index_cast %111 : i32 to index
    %c0_40 = arith.constant 0 : index
    %117 = vector.load %arg12[%116, %c0_40] : memref<64x256xf32, #tpu.memory_space<vmem>>, vector<16x128xf32>
    tpu.vector_store %arg12[%116, %c0_40], %115 {strides = array<i32>} : memref<64x256xf32, #tpu.memory_space<vmem>>, vector<16x128xf32>,
    %118 = vector.extract_strided_slice %109 {offsets = [0, 128], sizes = [16, 128], strides = [1, 1]} : vector<16x256xf32> to vector<16x128xf32>
    %119 = arith.index_cast %114 : i32 to index
    %c128_41 = arith.constant 128 : index
    %120 = vector.load %arg12[%119, %c128_41] : memref<64x256xf32, #tpu.memory_space<vmem>>, vector<16x128xf32>
    tpu.vector_store %arg12[%119, %c128_41], %118 {strides = array<i32>} : memref<64x256xf32, #tpu.memory_space<vmem>>, vector<16x128xf32>,
    %c2_i32 = arith.constant 2 : i32
    %121 = arith.index_cast %c2_i32 : i32 to index
    %c0_42 = arith.constant 0 : index
    %c0_43 = arith.constant 0 : index
    %122 = vector.load %arg1[%121, %c0_42, %c0_43] : memref<4x16x1xf32, #tpu.memory_space<vmem>>, vector<1x16x1xf32>
    %123 = vector.shape_cast %122 : vector<1x16x1xf32> to vector<16x1xf32>
    %124 = arith.index_cast %c2_i32 : i32 to index
    %c0_44 = arith.constant 0 : index
    %c0_45 = arith.constant 0 : index
    %125 = vector.load %arg2[%124, %c0_44, %c0_45] : memref<4x16x1xf32, #tpu.memory_space<vmem>>, vector<1x16x1xf32>
    %126 = vector.shape_cast %125 : vector<1x16x1xf32> to vector<16x1xf32>
    %c0_46 = arith.constant 0 : index
    %c0_47 = arith.constant 0 : index
    %c0_48 = arith.constant 0 : index
    %127 = vector.load %arg3[%c0_46, %c0_47, %c0_48] : memref<3x1x1024xf32, #tpu.memory_space<vmem>>, vector<1x1x1024xf32>
    %128 = vector.shape_cast %127 : vector<1x1x1024xf32> to vector<1x1024xf32>
    %129 = vector.broadcast %123 : vector<16x1xf32> to vector<16x1024xf32>
    %130 = vector.broadcast %128 : vector<1x1024xf32> to vector<16x1024xf32>
    %131 = arith.mulf %129, %130 : vector<16x1024xf32>
    %c1_49 = arith.constant 1 : index
    %c0_50 = arith.constant 0 : index
    %c0_51 = arith.constant 0 : index
    %132 = vector.load %arg3[%c1_49, %c0_50, %c0_51] : memref<3x1x1024xf32, #tpu.memory_space<vmem>>, vector<1x1x1024xf32>
    %133 = vector.shape_cast %132 : vector<1x1x1024xf32> to vector<1x1024xf32>
    %134 = vector.broadcast %126 : vector<16x1xf32> to vector<16x1024xf32>
    %135 = vector.broadcast %133 : vector<1x1024xf32> to vector<16x1024xf32>
    %136 = arith.mulf %134, %135 : vector<16x1024xf32>
    %137 = arith.addf %131, %136 : vector<16x1024xf32>
    %c2_52 = arith.constant 2 : index
    %c0_53 = arith.constant 0 : index
    %c0_54 = arith.constant 0 : index
    %138 = vector.load %arg3[%c2_52, %c0_53, %c0_54] : memref<3x1x1024xf32, #tpu.memory_space<vmem>>, vector<1x1x1024xf32>
    %139 = vector.shape_cast %138 : vector<1x1x1024xf32> to vector<1x1024xf32>
    %140 = vector.broadcast %139 : vector<1x1024xf32> to vector<16x1024xf32>
    %141 = arith.addf %137, %140 : vector<16x1024xf32>
    %c0_55 = arith.constant 0 : index
    %c0_56 = arith.constant 0 : index
    %142 = vector.load %arg4[%c0_55, %c0_56] : memref<256x1024xf32, #tpu.memory_space<vmem>>, vector<256x1024xf32>
    %cst_57 = arith.constant dense<0.000000e+00> : vector<16x1024xf32>
    %143 = tpu.matmul %109, %142, %cst_57 {dimension_numbers = #tpu.dot_dimension_numbers<[1], [0], [0], [1], [0, 0, 1, 1], [], []>} : vector<16x256xf32>, vector<256x1024xf32>, vector<16x1024xf32> -> vector<16x1024xf32>
    %144 = arith.addf %141, %143 : vector<16x1024xf32>
    %145 = vector.extract_strided_slice %144 {offsets = [0, 0], sizes = [16, 256], strides = [1, 1]} : vector<16x1024xf32> to vector<16x256xf32>
    %146 = arith.negf %145 : vector<16x256xf32>
    %147 = math.exp %146 : vector<16x256xf32>
    %cst_58 = arith.constant 1.000000e+00 : f32
    %148 = vector.broadcast %cst_58 : f32 to vector<16x256xf32>
    %149 = arith.addf %148, %147 : vector<16x256xf32>
    %150 = arith.divf %148, %149 : vector<16x256xf32>
    %151 = vector.extract_strided_slice %144 {offsets = [0, 256], sizes = [16, 256], strides = [1, 1]} : vector<16x1024xf32> to vector<16x256xf32>
    %152 = arith.negf %151 : vector<16x256xf32>
    %153 = math.exp %152 : vector<16x256xf32>
    %cst_59 = arith.constant 1.000000e+00 : f32
    %154 = vector.broadcast %cst_59 : f32 to vector<16x256xf32>
    %155 = arith.addf %154, %153 : vector<16x256xf32>
    %156 = arith.divf %154, %155 : vector<16x256xf32>
    %157 = vector.extract_strided_slice %144 {offsets = [0, 512], sizes = [16, 256], strides = [1, 1]} : vector<16x1024xf32> to vector<16x256xf32>
    %158 = math.tanh %157 : vector<16x256xf32>
    %159 = vector.extract_strided_slice %144 {offsets = [0, 768], sizes = [16, 256], strides = [1, 1]} : vector<16x1024xf32> to vector<16x256xf32>
    %160 = arith.negf %159 : vector<16x256xf32>
    %161 = math.exp %160 : vector<16x256xf32>
    %cst_60 = arith.constant 1.000000e+00 : f32
    %162 = vector.broadcast %cst_60 : f32 to vector<16x256xf32>
    %163 = arith.addf %162, %161 : vector<16x256xf32>
    %164 = arith.divf %162, %163 : vector<16x256xf32>
    %165 = arith.mulf %156, %107 : vector<16x256xf32>
    %166 = arith.mulf %150, %158 : vector<16x256xf32>
    %167 = arith.addf %165, %166 : vector<16x256xf32>
    %168 = math.tanh %167 : vector<16x256xf32>
    %169 = arith.mulf %164, %168 : vector<16x256xf32>
    %c16_i32_61 = arith.constant 16 : i32
    %170 = arith.muli %c2_i32, %c16_i32_61 : i32
    %171 = tpu.assume_multiple %170, 8 : i32
    %c3_i32_62 = arith.constant 3 : i32
    %172 = arith.subi %c3_i32_62, %c2_i32 : i32
    %c16_i32_63 = arith.constant 16 : i32
    %173 = arith.muli %172, %c16_i32_63 : i32
    %174 = tpu.assume_multiple %173, 8 : i32
    %175 = vector.extract_strided_slice %169 {offsets = [0, 0], sizes = [16, 128], strides = [1, 1]} : vector<16x256xf32> to vector<16x128xf32>
    %176 = arith.index_cast %171 : i32 to index
    %c0_64 = arith.constant 0 : index
    %177 = vector.load %arg12[%176, %c0_64] : memref<64x256xf32, #tpu.memory_space<vmem>>, vector<16x128xf32>
    tpu.vector_store %arg12[%176, %c0_64], %175 {strides = array<i32>} : memref<64x256xf32, #tpu.memory_space<vmem>>, vector<16x128xf32>,
    %178 = vector.extract_strided_slice %169 {offsets = [0, 128], sizes = [16, 128], strides = [1, 1]} : vector<16x256xf32> to vector<16x128xf32>
    %179 = arith.index_cast %174 : i32 to index
    %c128_65 = arith.constant 128 : index
    %180 = vector.load %arg12[%179, %c128_65] : memref<64x256xf32, #tpu.memory_space<vmem>>, vector<16x128xf32>
    tpu.vector_store %arg12[%179, %c128_65], %178 {strides = array<i32>} : memref<64x256xf32, #tpu.memory_space<vmem>>, vector<16x128xf32>,
    %c3_i32_66 = arith.constant 3 : i32
    %181 = arith.index_cast %c3_i32_66 : i32 to index
    %c0_67 = arith.constant 0 : index
    %c0_68 = arith.constant 0 : index
    %182 = vector.load %arg1[%181, %c0_67, %c0_68] : memref<4x16x1xf32, #tpu.memory_space<vmem>>, vector<1x16x1xf32>
    %183 = vector.shape_cast %182 : vector<1x16x1xf32> to vector<16x1xf32>
    %184 = arith.index_cast %c3_i32_66 : i32 to index
    %c0_69 = arith.constant 0 : index
    %c0_70 = arith.constant 0 : index
    %185 = vector.load %arg2[%184, %c0_69, %c0_70] : memref<4x16x1xf32, #tpu.memory_space<vmem>>, vector<1x16x1xf32>
    %186 = vector.shape_cast %185 : vector<1x16x1xf32> to vector<16x1xf32>
    %c0_71 = arith.constant 0 : index
    %c0_72 = arith.constant 0 : index
    %c0_73 = arith.constant 0 : index
    %187 = vector.load %arg3[%c0_71, %c0_72, %c0_73] : memref<3x1x1024xf32, #tpu.memory_space<vmem>>, vector<1x1x1024xf32>
    %188 = vector.shape_cast %187 : vector<1x1x1024xf32> to vector<1x1024xf32>
    %189 = vector.broadcast %183 : vector<16x1xf32> to vector<16x1024xf32>
    %190 = vector.broadcast %188 : vector<1x1024xf32> to vector<16x1024xf32>
    %191 = arith.mulf %189, %190 : vector<16x1024xf32>
    %c1_74 = arith.constant 1 : index
    %c0_75 = arith.constant 0 : index
    %c0_76 = arith.constant 0 : index
    %192 = vector.load %arg3[%c1_74, %c0_75, %c0_76] : memref<3x1x1024xf32, #tpu.memory_space<vmem>>, vector<1x1x1024xf32>
    %193 = vector.shape_cast %192 : vector<1x1x1024xf32> to vector<1x1024xf32>
    %194 = vector.broadcast %186 : vector<16x1xf32> to vector<16x1024xf32>
    %195 = vector.broadcast %193 : vector<1x1024xf32> to vector<16x1024xf32>
    %196 = arith.mulf %194, %195 : vector<16x1024xf32>
    %197 = arith.addf %191, %196 : vector<16x1024xf32>
    %c2_77 = arith.constant 2 : index
    %c0_78 = arith.constant 0 : index
    %c0_79 = arith.constant 0 : index
    %198 = vector.load %arg3[%c2_77, %c0_78, %c0_79] : memref<3x1x1024xf32, #tpu.memory_space<vmem>>, vector<1x1x1024xf32>
    %199 = vector.shape_cast %198 : vector<1x1x1024xf32> to vector<1x1024xf32>
    %200 = vector.broadcast %199 : vector<1x1024xf32> to vector<16x1024xf32>
    %201 = arith.addf %197, %200 : vector<16x1024xf32>
    %c0_80 = arith.constant 0 : index
    %c0_81 = arith.constant 0 : index
    %202 = vector.load %arg4[%c0_80, %c0_81] : memref<256x1024xf32, #tpu.memory_space<vmem>>, vector<256x1024xf32>
    %cst_82 = arith.constant dense<0.000000e+00> : vector<16x1024xf32>
    %203 = tpu.matmul %169, %202, %cst_82 {dimension_numbers = #tpu.dot_dimension_numbers<[1], [0], [0], [1], [0, 0, 1, 1], [], []>} : vector<16x256xf32>, vector<256x1024xf32>, vector<16x1024xf32> -> vector<16x1024xf32>
    %204 = arith.addf %201, %203 : vector<16x1024xf32>
    %205 = vector.extract_strided_slice %204 {offsets = [0, 0], sizes = [16, 256], strides = [1, 1]} : vector<16x1024xf32> to vector<16x256xf32>
    %206 = arith.negf %205 : vector<16x256xf32>
    %207 = math.exp %206 : vector<16x256xf32>
    %cst_83 = arith.constant 1.000000e+00 : f32
    %208 = vector.broadcast %cst_83 : f32 to vector<16x256xf32>
    %209 = arith.addf %208, %207 : vector<16x256xf32>
    %210 = arith.divf %208, %209 : vector<16x256xf32>
    %211 = vector.extract_strided_slice %204 {offsets = [0, 256], sizes = [16, 256], strides = [1, 1]} : vector<16x1024xf32> to vector<16x256xf32>
    %212 = arith.negf %211 : vector<16x256xf32>
    %213 = math.exp %212 : vector<16x256xf32>
    %cst_84 = arith.constant 1.000000e+00 : f32
    %214 = vector.broadcast %cst_84 : f32 to vector<16x256xf32>
    %215 = arith.addf %214, %213 : vector<16x256xf32>
    %216 = arith.divf %214, %215 : vector<16x256xf32>
    %217 = vector.extract_strided_slice %204 {offsets = [0, 512], sizes = [16, 256], strides = [1, 1]} : vector<16x1024xf32> to vector<16x256xf32>
    %218 = math.tanh %217 : vector<16x256xf32>
    %219 = vector.extract_strided_slice %204 {offsets = [0, 768], sizes = [16, 256], strides = [1, 1]} : vector<16x1024xf32> to vector<16x256xf32>
    %220 = arith.negf %219 : vector<16x256xf32>
    %221 = math.exp %220 : vector<16x256xf32>
    %cst_85 = arith.constant 1.000000e+00 : f32
    %222 = vector.broadcast %cst_85 : f32 to vector<16x256xf32>
    %223 = arith.addf %222, %221 : vector<16x256xf32>
    %224 = arith.divf %222, %223 : vector<16x256xf32>
    %225 = arith.mulf %216, %167 : vector<16x256xf32>
    %226 = arith.mulf %210, %218 : vector<16x256xf32>
    %227 = arith.addf %225, %226 : vector<16x256xf32>
    %228 = math.tanh %227 : vector<16x256xf32>
    %229 = arith.mulf %224, %228 : vector<16x256xf32>
    %c16_i32_86 = arith.constant 16 : i32
    %230 = arith.muli %c3_i32_66, %c16_i32_86 : i32
    %231 = tpu.assume_multiple %230, 8 : i32
    %c3_i32_87 = arith.constant 3 : i32
    %232 = arith.subi %c3_i32_87, %c3_i32_66 : i32
    %c16_i32_88 = arith.constant 16 : i32
    %233 = arith.muli %232, %c16_i32_88 : i32
    %234 = tpu.assume_multiple %233, 8 : i32
    %235 = vector.extract_strided_slice %229 {offsets = [0, 0], sizes = [16, 128], strides = [1, 1]} : vector<16x256xf32> to vector<16x128xf32>
    %236 = arith.index_cast %231 : i32 to index
    %c0_89 = arith.constant 0 : index
    %237 = vector.load %arg12[%236, %c0_89] : memref<64x256xf32, #tpu.memory_space<vmem>>, vector<16x128xf32>
    tpu.vector_store %arg12[%236, %c0_89], %235 {strides = array<i32>} : memref<64x256xf32, #tpu.memory_space<vmem>>, vector<16x128xf32>,
    %238 = vector.extract_strided_slice %229 {offsets = [0, 128], sizes = [16, 128], strides = [1, 1]} : vector<16x256xf32> to vector<16x128xf32>
    %239 = arith.index_cast %234 : i32 to index
    %c128_90 = arith.constant 128 : index
    %240 = vector.load %arg12[%239, %c128_90] : memref<64x256xf32, #tpu.memory_space<vmem>>, vector<16x128xf32>
    tpu.vector_store %arg12[%239, %c128_90], %238 {strides = array<i32>} : memref<64x256xf32, #tpu.memory_space<vmem>>, vector<16x128xf32>,
    %c4_i32 = arith.constant 4 : i32
    %c0_91 = arith.constant 0 : index
    %c0_92 = arith.constant 0 : index
    %241 = vector.load %arg12[%c0_91, %c0_92] : memref<64x256xf32, #tpu.memory_space<vmem>>, vector<64x256xf32>
    %c0_93 = arith.constant 0 : index
    %c0_94 = arith.constant 0 : index
    %242 = vector.load %arg5[%c0_93, %c0_94] : memref<256x512xf32, #tpu.memory_space<vmem>>, vector<256x512xf32>
    %cst_95 = arith.constant dense<0.000000e+00> : vector<64x512xf32>
    %243 = tpu.matmul %241, %242, %cst_95 {dimension_numbers = #tpu.dot_dimension_numbers<[1], [0], [0], [1], [0, 0, 1, 1], [], []>} : vector<64x256xf32>, vector<256x512xf32>, vector<64x512xf32> -> vector<64x512xf32>
    %c0_96 = arith.constant 0 : index
    %c0_97 = arith.constant 0 : index
    %244 = vector.load %arg13[%c0_96, %c0_97] : memref<64x512xf32, #tpu.memory_space<vmem>>, vector<64x512xf32>
    tpu.vector_store %arg13[%c0_96, %c0_97], %243 {strides = array<i32>} : memref<64x512xf32, #tpu.memory_space<vmem>>, vector<64x512xf32>,
    %cst_98 = arith.constant 0.000000e+00 : f32
    %245 = vector.broadcast %cst_98 : f32 to vector<16x128xf32>
    %c0_i32_99 = arith.constant 0 : i32
    %c16_i32_100 = arith.constant 16 : i32
    %246 = arith.muli %c0_i32_99, %c16_i32_100 : i32
    %247 = tpu.assume_multiple %246, 8 : i32
    %248 = arith.index_cast %247 : i32 to index
    %c0_101 = arith.constant 0 : index
    %249 = vector.load %arg13[%248, %c0_101] : memref<64x512xf32, #tpu.memory_space<vmem>>, vector<16x512xf32>
    %c0_102 = arith.constant 0 : index
    %c0_103 = arith.constant 0 : index
    %c0_104 = arith.constant 0 : index
    %250 = vector.load %arg8[%c0_102, %c0_103, %c0_104] : memref<2x1x512xf32, #tpu.memory_space<vmem>>, vector<1x1x512xf32>
    %251 = vector.shape_cast %250 : vector<1x1x512xf32> to vector<1x512xf32>
    %252 = vector.broadcast %251 : vector<1x512xf32> to vector<16x512xf32>
    %253 = arith.addf %249, %252 : vector<16x512xf32>
    %c0_105 = arith.constant 0 : index
    %c0_106 = arith.constant 0 : index
    %254 = vector.load %arg7[%c0_105, %c0_106] : memref<128x512xf32, #tpu.memory_space<vmem>>, vector<128x512xf32>
    %cst_107 = arith.constant dense<0.000000e+00> : vector<16x512xf32>
    %255 = tpu.matmul %245, %254, %cst_107 {dimension_numbers = #tpu.dot_dimension_numbers<[1], [0], [0], [1], [0, 0, 1, 1], [], []>} : vector<16x128xf32>, vector<128x512xf32>, vector<16x512xf32> -> vector<16x512xf32>
    %256 = arith.addf %253, %255 : vector<16x512xf32>
    %257 = vector.extract_strided_slice %256 {offsets = [0, 0], sizes = [16, 128], strides = [1, 1]} : vector<16x512xf32> to vector<16x128xf32>
    %258 = arith.negf %257 : vector<16x128xf32>
    %259 = math.exp %258 : vector<16x128xf32>
    %cst_108 = arith.constant 1.000000e+00 : f32
    %260 = vector.broadcast %cst_108 : f32 to vector<16x128xf32>
    %261 = arith.addf %260, %259 : vector<16x128xf32>
    %262 = arith.divf %260, %261 : vector<16x128xf32>
    %263 = vector.extract_strided_slice %256 {offsets = [0, 128], sizes = [16, 128], strides = [1, 1]} : vector<16x512xf32> to vector<16x128xf32>
    %264 = arith.negf %263 : vector<16x128xf32>
    %265 = math.exp %264 : vector<16x128xf32>
    %cst_109 = arith.constant 1.000000e+00 : f32
    %266 = vector.broadcast %cst_109 : f32 to vector<16x128xf32>
    %267 = arith.addf %266, %265 : vector<16x128xf32>
    %268 = arith.divf %266, %267 : vector<16x128xf32>
    %269 = vector.extract_strided_slice %256 {offsets = [0, 256], sizes = [16, 128], strides = [1, 1]} : vector<16x512xf32> to vector<16x128xf32>
    %270 = math.tanh %269 : vector<16x128xf32>
    %271 = vector.extract_strided_slice %256 {offsets = [0, 384], sizes = [16, 128], strides = [1, 1]} : vector<16x512xf32> to vector<16x128xf32>
    %272 = arith.negf %271 : vector<16x128xf32>
    %273 = math.exp %272 : vector<16x128xf32>
    %cst_110 = arith.constant 1.000000e+00 : f32
    %274 = vector.broadcast %cst_110 : f32 to vector<16x128xf32>
    %275 = arith.addf %274, %273 : vector<16x128xf32>
    %276 = arith.divf %274, %275 : vector<16x128xf32>
    %277 = arith.mulf %268, %245 : vector<16x128xf32>
    %278 = arith.mulf %262, %270 : vector<16x128xf32>
    %279 = arith.addf %277, %278 : vector<16x128xf32>
    %280 = math.tanh %279 : vector<16x128xf32>
    %281 = arith.mulf %276, %280 : vector<16x128xf32>
    %c1_i32_111 = arith.constant 1 : i32
    %c16_i32_112 = arith.constant 16 : i32
    %282 = arith.muli %c1_i32_111, %c16_i32_112 : i32
    %283 = tpu.assume_multiple %282, 8 : i32
    %284 = arith.index_cast %283 : i32 to index
    %c0_113 = arith.constant 0 : index
    %285 = vector.load %arg13[%284, %c0_113] : memref<64x512xf32, #tpu.memory_space<vmem>>, vector<16x512xf32>
    %c0_114 = arith.constant 0 : index
    %c0_115 = arith.constant 0 : index
    %c0_116 = arith.constant 0 : index
    %286 = vector.load %arg8[%c0_114, %c0_115, %c0_116] : memref<2x1x512xf32, #tpu.memory_space<vmem>>, vector<1x1x512xf32>
    %287 = vector.shape_cast %286 : vector<1x1x512xf32> to vector<1x512xf32>
    %288 = vector.broadcast %287 : vector<1x512xf32> to vector<16x512xf32>
    %289 = arith.addf %285, %288 : vector<16x512xf32>
    %c0_117 = arith.constant 0 : index
    %c0_118 = arith.constant 0 : index
    %290 = vector.load %arg7[%c0_117, %c0_118] : memref<128x512xf32, #tpu.memory_space<vmem>>, vector<128x512xf32>
    %cst_119 = arith.constant dense<0.000000e+00> : vector<16x512xf32>
    %291 = tpu.matmul %281, %290, %cst_119 {dimension_numbers = #tpu.dot_dimension_numbers<[1], [0], [0], [1], [0, 0, 1, 1], [], []>} : vector<16x128xf32>, vector<128x512xf32>, vector<16x512xf32> -> vector<16x512xf32>
    %292 = arith.addf %289, %291 : vector<16x512xf32>
    %293 = vector.extract_strided_slice %292 {offsets = [0, 0], sizes = [16, 128], strides = [1, 1]} : vector<16x512xf32> to vector<16x128xf32>
    %294 = arith.negf %293 : vector<16x128xf32>
    %295 = math.exp %294 : vector<16x128xf32>
    %cst_120 = arith.constant 1.000000e+00 : f32
    %296 = vector.broadcast %cst_120 : f32 to vector<16x128xf32>
    %297 = arith.addf %296, %295 : vector<16x128xf32>
    %298 = arith.divf %296, %297 : vector<16x128xf32>
    %299 = vector.extract_strided_slice %292 {offsets = [0, 128], sizes = [16, 128], strides = [1, 1]} : vector<16x512xf32> to vector<16x128xf32>
    %300 = arith.negf %299 : vector<16x128xf32>
    %301 = math.exp %300 : vector<16x128xf32>
    %cst_121 = arith.constant 1.000000e+00 : f32
    %302 = vector.broadcast %cst_121 : f32 to vector<16x128xf32>
    %303 = arith.addf %302, %301 : vector<16x128xf32>
    %304 = arith.divf %302, %303 : vector<16x128xf32>
    %305 = vector.extract_strided_slice %292 {offsets = [0, 256], sizes = [16, 128], strides = [1, 1]} : vector<16x512xf32> to vector<16x128xf32>
    %306 = math.tanh %305 : vector<16x128xf32>
    %307 = vector.extract_strided_slice %292 {offsets = [0, 384], sizes = [16, 128], strides = [1, 1]} : vector<16x512xf32> to vector<16x128xf32>
    %308 = arith.negf %307 : vector<16x128xf32>
    %309 = math.exp %308 : vector<16x128xf32>
    %cst_122 = arith.constant 1.000000e+00 : f32
    %310 = vector.broadcast %cst_122 : f32 to vector<16x128xf32>
    %311 = arith.addf %310, %309 : vector<16x128xf32>
    %312 = arith.divf %310, %311 : vector<16x128xf32>
    %313 = arith.mulf %304, %279 : vector<16x128xf32>
    %314 = arith.mulf %298, %306 : vector<16x128xf32>
    %315 = arith.addf %313, %314 : vector<16x128xf32>
    %316 = math.tanh %315 : vector<16x128xf32>
    %317 = arith.mulf %312, %316 : vector<16x128xf32>
    %c2_i32_123 = arith.constant 2 : i32
    %c16_i32_124 = arith.constant 16 : i32
    %318 = arith.muli %c2_i32_123, %c16_i32_124 : i32
    %319 = tpu.assume_multiple %318, 8 : i32
    %320 = arith.index_cast %319 : i32 to index
    %c0_125 = arith.constant 0 : index
    %321 = vector.load %arg13[%320, %c0_125] : memref<64x512xf32, #tpu.memory_space<vmem>>, vector<16x512xf32>
    %c0_126 = arith.constant 0 : index
    %c0_127 = arith.constant 0 : index
    %c0_128 = arith.constant 0 : index
    %322 = vector.load %arg8[%c0_126, %c0_127, %c0_128] : memref<2x1x512xf32, #tpu.memory_space<vmem>>, vector<1x1x512xf32>
    %323 = vector.shape_cast %322 : vector<1x1x512xf32> to vector<1x512xf32>
    %324 = vector.broadcast %323 : vector<1x512xf32> to vector<16x512xf32>
    %325 = arith.addf %321, %324 : vector<16x512xf32>
    %c0_129 = arith.constant 0 : index
    %c0_130 = arith.constant 0 : index
    %326 = vector.load %arg7[%c0_129, %c0_130] : memref<128x512xf32, #tpu.memory_space<vmem>>, vector<128x512xf32>
    %cst_131 = arith.constant dense<0.000000e+00> : vector<16x512xf32>
    %327 = tpu.matmul %317, %326, %cst_131 {dimension_numbers = #tpu.dot_dimension_numbers<[1], [0], [0], [1], [0, 0, 1, 1], [], []>} : vector<16x128xf32>, vector<128x512xf32>, vector<16x512xf32> -> vector<16x512xf32>
    %328 = arith.addf %325, %327 : vector<16x512xf32>
    %329 = vector.extract_strided_slice %328 {offsets = [0, 0], sizes = [16, 128], strides = [1, 1]} : vector<16x512xf32> to vector<16x128xf32>
    %330 = arith.negf %329 : vector<16x128xf32>
    %331 = math.exp %330 : vector<16x128xf32>
    %cst_132 = arith.constant 1.000000e+00 : f32
    %332 = vector.broadcast %cst_132 : f32 to vector<16x128xf32>
    %333 = arith.addf %332, %331 : vector<16x128xf32>
    %334 = arith.divf %332, %333 : vector<16x128xf32>
    %335 = vector.extract_strided_slice %328 {offsets = [0, 128], sizes = [16, 128], strides = [1, 1]} : vector<16x512xf32> to vector<16x128xf32>
    %336 = arith.negf %335 : vector<16x128xf32>
    %337 = math.exp %336 : vector<16x128xf32>
    %cst_133 = arith.constant 1.000000e+00 : f32
    %338 = vector.broadcast %cst_133 : f32 to vector<16x128xf32>
    %339 = arith.addf %338, %337 : vector<16x128xf32>
    %340 = arith.divf %338, %339 : vector<16x128xf32>
    %341 = vector.extract_strided_slice %328 {offsets = [0, 256], sizes = [16, 128], strides = [1, 1]} : vector<16x512xf32> to vector<16x128xf32>
    %342 = math.tanh %341 : vector<16x128xf32>
    %343 = vector.extract_strided_slice %328 {offsets = [0, 384], sizes = [16, 128], strides = [1, 1]} : vector<16x512xf32> to vector<16x128xf32>
    %344 = arith.negf %343 : vector<16x128xf32>
    %345 = math.exp %344 : vector<16x128xf32>
    %cst_134 = arith.constant 1.000000e+00 : f32
    %346 = vector.broadcast %cst_134 : f32 to vector<16x128xf32>
    %347 = arith.addf %346, %345 : vector<16x128xf32>
    %348 = arith.divf %346, %347 : vector<16x128xf32>
    %349 = arith.mulf %340, %315 : vector<16x128xf32>
    %350 = arith.mulf %334, %342 : vector<16x128xf32>
    %351 = arith.addf %349, %350 : vector<16x128xf32>
    %352 = math.tanh %351 : vector<16x128xf32>
    %353 = arith.mulf %348, %352 : vector<16x128xf32>
    %c3_i32_135 = arith.constant 3 : i32
    %c16_i32_136 = arith.constant 16 : i32
    %354 = arith.muli %c3_i32_135, %c16_i32_136 : i32
    %355 = tpu.assume_multiple %354, 8 : i32
    %356 = arith.index_cast %355 : i32 to index
    %c0_137 = arith.constant 0 : index
    %357 = vector.load %arg13[%356, %c0_137] : memref<64x512xf32, #tpu.memory_space<vmem>>, vector<16x512xf32>
    %c0_138 = arith.constant 0 : index
    %c0_139 = arith.constant 0 : index
    %c0_140 = arith.constant 0 : index
    %358 = vector.load %arg8[%c0_138, %c0_139, %c0_140] : memref<2x1x512xf32, #tpu.memory_space<vmem>>, vector<1x1x512xf32>
    %359 = vector.shape_cast %358 : vector<1x1x512xf32> to vector<1x512xf32>
    %360 = vector.broadcast %359 : vector<1x512xf32> to vector<16x512xf32>
    %361 = arith.addf %357, %360 : vector<16x512xf32>
    %c0_141 = arith.constant 0 : index
    %c0_142 = arith.constant 0 : index
    %362 = vector.load %arg7[%c0_141, %c0_142] : memref<128x512xf32, #tpu.memory_space<vmem>>, vector<128x512xf32>
    %cst_143 = arith.constant dense<0.000000e+00> : vector<16x512xf32>
    %363 = tpu.matmul %353, %362, %cst_143 {dimension_numbers = #tpu.dot_dimension_numbers<[1], [0], [0], [1], [0, 0, 1, 1], [], []>} : vector<16x128xf32>, vector<128x512xf32>, vector<16x512xf32> -> vector<16x512xf32>
    %364 = arith.addf %361, %363 : vector<16x512xf32>
    %365 = vector.extract_strided_slice %364 {offsets = [0, 0], sizes = [16, 128], strides = [1, 1]} : vector<16x512xf32> to vector<16x128xf32>
    %366 = arith.negf %365 : vector<16x128xf32>
    %367 = math.exp %366 : vector<16x128xf32>
    %cst_144 = arith.constant 1.000000e+00 : f32
    %368 = vector.broadcast %cst_144 : f32 to vector<16x128xf32>
    %369 = arith.addf %368, %367 : vector<16x128xf32>
    %370 = arith.divf %368, %369 : vector<16x128xf32>
    %371 = vector.extract_strided_slice %364 {offsets = [0, 128], sizes = [16, 128], strides = [1, 1]} : vector<16x512xf32> to vector<16x128xf32>
    %372 = arith.negf %371 : vector<16x128xf32>
    %373 = math.exp %372 : vector<16x128xf32>
    %cst_145 = arith.constant 1.000000e+00 : f32
    %374 = vector.broadcast %cst_145 : f32 to vector<16x128xf32>
    %375 = arith.addf %374, %373 : vector<16x128xf32>
    %376 = arith.divf %374, %375 : vector<16x128xf32>
    %377 = vector.extract_strided_slice %364 {offsets = [0, 256], sizes = [16, 128], strides = [1, 1]} : vector<16x512xf32> to vector<16x128xf32>
    %378 = math.tanh %377 : vector<16x128xf32>
    %379 = vector.extract_strided_slice %364 {offsets = [0, 384], sizes = [16, 128], strides = [1, 1]} : vector<16x512xf32> to vector<16x128xf32>
    %380 = arith.negf %379 : vector<16x128xf32>
    %381 = math.exp %380 : vector<16x128xf32>
    %cst_146 = arith.constant 1.000000e+00 : f32
    %382 = vector.broadcast %cst_146 : f32 to vector<16x128xf32>
    %383 = arith.addf %382, %381 : vector<16x128xf32>
    %384 = arith.divf %382, %383 : vector<16x128xf32>
    %385 = arith.mulf %376, %351 : vector<16x128xf32>
    %386 = arith.mulf %370, %378 : vector<16x128xf32>
    %387 = arith.addf %385, %386 : vector<16x128xf32>
    %388 = math.tanh %387 : vector<16x128xf32>
    %389 = arith.mulf %384, %388 : vector<16x128xf32>
    %c4_i32_147 = arith.constant 4 : i32
    %c48 = arith.constant 48 : index
    %c0_148 = arith.constant 0 : index
    %390 = vector.load %arg12[%c48, %c0_148] : memref<64x256xf32, #tpu.memory_space<vmem>>, vector<16x256xf32>
    %c0_149 = arith.constant 0 : index
    %c0_150 = arith.constant 0 : index
    %391 = vector.load %arg6[%c0_149, %c0_150] : memref<256x512xf32, #tpu.memory_space<vmem>>, vector<256x512xf32>
    %cst_151 = arith.constant dense<0.000000e+00> : vector<16x512xf32>
    %392 = tpu.matmul %390, %391, %cst_151 {dimension_numbers = #tpu.dot_dimension_numbers<[1], [0], [0], [1], [0, 0, 1, 1], [], []>} : vector<16x256xf32>, vector<256x512xf32>, vector<16x512xf32> -> vector<16x512xf32>
    %c1_152 = arith.constant 1 : index
    %c0_153 = arith.constant 0 : index
    %c0_154 = arith.constant 0 : index
    %393 = vector.load %arg8[%c1_152, %c0_153, %c0_154] : memref<2x1x512xf32, #tpu.memory_space<vmem>>, vector<1x1x512xf32>
    %394 = vector.shape_cast %393 : vector<1x1x512xf32> to vector<1x512xf32>
    %395 = vector.broadcast %394 : vector<1x512xf32> to vector<16x512xf32>
    %396 = arith.addf %392, %395 : vector<16x512xf32>
    %397 = vector.extract_strided_slice %396 {offsets = [0, 0], sizes = [16, 128], strides = [1, 1]} : vector<16x512xf32> to vector<16x128xf32>
    %398 = arith.negf %397 : vector<16x128xf32>
    %399 = math.exp %398 : vector<16x128xf32>
    %cst_155 = arith.constant 1.000000e+00 : f32
    %400 = vector.broadcast %cst_155 : f32 to vector<16x128xf32>
    %401 = arith.addf %400, %399 : vector<16x128xf32>
    %402 = arith.divf %400, %401 : vector<16x128xf32>
    %403 = vector.extract_strided_slice %396 {offsets = [0, 256], sizes = [16, 128], strides = [1, 1]} : vector<16x512xf32> to vector<16x128xf32>
    %404 = math.tanh %403 : vector<16x128xf32>
    %405 = vector.extract_strided_slice %396 {offsets = [0, 384], sizes = [16, 128], strides = [1, 1]} : vector<16x512xf32> to vector<16x128xf32>
    %406 = arith.negf %405 : vector<16x128xf32>
    %407 = math.exp %406 : vector<16x128xf32>
    %cst_156 = arith.constant 1.000000e+00 : f32
    %408 = vector.broadcast %cst_156 : f32 to vector<16x128xf32>
    %409 = arith.addf %408, %407 : vector<16x128xf32>
    %410 = arith.divf %408, %409 : vector<16x128xf32>
    %411 = arith.mulf %402, %404 : vector<16x128xf32>
    %412 = math.tanh %411 : vector<16x128xf32>
    %413 = arith.mulf %410, %412 : vector<16x128xf32>
    %414 = tpu.concatenate %389, %413 in 1 : vector<16x128xf32>, vector<16x128xf32> -> vector<16x256xf32>
    %415 = vector.extract_strided_slice %414 {offsets = [0, 0], sizes = [8, 256], strides = [1, 1]} : vector<16x256xf32> to vector<8x256xf32>
    %cst_157 = arith.constant 0.000000e+00 : f32
    %416 = vector.broadcast %cst_157 : f32 to vector<8x1xf32>
    %c0_158 = arith.constant 0 : index
    %c0_159 = arith.constant 0 : index
    %c0_160 = arith.constant 0 : index
    %417 = vector.load %arg9[%c0_158, %c0_159, %c0_160] : memref<4x8x256xf32, #tpu.memory_space<vmem>>, vector<1x8x256xf32>
    %418 = vector.shape_cast %417 : vector<1x8x256xf32> to vector<8x256xf32>
    %419 = arith.mulf %418, %415 : vector<8x256xf32>
    %cst_161 = arith.constant dense<0.000000e+00> : vector<8xf32>
    %420 = vector.multi_reduction <add>, %419, %cst_161 [1] : vector<8x256xf32> to vector<8xf32>
    %421 = vector.shape_cast %420 : vector<8xf32> to vector<8x1xf32>
    %cst_162 = arith.constant dense<0.000000e+00> : vector<1xf32>
    %422 = vector.multi_reduction <add>, %421, %cst_162 [0] : vector<8x1xf32> to vector<1xf32>
    %423 = vector.shape_cast %422 : vector<1xf32> to vector<1x1xf32>
    %cst_163 = arith.constant 0.000000e+00 : f32
    %424 = vector.broadcast %cst_163 : f32 to vector<1x1xf32>
    %425 = arith.maximumf %423, %424 : vector<1x1xf32>
    %c0_164 = arith.constant 0 : index
    %c0_165 = arith.constant 0 : index
    %c0_166 = arith.constant 0 : index
    %426 = vector.load %arg10[%c0_164, %c0_165, %c0_166] : memref<4x8x1xf32, #tpu.memory_space<vmem>>, vector<1x8x1xf32>
    %427 = vector.shape_cast %426 : vector<1x8x1xf32> to vector<8x1xf32>
    %428 = vector.broadcast %425 : vector<1x1xf32> to vector<8x1xf32>
    %429 = arith.mulf %428, %427 : vector<8x1xf32>
    %430 = arith.addf %416, %429 : vector<8x1xf32>
    %c1_167 = arith.constant 1 : index
    %c0_168 = arith.constant 0 : index
    %c0_169 = arith.constant 0 : index
    %431 = vector.load %arg9[%c1_167, %c0_168, %c0_169] : memref<4x8x256xf32, #tpu.memory_space<vmem>>, vector<1x8x256xf32>
    %432 = vector.shape_cast %431 : vector<1x8x256xf32> to vector<8x256xf32>
    %433 = arith.mulf %432, %415 : vector<8x256xf32>
    %cst_170 = arith.constant dense<0.000000e+00> : vector<8xf32>
    %434 = vector.multi_reduction <add>, %433, %cst_170 [1] : vector<8x256xf32> to vector<8xf32>
    %435 = vector.shape_cast %434 : vector<8xf32> to vector<8x1xf32>
    %cst_171 = arith.constant dense<0.000000e+00> : vector<1xf32>
    %436 = vector.multi_reduction <add>, %435, %cst_171 [0] : vector<8x1xf32> to vector<1xf32>
    %437 = vector.shape_cast %436 : vector<1xf32> to vector<1x1xf32>
    %cst_172 = arith.constant 0.000000e+00 : f32
    %438 = vector.broadcast %cst_172 : f32 to vector<1x1xf32>
    %439 = arith.maximumf %437, %438 : vector<1x1xf32>
    %c1_173 = arith.constant 1 : index
    %c0_174 = arith.constant 0 : index
    %c0_175 = arith.constant 0 : index
    %440 = vector.load %arg10[%c1_173, %c0_174, %c0_175] : memref<4x8x1xf32, #tpu.memory_space<vmem>>, vector<1x8x1xf32>
    %441 = vector.shape_cast %440 : vector<1x8x1xf32> to vector<8x1xf32>
    %442 = vector.broadcast %439 : vector<1x1xf32> to vector<8x1xf32>
    %443 = arith.mulf %442, %441 : vector<8x1xf32>
    %444 = arith.addf %430, %443 : vector<8x1xf32>
    %c2_176 = arith.constant 2 : index
    %c0_177 = arith.constant 0 : index
    %c0_178 = arith.constant 0 : index
    %445 = vector.load %arg9[%c2_176, %c0_177, %c0_178] : memref<4x8x256xf32, #tpu.memory_space<vmem>>, vector<1x8x256xf32>
    %446 = vector.shape_cast %445 : vector<1x8x256xf32> to vector<8x256xf32>
    %447 = arith.mulf %446, %415 : vector<8x256xf32>
    %cst_179 = arith.constant dense<0.000000e+00> : vector<8xf32>
    %448 = vector.multi_reduction <add>, %447, %cst_179 [1] : vector<8x256xf32> to vector<8xf32>
    %449 = vector.shape_cast %448 : vector<8xf32> to vector<8x1xf32>
    %cst_180 = arith.constant dense<0.000000e+00> : vector<1xf32>
    %450 = vector.multi_reduction <add>, %449, %cst_180 [0] : vector<8x1xf32> to vector<1xf32>
    %451 = vector.shape_cast %450 : vector<1xf32> to vector<1x1xf32>
    %cst_181 = arith.constant 0.000000e+00 : f32
    %452 = vector.broadcast %cst_181 : f32 to vector<1x1xf32>
    %453 = arith.maximumf %451, %452 : vector<1x1xf32>
    %c2_182 = arith.constant 2 : index
    %c0_183 = arith.constant 0 : index
    %c0_184 = arith.constant 0 : index
    %454 = vector.load %arg10[%c2_182, %c0_183, %c0_184] : memref<4x8x1xf32, #tpu.memory_space<vmem>>, vector<1x8x1xf32>
    %455 = vector.shape_cast %454 : vector<1x8x1xf32> to vector<8x1xf32>
    %456 = vector.broadcast %453 : vector<1x1xf32> to vector<8x1xf32>
    %457 = arith.mulf %456, %455 : vector<8x1xf32>
    %458 = arith.addf %444, %457 : vector<8x1xf32>
    %c3 = arith.constant 3 : index
    %c0_185 = arith.constant 0 : index
    %c0_186 = arith.constant 0 : index
    %459 = vector.load %arg9[%c3, %c0_185, %c0_186] : memref<4x8x256xf32, #tpu.memory_space<vmem>>, vector<1x8x256xf32>
    %460 = vector.shape_cast %459 : vector<1x8x256xf32> to vector<8x256xf32>
    %461 = arith.mulf %460, %415 : vector<8x256xf32>
    %cst_187 = arith.constant dense<0.000000e+00> : vector<8xf32>
    %462 = vector.multi_reduction <add>, %461, %cst_187 [1] : vector<8x256xf32> to vector<8xf32>
    %463 = vector.shape_cast %462 : vector<8xf32> to vector<8x1xf32>
    %cst_188 = arith.constant dense<0.000000e+00> : vector<1xf32>
    %464 = vector.multi_reduction <add>, %463, %cst_188 [0] : vector<8x1xf32> to vector<1xf32>
    %465 = vector.shape_cast %464 : vector<1xf32> to vector<1x1xf32>
    %cst_189 = arith.constant 0.000000e+00 : f32
    %466 = vector.broadcast %cst_189 : f32 to vector<1x1xf32>
    %467 = arith.maximumf %465, %466 : vector<1x1xf32>
    %c3_190 = arith.constant 3 : index
    %c0_191 = arith.constant 0 : index
    %c0_192 = arith.constant 0 : index
    %468 = vector.load %arg10[%c3_190, %c0_191, %c0_192] : memref<4x8x1xf32, #tpu.memory_space<vmem>>, vector<1x8x1xf32>
    %469 = vector.shape_cast %468 : vector<1x8x1xf32> to vector<8x1xf32>
    %470 = vector.broadcast %467 : vector<1x1xf32> to vector<8x1xf32>
    %471 = arith.mulf %470, %469 : vector<8x1xf32>
    %472 = arith.addf %458, %471 : vector<8x1xf32>
    %473 = vector.extract_strided_slice %414 {offsets = [8, 0], sizes = [8, 256], strides = [1, 1]} : vector<16x256xf32> to vector<8x256xf32>
    %cst_193 = arith.constant 0.000000e+00 : f32
    %474 = vector.broadcast %cst_193 : f32 to vector<8x1xf32>
    %c0_194 = arith.constant 0 : index
    %c0_195 = arith.constant 0 : index
    %c0_196 = arith.constant 0 : index
    %475 = vector.load %arg9[%c0_194, %c0_195, %c0_196] : memref<4x8x256xf32, #tpu.memory_space<vmem>>, vector<1x8x256xf32>
    %476 = vector.shape_cast %475 : vector<1x8x256xf32> to vector<8x256xf32>
    %477 = arith.mulf %476, %473 : vector<8x256xf32>
    %cst_197 = arith.constant dense<0.000000e+00> : vector<8xf32>
    %478 = vector.multi_reduction <add>, %477, %cst_197 [1] : vector<8x256xf32> to vector<8xf32>
    %479 = vector.shape_cast %478 : vector<8xf32> to vector<8x1xf32>
    %cst_198 = arith.constant dense<0.000000e+00> : vector<1xf32>
    %480 = vector.multi_reduction <add>, %479, %cst_198 [0] : vector<8x1xf32> to vector<1xf32>
    %481 = vector.shape_cast %480 : vector<1xf32> to vector<1x1xf32>
    %cst_199 = arith.constant 0.000000e+00 : f32
    %482 = vector.broadcast %cst_199 : f32 to vector<1x1xf32>
    %483 = arith.maximumf %481, %482 : vector<1x1xf32>
    %c0_200 = arith.constant 0 : index
    %c0_201 = arith.constant 0 : index
    %c0_202 = arith.constant 0 : index
    %484 = vector.load %arg10[%c0_200, %c0_201, %c0_202] : memref<4x8x1xf32, #tpu.memory_space<vmem>>, vector<1x8x1xf32>
    %485 = vector.shape_cast %484 : vector<1x8x1xf32> to vector<8x1xf32>
    %486 = vector.broadcast %483 : vector<1x1xf32> to vector<8x1xf32>
    %487 = arith.mulf %486, %485 : vector<8x1xf32>
    %488 = arith.addf %474, %487 : vector<8x1xf32>
    %c1_203 = arith.constant 1 : index
    %c0_204 = arith.constant 0 : index
    %c0_205 = arith.constant 0 : index
    %489 = vector.load %arg9[%c1_203, %c0_204, %c0_205] : memref<4x8x256xf32, #tpu.memory_space<vmem>>, vector<1x8x256xf32>
    %490 = vector.shape_cast %489 : vector<1x8x256xf32> to vector<8x256xf32>
    %491 = arith.mulf %490, %473 : vector<8x256xf32>
    %cst_206 = arith.constant dense<0.000000e+00> : vector<8xf32>
    %492 = vector.multi_reduction <add>, %491, %cst_206 [1] : vector<8x256xf32> to vector<8xf32>
    %493 = vector.shape_cast %492 : vector<8xf32> to vector<8x1xf32>
    %cst_207 = arith.constant dense<0.000000e+00> : vector<1xf32>
    %494 = vector.multi_reduction <add>, %493, %cst_207 [0] : vector<8x1xf32> to vector<1xf32>
    %495 = vector.shape_cast %494 : vector<1xf32> to vector<1x1xf32>
    %cst_208 = arith.constant 0.000000e+00 : f32
    %496 = vector.broadcast %cst_208 : f32 to vector<1x1xf32>
    %497 = arith.maximumf %495, %496 : vector<1x1xf32>
    %c1_209 = arith.constant 1 : index
    %c0_210 = arith.constant 0 : index
    %c0_211 = arith.constant 0 : index
    %498 = vector.load %arg10[%c1_209, %c0_210, %c0_211] : memref<4x8x1xf32, #tpu.memory_space<vmem>>, vector<1x8x1xf32>
    %499 = vector.shape_cast %498 : vector<1x8x1xf32> to vector<8x1xf32>
    %500 = vector.broadcast %497 : vector<1x1xf32> to vector<8x1xf32>
    %501 = arith.mulf %500, %499 : vector<8x1xf32>
    %502 = arith.addf %488, %501 : vector<8x1xf32>
    %c2_212 = arith.constant 2 : index
    %c0_213 = arith.constant 0 : index
    %c0_214 = arith.constant 0 : index
    %503 = vector.load %arg9[%c2_212, %c0_213, %c0_214] : memref<4x8x256xf32, #tpu.memory_space<vmem>>, vector<1x8x256xf32>
    %504 = vector.shape_cast %503 : vector<1x8x256xf32> to vector<8x256xf32>
    %505 = arith.mulf %504, %473 : vector<8x256xf32>
    %cst_215 = arith.constant dense<0.000000e+00> : vector<8xf32>
    %506 = vector.multi_reduction <add>, %505, %cst_215 [1] : vector<8x256xf32> to vector<8xf32>
    %507 = vector.shape_cast %506 : vector<8xf32> to vector<8x1xf32>
    %cst_216 = arith.constant dense<0.000000e+00> : vector<1xf32>
    %508 = vector.multi_reduction <add>, %507, %cst_216 [0] : vector<8x1xf32> to vector<1xf32>
    %509 = vector.shape_cast %508 : vector<1xf32> to vector<1x1xf32>
    %cst_217 = arith.constant 0.000000e+00 : f32
    %510 = vector.broadcast %cst_217 : f32 to vector<1x1xf32>
    %511 = arith.maximumf %509, %510 : vector<1x1xf32>
    %c2_218 = arith.constant 2 : index
    %c0_219 = arith.constant 0 : index
    %c0_220 = arith.constant 0 : index
    %512 = vector.load %arg10[%c2_218, %c0_219, %c0_220] : memref<4x8x1xf32, #tpu.memory_space<vmem>>, vector<1x8x1xf32>
    %513 = vector.shape_cast %512 : vector<1x8x1xf32> to vector<8x1xf32>
    %514 = vector.broadcast %511 : vector<1x1xf32> to vector<8x1xf32>
    %515 = arith.mulf %514, %513 : vector<8x1xf32>
    %516 = arith.addf %502, %515 : vector<8x1xf32>
    %c3_221 = arith.constant 3 : index
    %c0_222 = arith.constant 0 : index
    %c0_223 = arith.constant 0 : index
    %517 = vector.load %arg9[%c3_221, %c0_222, %c0_223] : memref<4x8x256xf32, #tpu.memory_space<vmem>>, vector<1x8x256xf32>
    %518 = vector.shape_cast %517 : vector<1x8x256xf32> to vector<8x256xf32>
    %519 = arith.mulf %518, %473 : vector<8x256xf32>
    %cst_224 = arith.constant dense<0.000000e+00> : vector<8xf32>
    %520 = vector.multi_reduction <add>, %519, %cst_224 [1] : vector<8x256xf32> to vector<8xf32>
    %521 = vector.shape_cast %520 : vector<8xf32> to vector<8x1xf32>
    %cst_225 = arith.constant dense<0.000000e+00> : vector<1xf32>
    %522 = vector.multi_reduction <add>, %521, %cst_225 [0] : vector<8x1xf32> to vector<1xf32>
    %523 = vector.shape_cast %522 : vector<1xf32> to vector<1x1xf32>
    %cst_226 = arith.constant 0.000000e+00 : f32
    %524 = vector.broadcast %cst_226 : f32 to vector<1x1xf32>
    %525 = arith.maximumf %523, %524 : vector<1x1xf32>
    %c3_227 = arith.constant 3 : index
    %c0_228 = arith.constant 0 : index
    %c0_229 = arith.constant 0 : index
    %526 = vector.load %arg10[%c3_227, %c0_228, %c0_229] : memref<4x8x1xf32, #tpu.memory_space<vmem>>, vector<1x8x1xf32>
    %527 = vector.shape_cast %526 : vector<1x8x1xf32> to vector<8x1xf32>
    %528 = vector.broadcast %525 : vector<1x1xf32> to vector<8x1xf32>
    %529 = arith.mulf %528, %527 : vector<8x1xf32>
    %530 = arith.addf %516, %529 : vector<8x1xf32>
    %531 = tpu.concatenate %472, %530 in 0 : vector<8x1xf32>, vector<8x1xf32> -> vector<16x1xf32>
    %532 = arith.negf %531 : vector<16x1xf32>
    %533 = math.exp %532 : vector<16x1xf32>
    %cst_230 = arith.constant 1.000000e+00 : f32
    %534 = vector.broadcast %cst_230 : f32 to vector<16x1xf32>
    %535 = arith.addf %534, %533 : vector<16x1xf32>
    %536 = arith.divf %534, %535 : vector<16x1xf32>
    %c0_231 = arith.constant 0 : index
    %c0_232 = arith.constant 0 : index
    %537 = vector.load %arg11[%c0_231, %c0_232] : memref<16x1xf32, #tpu.memory_space<vmem>>, vector<16x1xf32>
    tpu.vector_store %arg11[%c0_231, %c0_232], %536 {strides = array<i32>} : memref<16x1xf32, #tpu.memory_space<vmem>>, vector<16x1xf32>,
    return
  }
  func.func @transform_0(%arg0: i32) -> (i32, i32, i32) {
    %c0_i32 = arith.constant 0 : i32
    %c0_i32_0 = arith.constant 0 : i32
    %c0_i32_1 = arith.constant 0 : i32
    %c0_i32_2 = arith.constant 0 : i32
    return %c0_i32, %c0_i32_0, %c0_i32_1 : i32, i32, i32
  }
  func.func @transform_1(%arg0: i32) -> (i32, i32, i32) {
    %c0_i32 = arith.constant 0 : i32
    %c0_i32_0 = arith.constant 0 : i32
    %c0_i32_1 = arith.constant 0 : i32
    %c0_i32_2 = arith.constant 0 : i32
    return %c0_i32, %c0_i32_0, %c0_i32_1 : i32, i32, i32
  }
  func.func @transform_2(%arg0: i32) -> (i32, i32, i32) {
    %c0_i32 = arith.constant 0 : i32
    %c0_i32_0 = arith.constant 0 : i32
    %c0_i32_1 = arith.constant 0 : i32
    %c0_i32_2 = arith.constant 0 : i32
    return %c0_i32, %c0_i32_0, %c0_i32_1 : i32, i32, i32
  }
  func.func @transform_3(%arg0: i32) -> (i32, i32) {
    %c0_i32 = arith.constant 0 : i32
    %c0_i32_0 = arith.constant 0 : i32
    %c0_i32_1 = arith.constant 0 : i32
    return %c0_i32, %c0_i32_0 : i32, i32
  }
  func.func @transform_4(%arg0: i32) -> (i32, i32) {
    %c0_i32 = arith.constant 0 : i32
    %c0_i32_0 = arith.constant 0 : i32
    %c0_i32_1 = arith.constant 0 : i32
    return %c0_i32, %c0_i32_0 : i32, i32
  }
  func.func @transform_5(%arg0: i32) -> (i32, i32) {
    %c0_i32 = arith.constant 0 : i32
    %c0_i32_0 = arith.constant 0 : i32
    %c0_i32_1 = arith.constant 0 : i32
    return %c0_i32, %c0_i32_0 : i32, i32
  }
  func.func @transform_6(%arg0: i32) -> (i32, i32) {
    %c0_i32 = arith.constant 0 : i32
    %c0_i32_0 = arith.constant 0 : i32
    %c0_i32_1 = arith.constant 0 : i32
    return %c0_i32, %c0_i32_0 : i32, i32
  }
  func.func @transform_7(%arg0: i32) -> (i32, i32, i32) {
    %c0_i32 = arith.constant 0 : i32
    %c0_i32_0 = arith.constant 0 : i32
    %c0_i32_1 = arith.constant 0 : i32
    %c0_i32_2 = arith.constant 0 : i32
    return %c0_i32, %c0_i32_0, %c0_i32_1 : i32, i32, i32
  }
  func.func @transform_8(%arg0: i32) -> (i32, i32, i32) {
    %c0_i32 = arith.constant 0 : i32
    %c0_i32_0 = arith.constant 0 : i32
    %c0_i32_1 = arith.constant 0 : i32
    %c0_i32_2 = arith.constant 0 : i32
    return %c0_i32, %c0_i32_0, %c0_i32_1 : i32, i32, i32
  }
  func.func @transform_9(%arg0: i32) -> (i32, i32, i32) {
    %c0_i32 = arith.constant 0 : i32
    %c0_i32_0 = arith.constant 0 : i32
    %c0_i32_1 = arith.constant 0 : i32
    %c0_i32_2 = arith.constant 0 : i32
    return %c0_i32, %c0_i32_0, %c0_i32_1 : i32, i32, i32
  }
  func.func @transform_10(%arg0: i32) -> (i32, i32) {
    %c0_i32 = arith.constant 0 : i32
    %c0_i32_0 = arith.constant 0 : i32
    %c0_i32_1 = arith.constant 0 : i32
    return %c0_i32, %c0_i32_0 : i32, i32
  }
}

</mosaic_0001>

<bundles_post_ra>
// kernel: reverse
= control target key start
LH: loop header
LB: loop body
LE: loop exit
PB: predicated region body
PF: predicated region fallthrough
CT: control target
= control target key end

     0   :  { %v2_v0 = vlaneseq  ;;  %s117_s0 = inlined_call_operand.vmem [shape: f32[4,16], index: 0, kind: input, shape index: {}]   ;;  %s118_s1 = inlined_call_operand.vmem [shape: f32[4,16], index: 1, kind: output, shape index: {}]  }
   0x1   :  { %v34_v2 = vld [vmem:[%s117_s0] sm:$0xff]  ;;  %v36_v3 = vld [vmem:[%s117_s0 + $0x8] sm:$0xff] }
   0x2   :  { %v3_v1 = vsub.s32 3, %v2_v0 }
   0x4   :  { %4 = vset.pattern.permute.xlu0 %v3_v1 }
   0x5   :  { %42 = vperm.xlu0 %4, %v34_v2  }
   0x9   :  { %48 = vperm.xlu0 %4, %v36_v3  }
  0x84   :  { %v43_v4 = vpop.permute.xlu0 %42 }
  0x85   :  { %81 = vst [vmem:[%s118_s1] sm:$0xff] %v43_v4 }
  0x88   :  { %v49_v5 = vpop.permute.xlu0 %48 }
  0x89   :  { %83 = vst [vmem:[%s118_s1 + $0x8] sm:$0xff] %v49_v5 }

// kernel: se_block_rnn.3
= control target key start
LH: loop header
LB: loop body
LE: loop exit
PB: predicated region body
PF: predicated region fallthrough
CT: control target
= control target key end

     0   :  { %vm40_vm0 = vcmask 7168   ;;  %s119_s0 = inlined_call_operand.vmem [shape: f32[64,128], index: 0, kind: input, shape index: {}]   ;;  %s120_s1 = inlined_call_operand.vmem [shape: f32[64,1], index: 1, kind: output, shape index: {}]  }
   0x1   :  { %v10_v0 = vld [vmem:[%s119_s0 + $0x10] sm:$0xff]  ;;  %v8_v1 = vld [vmem:[%s119_s0] sm:$0xff]  ;;  %v11_v2 = vld [vmem:[%s119_s0 + $0x18] sm:$0xff] }
   0x2   :  { %20 = vadd.xlane.f32.xlu1 %v10_v0  ;;  %16 = vadd.xlane.f32.xlu0 %v8_v1  ;;  %v9_v3 = vld [vmem:[%s119_s0 + $0x8] sm:$0xff]  ;;  %v12_v5 = vld [vmem:[%s119_s0 + $0x20] sm:$0xff]  ;;  %v15_v6 = vld [vmem:[%s119_s0 + $0x38] sm:$0xff] }
   0x3   :  { %v13_v4 = vld [vmem:[%s119_s0 + $0x28] sm:$0xff]  ;;  %v14_v7 = vld [vmem:[%s119_s0 + $0x30] sm:$0xff] }
   0x6   :  { %22 = vadd.xlane.f32.xlu1 %v11_v2  ;;  %18 = vadd.xlane.f32.xlu0 %v9_v3 }
   0xa   :  { %26 = vadd.xlane.f32.xlu1 %v13_v4  ;;  %24 = vadd.xlane.f32.xlu0 %v12_v5 }
   0xe   :  { %30 = vadd.xlane.f32.xlu1 %v15_v6  ;;  %28 = vadd.xlane.f32.xlu0 %v14_v7 }
  0x8f   :  { %v21_v8 = vpop.xlane.xlu1 %20  ;;  %v17_v9 = vpop.xlane.xlu0 %16 }
  0x90   :  { %v34_v10 = vmul.f32 0.0078125, %v21_v8  ;;  %v32_v11 = vmul.f32 0.0078125, %v17_v9 }
  0x92   :  { %43 = vst.msk [vmem:[%s120_s1 + $0x10] sm:$0xff] %vm40_vm0, %v34_v10  ;;  %41 = vst.msk [vmem:[%s120_s1] sm:$0xff] %vm40_vm0, %v32_v11 }
  0x93   :  { %v23_v12 = vpop.xlane.xlu1 %22  ;;  %v19_v13 = vpop.xlane.xlu0 %18 }
  0x94   :  { %v35_v14 = vmul.f32 0.0078125, %v23_v12  ;;  %v33_v15 = vmul.f32 0.0078125, %v19_v13 }
  0x96   :  { %44 = vst.msk [vmem:[%s120_s1 + $0x18] sm:$0xff] %vm40_vm0, %v35_v14  ;;  %42 = vst.msk [vmem:[%s120_s1 + $0x8] sm:$0xff] %vm40_vm0, %v33_v15 }
  0x97   :  { %v27_v16 = vpop.xlane.xlu1 %26  ;;  %v25_v17 = vpop.xlane.xlu0 %24 }
  0x98   :  { %v37_v18 = vmul.f32 0.0078125, %v27_v16  ;;  %v36_v19 = vmul.f32 0.0078125, %v25_v17 }
  0x9a   :  { %46 = vst.msk [vmem:[%s120_s1 + $0x28] sm:$0xff] %vm40_vm0, %v37_v18  ;;  %45 = vst.msk [vmem:[%s120_s1 + $0x20] sm:$0xff] %vm40_vm0, %v36_v19 }
  0x9b   :  { %v31_v20 = vpop.xlane.xlu1 %30  ;;  %v29_v21 = vpop.xlane.xlu0 %28 }
  0x9c   :  { %v39_v22 = vmul.f32 0.0078125, %v31_v20  ;;  %v38_v23 = vmul.f32 0.0078125, %v29_v21 }
  0x9e   :  { %48 = vst.msk [vmem:[%s120_s1 + $0x38] sm:$0xff] %vm40_vm0, %v39_v22  ;;  %47 = vst.msk [vmem:[%s120_s1 + $0x30] sm:$0xff] %vm40_vm0, %v38_v23 }

// kernel: se_block_rnn.5
= control target key start
LH: loop header
LB: loop body
LE: loop exit
PB: predicated region body
PF: predicated region fallthrough
CT: control target
= control target key end

     0   :  { %v53_v0 = vmov 0   ;;  %s123_s1 = inlined_call_operand.vmem [shape: f32[16,1], index: 1, kind: input, shape index: {}]   ;;  %s124_s0 = inlined_call_operand.vmem [shape: f32[16,512], index: 0, kind: input, shape index: {}]   ;;  %s125_s2 = inlined_call_operand.vmem [shape: f32[16,512], index: 2, kind: output, shape index: {}]  }
   0x1   :  { %52 = vset.pattern.permute.xlu0 %v53_v0  ;;  %v19_v1 = vld [vmem:[%s123_s1] sm:$0xff]  ;;  %v20_v2 = vld [vmem:[%s123_s1 + $0x8] sm:$0xff]  ;;  %v13_v5 = vld [vmem:[%s124_s0 + $0x10] sm:$0xff] }
   0x2   :  { %23 = vperm.xlu0 %52, %v19_v1   ;;  %v11_v3 = vld [vmem:[%s124_s0] sm:$0xff]  ;;  %v12_v4 = vld [vmem:[%s124_s0 + $0x8] sm:$0xff]  ;;  %v14_v6 = vld [vmem:[%s124_s0 + $0x18] sm:$0xff] }
   0x3   :  { %v15_v12 = vld [vmem:[%s124_s0 + $0x20] sm:$0xff]  ;;  %v16_v13 = vld [vmem:[%s124_s0 + $0x28] sm:$0xff]  ;;  %v17_v14 = vld [vmem:[%s124_s0 + $0x30] sm:$0xff] }
   0x4   :  { %v18_v15 = vld [vmem:[%s124_s0 + $0x38] sm:$0xff] }
   0x6   :  { %28 = vperm.xlu0 %52, %v20_v2  }
  0x81   :  { %v24_v7 = vpop.permute.xlu0 %23 }
  0x82   :  { %v31_v8 = vmul.f32 %v24_v7, %v11_v3  ;;  %v32_v9 = vmul.f32 %v24_v7, %v12_v4  ;;  %v33_v10 = vmul.f32 %v24_v7, %v13_v5  ;;  %v34_v11 = vmul.f32 %v24_v7, %v14_v6 }
  0x84   :  { %39 = vst [vmem:[%s125_s2] sm:$0xff] %v31_v8  ;;  %40 = vst [vmem:[%s125_s2 + $0x8] sm:$0xff] %v32_v9 }
  0x85   :  { %41 = vst [vmem:[%s125_s2 + $0x10] sm:$0xff] %v33_v10  ;;  %42 = vst [vmem:[%s125_s2 + $0x18] sm:$0xff] %v34_v11  ;;  %v29_v16 = vpop.permute.xlu0 %28 }
  0x86   :  { %v35_v17 = vmul.f32 %v29_v16, %v15_v12  ;;  %v36_v18 = vmul.f32 %v29_v16, %v16_v13  ;;  %v37_v19 = vmul.f32 %v29_v16, %v17_v14  ;;  %v38_v20 = vmul.f32 %v29_v16, %v18_v15 }
  0x88   :  { %43 = vst [vmem:[%s125_s2 + $0x20] sm:$0xff] %v35_v17  ;;  %44 = vst [vmem:[%s125_s2 + $0x28] sm:$0xff] %v36_v18 }
  0x89   :  { %45 = vst [vmem:[%s125_s2 + $0x30] sm:$0xff] %v37_v19  ;;  %46 = vst [vmem:[%s125_s2 + $0x38] sm:$0xff] %v38_v20 }

// kernel: se_block_rnn.4
= control target key start
LH: loop header
LB: loop body
LE: loop exit
PB: predicated region body
PF: predicated region fallthrough
CT: control target
= control target key end

     0   :  { %v12784_v3 = vmov 0.0   ;;  %v7653_v48 = vmov 0   ;;  %vm5511_vm0 = vcmask 7168   ;;  %s12773_s3 = inlined_call_operand.vmem [shape: f32[256,1024], index: 3, kind: input, shape index: {}]   ;;  %s12774_s0 = inlined_call_operand.vmem [shape: f32[4,16,1], index: 0, kind: input, shape index: {}]   ;;  %s12775_s1 = inlined_call_operand.vmem [shape: f32[4,16,1], index: 1, kind: input, shape index: {}]   ;;  %s12776_s2 = inlined_call_operand.vmem [shape: f32[3,1,1024], index: 2, kind: input, shape index: {}]   ;;  %s12777_s4 = inlined_call_operand.vmem [shape: f32[256,512], index: 4, kind: input, shape index: {}]   ;;  %s12778_s6 = inlined_call_operand.vmem [shape: f32[128,512], index: 6, kind: input, shape index: {}]   ;;  %s12779_s7 = inlined_call_operand.vmem [shape: f32[2,1,512], index: 7, kind: input, shape index: {}]   ;;  %s12780_s5 = inlined_call_operand.vmem [shape: f32[256,512], index: 5, kind: input, shape index: {}]   ;;  %s12781_s8 = inlined_call_operand.vmem [shape: f32[4,8,256], index: 8, kind: input, shape index: {}]   ;;  %s12782_s9 = inlined_call_operand.vmem [shape: f32[4,8,1], index: 9, kind: input, shape index: {}]   ;;  %s12783_s10 = inlined_call_operand.vmem [shape: f32[16,1], index: 10, kind: output, shape index: {}]  }
   0x1   :  { %v252_v0 = vld [vmem:[%s12773_s3 + $0x8] sm:$0xff]  ;;  %v254_v2 = vld [vmem:[%s12773_s3 + $0x18] sm:$0xff]  ;;  %571 = vmatprep.mubr.f32.mxu0 %v12784_v3  ;;  %648 = vmatprep.mubr.f32.mxu1 %v12784_v3  ;;  %v251_v6 = vld [vmem:[%s12773_s3] sm:$0xff] }
   0x2   :  { %v260_v1 = vld [vmem:[%s12773_s3 + $0x48] sm:$0xff]  ;;  %v262_v5 = vld [vmem:[%s12773_s3 + $0x58] sm:$0xff]  ;;  %v259_v7 = vld [vmem:[%s12773_s3 + $0x40] sm:$0xff]  ;;  %7234 = vset.pattern.permute.xlu0 %v7653_v48  ;;  %7235 = vset.pattern.permute.xlu1 %v7653_v48 }
   0x3   :  { %v5632_v4 = vpack.c.bf16 %v260_v1, %v252_v0  ;;  %v5696_v8 = vpack.c.bf16 %v262_v5, %v254_v2  ;;  %v5634_v9 = vpack.c.bf16 %v259_v7, %v251_v6  ;;  %v253_v10 = vld [vmem:[%s12773_s3 + $0x10] sm:$0xff]  ;;  %v268_v12 = vld [vmem:[%s12773_s3 + $0x88] sm:$0xff]  ;;  %v270_v15 = vld [vmem:[%s12773_s3 + $0x98] sm:$0xff] }
   0x4   :  { %v261_v11 = vld [vmem:[%s12773_s3 + $0x50] sm:$0xff]  ;;  %v276_v14 = vld [vmem:[%s12773_s3 + $0xc8] sm:$0xff]  ;;  %v278_v16 = vld [vmem:[%s12773_s3 + $0xd8] sm:$0xff] }
   0x5   :  { %5633 = vmatprep.subr.bf16.mxu0 %v5632_v4  ;;  %v5698_v13 = vpack.c.bf16 %v261_v11, %v253_v10  ;;  %5697 = vmatprep.subr.bf16.mxu1 %v5696_v8  ;;  %v5636_v17 = vpack.c.bf16 %v276_v14, %v268_v12  ;;  %v5700_v18 = vpack.c.bf16 %v278_v16, %v270_v15  ;;  %v267_v19 = vld [vmem:[%s12773_s3 + $0x80] sm:$0xff]  ;;  %v269_v21 = vld [vmem:[%s12773_s3 + $0x90] sm:$0xff]  ;;  %v284_v24 = vld [vmem:[%s12773_s3 + $0x108] sm:$0xff] }
   0x6   :  { %5635 = vmatpush1.bf16.msra.mxu0 %v5634_v9  ;;  %v275_v20 = vld [vmem:[%s12773_s3 + $0xc0] sm:$0xff]  ;;  %v277_v23 = vld [vmem:[%s12773_s3 + $0xd0] sm:$0xff]  ;;  %v292_v25 = vld [vmem:[%s12773_s3 + $0x148] sm:$0xff] }
   0x7   :  { %5699 = vmatpush1.bf16.msra.mxu1 %v5698_v13  ;;  %v5638_v22 = vpack.c.bf16 %v275_v20, %v267_v19  ;;  %5637 = vmatprep.subr.bf16.mxu0 %v5636_v17  ;;  %v5702_v26 = vpack.c.bf16 %v277_v23, %v269_v21  ;;  %v5640_v27 = vpack.c.bf16 %v292_v25, %v284_v24  ;;  %v286_v28 = vld [vmem:[%s12773_s3 + $0x118] sm:$0xff]  ;;  %v283_v30 = vld [vmem:[%s12773_s3 + $0x100] sm:$0xff]  ;;  %v285_v33 = vld [vmem:[%s12773_s3 + $0x110] sm:$0xff] }
   0x8   :  { %5701 = vmatprep.subr.bf16.mxu1 %v5700_v18  ;;  %v294_v29 = vld [vmem:[%s12773_s3 + $0x158] sm:$0xff]  ;;  %v291_v32 = vld [vmem:[%s12773_s3 + $0x140] sm:$0xff]  ;;  %v293_v34 = vld [vmem:[%s12773_s3 + $0x150] sm:$0xff] }
   0x9   :  { %v5704_v31 = vpack.c.bf16 %v294_v29, %v286_v28  ;;  %v5642_v35 = vpack.c.bf16 %v291_v32, %v283_v30  ;;  %v300_v36 = vld [vmem:[%s12773_s3 + $0x188] sm:$0xff]  ;;  %v302_v38 = vld [vmem:[%s12773_s3 + $0x198] sm:$0xff]  ;;  %v5706_v39 = vpack.c.bf16 %v293_v34, %v285_v33  ;;  %v299_v42 = vld [vmem:[%s12773_s3 + $0x180] sm:$0xff] }
   0xa   :  { %5639 = vmatpush1.bf16.msra.mxu0 %v5638_v22  ;;  %v308_v37 = vld [vmem:[%s12773_s3 + $0x1c8] sm:$0xff]  ;;  %v310_v41 = vld [vmem:[%s12773_s3 + $0x1d8] sm:$0xff]  ;;  %v307_v43 = vld [vmem:[%s12773_s3 + $0x1c0] sm:$0xff] }
   0xb   :  { %5703 = vmatpush1.bf16.msra.mxu1 %v5702_v26  ;;  %5641 = vmatprep.subr.bf16.mxu0 %v5640_v27  ;;  %v5644_v40 = vpack.c.bf16 %v308_v37, %v300_v36  ;;  %v5708_v44 = vpack.c.bf16 %v310_v41, %v302_v38  ;;  %v301_v45 = vld [vmem:[%s12773_s3 + $0x190] sm:$0xff]  ;;  %v316_v47 = vld [vmem:[%s12773_s3 + $0x208] sm:$0xff]  ;;  %v318_v50 = vld [vmem:[%s12773_s3 + $0x218] sm:$0xff]  ;;  %v5646_v52 = vpack.c.bf16 %v307_v43, %v299_v42 }
   0xc   :  { %5705 = vmatprep.subr.bf16.mxu1 %v5704_v31  ;;  %v309_v46 = vld [vmem:[%s12773_s3 + $0x1d0] sm:$0xff]  ;;  %v324_v49 = vld [vmem:[%s12773_s3 + $0x248] sm:$0xff]  ;;  %v326_v51 = vld [vmem:[%s12773_s3 + $0x258] sm:$0xff] }
   0xd   :  { %v5710_v53 = vpack.c.bf16 %v309_v46, %v301_v45  ;;  %v5648_v54 = vpack.c.bf16 %v324_v49, %v316_v47  ;;  %v315_v55 = vld [vmem:[%s12773_s3 + $0x200] sm:$0xff]  ;;  %v317_v57 = vld [vmem:[%s12773_s3 + $0x210] sm:$0xff]  ;;  %v5712_v58 = vpack.c.bf16 %v326_v51, %v318_v50  ;;  %v332_v60 = vld [vmem:[%s12773_s3 + $0x288] sm:$0xff] }
   0xe   :  { %5643 = vmatpush1.bf16.msra.mxu0 %v5642_v35  ;;  %v323_v56 = vld [vmem:[%s12773_s3 + $0x240] sm:$0xff]  ;;  %v325_v59 = vld [vmem:[%s12773_s3 + $0x250] sm:$0xff]  ;;  %v340_v61 = vld [vmem:[%s12773_s3 + $0x2c8] sm:$0xff] }
   0xf   :  { %5707 = vmatpush1.bf16.msra.mxu1 %v5706_v39  ;;  %5645 = vmatprep.subr.bf16.mxu0 %v5644_v40  ;;  %v334_v62 = vld [vmem:[%s12773_s3 + $0x298] sm:$0xff]  ;;  %v5650_v0 = vpack.c.bf16 %v323_v56, %v315_v55  ;;  %v5714_v1 = vpack.c.bf16 %v325_v59, %v317_v57  ;;  %v5652_v2 = vpack.c.bf16 %v340_v61, %v332_v60  ;;  %v331_v4 = vld [vmem:[%s12773_s3 + $0x280] sm:$0xff]  ;;  %v333_v6 = vld [vmem:[%s12773_s3 + $0x290] sm:$0xff] }
  0x10   :  { %5709 = vmatprep.subr.bf16.mxu1 %v5708_v44  ;;  %v342_v63 = vld [vmem:[%s12773_s3 + $0x2d8] sm:$0xff]  ;;  %v339_v5 = vld [vmem:[%s12773_s3 + $0x2c0] sm:$0xff]  ;;  %v341_v8 = vld [vmem:[%s12773_s3 + $0x2d0] sm:$0xff] }
  0x11   :  { %v5716_v7 = vpack.c.bf16 %v342_v63, %v334_v62  ;;  %v348_v9 = vld [vmem:[%s12773_s3 + $0x308] sm:$0xff]  ;;  %v350_v11 = vld [vmem:[%s12773_s3 + $0x318] sm:$0xff]  ;;  %v5654_v13 = vpack.c.bf16 %v339_v5, %v331_v4  ;;  %v5718_v14 = vpack.c.bf16 %v341_v8, %v333_v6  ;;  %v347_v16 = vld [vmem:[%s12773_s3 + $0x300] sm:$0xff] }
  0x12   :  { %5647 = vmatpush1.bf16.msra.mxu0 %v5646_v52  ;;  %v356_v10 = vld [vmem:[%s12773_s3 + $0x348] sm:$0xff]  ;;  %v358_v12 = vld [vmem:[%s12773_s3 + $0x358] sm:$0xff]  ;;  %v355_v17 = vld [vmem:[%s12773_s3 + $0x340] sm:$0xff] }
  0x13   :  { %5711 = vmatpush1.bf16.msra.mxu1 %v5710_v53  ;;  %5649 = vmatprep.subr.bf16.mxu0 %v5648_v54  ;;  %v5656_v15 = vpack.c.bf16 %v356_v10, %v348_v9  ;;  %v349_v18 = vld [vmem:[%s12773_s3 + $0x310] sm:$0xff]  ;;  %v5720_v19 = vpack.c.bf16 %v358_v12, %v350_v11  ;;  %v364_v21 = vld [vmem:[%s12773_s3 + $0x388] sm:$0xff]  ;;  %v366_v23 = vld [vmem:[%s12773_s3 + $0x398] sm:$0xff]  ;;  %v5658_v25 = vpack.c.bf16 %v355_v17, %v347_v16 }
  0x14   :  { %5713 = vmatprep.subr.bf16.mxu1 %v5712_v58  ;;  %v357_v20 = vld [vmem:[%s12773_s3 + $0x350] sm:$0xff]  ;;  %v372_v22 = vld [vmem:[%s12773_s3 + $0x3c8] sm:$0xff]  ;;  %v374_v24 = vld [vmem:[%s12773_s3 + $0x3d8] sm:$0xff] }
  0x15   :  { %v5722_v26 = vpack.c.bf16 %v357_v20, %v349_v18  ;;  %v5660_v27 = vpack.c.bf16 %v372_v22, %v364_v21  ;;  %v363_v28 = vld [vmem:[%s12773_s3 + $0x380] sm:$0xff]  ;;  %v365_v30 = vld [vmem:[%s12773_s3 + $0x390] sm:$0xff]  ;;  %v5724_v31 = vpack.c.bf16 %v374_v24, %v366_v23  ;;  %v380_v33 = vld [vmem:[%s12773_s3 + $0x408] sm:$0xff] }
  0x16   :  { %5651 = vmatpush1.bf16.msra.mxu0 %v5650_v0  ;;  %v371_v29 = vld [vmem:[%s12773_s3 + $0x3c0] sm:$0xff]  ;;  %v373_v32 = vld [vmem:[%s12773_s3 + $0x3d0] sm:$0xff]  ;;  %v388_v34 = vld [vmem:[%s12773_s3 + $0x448] sm:$0xff] }
  0x17   :  { %5715 = vmatpush1.bf16.msra.mxu1 %v5714_v1  ;;  %5653 = vmatprep.subr.bf16.mxu0 %v5652_v2  ;;  %v382_v35 = vld [vmem:[%s12773_s3 + $0x418] sm:$0xff]  ;;  %v5662_v37 = vpack.c.bf16 %v371_v29, %v363_v28  ;;  %v5726_v38 = vpack.c.bf16 %v373_v32, %v365_v30  ;;  %v5664_v39 = vpack.c.bf16 %v388_v34, %v380_v33  ;;  %v379_v40 = vld [vmem:[%s12773_s3 + $0x400] sm:$0xff]  ;;  %v381_v42 = vld [vmem:[%s12773_s3 + $0x410] sm:$0xff] }
  0x18   :  { %5717 = vmatprep.subr.bf16.mxu1 %v5716_v7  ;;  %v390_v36 = vld [vmem:[%s12773_s3 + $0x458] sm:$0xff]  ;;  %v387_v41 = vld [vmem:[%s12773_s3 + $0x440] sm:$0xff]  ;;  %v389_v44 = vld [vmem:[%s12773_s3 + $0x450] sm:$0xff] }
  0x19   :  { %v5728_v43 = vpack.c.bf16 %v390_v36, %v382_v35  ;;  %v396_v45 = vld [vmem:[%s12773_s3 + $0x488] sm:$0xff]  ;;  %v398_v47 = vld [vmem:[%s12773_s3 + $0x498] sm:$0xff]  ;;  %v5666_v49 = vpack.c.bf16 %v387_v41, %v379_v40  ;;  %v5730_v50 = vpack.c.bf16 %v389_v44, %v381_v42  ;;  %v395_v52 = vld [vmem:[%s12773_s3 + $0x480] sm:$0xff] }
  0x1a   :  { %5655 = vmatpush1.bf16.msra.mxu0 %v5654_v13  ;;  %v404_v46 = vld [vmem:[%s12773_s3 + $0x4c8] sm:$0xff]  ;;  %v406_v48 = vld [vmem:[%s12773_s3 + $0x4d8] sm:$0xff]  ;;  %v403_v53 = vld [vmem:[%s12773_s3 + $0x4c0] sm:$0xff] }
  0x1b   :  { %5719 = vmatpush1.bf16.msra.mxu1 %v5718_v14  ;;  %5657 = vmatprep.subr.bf16.mxu0 %v5656_v15  ;;  %v5668_v51 = vpack.c.bf16 %v404_v46, %v396_v45  ;;  %v397_v54 = vld [vmem:[%s12773_s3 + $0x490] sm:$0xff]  ;;  %v5732_v55 = vpack.c.bf16 %v406_v48, %v398_v47  ;;  %v412_v57 = vld [vmem:[%s12773_s3 + $0x508] sm:$0xff]  ;;  %v414_v59 = vld [vmem:[%s12773_s3 + $0x518] sm:$0xff]  ;;  %v5670_v61 = vpack.c.bf16 %v403_v53, %v395_v52 }
  0x1c   :  { %5721 = vmatprep.subr.bf16.mxu1 %v5720_v19  ;;  %v405_v56 = vld [vmem:[%s12773_s3 + $0x4d0] sm:$0xff]  ;;  %v420_v58 = vld [vmem:[%s12773_s3 + $0x548] sm:$0xff]  ;;  %v422_v60 = vld [vmem:[%s12773_s3 + $0x558] sm:$0xff] }
  0x1d   :  { %v5734_v62 = vpack.c.bf16 %v405_v56, %v397_v54  ;;  %v5672_v63 = vpack.c.bf16 %v420_v58, %v412_v57  ;;  %v411_v0 = vld [vmem:[%s12773_s3 + $0x500] sm:$0xff]  ;;  %v413_v2 = vld [vmem:[%s12773_s3 + $0x510] sm:$0xff]  ;;  %v5736_v4 = vpack.c.bf16 %v422_v60, %v414_v59  ;;  %v428_v6 = vld [vmem:[%s12773_s3 + $0x588] sm:$0xff] }
  0x1e   :  { %5659 = vmatpush1.bf16.msra.mxu0 %v5658_v25  ;;  %v419_v1 = vld [vmem:[%s12773_s3 + $0x540] sm:$0xff]  ;;  %v421_v5 = vld [vmem:[%s12773_s3 + $0x550] sm:$0xff]  ;;  %v436_v7 = vld [vmem:[%s12773_s3 + $0x5c8] sm:$0xff] }
  0x1f   :  { %5723 = vmatpush1.bf16.msra.mxu1 %v5722_v26  ;;  %5661 = vmatprep.subr.bf16.mxu0 %v5660_v27  ;;  %v430_v8 = vld [vmem:[%s12773_s3 + $0x598] sm:$0xff]  ;;  %v5674_v10 = vpack.c.bf16 %v419_v1, %v411_v0  ;;  %v5738_v11 = vpack.c.bf16 %v421_v5, %v413_v2  ;;  %v5676_v12 = vpack.c.bf16 %v436_v7, %v428_v6  ;;  %v427_v13 = vld [vmem:[%s12773_s3 + $0x580] sm:$0xff]  ;;  %v429_v15 = vld [vmem:[%s12773_s3 + $0x590] sm:$0xff] }
  0x20   :  { %5725 = vmatprep.subr.bf16.mxu1 %v5724_v31  ;;  %v438_v9 = vld [vmem:[%s12773_s3 + $0x5d8] sm:$0xff]  ;;  %v435_v14 = vld [vmem:[%s12773_s3 + $0x5c0] sm:$0xff]  ;;  %v437_v17 = vld [vmem:[%s12773_s3 + $0x5d0] sm:$0xff] }
  0x21   :  { %v5740_v16 = vpack.c.bf16 %v438_v9, %v430_v8  ;;  %v444_v18 = vld [vmem:[%s12773_s3 + $0x608] sm:$0xff]  ;;  %v446_v20 = vld [vmem:[%s12773_s3 + $0x618] sm:$0xff]  ;;  %v5678_v22 = vpack.c.bf16 %v435_v14, %v427_v13  ;;  %v5742_v23 = vpack.c.bf16 %v437_v17, %v429_v15  ;;  %v443_v25 = vld [vmem:[%s12773_s3 + $0x600] sm:$0xff] }
  0x22   :  { %5663 = vmatpush1.bf16.msra.mxu0 %v5662_v37  ;;  %v452_v19 = vld [vmem:[%s12773_s3 + $0x648] sm:$0xff]  ;;  %v454_v21 = vld [vmem:[%s12773_s3 + $0x658] sm:$0xff]  ;;  %v451_v26 = vld [vmem:[%s12773_s3 + $0x640] sm:$0xff] }
  0x23   :  { %5727 = vmatpush1.bf16.msra.mxu1 %v5726_v38  ;;  %5665 = vmatprep.subr.bf16.mxu0 %v5664_v39  ;;  %v5680_v24 = vpack.c.bf16 %v452_v19, %v444_v18  ;;  %v445_v27 = vld [vmem:[%s12773_s3 + $0x610] sm:$0xff]  ;;  %v5744_v28 = vpack.c.bf16 %v454_v21, %v446_v20  ;;  %v460_v30 = vld [vmem:[%s12773_s3 + $0x688] sm:$0xff]  ;;  %v462_v32 = vld [vmem:[%s12773_s3 + $0x698] sm:$0xff]  ;;  %v5682_v34 = vpack.c.bf16 %v451_v26, %v443_v25 }
  0x24   :  { %5729 = vmatprep.subr.bf16.mxu1 %v5728_v43  ;;  %v453_v29 = vld [vmem:[%s12773_s3 + $0x650] sm:$0xff]  ;;  %v468_v31 = vld [vmem:[%s12773_s3 + $0x6c8] sm:$0xff]  ;;  %v470_v33 = vld [vmem:[%s12773_s3 + $0x6d8] sm:$0xff] }
  0x25   :  { %v5746_v35 = vpack.c.bf16 %v453_v29, %v445_v27  ;;  %v5684_v36 = vpack.c.bf16 %v468_v31, %v460_v30  ;;  %v459_v37 = vld [vmem:[%s12773_s3 + $0x680] sm:$0xff]  ;;  %v461_v39 = vld [vmem:[%s12773_s3 + $0x690] sm:$0xff]  ;;  %v5748_v40 = vpack.c.bf16 %v470_v33, %v462_v32  ;;  %v476_v42 = vld [vmem:[%s12773_s3 + $0x708] sm:$0xff] }
  0x26   :  { %5667 = vmatpush1.bf16.msra.mxu0 %v5666_v49  ;;  %v467_v38 = vld [vmem:[%s12773_s3 + $0x6c0] sm:$0xff]  ;;  %v469_v41 = vld [vmem:[%s12773_s3 + $0x6d0] sm:$0xff]  ;;  %v484_v43 = vld [vmem:[%s12773_s3 + $0x748] sm:$0xff] }
  0x27   :  { %5731 = vmatpush1.bf16.msra.mxu1 %v5730_v50  ;;  %5669 = vmatprep.subr.bf16.mxu0 %v5668_v51  ;;  %v478_v44 = vld [vmem:[%s12773_s3 + $0x718] sm:$0xff]  ;;  %v5686_v46 = vpack.c.bf16 %v467_v38, %v459_v37  ;;  %v5750_v47 = vpack.c.bf16 %v469_v41, %v461_v39  ;;  %v5688_v48 = vpack.c.bf16 %v484_v43, %v476_v42  ;;  %v475_v49 = vld [vmem:[%s12773_s3 + $0x700] sm:$0xff]  ;;  %v477_v51 = vld [vmem:[%s12773_s3 + $0x710] sm:$0xff] }
  0x28   :  { %5733 = vmatprep.subr.bf16.mxu1 %v5732_v55  ;;  %v486_v45 = vld [vmem:[%s12773_s3 + $0x758] sm:$0xff]  ;;  %v483_v50 = vld [vmem:[%s12773_s3 + $0x740] sm:$0xff]  ;;  %v485_v53 = vld [vmem:[%s12773_s3 + $0x750] sm:$0xff] }
  0x29   :  { %v5752_v52 = vpack.c.bf16 %v486_v45, %v478_v44  ;;  %v492_v54 = vld [vmem:[%s12773_s3 + $0x788] sm:$0xff]  ;;  %v494_v56 = vld [vmem:[%s12773_s3 + $0x798] sm:$0xff]  ;;  %v5690_v58 = vpack.c.bf16 %v483_v50, %v475_v49  ;;  %v5754_v59 = vpack.c.bf16 %v485_v53, %v477_v51  ;;  %v501_v1 = vld [vmem:[%s12773_s3 + $0x7d0] sm:$0xff] }
  0x2a   :  { %5671 = vmatpush1.bf16.msra.mxu0 %v5670_v61  ;;  %v500_v55 = vld [vmem:[%s12773_s3 + $0x7c8] sm:$0xff]  ;;  %v502_v57 = vld [vmem:[%s12773_s3 + $0x7d8] sm:$0xff]  ;;  %v491_v61 = vld [vmem:[%s12773_s3 + $0x780] sm:$0xff] }
  0x2b   :  { %5735 = vmatpush1.bf16.msra.mxu1 %v5734_v62  ;;  %5673 = vmatprep.subr.bf16.mxu0 %v5672_v63  ;;  %v5692_v60 = vpack.c.bf16 %v500_v55, %v492_v54  ;;  %v499_v62 = vld [vmem:[%s12773_s3 + $0x7c0] sm:$0xff]  ;;  %v493_v63 = vld [vmem:[%s12773_s3 + $0x790] sm:$0xff]  ;;  %v5756_v0 = vpack.c.bf16 %v502_v57, %v494_v56  ;;  %v256_v2 = vld [vmem:[%s12773_s3 + $0x28] sm:$0xff] }
  0x2c   :  { %5737 = vmatprep.subr.bf16.mxu1 %v5736_v4  ;;  %v264_v4 = vld [vmem:[%s12773_s3 + $0x68] sm:$0xff]  ;;  %v258_v5 = vld [vmem:[%s12773_s3 + $0x38] sm:$0xff]  ;;  %v5694_v7 = vpack.c.bf16 %v499_v62, %v491_v61  ;;  %v5758_v8 = vpack.c.bf16 %v501_v1, %v493_v63  ;;  %v265_v14 = vld [vmem:[%s12773_s3 + $0x70] sm:$0xff] }
  0x2d   :  { %v266_v6 = vld [vmem:[%s12773_s3 + $0x78] sm:$0xff]  ;;  %v5760_v9 = vpack.c.bf16 %v264_v4, %v256_v2  ;;  %v272_v15 = vld [vmem:[%s12773_s3 + $0xa8] sm:$0xff]  ;;  %v281_v26 = vld [vmem:[%s12773_s3 + $0xf0] sm:$0xff] }
  0x2e   :  { %5675 = vmatpush1.bf16.msra.mxu0 %v5674_v10  ;;  %v255_v10 = vld [vmem:[%s12773_s3 + $0x20] sm:$0xff]  ;;  %v5824_v13 = vpack.c.bf16 %v266_v6, %v258_v5  ;;  %v274_v17 = vld [vmem:[%s12773_s3 + $0xb8] sm:$0xff]  ;;  %v288_v27 = vld [vmem:[%s12773_s3 + $0x128] sm:$0xff] }
  0x2f   :  { %5739 = vmatpush1.bf16.msra.mxu1 %v5738_v11  ;;  %5677 = vmatprep.subr.bf16.mxu0 %v5676_v12  ;;  %v263_v11 = vld [vmem:[%s12773_s3 + $0x60] sm:$0xff]  ;;  %v257_v12 = vld [vmem:[%s12773_s3 + $0x30] sm:$0xff]  ;;  %v282_v18 = vld [vmem:[%s12773_s3 + $0xf8] sm:$0xff] }
  0x30   :  { %5741 = vmatprep.subr.bf16.mxu1 %v5740_v16  ;;  %v280_v16 = vld [vmem:[%s12773_s3 + $0xe8] sm:$0xff]  ;;  %v5762_v19 = vpack.c.bf16 %v263_v11, %v255_v10  ;;  %v5826_v20 = vpack.c.bf16 %v265_v14, %v257_v12  ;;  %v5828_v25 = vpack.c.bf16 %v282_v18, %v274_v17  ;;  %v290_v29 = vld [vmem:[%s12773_s3 + $0x138] sm:$0xff]  ;;  %v297_v38 = vld [vmem:[%s12773_s3 + $0x170] sm:$0xff] }
  0x31   :  { %v5764_v21 = vpack.c.bf16 %v280_v16, %v272_v15  ;;  %v298_v30 = vld [vmem:[%s12773_s3 + $0x178] sm:$0xff]  ;;  %v304_v39 = vld [vmem:[%s12773_s3 + $0x1a8] sm:$0xff]  ;;  %v313_v50 = vld [vmem:[%s12773_s3 + $0x1f0] sm:$0xff] }
  0x32   :  { %5679 = vmatpush1.bf16.msra.mxu0 %v5678_v22  ;;  %v271_v22 = vld [vmem:[%s12773_s3 + $0xa0] sm:$0xff]  ;;  %v5832_v37 = vpack.c.bf16 %v298_v30, %v290_v29  ;;  %v306_v41 = vld [vmem:[%s12773_s3 + $0x1b8] sm:$0xff]  ;;  %v320_v51 = vld [vmem:[%s12773_s3 + $0x228] sm:$0xff] }
  0x33   :  { %5743 = vmatpush1.bf16.msra.mxu1 %v5742_v23  ;;  %5681 = vmatprep.subr.bf16.mxu0 %v5680_v24  ;;  %v279_v23 = vld [vmem:[%s12773_s3 + $0xe0] sm:$0xff]  ;;  %v273_v24 = vld [vmem:[%s12773_s3 + $0xb0] sm:$0xff]  ;;  %v314_v42 = vld [vmem:[%s12773_s3 + $0x1f8] sm:$0xff] }
  0x34   :  { %5745 = vmatprep.subr.bf16.mxu1 %v5744_v28  ;;  %v296_v28 = vld [vmem:[%s12773_s3 + $0x168] sm:$0xff]  ;;  %v5766_v31 = vpack.c.bf16 %v279_v23, %v271_v22  ;;  %v5830_v32 = vpack.c.bf16 %v281_v26, %v273_v24  ;;  %v5836_v49 = vpack.c.bf16 %v314_v42, %v306_v41  ;;  %v322_v53 = vld [vmem:[%s12773_s3 + $0x238] sm:$0xff]  ;;  %v329_v62 = vld [vmem:[%s12773_s3 + $0x270] sm:$0xff] }
  0x35   :  { %v5768_v33 = vpack.c.bf16 %v296_v28, %v288_v27  ;;  %v330_v54 = vld [vmem:[%s12773_s3 + $0x278] sm:$0xff]  ;;  %v336_v63 = vld [vmem:[%s12773_s3 + $0x2a8] sm:$0xff]  ;;  %v345_v11 = vld [vmem:[%s12773_s3 + $0x2f0] sm:$0xff] }
  0x36   :  { %5683 = vmatpush1.bf16.msra.mxu0 %v5682_v34  ;;  %v287_v34 = vld [vmem:[%s12773_s3 + $0x120] sm:$0xff]  ;;  %v5840_v61 = vpack.c.bf16 %v330_v54, %v322_v53  ;;  %v338_v1 = vld [vmem:[%s12773_s3 + $0x2b8] sm:$0xff]  ;;  %v352_v12 = vld [vmem:[%s12773_s3 + $0x328] sm:$0xff] }
  0x37   :  { %5747 = vmatpush1.bf16.msra.mxu1 %v5746_v35  ;;  %5685 = vmatprep.subr.bf16.mxu0 %v5684_v36  ;;  %v295_v35 = vld [vmem:[%s12773_s3 + $0x160] sm:$0xff]  ;;  %v289_v36 = vld [vmem:[%s12773_s3 + $0x130] sm:$0xff]  ;;  %v346_v2 = vld [vmem:[%s12773_s3 + $0x2f8] sm:$0xff] }
  0x38   :  { %5749 = vmatprep.subr.bf16.mxu1 %v5748_v40  ;;  %v312_v40 = vld [vmem:[%s12773_s3 + $0x1e8] sm:$0xff]  ;;  %v5770_v43 = vpack.c.bf16 %v295_v35, %v287_v34  ;;  %v5834_v44 = vpack.c.bf16 %v297_v38, %v289_v36  ;;  %v5844_v10 = vpack.c.bf16 %v346_v2, %v338_v1  ;;  %v354_v14 = vld [vmem:[%s12773_s3 + $0x338] sm:$0xff]  ;;  %v351_v17 = vld [vmem:[%s12773_s3 + $0x320] sm:$0xff] }
  0x39   :  { %v5772_v45 = vpack.c.bf16 %v312_v40, %v304_v39  ;;  %v362_v15 = vld [vmem:[%s12773_s3 + $0x378] sm:$0xff]  ;;  %v359_v18 = vld [vmem:[%s12773_s3 + $0x360] sm:$0xff]  ;;  %v361_v22 = vld [vmem:[%s12773_s3 + $0x370] sm:$0xff] }
  0x3a   :  { %5687 = vmatpush1.bf16.msra.mxu0 %v5686_v46  ;;  %v303_v46 = vld [vmem:[%s12773_s3 + $0x1a0] sm:$0xff]  ;;  %v5848_v24 = vpack.c.bf16 %v362_v15, %v354_v14  ;;  %v376_v26 = vld [vmem:[%s12773_s3 + $0x3e8] sm:$0xff]  ;;  %v370_v28 = vld [vmem:[%s12773_s3 + $0x3b8] sm:$0xff] }
  0x3b   :  { %5751 = vmatpush1.bf16.msra.mxu1 %v5750_v47  ;;  %5689 = vmatprep.subr.bf16.mxu0 %v5688_v48  ;;  %v311_v47 = vld [vmem:[%s12773_s3 + $0x1e0] sm:$0xff]  ;;  %v305_v48 = vld [vmem:[%s12773_s3 + $0x1b0] sm:$0xff]  ;;  %v36_v27 = vld [vmem:[%s12774_s0 + $0x8] sm:$0xff] }
  0x3c   :  { %5753 = vmatprep.subr.bf16.mxu1 %v5752_v52  ;;  %v328_v52 = vld [vmem:[%s12773_s3 + $0x268] sm:$0xff]  ;;  %v5774_v55 = vpack.c.bf16 %v311_v47, %v303_v46  ;;  %v5838_v56 = vpack.c.bf16 %v313_v50, %v305_v48  ;;  %v35_v23 = vld [vmem:[%s12774_s0] sm:$0xff]  ;;  %v378_v29 = vld [vmem:[%s12773_s3 + $0x3f8] sm:$0xff]  ;;  %47 = vperm.xlu1 %7235, %v36_v27  }
  0x3d   :  { %v5776_v57 = vpack.c.bf16 %v328_v52, %v320_v51  ;;  %42 = vperm.xlu0 %7234, %v35_v23   ;;  %v37_v30 = vld [vmem:[%s12775_s1] sm:$0xff]  ;;  %v5852_v38 = vpack.c.bf16 %v378_v29, %v370_v28  ;;  %v377_v39 = vld [vmem:[%s12773_s3 + $0x3f0] sm:$0xff]  ;;  %v384_v40 = vld [vmem:[%s12773_s3 + $0x428] sm:$0xff] }
  0x3e   :  { %5691 = vmatpush1.bf16.msra.mxu0 %v5690_v58  ;;  %v319_v58 = vld [vmem:[%s12773_s3 + $0x220] sm:$0xff]  ;;  %v392_v41 = vld [vmem:[%s12773_s3 + $0x468] sm:$0xff]  ;;  %v386_v42 = vld [vmem:[%s12773_s3 + $0x438] sm:$0xff] }
  0x3f   :  { %5755 = vmatpush1.bf16.msra.mxu1 %v5754_v59  ;;  %5693 = vmatprep.subr.bf16.mxu0 %v5692_v60  ;;  %v327_v59 = vld [vmem:[%s12773_s3 + $0x260] sm:$0xff]  ;;  %v321_v60 = vld [vmem:[%s12773_s3 + $0x230] sm:$0xff]  ;;  %v5792_v48 = vpack.c.bf16 %v392_v41, %v384_v40  ;;  %v400_v54 = vld [vmem:[%s12773_s3 + $0x4a8] sm:$0xff] }
  0x40   :  { %5757 = vmatprep.subr.bf16.mxu1 %v5756_v0  ;;  %v344_v0 = vld [vmem:[%s12773_s3 + $0x2e8] sm:$0xff]  ;;  %v5778_v4 = vpack.c.bf16 %v327_v59, %v319_v58  ;;  %v5842_v5 = vpack.c.bf16 %v329_v62, %v321_v60  ;;  %v367_v35 = vld [vmem:[%s12773_s3 + $0x3a0] sm:$0xff]  ;;  %v5540_v46 = vld [vmem:[%s12775_s1 + $0x10] sm:$0xff] }
  0x41   :  { %v5780_v6 = vpack.c.bf16 %v344_v0, %v336_v63  ;;  %v375_v36 = vld [vmem:[%s12773_s3 + $0x3e0] sm:$0xff]  ;;  %111 = vperm.xlu0 %7234, %v37_v30   ;;  %v385_v51 = vld [vmem:[%s12773_s3 + $0x430] sm:$0xff]  ;;  %v5539_v58 = vld [vmem:[%s12774_s0 + $0x18] sm:$0xff] }
  0x42   :  { %5695 = vmatpush1.bf16.msra.mxu0 %v5694_v7  ;;  %v335_v7 = vld [vmem:[%s12773_s3 + $0x2a0] sm:$0xff]  ;;  %v393_v53 = vld [vmem:[%s12773_s3 + $0x470] sm:$0xff]  ;;  %v5541_v60 = vld [vmem:[%s12775_s1 + $0x18] sm:$0xff] }
  0x43   :  { %5759 = vmatpush1.bf16.msra.mxu1 %v5758_v8  ;;  %5761 = vmatprep.subr.bf16.mxu0 %v5760_v9  ;;  %v343_v8 = vld [vmem:[%s12773_s3 + $0x2e0] sm:$0xff]  ;;  %v337_v9 = vld [vmem:[%s12773_s3 + $0x2b0] sm:$0xff]  ;;  %v5557_v23 = vld [vmem:[%s12774_s0 + $0x28] sm:$0xff] }
  0x44   :  { %5825 = vmatprep.subr.bf16.mxu1 %v5824_v13  ;;  %v360_v13 = vld [vmem:[%s12773_s3 + $0x368] sm:$0xff]  ;;  %v5782_v16 = vpack.c.bf16 %v343_v8, %v335_v7  ;;  %v391_v50 = vld [vmem:[%s12773_s3 + $0x460] sm:$0xff]  ;;  %v401_v1 = vld [vmem:[%s12773_s3 + $0x4b0] sm:$0xff] }
  0x45   :  { %572 = vmatmul.mubr.f32.vlgmr.msra.gmra.mrb[0].mxu0 %v12784_v3  ;;  %v399_v63 = vld [vmem:[%s12773_s3 + $0x4a0] sm:$0xff]  ;;  %v418_v7 = vld [vmem:[%s12773_s3 + $0x538] sm:$0xff]  ;;  %v433_v30 = vld [vmem:[%s12773_s3 + $0x5b0] sm:$0xff] }
  0x46   :  { %649 = vmatmul.mubr.f32.vlgmr.msra.gmra.mrb[0].mxu1 %v12784_v3  ;;  %5763 = vmatpush1.bf16.msra.mxu0 %v5762_v19  ;;  %v5846_v19 = vpack.c.bf16 %v345_v11, %v337_v9  ;;  %v407_v0 = vld [vmem:[%s12773_s3 + $0x4e0] sm:$0xff]  ;;  %v426_v8 = vld [vmem:[%s12773_s3 + $0x578] sm:$0xff] }
  0x47   :  { %5827 = vmatpush1.bf16.msra.mxu1 %v5826_v20  ;;  %5765 = vmatprep.subr.bf16.mxu0 %v5764_v21  ;;  %v5784_v20 = vpack.c.bf16 %v360_v13, %v352_v12  ;;  %v353_v21 = vld [vmem:[%s12773_s3 + $0x330] sm:$0xff]  ;;  %v5556_v9 = vld [vmem:[%s12774_s0 + $0x20] sm:$0xff] }
  0x48   :  { %5829 = vmatprep.subr.bf16.mxu1 %v5828_v25  ;;  %577 = vmatprep.mubr.f32.mxu0 %v12784_v3  ;;  %v368_v25 = vld [vmem:[%s12773_s3 + $0x3a8] sm:$0xff]  ;;  %v5558_v11 = vld [vmem:[%s12775_s1 + $0x20] sm:$0xff] }
  0x49   :  { %654 = vmatprep.mubr.f32.mxu1 %v12784_v3  ;;  %578 = vmatmul.mubr.f32.gmra.mrb[2].mxu0 %v12784_v3  ;;  %v5788_v34 = vpack.c.bf16 %v376_v26, %v368_v25  ;;  %v415_v14 = vld [vmem:[%s12773_s3 + $0x520] sm:$0xff]  ;;  %v5559_v25 = vld [vmem:[%s12775_s1 + $0x28] sm:$0xff] }
  0x4a   :  { %5767 = vmatpush1.bf16.msra.mxu0 %v5766_v31  ;;  %655 = vmatmul.mubr.f32.gmra.mrb[2].mxu1 %v12784_v3  ;;  %v5786_v31 = vpack.c.bf16 %v359_v18, %v351_v17  ;;  %v423_v15 = vld [vmem:[%s12773_s3 + $0x560] sm:$0xff]  ;;  %v5864_v17 = vpack.c.bf16 %v426_v8, %v418_v7  ;;  %v425_v18 = vld [vmem:[%s12773_s3 + $0x570] sm:$0xff] }
  0x4b   :  { %5831 = vmatpush1.bf16.msra.mxu1 %v5830_v32  ;;  %5769 = vmatprep.subr.bf16.mxu0 %v5768_v33  ;;  %v38_v32 = vld [vmem:[%s12775_s1 + $0x8] sm:$0xff]  ;;  %v5850_v33 = vpack.c.bf16 %v361_v22, %v353_v21  ;;  %v434_v21 = vld [vmem:[%s12773_s3 + $0x5b8] sm:$0xff]  ;;  %v431_v28 = vld [vmem:[%s12773_s3 + $0x5a0] sm:$0xff] }
  0x4c   :  { %5833 = vmatprep.subr.bf16.mxu1 %v5832_v37  ;;  %725 = vmatprep.mubr.f32.mxu0 %v12784_v3  ;;  %v369_v37 = vld [vmem:[%s12773_s3 + $0x3b0] sm:$0xff]  ;;  %v442_v22 = vld [vmem:[%s12773_s3 + $0x5f8] sm:$0xff]  ;;  %v439_v29 = vld [vmem:[%s12773_s3 + $0x5e0] sm:$0xff] }
  0x4d   :  { %802 = vmatprep.mubr.f32.mxu1 %v12784_v3  ;;  %116 = vperm.xlu1 %7235, %v38_v32   ;;  %v5854_v47 = vpack.c.bf16 %v377_v39, %v369_v37  ;;  %v441_v32 = vld [vmem:[%s12773_s3 + $0x5f0] sm:$0xff] }
  0x4e   :  { %5771 = vmatpush1.bf16.msra.mxu0 %v5770_v43  ;;  %v394_v43 = vld [vmem:[%s12773_s3 + $0x478] sm:$0xff]  ;;  %v5574_v37 = vld [vmem:[%s12774_s0 + $0x30] sm:$0xff]  ;;  %v5870_v40 = vpack.c.bf16 %v441_v32, %v433_v30  ;;  %v1161_v30 = vld [vmem:[%s12773_s3 + $0x40] sm:$0xff] }
  0x4f   :  { %5835 = vmatpush1.bf16.msra.mxu1 %v5834_v44  ;;  %5773 = vmatprep.subr.bf16.mxu0 %v5772_v45  ;;  %v5538_v44 = vld [vmem:[%s12774_s0 + $0x10] sm:$0xff]  ;;  %v5790_v45 = vpack.c.bf16 %v375_v36, %v367_v35  ;;  %v5856_v52 = vpack.c.bf16 %v394_v43, %v386_v42  ;;  %v450_v35 = vld [vmem:[%s12773_s3 + $0x638] sm:$0xff]  ;;  %v447_v42 = vld [vmem:[%s12773_s3 + $0x620] sm:$0xff] }
  0x50   :  { %5837 = vmatprep.subr.bf16.mxu1 %v5836_v49  ;;  %v383_v49 = vld [vmem:[%s12773_s3 + $0x420] sm:$0xff]  ;;  %946 = vperm.xlu0 %7234, %v5538_v44   ;;  %v458_v36 = vld [vmem:[%s12773_s3 + $0x678] sm:$0xff]  ;;  %v5576_v39 = vld [vmem:[%s12775_s1 + $0x30] sm:$0xff] }
  0x51   :  { %1014 = vperm.xlu1 %7235, %v5540_v46   ;;  %v5794_v59 = vpack.c.bf16 %v391_v50, %v383_v49  ;;  %v455_v43 = vld [vmem:[%s12773_s3 + $0x660] sm:$0xff]  ;;  %v449_v44 = vld [vmem:[%s12773_s3 + $0x630] sm:$0xff]  ;;  %v466_v49 = vld [vmem:[%s12773_s3 + $0x6b8] sm:$0xff] }
  0x52   :  { %5775 = vmatpush1.bf16.msra.mxu0 %v5774_v55  ;;  %v408_v55 = vld [vmem:[%s12773_s3 + $0x4e8] sm:$0xff]  ;;  %v457_v46 = vld [vmem:[%s12773_s3 + $0x670] sm:$0xff]  ;;  %v474_v50 = vld [vmem:[%s12773_s3 + $0x6f8] sm:$0xff] }
  0x53   :  { %5839 = vmatpush1.bf16.msra.mxu1 %v5838_v56  ;;  %5777 = vmatprep.subr.bf16.mxu0 %v5776_v57  ;;  %v402_v56 = vld [vmem:[%s12773_s3 + $0x4b8] sm:$0xff]  ;;  %v5796_v62 = vpack.c.bf16 %v408_v55, %v400_v54  ;;  %v5874_v54 = vpack.c.bf16 %v457_v46, %v449_v44  ;;  %v481_v7 = vld [vmem:[%s12773_s3 + $0x730] sm:$0xff] }
  0x54   :  { %5841 = vmatprep.subr.bf16.mxu1 %v5840_v61  ;;  %v410_v57 = vld [vmem:[%s12773_s3 + $0x4f8] sm:$0xff]  ;;  %v5858_v61 = vpack.c.bf16 %v393_v53, %v385_v51  ;;  %951 = vperm.xlu0 %7234, %v5539_v58   ;;  %v465_v58 = vld [vmem:[%s12773_s3 + $0x6b0] sm:$0xff] }
  0x55   :  { %v5860_v2 = vpack.c.bf16 %v410_v57, %v402_v56  ;;  %1019 = vperm.xlu1 %7235, %v5541_v60   ;;  %v5575_v51 = vld [vmem:[%s12774_s0 + $0x38] sm:$0xff]  ;;  %v463_v56 = vld [vmem:[%s12773_s3 + $0x6a0] sm:$0xff]  ;;  %v473_v60 = vld [vmem:[%s12773_s3 + $0x6f0] sm:$0xff] }
  0x56   :  { %5779 = vmatpush1.bf16.msra.mxu0 %v5778_v4  ;;  %v409_v4 = vld [vmem:[%s12773_s3 + $0x4f0] sm:$0xff]  ;;  %v5577_v53 = vld [vmem:[%s12775_s1 + $0x38] sm:$0xff]  ;;  %v471_v57 = vld [vmem:[%s12773_s3 + $0x6e0] sm:$0xff] }
  0x57   :  { %5843 = vmatpush1.bf16.msra.mxu1 %v5842_v5  ;;  %5781 = vmatprep.subr.bf16.mxu0 %v5780_v6  ;;  %v416_v5 = vld [vmem:[%s12773_s3 + $0x528] sm:$0xff]  ;;  %v5862_v12 = vpack.c.bf16 %v409_v4, %v401_v1  ;;  %v5814_v1 = vpack.c.bf16 %v471_v57, %v463_v56  ;;  %v1171_v44 = vld [vmem:[%s12773_s3 + $0x90] sm:$0xff] }
  0x58   :  { %5845 = vmatprep.subr.bf16.mxu1 %v5844_v10  ;;  %v424_v6 = vld [vmem:[%s12773_s3 + $0x568] sm:$0xff]  ;;  %v5798_v10 = vpack.c.bf16 %v407_v0, %v399_v63  ;;  %1848 = vperm.xlu0 %7234, %v5556_v9   ;;  %v482_v63 = vld [vmem:[%s12773_s3 + $0x738] sm:$0xff]  ;;  %v489_v9 = vld [vmem:[%s12773_s3 + $0x770] sm:$0xff] }
  0x59   :  { %v5800_v13 = vpack.c.bf16 %v424_v6, %v416_v5  ;;  %1916 = vperm.xlu1 %7235, %v5558_v11   ;;  %v490_v0 = vld [vmem:[%s12773_s3 + $0x778] sm:$0xff]  ;;  %v479_v5 = vld [vmem:[%s12773_s3 + $0x720] sm:$0xff]  ;;  %v504_v11 = vld [vmem:[%s12773_s3 + $0x7e8] sm:$0xff] }
  0x5a   :  { %5783 = vmatpush1.bf16.msra.mxu0 %v5782_v16  ;;  %v417_v16 = vld [vmem:[%s12773_s3 + $0x530] sm:$0xff]  ;;  %v487_v6 = vld [vmem:[%s12773_s3 + $0x760] sm:$0xff]  ;;  %v5880_v8 = vpack.c.bf16 %v490_v0, %v482_v63  ;;  %v1212_v0 = vld [vmem:[%s12773_s3 + $0x1d8] sm:$0xff] }
  0x5b   :  { %5847 = vmatpush1.bf16.msra.mxu1 %v5846_v19  ;;  %5785 = vmatprep.subr.bf16.mxu0 %v5784_v20  ;;  %v432_v19 = vld [vmem:[%s12773_s3 + $0x5a8] sm:$0xff]  ;;  %v5866_v26 = vpack.c.bf16 %v425_v18, %v417_v16  ;;  %v503_v18 = vld [vmem:[%s12773_s3 + $0x7e0] sm:$0xff]  ;;  %v1179_v46 = vld [vmem:[%s12773_s3 + $0xd0] sm:$0xff] }
  0x5c   :  { %5849 = vmatprep.subr.bf16.mxu1 %v5848_v24  ;;  %v440_v20 = vld [vmem:[%s12773_s3 + $0x5e8] sm:$0xff]  ;;  %v5802_v24 = vpack.c.bf16 %v423_v15, %v415_v14  ;;  %1853 = vperm.xlu0 %7234, %v5557_v23   ;;  %v5818_v14 = vpack.c.bf16 %v487_v6, %v479_v5  ;;  %v5882_v15 = vpack.c.bf16 %v489_v9, %v481_v7  ;;  %v1187_v56 = vld [vmem:[%s12773_s3 + $0x110] sm:$0xff]  ;;  %v1220_v9 = vld [vmem:[%s12773_s3 + $0x218] sm:$0xff] }
  0x5d   :  { %v5804_v27 = vpack.c.bf16 %v440_v20, %v432_v19  ;;  %1921 = vperm.xlu1 %7235, %v5559_v25   ;;  %v497_v20 = vld [vmem:[%s12773_s3 + $0x7b0] sm:$0xff]  ;;  %v1162_v25 = vld [vmem:[%s12773_s3 + $0x48] sm:$0xff] }
  0x5e   :  { %5787 = vmatpush1.bf16.msra.mxu0 %v5786_v31  ;;  %v5868_v31 = vpack.c.bf16 %v442_v22, %v434_v21  ;;  %v505_v21 = vld [vmem:[%s12773_s3 + $0x7f0] sm:$0xff]  ;;  %v1218_v7 = vld [vmem:[%s12773_s3 + $0x208] sm:$0xff] }
  0x5f   :  { %5851 = vmatpush1.bf16.msra.mxu1 %v5850_v33  ;;  %5789 = vmatprep.subr.bf16.mxu0 %v5788_v34  ;;  %v448_v33 = vld [vmem:[%s12773_s3 + $0x628] sm:$0xff]  ;;  %v5886_v23 = vpack.c.bf16 %v505_v21, %v497_v20  ;;  %v1195_v57 = vld [vmem:[%s12773_s3 + $0x150] sm:$0xff]  ;;  %v1236_v21 = vld [vmem:[%s12773_s3 + $0x298] sm:$0xff] }
  0x60   :  { %5853 = vmatprep.subr.bf16.mxu1 %v5852_v38  ;;  %v456_v34 = vld [vmem:[%s12773_s3 + $0x668] sm:$0xff]  ;;  %v5806_v38 = vpack.c.bf16 %v439_v29, %v431_v28  ;;  %2744 = vperm.xlu0 %7234, %v5574_v37   ;;  %v1164_v28 = vld [vmem:[%s12773_s3 + $0x58] sm:$0xff]  ;;  %v1153_v29 = vld [vmem:[%s12773_s3] sm:$0xff] }
  0x61   :  { %v5808_v41 = vpack.c.bf16 %v456_v34, %v448_v33  ;;  %2812 = vperm.xlu1 %7235, %v5576_v39   ;;  %v5890_v32 = vpack.c.bf16 %v1161_v30, %v1153_v29  ;;  %v1155_v33 = vld [vmem:[%s12773_s3 + $0x10] sm:$0xff]  ;;  %v1178_v37 = vld [vmem:[%s12773_s3 + $0xc8] sm:$0xff]  ;;  %v1180_v39 = vld [vmem:[%s12773_s3 + $0xd8] sm:$0xff] }
  0x62   :  { %5791 = vmatpush1.bf16.msra.mxu0 %v5790_v45  ;;  %v5872_v45 = vpack.c.bf16 %v458_v36, %v450_v35  ;;  %v1163_v34 = vld [vmem:[%s12773_s3 + $0x50] sm:$0xff]  ;;  %v1170_v35 = vld [vmem:[%s12773_s3 + $0x88] sm:$0xff] }
  0x63   :  { %5855 = vmatpush1.bf16.msra.mxu1 %v5854_v47  ;;  %5793 = vmatprep.subr.bf16.mxu0 %v5792_v48  ;;  %v464_v47 = vld [vmem:[%s12773_s3 + $0x6a8] sm:$0xff]  ;;  %v5954_v36 = vpack.c.bf16 %v1163_v34, %v1155_v33  ;;  %v1203_v5 = vld [vmem:[%s12773_s3 + $0x190] sm:$0xff]  ;;  %v1252_v33 = vld [vmem:[%s12773_s3 + $0x318] sm:$0xff] }
  0x64   :  { %5857 = vmatprep.subr.bf16.mxu1 %v5856_v52  ;;  %v472_v48 = vld [vmem:[%s12773_s3 + $0x6e8] sm:$0xff]  ;;  %v5810_v52 = vpack.c.bf16 %v455_v43, %v447_v42  ;;  %2749 = vperm.xlu0 %7234, %v5575_v51   ;;  %v1169_v42 = vld [vmem:[%s12773_s3 + $0x80] sm:$0xff]  ;;  %v1188_v51 = vld [vmem:[%s12773_s3 + $0x118] sm:$0xff] }
  0x65   :  { %v5812_v55 = vpack.c.bf16 %v472_v48, %v464_v47  ;;  %2817 = vperm.xlu1 %7235, %v5577_v53   ;;  %v1177_v43 = vld [vmem:[%s12773_s3 + $0xc0] sm:$0xff]  ;;  %v1186_v47 = vld [vmem:[%s12773_s3 + $0x108] sm:$0xff]  ;;  %v1211_v6 = vld [vmem:[%s12773_s3 + $0x1d0] sm:$0xff] }
  0x66   :  { %5795 = vmatpush1.bf16.msra.mxu0 %v5794_v59  ;;  %v5876_v59 = vpack.c.bf16 %v474_v50, %v466_v49  ;;  %v1194_v48 = vld [vmem:[%s12773_s3 + $0x148] sm:$0xff]  ;;  %v5958_v49 = vpack.c.bf16 %v1179_v46, %v1171_v44  ;;  %v1185_v53 = vld [vmem:[%s12773_s3 + $0x100] sm:$0xff]  ;;  %v1243_v30 = vld [vmem:[%s12773_s3 + $0x2d0] sm:$0xff] }
  0x67   :  { %5859 = vmatpush1.bf16.msra.mxu1 %v5858_v61  ;;  %5797 = vmatprep.subr.bf16.mxu0 %v5796_v62  ;;  %v480_v61 = vld [vmem:[%s12773_s3 + $0x728] sm:$0xff]  ;;  %v5896_v50 = vpack.c.bf16 %v1194_v48, %v1186_v47  ;;  %v1260_v34 = vld [vmem:[%s12773_s3 + $0x358] sm:$0xff] }
  0x68   :  { %5861 = vmatprep.subr.bf16.mxu1 %v5860_v2  ;;  %v488_v62 = vld [vmem:[%s12773_s3 + $0x768] sm:$0xff]  ;;  %v5878_v2 = vpack.c.bf16 %v473_v60, %v465_v58  ;;  %v1276_v46 = vld [vmem:[%s12773_s3 + $0x3d8] sm:$0xff] }
  0x69   :  { %v5816_v4 = vpack.c.bf16 %v488_v62, %v480_v61  ;;  %v1210_v60 = vld [vmem:[%s12773_s3 + $0x1c8] sm:$0xff]  ;;  %v1204_v61 = vld [vmem:[%s12773_s3 + $0x198] sm:$0xff]  ;;  %v5962_v62 = vpack.c.bf16 %v1195_v57, %v1187_v56 }
  0x6a   :  { %5799 = vmatpush1.bf16.msra.mxu0 %v5798_v10  ;;  %v496_v10 = vld [vmem:[%s12773_s3 + $0x7a8] sm:$0xff] }
  0x6b   :  { %5863 = vmatpush1.bf16.msra.mxu1 %v5862_v12  ;;  %5801 = vmatprep.subr.bf16.mxu0 %v5800_v13  ;;  %v498_v12 = vld [vmem:[%s12773_s3 + $0x7b8] sm:$0xff]  ;;  %v5820_v16 = vpack.c.bf16 %v504_v11, %v496_v10  ;;  %v1242_v20 = vld [vmem:[%s12773_s3 + $0x2c8] sm:$0xff] }
  0x6c   :  { %5865 = vmatprep.subr.bf16.mxu1 %v5864_v17  ;;  %v506_v13 = vld [vmem:[%s12773_s3 + $0x7f8] sm:$0xff]  ;;  %v495_v17 = vld [vmem:[%s12773_s3 + $0x7a0] sm:$0xff]  ;;  %v1274_v44 = vld [vmem:[%s12773_s3 + $0x3c8] sm:$0xff] }
  0x6d   :  { %v5884_v19 = vpack.c.bf16 %v506_v13, %v498_v12  ;;  %v5822_v22 = vpack.c.bf16 %v503_v18, %v495_v17  ;;  %v1228_v10 = vld [vmem:[%s12773_s3 + $0x258] sm:$0xff]  ;;  %v5966_v12 = vpack.c.bf16 %v1211_v6, %v1203_v5  ;;  %v1227_v18 = vld [vmem:[%s12773_s3 + $0x250] sm:$0xff]  ;;  %v1282_v57 = vld [vmem:[%s12773_s3 + $0x408] sm:$0xff] }
  0x6e   :  { %5803 = vmatpush1.bf16.msra.mxu0 %v5802_v24  ;;  %v1154_v24 = vld [vmem:[%s12773_s3 + $0x8] sm:$0xff]  ;;  %v5968_v17 = vpack.c.bf16 %v1228_v10, %v1220_v9  ;;  %v1308_v9 = vld [vmem:[%s12773_s3 + $0x4d8] sm:$0xff]  ;;  %v1297_v10 = vld [vmem:[%s12773_s3 + $0x480] sm:$0xff] }
  0x6f   :  { %5867 = vmatpush1.bf16.msra.mxu1 %v5866_v26  ;;  %5805 = vmatprep.subr.bf16.mxu0 %v5804_v27  ;;  %v1156_v26 = vld [vmem:[%s12773_s3 + $0x18] sm:$0xff]  ;;  %v5888_v27 = vpack.c.bf16 %v1162_v25, %v1154_v24  ;;  %v1298_v6 = vld [vmem:[%s12773_s3 + $0x488] sm:$0xff] }
  0x70   :  { %5869 = vmatprep.subr.bf16.mxu1 %v5868_v31  ;;  %v5952_v31 = vpack.c.bf16 %v1164_v28, %v1156_v26  ;;  %v1233_v26 = vld [vmem:[%s12773_s3 + $0x280] sm:$0xff]  ;;  %v1235_v28 = vld [vmem:[%s12773_s3 + $0x290] sm:$0xff] }
  0x72   :  { %5807 = vmatpush1.bf16.msra.mxu0 %v5806_v38  ;;  %v1172_v38 = vld [vmem:[%s12773_s3 + $0x98] sm:$0xff] }
  0x73   :  { %5871 = vmatpush1.bf16.msra.mxu1 %v5870_v40  ;;  %5809 = vmatprep.subr.bf16.mxu0 %v5808_v41  ;;  %v5892_v40 = vpack.c.bf16 %v1178_v37, %v1170_v35  ;;  %v5956_v41 = vpack.c.bf16 %v1180_v39, %v1172_v38  ;;  %v1249_v38 = vld [vmem:[%s12773_s3 + $0x300] sm:$0xff] }
  0x74   :  { %5873 = vmatprep.subr.bf16.mxu1 %v5872_v45  ;;  %v5894_v45 = vpack.c.bf16 %v1177_v43, %v1169_v42  ;;  %v1257_v39 = vld [vmem:[%s12773_s3 + $0x340] sm:$0xff]  ;;  %v1259_v42 = vld [vmem:[%s12773_s3 + $0x350] sm:$0xff]  ;;  %v1266_v43 = vld [vmem:[%s12773_s3 + $0x388] sm:$0xff] }
  0x75   :  { %v5914_v47 = vpack.c.bf16 %v1257_v39, %v1249_v38  ;;  %v1339_v39 = vld [vmem:[%s12773_s3 + $0x5d0] sm:$0xff] }
  0x76   :  { %5811 = vmatpush1.bf16.msra.mxu0 %v5810_v52  ;;  %v1196_v52 = vld [vmem:[%s12773_s3 + $0x158] sm:$0xff] }
  0x77   :  { %5875 = vmatpush1.bf16.msra.mxu1 %v5874_v54  ;;  %5813 = vmatprep.subr.bf16.mxu0 %v5812_v55  ;;  %v5960_v54 = vpack.c.bf16 %v1196_v52, %v1188_v51  ;;  %v1193_v55 = vld [vmem:[%s12773_s3 + $0x140] sm:$0xff] }
  0x78   :  { %5877 = vmatprep.subr.bf16.mxu1 %v5876_v59  ;;  %v5898_v58 = vpack.c.bf16 %v1193_v55, %v1185_v53  ;;  %v1202_v59 = vld [vmem:[%s12773_s3 + $0x188] sm:$0xff]  ;;  %v1273_v51 = vld [vmem:[%s12773_s3 + $0x3c0] sm:$0xff]  ;;  %v1267_v53 = vld [vmem:[%s12773_s3 + $0x390] sm:$0xff] }
  0x79   :  { %v5900_v63 = vpack.c.bf16 %v1210_v60, %v1202_v59  ;;  %v1284_v59 = vld [vmem:[%s12773_s3 + $0x418] sm:$0xff] }
  0x7a   :  { %5815 = vmatpush1.bf16.msra.mxu0 %v5814_v1  ;;  %v1201_v1 = vld [vmem:[%s12773_s3 + $0x180] sm:$0xff]  ;;  %v1292_v60 = vld [vmem:[%s12773_s3 + $0x458] sm:$0xff] }
  0x7b   :  { %5879 = vmatpush1.bf16.msra.mxu1 %v5878_v2  ;;  %5817 = vmatprep.subr.bf16.mxu0 %v5816_v4  ;;  %v1209_v2 = vld [vmem:[%s12773_s3 + $0x1c0] sm:$0xff]  ;;  %v5964_v4 = vpack.c.bf16 %v1212_v0, %v1204_v61  ;;  %v1291_v0 = vld [vmem:[%s12773_s3 + $0x450] sm:$0xff] }
  0x7c   :  { %5881 = vmatprep.subr.bf16.mxu1 %v5880_v8  ;;  %v1226_v8 = vld [vmem:[%s12773_s3 + $0x248] sm:$0xff]  ;;  %v5902_v11 = vpack.c.bf16 %v1209_v2, %v1201_v1  ;;  %v1281_v61 = vld [vmem:[%s12773_s3 + $0x400] sm:$0xff]  ;;  %v5984_v2 = vpack.c.bf16 %v1292_v60, %v1284_v59 }
  0x7d   :  { %v5904_v13 = vpack.c.bf16 %v1226_v8, %v1218_v7  ;;  %v1306_v7 = vld [vmem:[%s12773_s3 + $0x4c8] sm:$0xff]  ;;  %v1300_v8 = vld [vmem:[%s12773_s3 + $0x498] sm:$0xff]  ;;  %v1361_v59 = vld [vmem:[%s12773_s3 + $0x680] sm:$0xff] }
  0x7e   :  { %5819 = vmatpush1.bf16.msra.mxu0 %v5818_v14  ;;  %v1217_v14 = vld [vmem:[%s12773_s3 + $0x200] sm:$0xff] }
  0x7f   :  { %5883 = vmatpush1.bf16.msra.mxu1 %v5882_v15  ;;  %5821 = vmatprep.subr.bf16.mxu0 %v5820_v16  ;;  %v1225_v15 = vld [vmem:[%s12773_s3 + $0x240] sm:$0xff]  ;;  %v1219_v16 = vld [vmem:[%s12773_s3 + $0x210] sm:$0xff] }
  0x80   :  { %5885 = vmatprep.subr.bf16.mxu1 %v5884_v19  ;;  %v1234_v19 = vld [vmem:[%s12773_s3 + $0x288] sm:$0xff]  ;;  %v5970_v24 = vpack.c.bf16 %v1227_v18, %v1219_v16  ;;  %v1316_v18 = vld [vmem:[%s12773_s3 + $0x518] sm:$0xff]  ;;  %v1369_v60 = vld [vmem:[%s12773_s3 + $0x6c0] sm:$0xff] }
  0x81   :  { %v5908_v25 = vpack.c.bf16 %v1242_v20, %v1234_v19  ;;  %v1314_v16 = vld [vmem:[%s12773_s3 + $0x508] sm:$0xff]  ;;  %v1324_v19 = vld [vmem:[%s12773_s3 + $0x558] sm:$0xff]  ;;  %v1313_v20 = vld [vmem:[%s12773_s3 + $0x500] sm:$0xff] }
  0x82   :  { %5823 = vmatpush1.bf16.msra.mxu0 %v5822_v22  ;;  %v1244_v22 = vld [vmem:[%s12773_s3 + $0x2d8] sm:$0xff] }
  0x83   :  { %5887 = vmatpush1.bf16.msra.mxu1 %v5886_v23  ;;  %5889 = vmatprep.subr.bf16.mxu0 %v5888_v27  ;;  %v5906_v23 = vpack.c.bf16 %v1225_v15, %v1217_v14  ;;  %v1241_v27 = vld [vmem:[%s12773_s3 + $0x2c0] sm:$0xff]  ;;  %v5972_v29 = vpack.c.bf16 %v1244_v22, %v1236_v21  ;;  %v1299_v14 = vld [vmem:[%s12773_s3 + $0x490] sm:$0xff] }
  0x84   :  { %5953 = vmatprep.subr.bf16.mxu1 %v5952_v31  ;;  %v1250_v31 = vld [vmem:[%s12773_s3 + $0x308] sm:$0xff]  ;;  %v5910_v35 = vpack.c.bf16 %v1241_v27, %v1233_v26  ;;  %v1307_v15 = vld [vmem:[%s12773_s3 + $0x4d0] sm:$0xff]  ;;  %v1321_v21 = vld [vmem:[%s12773_s3 + $0x540] sm:$0xff] }
  0x85   :  { %726 = vmatmul.mubr.f32.vlgmr.msra.gmra.mrb[4].mxu0 %v12784_v3  ;;  %v1315_v22 = vld [vmem:[%s12773_s3 + $0x510] sm:$0xff]  ;;  %v1338_v26 = vld [vmem:[%s12773_s3 + $0x5c8] sm:$0xff]  ;;  %v5990_v27 = vpack.c.bf16 %v1307_v15, %v1299_v14  ;;  %v1396_v15 = vld [vmem:[%s12773_s3 + $0x798] sm:$0xff] }
  0x86   :  { %803 = vmatmul.mubr.f32.vlgmr.msra.gmra.mrb[4].mxu1 %v12784_v3  ;;  %731 = vmatprep.mubr.f32.mxu0 %v12784_v3  ;;  %v1402_v14 = vld [vmem:[%s12773_s3 + $0x7c8] sm:$0xff] }
  0x87   :  { %808 = vmatprep.mubr.f32.mxu1 %v12784_v3  ;;  %5891 = vmatpush1.bf16.msra.mxu0 %v5890_v32  ;;  %v1258_v32 = vld [vmem:[%s12773_s3 + $0x348] sm:$0xff] }
  0x88   :  { %5955 = vmatpush1.bf16.msra.mxu1 %v5954_v36  ;;  %5893 = vmatprep.subr.bf16.mxu0 %v5892_v40  ;;  %v5974_v36 = vpack.c.bf16 %v1243_v30, %v1235_v28  ;;  %v5912_v37 = vpack.c.bf16 %v1258_v32, %v1250_v31  ;;  %v1251_v40 = vld [vmem:[%s12773_s3 + $0x310] sm:$0xff]  ;;  %v1332_v30 = vld [vmem:[%s12773_s3 + $0x598] sm:$0xff]  ;;  %v5930_v32 = vpack.c.bf16 %v1321_v21, %v1313_v20  ;;  %v1393_v20 = vld [vmem:[%s12773_s3 + $0x780] sm:$0xff] }
  0x89   :  { %732 = vmatmul.mubr.f32.gmra.mrb[6].mxu0 %v12784_v3  ;;  %5957 = vmatprep.subr.bf16.mxu1 %v5956_v41  ;;  %v5976_v41 = vpack.c.bf16 %v1260_v34, %v1252_v33  ;;  %v5978_v48 = vpack.c.bf16 %v1259_v42, %v1251_v40  ;;  %v1340_v31 = vld [vmem:[%s12773_s3 + $0x5d8] sm:$0xff]  ;;  %v1346_v40 = vld [vmem:[%s12773_s3 + $0x608] sm:$0xff]  ;;  %v1401_v21 = vld [vmem:[%s12773_s3 + $0x7c0] sm:$0xff] }
  0x8a   :  { %809 = vmatmul.mubr.f32.gmra.mrb[6].mxu1 %v12784_v3  ;;  %v5996_v38 = vpack.c.bf16 %v1340_v31, %v1332_v30  ;;  %v1348_v42 = vld [vmem:[%s12773_s3 + $0x618] sm:$0xff] }
  0x8b   :  { %5895 = vmatpush1.bf16.msra.mxu0 %v5894_v45  ;;  %v1268_v45 = vld [vmem:[%s12773_s3 + $0x398] sm:$0xff] }
  0x8c   :  { %5959 = vmatpush1.bf16.msra.mxu1 %v5958_v49  ;;  %5897 = vmatprep.subr.bf16.mxu0 %v5896_v50  ;;  %v5916_v49 = vpack.c.bf16 %v1274_v44, %v1266_v43  ;;  %v1265_v50 = vld [vmem:[%s12773_s3 + $0x380] sm:$0xff]  ;;  %v5980_v52 = vpack.c.bf16 %v1276_v46, %v1268_v45  ;;  %v1356_v43 = vld [vmem:[%s12773_s3 + $0x658] sm:$0xff] }
  0x8d   :  { %5961 = vmatprep.subr.bf16.mxu1 %v5960_v54  ;;  %v1275_v54 = vld [vmem:[%s12773_s3 + $0x3d0] sm:$0xff]  ;;  %v5918_v55 = vpack.c.bf16 %v1273_v51, %v1265_v50  ;;  %v6000_v50 = vpack.c.bf16 %v1356_v43, %v1348_v42 }
  0x8e   :  { %v5982_v56 = vpack.c.bf16 %v1275_v54, %v1267_v53  ;;  %v1355_v51 = vld [vmem:[%s12773_s3 + $0x650] sm:$0xff]  ;;  %v1370_v53 = vld [vmem:[%s12773_s3 + $0x6c8] sm:$0xff]  ;;  %v1364_v54 = vld [vmem:[%s12773_s3 + $0x698] sm:$0xff] }
  0x8f   :  { %5899 = vmatpush1.bf16.msra.mxu0 %v5898_v58  ;;  %v1290_v58 = vld [vmem:[%s12773_s3 + $0x448] sm:$0xff] }
  0x90   :  { %5963 = vmatpush1.bf16.msra.mxu1 %v5962_v62  ;;  %5901 = vmatprep.subr.bf16.mxu0 %v5900_v63  ;;  %v1289_v62 = vld [vmem:[%s12773_s3 + $0x440] sm:$0xff]  ;;  %v1283_v63 = vld [vmem:[%s12773_s3 + $0x410] sm:$0xff]  ;;  %v5920_v1 = vpack.c.bf16 %v1290_v58, %v1282_v57 }
  0x91   :  { %5965 = vmatprep.subr.bf16.mxu1 %v5964_v4  ;;  %v5922_v4 = vpack.c.bf16 %v1289_v62, %v1281_v61  ;;  %v5986_v5 = vpack.c.bf16 %v1291_v0, %v1283_v63  ;;  %v1363_v61 = vld [vmem:[%s12773_s3 + $0x690] sm:$0xff]  ;;  %v1378_v0 = vld [vmem:[%s12773_s3 + $0x708] sm:$0xff] }
  0x92   :  { %v1371_v63 = vld [vmem:[%s12773_s3 + $0x6d0] sm:$0xff] }
  0x93   :  { %5903 = vmatpush1.bf16.msra.mxu0 %v5902_v11  ;;  %v1305_v11 = vld [vmem:[%s12773_s3 + $0x4c0] sm:$0xff] }
  0x94   :  { %5967 = vmatpush1.bf16.msra.mxu1 %v5966_v12  ;;  %5905 = vmatprep.subr.bf16.mxu0 %v5904_v13  ;;  %v5924_v12 = vpack.c.bf16 %v1306_v7, %v1298_v6  ;;  %v5988_v13 = vpack.c.bf16 %v1308_v9, %v1300_v8  ;;  %v6006_v6 = vpack.c.bf16 %v1371_v63, %v1363_v61  ;;  %v1377_v8 = vld [vmem:[%s12773_s3 + $0x700] sm:$0xff] }
  0x95   :  { %5969 = vmatprep.subr.bf16.mxu1 %v5968_v17  ;;  %v1322_v17 = vld [vmem:[%s12773_s3 + $0x548] sm:$0xff]  ;;  %v1385_v9 = vld [vmem:[%s12773_s3 + $0x740] sm:$0xff] }
  0x96   :  { %v5928_v28 = vpack.c.bf16 %v1322_v17, %v1314_v16  ;;  %v1404_v16 = vld [vmem:[%s12773_s3 + $0x7d8] sm:$0xff]  ;;  %v5946_v17 = vpack.c.bf16 %v1385_v9, %v1377_v8 }
  0x97   :  { %5907 = vmatpush1.bf16.msra.mxu0 %v5906_v23  ;;  %v5926_v23 = vpack.c.bf16 %v1305_v11, %v1297_v10  ;;  %v1379_v10 = vld [vmem:[%s12773_s3 + $0x710] sm:$0xff] }
  0x98   :  { %5971 = vmatpush1.bf16.msra.mxu1 %v5970_v24  ;;  %5909 = vmatprep.subr.bf16.mxu0 %v5908_v25  ;;  %v1323_v24 = vld [vmem:[%s12773_s3 + $0x550] sm:$0xff]  ;;  %v1330_v25 = vld [vmem:[%s12773_s3 + $0x588] sm:$0xff] }
  0x99   :  { %5973 = vmatprep.subr.bf16.mxu1 %v5972_v29  ;;  %v5992_v29 = vpack.c.bf16 %v1324_v19, %v1316_v18  ;;  %v5994_v33 = vpack.c.bf16 %v1323_v24, %v1315_v22  ;;  %v5932_v34 = vpack.c.bf16 %v1338_v26, %v1330_v25  ;;  %v1395_v22 = vld [vmem:[%s12773_s3 + $0x790] sm:$0xff]  ;;  %v1158_v25 = vld [vmem:[%s12773_s3 + $0x28] sm:$0xff] }
  0x9a   :  { %v1403_v24 = vld [vmem:[%s12773_s3 + $0x7d0] sm:$0xff]  ;;  %v1166_v26 = vld [vmem:[%s12773_s3 + $0x68] sm:$0xff] }
  0x9b   :  { %5911 = vmatpush1.bf16.msra.mxu0 %v5910_v35  ;;  %v1329_v35 = vld [vmem:[%s12773_s3 + $0x580] sm:$0xff]  ;;  %v6014_v30 = vpack.c.bf16 %v1403_v24, %v1395_v22  ;;  %v6016_v31 = vpack.c.bf16 %v1166_v26, %v1158_v25 }
  0x9c   :  { %5975 = vmatpush1.bf16.msra.mxu1 %v5974_v36  ;;  %5913 = vmatprep.subr.bf16.mxu0 %v5912_v37  ;;  %v1337_v36 = vld [vmem:[%s12773_s3 + $0x5c0] sm:$0xff]  ;;  %v1331_v37 = vld [vmem:[%s12773_s3 + $0x590] sm:$0xff] }
  0x9d   :  { %5977 = vmatprep.subr.bf16.mxu1 %v5976_v41  ;;  %v1354_v41 = vld [vmem:[%s12773_s3 + $0x648] sm:$0xff]  ;;  %v5934_v44 = vpack.c.bf16 %v1337_v36, %v1329_v35  ;;  %v5998_v45 = vpack.c.bf16 %v1339_v39, %v1331_v37 }
  0x9e   :  { %v5936_v46 = vpack.c.bf16 %v1354_v41, %v1346_v40  ;;  %v51_v41 = vlaneseq }
  0x9f   :  { %5915 = vmatpush1.bf16.msra.mxu0 %v5914_v47  ;;  %v1345_v47 = vld [vmem:[%s12773_s3 + $0x600] sm:$0xff] }
  0xa0   :  { %5979 = vmatpush1.bf16.msra.mxu1 %v5978_v48  ;;  %5917 = vmatprep.subr.bf16.mxu0 %v5916_v49  ;;  %v1353_v48 = vld [vmem:[%s12773_s3 + $0x640] sm:$0xff]  ;;  %v1347_v49 = vld [vmem:[%s12773_s3 + $0x610] sm:$0xff]  ;;  %v8949_v42 = vshrl.u32 %v51_v41, 7 }
  0xa1   :  { %5981 = vmatprep.subr.bf16.mxu1 %v5980_v52  ;;  %v1362_v52 = vld [vmem:[%s12773_s3 + $0x688] sm:$0xff]  ;;  %v6002_v57 = vpack.c.bf16 %v1355_v51, %v1347_v49 }
  0xa2   :  { %v5940_v58 = vpack.c.bf16 %v1370_v53, %v1362_v52  ;;  %v8973_v49 = vsub.s32 3, %v8949_v42 }
  0xa3   :  { %5919 = vmatpush1.bf16.msra.mxu0 %v5918_v55  ;;  %v1372_v55 = vld [vmem:[%s12773_s3 + $0x6d8] sm:$0xff] }
  0xa4   :  { %5983 = vmatpush1.bf16.msra.mxu1 %v5982_v56  ;;  %5921 = vmatprep.subr.bf16.mxu0 %v5920_v1  ;;  %v5938_v56 = vpack.c.bf16 %v1353_v48, %v1345_v47  ;;  %v6004_v62 = vpack.c.bf16 %v1372_v55, %v1364_v54  ;;  %v1386_v1 = vld [vmem:[%s12773_s3 + $0x748] sm:$0xff]  ;;  %v8967_v47 = vsub.s32 2, %v8949_v42  ;;  %v8970_v48 = vsub.s32 1, %v8949_v42  ;;  %12814 = vst [vmem:[#allocation7_spill] sm:$0xff] %v8973_v49 }
  0xa5   :  { %5985 = vmatprep.subr.bf16.mxu1 %v5984_v2  ;;  %v1380_v2 = vld [vmem:[%s12773_s3 + $0x718] sm:$0xff]  ;;  %v5944_v7 = vpack.c.bf16 %v1386_v1, %v1378_v0 }
  0xa6   :  { %12812 = vst [vmem:[#allocation5_spill] sm:$0xff] %v8967_v47  ;;  %12813 = vst [vmem:[#allocation6_spill] sm:$0xff] %v8970_v48 }
  0xa7   :  { %5923 = vmatpush1.bf16.msra.mxu0 %v5922_v4  ;;  %v1388_v4 = vld [vmem:[%s12773_s3 + $0x758] sm:$0xff] }
  0xa8   :  { %5987 = vmatpush1.bf16.msra.mxu1 %v5986_v5  ;;  %5925 = vmatprep.subr.bf16.mxu0 %v5924_v12  ;;  %v5942_v5 = vpack.c.bf16 %v1369_v60, %v1361_v59  ;;  %v6008_v11 = vpack.c.bf16 %v1388_v4, %v1380_v2  ;;  %v1387_v12 = vld [vmem:[%s12773_s3 + $0x750] sm:$0xff] }
  0xa9   :  { %5989 = vmatprep.subr.bf16.mxu1 %v5988_v13  ;;  %v1394_v13 = vld [vmem:[%s12773_s3 + $0x788] sm:$0xff]  ;;  %v6010_v18 = vpack.c.bf16 %v1387_v12, %v1379_v10 }
  0xaa   :  { %v5948_v19 = vpack.c.bf16 %v1402_v14, %v1394_v13 }
  0xab   :  { %5927 = vmatpush1.bf16.msra.mxu0 %v5926_v23  ;;  %v6012_v23 = vpack.c.bf16 %v1404_v16, %v1396_v15 }
  0xac   :  { %5991 = vmatpush1.bf16.msra.mxu1 %v5990_v27  ;;  %5929 = vmatprep.subr.bf16.mxu0 %v5928_v28  ;;  %v1160_v27 = vld [vmem:[%s12773_s3 + $0x38] sm:$0xff] }
  0xad   :  { %5993 = vmatprep.subr.bf16.mxu1 %v5992_v29  ;;  %v1168_v28 = vld [vmem:[%s12773_s3 + $0x78] sm:$0xff]  ;;  %v5950_v29 = vpack.c.bf16 %v1401_v21, %v1393_v20 }
  0xaf   :  { %5931 = vmatpush1.bf16.msra.mxu0 %v5930_v32  ;;  %v6080_v32 = vpack.c.bf16 %v1168_v28, %v1160_v27 }
  0xb0   :  { %5995 = vmatpush1.bf16.msra.mxu1 %v5994_v33  ;;  %5933 = vmatprep.subr.bf16.mxu0 %v5932_v34 }
  0xb1   :  { %5997 = vmatprep.subr.bf16.mxu1 %v5996_v38 }
  0xb3   :  { %5935 = vmatpush1.bf16.msra.mxu0 %v5934_v44  ;;  %v8954_v44 = vsub.s32 0, %v8949_v42 }
  0xb4   :  { %5999 = vmatpush1.bf16.msra.mxu1 %v5998_v45  ;;  %5937 = vmatprep.subr.bf16.mxu0 %v5936_v46  ;;  %v8959_v45 = vld [vmem:[%s12776_s2] sm:$0xff]  ;;  %v8964_v46 = vld [vmem:[%s12776_s2 + $0x8] sm:$0xff] }
  0xb5   :  { %6001 = vmatprep.subr.bf16.mxu1 %v6000_v50  ;;  %12811 = vst [vmem:[#allocation4_spill] sm:$0xff] %v8954_v44  ;;  %v54_v50 = vrot.slane %v8959_v45, %v8954_v44  ;;  %v123_v51 = vrot.slane %v8964_v46, %v8954_v44  ;;  %v62_v53 = vrot.slane %v8959_v45, %v8967_v47 }
  0xb6   :  { %v131_v54 = vrot.slane %v8964_v46, %v8967_v47  ;;  %v135_v59 = vrot.slane %v8964_v46, %v8973_v49 }
  0xb7   :  { %5939 = vmatpush1.bf16.msra.mxu0 %v5938_v56  ;;  %v58_v56 = vrot.slane %v8959_v45, %v8970_v48 }
  0xb8   :  { %6003 = vmatpush1.bf16.msra.mxu1 %v6002_v57  ;;  %5941 = vmatprep.subr.bf16.mxu0 %v5940_v58  ;;  %v127_v57 = vrot.slane %v8964_v46, %v8970_v48  ;;  %v66_v58 = vrot.slane %v8959_v45, %v8973_v49 }
  0xb9   :  { %6005 = vmatprep.subr.bf16.mxu1 %v6004_v62  ;;  %v9000_v62 = vld [vmem:[%s12776_s2 + $0x10] sm:$0xff] }
  0xba   :  { %v198_v8 = vrot.slane %v9000_v62, %v8954_v44  ;;  %v206_v12 = vrot.slane %v9000_v62, %v8967_v47  ;;  %v202_v16 = vrot.slane %v9000_v62, %v8970_v48  ;;  %v210_v20 = vrot.slane %v9000_v62, %v8973_v49 }
  0xbb   :  { %5943 = vmatpush1.bf16.msra.mxu0 %v5942_v5  ;;  %v8985_v55 = vpop.permute.xlu1 %47 }
  0xbc   :  { %6007 = vmatpush1.bf16.msra.mxu1 %v6006_v6  ;;  %5945 = vmatprep.subr.bf16.mxu0 %v5944_v7  ;;  %v8951_v43 = vpop.permute.xlu0 %42  ;;  %v99_v9 = vmul.f32 %v54_v50, %v8985_v55  ;;  %v101_v13 = vmul.f32 %v62_v53, %v8985_v55  ;;  %v102_v25 = vmul.f32 %v66_v58, %v8985_v55 }
  0xbd   :  { %6009 = vmatprep.subr.bf16.mxu1 %v6008_v11  ;;  %v91_v60 = vmul.f32 %v54_v50, %v8951_v43  ;;  %v93_v63 = vmul.f32 %v62_v53, %v8951_v43  ;;  %v92_v1 = vmul.f32 %v58_v56, %v8951_v43  ;;  %v94_v4 = vmul.f32 %v66_v58, %v8951_v43 }
  0xbf   :  { %5947 = vmatpush1.bf16.msra.mxu0 %v5946_v17  ;;  %v100_v17 = vmul.f32 %v58_v56, %v8985_v55 }
  0xc0   :  { %6011 = vmatpush1.bf16.msra.mxu1 %v6010_v18  ;;  %5949 = vmatprep.subr.bf16.mxu0 %v5948_v19  ;;  %v8979_v52 = vpop.permute.xlu0 %111 }
  0xc1   :  { %6013 = vmatprep.subr.bf16.mxu1 %v6012_v23  ;;  %v160_v61 = vmul.f32 %v123_v51, %v8979_v52  ;;  %v162_v0 = vmul.f32 %v131_v54, %v8979_v52  ;;  %v161_v2 = vmul.f32 %v127_v57, %v8979_v52  ;;  %v163_v5 = vmul.f32 %v135_v59, %v8979_v52 }
  0xc3   :  { %5951 = vmatpush1.bf16.msra.mxu0 %v5950_v29  ;;  %v176_v7 = vadd.f32 %v160_v61, %v91_v60  ;;  %v178_v11 = vadd.f32 %v162_v0, %v93_v63  ;;  %v177_v15 = vadd.f32 %v161_v2, %v92_v1  ;;  %v179_v19 = vadd.f32 %v163_v5, %v94_v4 }
  0xc4   :  { %6015 = vmatpush1.bf16.msra.mxu1 %v6014_v30  ;;  %6017 = vmatprep.subr.bf16.mxu0 %v6016_v31 }
  0xc5   :  { %6081 = vmatprep.subr.bf16.mxu1 %v6080_v32  ;;  %v235_v21 = vadd.f32 %v198_v8, %v176_v7  ;;  %v237_v23 = vadd.f32 %v206_v12, %v178_v11  ;;  %v236_v27 = vadd.f32 %v202_v16, %v177_v15  ;;  %v238_v29 = vadd.f32 %v210_v20, %v179_v19 }
  0xcc   :  { %v9008_v6 = vpop.permute.xlu1 %116 }
  0xcd   :  { %v168_v10 = vmul.f32 %v123_v51, %v9008_v6  ;;  %v170_v14 = vmul.f32 %v131_v54, %v9008_v6  ;;  %v169_v18 = vmul.f32 %v127_v57, %v9008_v6  ;;  %v171_v26 = vmul.f32 %v135_v59, %v9008_v6 }
  0xcf   :  { %v184_v22 = vadd.f32 %v168_v10, %v99_v9  ;;  %v186_v24 = vadd.f32 %v170_v14, %v101_v13  ;;  %v185_v28 = vadd.f32 %v169_v18, %v100_v17  ;;  %v187_v50 = vadd.f32 %v171_v26, %v102_v25 }
  0xd1   :  { %v243_v31 = vadd.f32 %v198_v8, %v184_v22  ;;  %v245_v41 = vadd.f32 %v206_v12, %v186_v24  ;;  %v244_v53 = vadd.f32 %v202_v16, %v185_v28  ;;  %v246_v59 = vadd.f32 %v210_v20, %v187_v50 }
 0x118   :  { %v573_v33 = vpop.f32.mrb[0].mxu0 }
 0x119   :  { %v650_v34 = vpop.f32.mrb[0].mxu1  ;;  %v8937_v35 = vpop.f32.mrb[1].mxu0  ;;  %v815_v30 = vadd.f32 %v573_v33, %v235_v21 }
 0x11a   :  { %v8939_v36 = vpop.f32.mrb[1].mxu1  ;;  %v817_v32 = vadd.f32 %v650_v34, %v237_v23  ;;  %v816_v51 = vadd.f32 %v8937_v35, %v236_v27 }
 0x11b   :  { %v818_v54 = vadd.f32 %v8939_v36, %v238_v29  ;;  %v5526_v56 = vmul.f32 -1.442695, %v815_v30  ;;  %v9033_v36 = vsub.s32 4, %v8949_v42 }
 0x11c   :  { %v8941_v37 = vpop.f32.mrb[2].mxu0  ;;  %v5530_v60 = vmul.f32 -1.442695, %v817_v32  ;;  %v5527_v61 = vmul.f32 -1.442695, %v816_v51 }
 0x11d   :  { %v8943_v38 = vpop.f32.mrb[2].mxu1  ;;  %v8945_v39 = vpop.f32.mrb[3].mxu0  ;;  %v823_v57 = vadd.f32 %v8941_v37, %v243_v31  ;;  %v5531_v33 = vmul.f32 -1.442695, %v818_v54  ;;  %7236 = vpow2.f32 %v5526_v56  ;;  %v9036_v37 = vsub.s32 6, %v8949_v42 }
 0x11e   :  { %v8947_v40 = vpop.f32.mrb[3].mxu1  ;;  %v825_v58 = vadd.f32 %v8943_v38, %v245_v41  ;;  %v824_v63 = vadd.f32 %v8945_v39, %v244_v53  ;;  %7238 = vpow2.f32 %v5530_v60  ;;  %v9039_v38 = vsub.s32 5, %v8949_v42 }
 0x11f   :  { %v5528_v34 = vmul.f32 -1.442695, %v823_v57  ;;  %v826_v35 = vadd.f32 %v8947_v40, %v246_v59  ;;  %7240 = vpow2.f32 %v5527_v61  ;;  %v9042_v39 = vsub.s32 7, %v8949_v42 }
 0x120   :  { %v5532_v0 = vmul.f32 -1.442695, %v825_v58  ;;  %v5529_v1 = vmul.f32 -1.442695, %v824_v63  ;;  %7242 = vpow2.f32 %v5531_v33  ;;  %v70_v40 = vrot.slane %v8959_v45, %v9033_v36 }
 0x121   :  { %7244 = vpow2.f32 %v5528_v34  ;;  %v5533_v2 = vmul.f32 -1.442695, %v826_v35  ;;  %v139_v4 = vrot.slane %v8964_v46, %v9033_v36  ;;  %v78_v5 = vrot.slane %v8959_v45, %v9036_v37 }
 0x122   :  { %7246 = vpow2.f32 %v5532_v0  ;;  %v147_v7 = vrot.slane %v8964_v46, %v9036_v37  ;;  %v74_v8 = vrot.slane %v8959_v45, %v9039_v38  ;;  %v143_v42 = vrot.slane %v8964_v46, %v9039_v38 }
 0x123   :  { %7248 = vpow2.f32 %v5529_v1  ;;  %v82_v9 = vrot.slane %v8959_v45, %v9042_v39  ;;  %v151_v10 = vrot.slane %v8964_v46, %v9042_v39  ;;  %v95_v12 = vmul.f32 %v70_v40, %v8951_v43 }
 0x124   :  { %7250 = vpow2.f32 %v5533_v2  ;;  %v164_v13 = vmul.f32 %v139_v4, %v8979_v52  ;;  %v214_v14 = vrot.slane %v9000_v62, %v9033_v36  ;;  %v97_v16 = vmul.f32 %v78_v5, %v8951_v43 }
 0x125   :  { %v166_v17 = vmul.f32 %v147_v7, %v8979_v52  ;;  %v222_v45 = vrot.slane %v9000_v62, %v9036_v37  ;;  %v218_v18 = vrot.slane %v9000_v62, %v9039_v38  ;;  %v96_v19 = vmul.f32 %v74_v8, %v8951_v43 }
 0x126   :  { %v165_v20 = vmul.f32 %v143_v42, %v8979_v52  ;;  %v98_v21 = vmul.f32 %v82_v9, %v8951_v43  ;;  %v226_v22 = vrot.slane %v9000_v62, %v9042_v39  ;;  %v167_v25 = vmul.f32 %v151_v10, %v8979_v52 }
 0x127   :  { %v7237_v11 = vpop.eup %7236  ;;  %v103_v26 = vmul.f32 %v70_v40, %v8985_v55  ;;  %v172_v27 = vmul.f32 %v139_v4, %v9008_v6  ;;  %v180_v30 = vadd.f32 %v164_v13, %v95_v12  ;;  %v105_v31 = vmul.f32 %v78_v5, %v8985_v55 }
 0x128   :  { %v7239_v15 = vpop.eup %7238  ;;  %v843_v24 = vadd.f32 1.0, %v7237_v11  ;;  %v174_v32 = vmul.f32 %v147_v7, %v9008_v6  ;;  %v182_v50 = vadd.f32 %v166_v17, %v97_v16  ;;  %v104_v62 = vmul.f32 %v74_v8, %v8985_v55 }
 0x129   :  { %v7241_v46 = vpop.eup %7240  ;;  %v867_v29 = vadd.f32 1.0, %v7239_v15  ;;  %v173_v51 = vmul.f32 %v143_v42, %v9008_v6  ;;  %v181_v54 = vadd.f32 %v165_v20, %v96_v19  ;;  %v106_v56 = vmul.f32 %v82_v9, %v8985_v55 }
 0x12a   :  { %v7243_v23 = vpop.eup %7242  ;;  %v844_v43 = vadd.f32 1.0, %v7241_v46  ;;  %v175_v57 = vmul.f32 %v151_v10, %v9008_v6  ;;  %7252 = vrcp.f32 %v843_v24  ;;  %v183_v58 = vadd.f32 %v167_v25, %v98_v21 }
 0x12b   :  { %v7245_v28 = vpop.eup %7244  ;;  %v868_v52 = vadd.f32 1.0, %v7243_v23  ;;  %v188_v59 = vadd.f32 %v172_v27, %v103_v26  ;;  %7254 = vrcp.f32 %v867_v29  ;;  %v190_v63 = vadd.f32 %v174_v32, %v105_v31 }
 0x12c   :  { %v7247_v41 = vpop.eup %7246  ;;  %v845_v60 = vadd.f32 1.0, %v7245_v28  ;;  %7256 = vrcp.f32 %v844_v43  ;;  %v189_v0 = vadd.f32 %v173_v51, %v104_v62  ;;  %v239_v35 = vadd.f32 %v214_v14, %v180_v30 }
 0x12d   :  { %v7249_v53 = vpop.eup %7248  ;;  %v869_v61 = vadd.f32 1.0, %v7247_v41  ;;  %7258 = vrcp.f32 %v868_v52  ;;  %v241_v1 = vadd.f32 %v222_v45, %v182_v50  ;;  %v191_v2 = vadd.f32 %v175_v57, %v106_v56 }
 0x12e   :  { %v7251_v33 = vpop.eup %7250  ;;  %v846_v34 = vadd.f32 1.0, %v7249_v53  ;;  %7260 = vrcp.f32 %v845_v60  ;;  %v240_v55 = vadd.f32 %v218_v18, %v181_v54  ;;  %v242_v4 = vadd.f32 %v226_v22, %v183_v58 }
 0x12f   :  { %v247_v6 = vadd.f32 %v214_v14, %v188_v59  ;;  %7262 = vrcp.f32 %v869_v61  ;;  %v870_v5 = vadd.f32 1.0, %v7251_v33  ;;  %v249_v9 = vadd.f32 %v222_v45, %v190_v63 }
 0x130   :  { %7264 = vrcp.f32 %v846_v34  ;;  %v248_v13 = vadd.f32 %v218_v18, %v189_v0  ;;  %v250_v16 = vadd.f32 %v226_v22, %v191_v2 }
 0x134   :  { %v7253_v23 = vpop.eup %7252 }
 0x135   :  { %v7255_v26 = vpop.eup %7254 }
 0x136   :  { %v7257_v18 = vpop.eup %7256  ;;  %v907_v50 = vmul.f32 0.0, %v7255_v26  ;;  %v1181_v26 = vld [vmem:[%s12773_s3 + $0xe0] sm:$0xff] }
 0x137   :  { %v7259_v22 = vpop.eup %7258 }
 0x138   :  { %v7261_v30 = vpop.eup %7260  ;;  %v908_v53 = vmul.f32 0.0, %v7259_v22  ;;  %v1190_v22 = vld [vmem:[%s12773_s3 + $0x128] sm:$0xff] }
 0x139   :  { %v7263_v31 = vpop.eup %7262 }
 0x13a   :  { %v7265_v32 = vpop.eup %7264  ;;  %v909_v60 = vmul.f32 0.0, %v7263_v31  ;;  %v1198_v31 = vld [vmem:[%s12773_s3 + $0x168] sm:$0xff] }
 0x158   :  { %v727_v40 = vpop.f32.mrb[4].mxu0 }
 0x159   :  { %v819_v7 = vadd.f32 %v727_v40, %v239_v35  ;;  %v804_v8 = vpop.f32.mrb[4].mxu1  ;;  %v729_v42 = vpop.f32.mrb[5].mxu0 }
 0x15a   :  { %v821_v10 = vadd.f32 %v804_v8, %v241_v1  ;;  %v820_v11 = vadd.f32 %v729_v42, %v240_v55  ;;  %v806_v12 = vpop.f32.mrb[5].mxu1  ;;  %v1165_v8 = vld [vmem:[%s12773_s3 + $0x60] sm:$0xff] }
 0x15b   :  { %7266 = vtanh.f32 %v819_v7  ;;  %v822_v15 = vadd.f32 %v806_v12, %v242_v4  ;;  %v1157_v7 = vld [vmem:[%s12773_s3 + $0x20] sm:$0xff] }
 0x15c   :  { %v5534_v17 = vmul.f32 -1.442695, %v821_v10  ;;  %7268 = vtanh.f32 %v820_v11  ;;  %v733_v46 = vpop.f32.mrb[6].mxu0  ;;  %v1167_v10 = vld [vmem:[%s12773_s3 + $0x70] sm:$0xff]  ;;  %v1174_v11 = vld [vmem:[%s12773_s3 + $0xa8] sm:$0xff] }
 0x15d   :  { %7270 = vrcp.f32 %v870_v5  ;;  %v5535_v19 = vmul.f32 -1.442695, %v822_v15  ;;  %v827_v14 = vadd.f32 %v733_v46, %v247_v6  ;;  %v810_v20 = vpop.f32.mrb[6].mxu1  ;;  %v735_v21 = vpop.f32.mrb[7].mxu0  ;;  %v1176_v15 = vld [vmem:[%s12773_s3 + $0xb8] sm:$0xff] }
 0x15e   :  { %7272 = vpow2.f32 %v5534_v17  ;;  %v829_v24 = vadd.f32 %v810_v20, %v249_v9  ;;  %v828_v45 = vadd.f32 %v735_v21, %v248_v13  ;;  %v812_v25 = vpop.f32.mrb[7].mxu1  ;;  %v1159_v9 = vld [vmem:[%s12773_s3 + $0x30] sm:$0xff]  ;;  %v1182_v13 = vld [vmem:[%s12773_s3 + $0xe8] sm:$0xff] }
 0x15f   :  { %7274 = vpow2.f32 %v5535_v19  ;;  %v830_v27 = vadd.f32 %v812_v25, %v250_v16  ;;  %v1184_v16 = vld [vmem:[%s12773_s3 + $0xf8] sm:$0xff]  ;;  %v6018_v19 = vpack.c.bf16 %v1165_v8, %v1157_v7  ;;  %v1222_v7 = vld [vmem:[%s12773_s3 + $0x228] sm:$0xff] }
 0x160   :  { %7276 = vtanh.f32 %v827_v14  ;;  %v5536_v28 = vmul.f32 -1.442695, %v829_v24  ;;  %v6082_v14 = vpack.c.bf16 %v1167_v10, %v1159_v9  ;;  %v6084_v24 = vpack.c.bf16 %v1184_v16, %v1176_v15  ;;  %v1230_v8 = vld [vmem:[%s12773_s3 + $0x268] sm:$0xff]  ;;  %v1232_v9 = vld [vmem:[%s12773_s3 + $0x278] sm:$0xff] }
 0x161   :  { %7278 = vtanh.f32 %v828_v45  ;;  %v5537_v29 = vmul.f32 -1.442695, %v830_v27  ;;  %v1173_v45 = vld [vmem:[%s12773_s3 + $0xa0] sm:$0xff]  ;;  %v1175_v27 = vld [vmem:[%s12773_s3 + $0xb0] sm:$0xff]  ;;  %v6032_v15 = vpack.c.bf16 %v1230_v8, %v1222_v7  ;;  %v1286_v8 = vld [vmem:[%s12773_s3 + $0x428] sm:$0xff] }
 0x162   :  { %7280 = vpow2.f32 %v5536_v28  ;;  %v1279_v7 = vld [vmem:[%s12773_s3 + $0x3f0] sm:$0xff] }
 0x163   :  { %7282 = vpow2.f32 %v5537_v29 }
 0x165   :  { %v7267_v41 = vpop.eup %7266 }
 0x166   :  { %v7269_v43 = vpop.eup %7268  ;;  %v911_v62 = vmul.f32 %v7267_v41, %v7253_v23  ;;  %v6020_v23 = vpack.c.bf16 %v1182_v13, %v1174_v11  ;;  %v1200_v41 = vld [vmem:[%s12773_s3 + $0x178] sm:$0xff]  ;;  %v1229_v13 = vld [vmem:[%s12773_s3 + $0x260] sm:$0xff] }
 0x167   :  { %v7271_v51 = vpop.eup %7270  ;;  %v912_v52 = vmul.f32 %v7269_v43, %v7257_v18  ;;  %v1183_v18 = vld [vmem:[%s12773_s3 + $0xf0] sm:$0xff] }
 0x168   :  { %v7273_v54 = vpop.eup %7272  ;;  %v9084_v56 = vadd.f32 %v911_v62, %v907_v50  ;;  %v910_v63 = vmul.f32 0.0, %v7271_v51  ;;  %v6022_v50 = vpack.c.bf16 %v1181_v26, %v1173_v45  ;;  %v6086_v62 = vpack.c.bf16 %v1183_v18, %v1175_v27  ;;  %v1189_v51 = vld [vmem:[%s12773_s3 + $0x120] sm:$0xff] }
 0x169   :  { %v7275_v57 = vpop.eup %7274  ;;  %v895_v58 = vadd.f32 1.0, %v7273_v54  ;;  %v9086_v59 = vadd.f32 %v912_v52, %v908_v53  ;;  %v1197_v53 = vld [vmem:[%s12773_s3 + $0x160] sm:$0xff]  ;;  %v1191_v52 = vld [vmem:[%s12773_s3 + $0x130] sm:$0xff] }
 0x16a   :  { %v7277_v61 = vpop.eup %7276  ;;  %7284 = vtanh.f32 %v9084_v56  ;;  %v896_v33 = vadd.f32 1.0, %v7275_v57  ;;  %v1199_v54 = vld [vmem:[%s12773_s3 + $0x170] sm:$0xff]  ;;  %v1206_v57 = vld [vmem:[%s12773_s3 + $0x1a8] sm:$0xff]  ;;  %v1237_v26 = vld [vmem:[%s12773_s3 + $0x2a0] sm:$0xff] }
 0x16b   :  { %v7279_v34 = vpop.eup %7278  ;;  %7286 = vrcp.f32 %v895_v58  ;;  %v913_v0 = vmul.f32 %v7277_v61, %v7261_v30  ;;  %v1214_v61 = vld [vmem:[%s12773_s3 + $0x1e8] sm:$0xff]  ;;  %v1245_v27 = vld [vmem:[%s12773_s3 + $0x2e0] sm:$0xff] }
 0x16c   :  { %v7281_v35 = vpop.eup %7280  ;;  %7288 = vtanh.f32 %v9086_v59  ;;  %v914_v1 = vmul.f32 %v7279_v34, %v7265_v32  ;;  %v1192_v32 = vld [vmem:[%s12773_s3 + $0x138] sm:$0xff]  ;;  %v6026_v34 = vpack.c.bf16 %v1197_v53, %v1189_v51  ;;  %v1253_v53 = vld [vmem:[%s12773_s3 + $0x320] sm:$0xff] }
 0x16d   :  { %v7283_v2 = vpop.eup %7282  ;;  %7290 = vrcp.f32 %v896_v33  ;;  %v9090_v40 = vadd.f32 %v913_v0, %v909_v60  ;;  %v897_v55 = vadd.f32 1.0, %v7281_v35  ;;  %v6024_v60 = vpack.c.bf16 %v1198_v31, %v1190_v22  ;;  %v1216_v33 = vld [vmem:[%s12773_s3 + $0x1f8] sm:$0xff]  ;;  %v1205_v35 = vld [vmem:[%s12773_s3 + $0x1a0] sm:$0xff]  ;;  %v1239_v22 = vld [vmem:[%s12773_s3 + $0x2b0] sm:$0xff] }
 0x16e   :  { %v9092_v4 = vadd.f32 %v914_v1, %v910_v63  ;;  %v898_v6 = vadd.f32 1.0, %v7283_v2  ;;  %v6088_v58 = vpack.c.bf16 %v1200_v41, %v1192_v32  ;;  %v1208_v63 = vld [vmem:[%s12773_s3 + $0x1b8] sm:$0xff]  ;;  %v6090_v0 = vpack.c.bf16 %v1199_v54, %v1191_v52  ;;  %v1213_v1 = vld [vmem:[%s12773_s3 + $0x1e0] sm:$0xff]  ;;  %v1254_v31 = vld [vmem:[%s12773_s3 + $0x328] sm:$0xff] }
 0x16f   :  { %7292 = vtanh.f32 %v9090_v40  ;;  %v6028_v2 = vpack.c.bf16 %v1214_v61, %v1206_v57  ;;  %v6030_v10 = vpack.c.bf16 %v1213_v1, %v1205_v35  ;;  %v1262_v32 = vld [vmem:[%s12773_s3 + $0x368] sm:$0xff]  ;;  %v1256_v41 = vld [vmem:[%s12773_s3 + $0x338] sm:$0xff]  ;;  %v1261_v52 = vld [vmem:[%s12773_s3 + $0x360] sm:$0xff] }
 0x170   :  { %7294 = vrcp.f32 %v897_v55  ;;  %v6092_v55 = vpack.c.bf16 %v1216_v33, %v1208_v63  ;;  %v6040_v54 = vpack.c.bf16 %v1262_v32, %v1254_v31  ;;  %v1270_v61 = vld [vmem:[%s12773_s3 + $0x3a8] sm:$0xff]  ;;  %v1272_v33 = vld [vmem:[%s12773_s3 + $0x3b8] sm:$0xff]  ;;  %v1269_v1 = vld [vmem:[%s12773_s3 + $0x3a0] sm:$0xff] }
 0x171   :  { %7296 = vtanh.f32 %v9092_v4  ;;  %v1278_v63 = vld [vmem:[%s12773_s3 + $0x3e8] sm:$0xff]  ;;  %v1311_v31 = vld [vmem:[%s12773_s3 + $0x4f0] sm:$0xff] }
 0x172   :  { %7298 = vrcp.f32 %v898_v6  ;;  %v1207_v6 = vld [vmem:[%s12773_s3 + $0x1b0] sm:$0xff]  ;;  %v1318_v32 = vld [vmem:[%s12773_s3 + $0x528] sm:$0xff] }
 0x174   :  { %v7285_v5 = vpop.eup %7284 }
 0x175   :  { %v7287_v42 = vpop.eup %7286 }
 0x176   :  { %v7289_v12 = vpop.eup %7288  ;;  %v9122_v21 = vmul.f32 %v7287_v42, %v7285_v5  ;;  %v1215_v5 = vld [vmem:[%s12773_s3 + $0x1f0] sm:$0xff]  ;;  %v1224_v42 = vld [vmem:[%s12773_s3 + $0x238] sm:$0xff] }
 0x177   :  { %v7291_v17 = vpop.eup %7290  ;;  %v6094_v11 = vpack.c.bf16 %v1215_v5, %v1207_v6  ;;  %v6096_v16 = vpack.c.bf16 %v1232_v9, %v1224_v42  ;;  %v1271_v5 = vld [vmem:[%s12773_s3 + $0x3b0] sm:$0xff]  ;;  %v1294_v42 = vld [vmem:[%s12773_s3 + $0x468] sm:$0xff]  ;;  %v1288_v9 = vld [vmem:[%s12773_s3 + $0x438] sm:$0xff] }
 0x178   :  { %v9120_v46 = vmul.f32 %v7291_v17, %v7289_v12  ;;  %v1221_v12 = vld [vmem:[%s12773_s3 + $0x220] sm:$0xff]  ;;  %v1223_v17 = vld [vmem:[%s12773_s3 + $0x230] sm:$0xff] }
 0x179   :  { %v7293_v20 = vpop.eup %7292  ;;  %v6034_v45 = vpack.c.bf16 %v1229_v13, %v1221_v12  ;;  %v6110_v12 = vpack.c.bf16 %v1279_v7, %v1271_v5  ;;  %v1285_v13 = vld [vmem:[%s12773_s3 + $0x420] sm:$0xff]  ;;  %v1335_v7 = vld [vmem:[%s12773_s3 + $0x5b0] sm:$0xff] }
 0x17a   :  { %12815 = vst [vmem:[#allocation8_spill] sm:$0xff] %v9120_v46  ;;  %v7295_v25 = vpop.eup %7294  ;;  %1473 = vmatprep.mubr.f32.mxu0 %v9120_v46  ;;  %1550 = vmatprep.mubr.f32.mxu1 %v9120_v46 }
 0x17b   :  { %v7297_v28 = vpop.eup %7296  ;;  %1474 = vmatmul.mubr.f32.vlgmr.msra.gmra.mrb[8].mxu0 %v9122_v21  ;;  %1551 = vmatmul.mubr.f32.vlgmr.msra.gmra.mrb[8].mxu1 %v9122_v21  ;;  %v9143_v30 = vmul.f32 %v7295_v25, %v7293_v20  ;;  %v1246_v20 = vld [vmem:[%s12773_s3 + $0x2e8] sm:$0xff] }
 0x17c   :  { %v7299_v29 = vpop.eup %7298  ;;  %6019 = vmatpush1.bf16.msra.mxu0 %v6018_v19  ;;  %6083 = vmatpush1.bf16.msra.mxu1 %v6082_v14  ;;  %v1231_v19 = vld [vmem:[%s12773_s3 + $0x270] sm:$0xff]  ;;  %v1238_v14 = vld [vmem:[%s12773_s3 + $0x2a8] sm:$0xff] }
 0x17d   :  { %12816 = vst [vmem:[#allocation9_spill] sm:$0xff] %v9143_v30  ;;  %v9154_v43 = vmul.f32 %v7299_v29, %v7297_v28  ;;  %6021 = vmatprep.subr.bf16.mxu0 %v6020_v23  ;;  %6085 = vmatprep.subr.bf16.mxu1 %v6084_v24  ;;  %v1240_v23 = vld [vmem:[%s12773_s3 + $0x2b8] sm:$0xff]  ;;  %v6098_v25 = vpack.c.bf16 %v1231_v19, %v1223_v17  ;;  %v1247_v29 = vld [vmem:[%s12773_s3 + $0x2f0] sm:$0xff] }
 0x17e   :  { %v1248_v24 = vld [vmem:[%s12773_s3 + $0x2f8] sm:$0xff]  ;;  %v6036_v18 = vpack.c.bf16 %v1246_v20, %v1238_v14  ;;  %v6102_v51 = vpack.c.bf16 %v1247_v29, %v1239_v22  ;;  %v1287_v19 = vld [vmem:[%s12773_s3 + $0x430] sm:$0xff]  ;;  %v1302_v20 = vld [vmem:[%s12773_s3 + $0x4a8] sm:$0xff] }
 0x17f   :  { %12817 = vst [vmem:[#allocation10_spill] sm:$0xff] %v9154_v43  ;;  %1479 = vmatprep.mubr.f32.mxu0 %v9154_v43  ;;  %1556 = vmatprep.mubr.f32.mxu1 %v9154_v43  ;;  %v6100_v28 = vpack.c.bf16 %v1248_v24, %v1240_v23  ;;  %v1295_v14 = vld [vmem:[%s12773_s3 + $0x470] sm:$0xff]  ;;  %v1310_v23 = vld [vmem:[%s12773_s3 + $0x4e8] sm:$0xff]  ;;  %v1304_v24 = vld [vmem:[%s12773_s3 + $0x4b8] sm:$0xff] }
 0x180   :  { %1480 = vmatmul.mubr.f32.gmra.mrb[10].mxu0 %v9143_v30  ;;  %1557 = vmatmul.mubr.f32.gmra.mrb[10].mxu1 %v9143_v30  ;;  %v1303_v29 = vld [vmem:[%s12773_s3 + $0x4b0] sm:$0xff] }
 0x181   :  { %6023 = vmatpush1.bf16.msra.mxu0 %v6022_v50  ;;  %6087 = vmatpush1.bf16.msra.mxu1 %v6086_v62  ;;  %v1264_v50 = vld [vmem:[%s12773_s3 + $0x378] sm:$0xff]  ;;  %v6038_v62 = vpack.c.bf16 %v1245_v27, %v1237_v26  ;;  %v6114_v26 = vpack.c.bf16 %v1295_v14, %v1287_v19  ;;  %v1301_v27 = vld [vmem:[%s12773_s3 + $0x4a0] sm:$0xff]  ;;  %v1351_v14 = vld [vmem:[%s12773_s3 + $0x630] sm:$0xff] }
 0x182   :  { %1627 = vmatprep.mubr.f32.mxu0 %v9120_v46  ;;  %1704 = vmatprep.mubr.f32.mxu1 %v9120_v46  ;;  %v6104_v57 = vpack.c.bf16 %v1264_v50, %v1256_v41  ;;  %v1326_v41 = vld [vmem:[%s12773_s3 + $0x568] sm:$0xff]  ;;  %v1320_v50 = vld [vmem:[%s12773_s3 + $0x538] sm:$0xff] }
 0x183   :  { %6025 = vmatprep.subr.bf16.mxu0 %v6024_v60  ;;  %6089 = vmatprep.subr.bf16.mxu1 %v6088_v58  ;;  %v1255_v60 = vld [vmem:[%s12773_s3 + $0x330] sm:$0xff] }
 0x184   :  { %v1263_v58 = vld [vmem:[%s12773_s3 + $0x370] sm:$0xff] }
 0x185   :  { %6027 = vmatpush1.bf16.msra.mxu0 %v6026_v34  ;;  %6091 = vmatpush1.bf16.msra.mxu1 %v6090_v0  ;;  %v1280_v34 = vld [vmem:[%s12773_s3 + $0x3f8] sm:$0xff]  ;;  %v6042_v0 = vpack.c.bf16 %v1261_v52, %v1253_v53  ;;  %v6106_v35 = vpack.c.bf16 %v1263_v58, %v1255_v60  ;;  %v6118_v53 = vpack.c.bf16 %v1311_v31, %v1303_v29  ;;  %v1317_v52 = vld [vmem:[%s12773_s3 + $0x520] sm:$0xff]  ;;  %v1319_v58 = vld [vmem:[%s12773_s3 + $0x530] sm:$0xff] }
 0x186   :  { %6029 = vmatprep.subr.bf16.mxu0 %v6028_v2  ;;  %6093 = vmatprep.subr.bf16.mxu1 %v6092_v55  ;;  %v1277_v2 = vld [vmem:[%s12773_s3 + $0x3e0] sm:$0xff]  ;;  %v6044_v55 = vpack.c.bf16 %v1278_v63, %v1270_v61  ;;  %v6108_v6 = vpack.c.bf16 %v1280_v34, %v1272_v33  ;;  %v1327_v61 = vld [vmem:[%s12773_s3 + $0x570] sm:$0xff]  ;;  %v1334_v63 = vld [vmem:[%s12773_s3 + $0x5a8] sm:$0xff] }
 0x187   :  { %v1342_v33 = vld [vmem:[%s12773_s3 + $0x5e8] sm:$0xff]  ;;  %v1336_v34 = vld [vmem:[%s12773_s3 + $0x5b8] sm:$0xff]  ;;  %v1367_v31 = vld [vmem:[%s12773_s3 + $0x6b0] sm:$0xff] }
 0x189   :  { %6031 = vmatpush1.bf16.msra.mxu0 %v6030_v10  ;;  %6095 = vmatpush1.bf16.msra.mxu1 %v6094_v11  ;;  %v1296_v10 = vld [vmem:[%s12773_s3 + $0x478] sm:$0xff]  ;;  %v6046_v11 = vpack.c.bf16 %v1277_v2, %v1269_v1  ;;  %v6122_v1 = vpack.c.bf16 %v1327_v61, %v1319_v58  ;;  %v1333_v2 = vld [vmem:[%s12773_s3 + $0x5a0] sm:$0xff]  ;;  %v1383_v61 = vld [vmem:[%s12773_s3 + $0x730] sm:$0xff] }
 0x18a   :  { %6033 = vmatprep.subr.bf16.mxu0 %v6032_v15  ;;  %6097 = vmatprep.subr.bf16.mxu1 %v6096_v16  ;;  %v1293_v15 = vld [vmem:[%s12773_s3 + $0x460] sm:$0xff]  ;;  %v6048_v16 = vpack.c.bf16 %v1294_v42, %v1286_v8  ;;  %v6112_v17 = vpack.c.bf16 %v1296_v10, %v1288_v9  ;;  %v1343_v8 = vld [vmem:[%s12773_s3 + $0x5f0] sm:$0xff]  ;;  %v1350_v42 = vld [vmem:[%s12773_s3 + $0x628] sm:$0xff] }
 0x18b   :  { %v1358_v9 = vld [vmem:[%s12773_s3 + $0x668] sm:$0xff]  ;;  %v1352_v10 = vld [vmem:[%s12773_s3 + $0x638] sm:$0xff] }
 0x18d   :  { %6035 = vmatpush1.bf16.msra.mxu0 %v6034_v45  ;;  %6099 = vmatpush1.bf16.msra.mxu1 %v6098_v25  ;;  %v1312_v45 = vld [vmem:[%s12773_s3 + $0x4f8] sm:$0xff]  ;;  %v6050_v25 = vpack.c.bf16 %v1293_v15, %v1285_v13  ;;  %v6126_v13 = vpack.c.bf16 %v1343_v8, %v1335_v7  ;;  %v1349_v15 = vld [vmem:[%s12773_s3 + $0x620] sm:$0xff]  ;;  %v1399_v8 = vld [vmem:[%s12773_s3 + $0x7b0] sm:$0xff] }
 0x18e   :  { %6037 = vmatprep.subr.bf16.mxu0 %v6036_v18  ;;  %6101 = vmatprep.subr.bf16.mxu1 %v6100_v28  ;;  %v1309_v18 = vld [vmem:[%s12773_s3 + $0x4e0] sm:$0xff]  ;;  %v6052_v28 = vpack.c.bf16 %v1310_v23, %v1302_v20  ;;  %v6116_v22 = vpack.c.bf16 %v1312_v45, %v1304_v24  ;;  %v1359_v20 = vld [vmem:[%s12773_s3 + $0x670] sm:$0xff]  ;;  %v1366_v23 = vld [vmem:[%s12773_s3 + $0x6a8] sm:$0xff] }
 0x18f   :  { %v1374_v24 = vld [vmem:[%s12773_s3 + $0x6e8] sm:$0xff]  ;;  %v1368_v45 = vld [vmem:[%s12773_s3 + $0x6b8] sm:$0xff]  ;;  %v1405_v7 = vld [vmem:[%s12773_s3 + $0x7e0] sm:$0xff] }
 0x191   :  { %6039 = vmatpush1.bf16.msra.mxu0 %v6038_v62  ;;  %6103 = vmatpush1.bf16.msra.mxu1 %v6102_v51  ;;  %v1328_v62 = vld [vmem:[%s12773_s3 + $0x578] sm:$0xff]  ;;  %v6054_v51 = vpack.c.bf16 %v1309_v18, %v1301_v27  ;;  %v6130_v27 = vpack.c.bf16 %v1359_v20, %v1351_v14  ;;  %v1365_v18 = vld [vmem:[%s12773_s3 + $0x6a0] sm:$0xff] }
 0x192   :  { %6041 = vmatprep.subr.bf16.mxu0 %v6040_v54  ;;  %6105 = vmatprep.subr.bf16.mxu1 %v6104_v57  ;;  %v1325_v54 = vld [vmem:[%s12773_s3 + $0x560] sm:$0xff]  ;;  %v6056_v57 = vpack.c.bf16 %v1326_v41, %v1318_v32  ;;  %v6120_v60 = vpack.c.bf16 %v1328_v62, %v1320_v50  ;;  %v1375_v32 = vld [vmem:[%s12773_s3 + $0x6f0] sm:$0xff]  ;;  %v1382_v41 = vld [vmem:[%s12773_s3 + $0x728] sm:$0xff] }
 0x193   :  { %v1390_v50 = vld [vmem:[%s12773_s3 + $0x768] sm:$0xff]  ;;  %v1384_v62 = vld [vmem:[%s12773_s3 + $0x738] sm:$0xff] }
 0x195   :  { %6043 = vmatpush1.bf16.msra.mxu0 %v6042_v0  ;;  %6107 = vmatpush1.bf16.msra.mxu1 %v6106_v35  ;;  %v1344_v0 = vld [vmem:[%s12773_s3 + $0x5f8] sm:$0xff]  ;;  %v6058_v35 = vpack.c.bf16 %v1325_v54, %v1317_v52  ;;  %v6134_v52 = vpack.c.bf16 %v1375_v32, %v1367_v31  ;;  %v1381_v54 = vld [vmem:[%s12773_s3 + $0x720] sm:$0xff] }
 0x196   :  { %6045 = vmatprep.subr.bf16.mxu0 %v6044_v55  ;;  %6109 = vmatprep.subr.bf16.mxu1 %v6108_v6  ;;  %v1341_v55 = vld [vmem:[%s12773_s3 + $0x5e0] sm:$0xff]  ;;  %v6060_v6 = vpack.c.bf16 %v1342_v33, %v1334_v63  ;;  %v6124_v5 = vpack.c.bf16 %v1344_v0, %v1336_v34  ;;  %v1391_v63 = vld [vmem:[%s12773_s3 + $0x770] sm:$0xff]  ;;  %v1398_v33 = vld [vmem:[%s12773_s3 + $0x7a8] sm:$0xff] }
 0x197   :  { %v1406_v34 = vld [vmem:[%s12773_s3 + $0x7e8] sm:$0xff]  ;;  %v1400_v0 = vld [vmem:[%s12773_s3 + $0x7b8] sm:$0xff] }
 0x199   :  { %6047 = vmatpush1.bf16.msra.mxu0 %v6046_v11  ;;  %6111 = vmatpush1.bf16.msra.mxu1 %v6110_v12  ;;  %v1360_v11 = vld [vmem:[%s12773_s3 + $0x678] sm:$0xff]  ;;  %v6062_v12 = vpack.c.bf16 %v1341_v55, %v1333_v2  ;;  %v6138_v2 = vpack.c.bf16 %v1391_v63, %v1383_v61  ;;  %v1397_v55 = vld [vmem:[%s12773_s3 + $0x7a0] sm:$0xff]  ;;  %v2089_v63 = vld [vmem:[%s12773_s3 + $0x110] sm:$0xff] }
 0x19a   :  { %6049 = vmatprep.subr.bf16.mxu0 %v6048_v16  ;;  %6113 = vmatprep.subr.bf16.mxu1 %v6112_v17  ;;  %v1357_v16 = vld [vmem:[%s12773_s3 + $0x660] sm:$0xff]  ;;  %v6064_v17 = vpack.c.bf16 %v1358_v9, %v1350_v42  ;;  %v6128_v19 = vpack.c.bf16 %v1360_v11, %v1352_v10  ;;  %v1407_v42 = vld [vmem:[%s12773_s3 + $0x7f0] sm:$0xff]  ;;  %v6078_v9 = vpack.c.bf16 %v1405_v7, %v1397_v55  ;;  %v2056_v11 = vld [vmem:[%s12773_s3 + $0x8] sm:$0xff] }
 0x19b   :  { %v6142_v10 = vpack.c.bf16 %v1407_v42, %v1399_v8  ;;  %v2095_v61 = vld [vmem:[%s12773_s3 + $0x140] sm:$0xff]  ;;  %v2106_v55 = vld [vmem:[%s12773_s3 + $0x198] sm:$0xff]  ;;  %v2105_v42 = vld [vmem:[%s12773_s3 + $0x190] sm:$0xff] }
 0x19c   :  { %v2111_v8 = vld [vmem:[%s12773_s3 + $0x1c0] sm:$0xff] }
 0x19d   :  { %6051 = vmatpush1.bf16.msra.mxu0 %v6050_v25  ;;  %6115 = vmatpush1.bf16.msra.mxu1 %v6114_v26  ;;  %v1376_v25 = vld [vmem:[%s12773_s3 + $0x6f8] sm:$0xff]  ;;  %v6066_v26 = vpack.c.bf16 %v1357_v16, %v1349_v15 }
 0x19e   :  { %6053 = vmatprep.subr.bf16.mxu0 %v6052_v28  ;;  %6117 = vmatprep.subr.bf16.mxu1 %v6116_v22  ;;  %v1373_v28 = vld [vmem:[%s12773_s3 + $0x6e0] sm:$0xff]  ;;  %v6068_v22 = vpack.c.bf16 %v1374_v24, %v1366_v23  ;;  %v6132_v29 = vpack.c.bf16 %v1376_v25, %v1368_v45  ;;  %v2066_v16 = vld [vmem:[%s12773_s3 + $0x58] sm:$0xff]  ;;  %v2057_v23 = vld [vmem:[%s12773_s3 + $0x10] sm:$0xff] }
 0x19f   :  { %v2065_v24 = vld [vmem:[%s12773_s3 + $0x50] sm:$0xff]  ;;  %v2072_v25 = vld [vmem:[%s12773_s3 + $0x88] sm:$0xff] }
 0x1a0   :  { %v6210_v45 = vpack.c.bf16 %v2065_v24, %v2057_v23  ;;  %v2121_v23 = vld [vmem:[%s12773_s3 + $0x210] sm:$0xff] }
 0x1a1   :  { %6055 = vmatpush1.bf16.msra.mxu0 %v6054_v51  ;;  %6119 = vmatpush1.bf16.msra.mxu1 %v6118_v53  ;;  %v1392_v51 = vld [vmem:[%s12773_s3 + $0x778] sm:$0xff]  ;;  %v6070_v53 = vpack.c.bf16 %v1373_v28, %v1365_v18  ;;  %v2129_v24 = vld [vmem:[%s12773_s3 + $0x250] sm:$0xff] }
 0x1a2   :  { %6057 = vmatprep.subr.bf16.mxu0 %v6056_v57  ;;  %6121 = vmatprep.subr.bf16.mxu1 %v6120_v60  ;;  %v1389_v57 = vld [vmem:[%s12773_s3 + $0x760] sm:$0xff]  ;;  %v6072_v60 = vpack.c.bf16 %v1390_v50, %v1382_v41  ;;  %v6136_v58 = vpack.c.bf16 %v1392_v51, %v1384_v62  ;;  %v2082_v28 = vld [vmem:[%s12773_s3 + $0xd8] sm:$0xff]  ;;  %v2073_v41 = vld [vmem:[%s12773_s3 + $0x90] sm:$0xff] }
 0x1a3   :  { %v2081_v50 = vld [vmem:[%s12773_s3 + $0xd0] sm:$0xff]  ;;  %v2088_v62 = vld [vmem:[%s12773_s3 + $0x108] sm:$0xff] }
 0x1a4   :  { %v6214_v51 = vpack.c.bf16 %v2081_v50, %v2073_v41  ;;  %v2145_v50 = vld [vmem:[%s12773_s3 + $0x2d0] sm:$0xff] }
 0x1a5   :  { %6059 = vmatpush1.bf16.msra.mxu0 %v6058_v35  ;;  %6123 = vmatpush1.bf16.msra.mxu1 %v6122_v1  ;;  %v1408_v35 = vld [vmem:[%s12773_s3 + $0x7f8] sm:$0xff]  ;;  %v6074_v1 = vpack.c.bf16 %v1389_v57, %v1381_v54 }
 0x1a6   :  { %6061 = vmatprep.subr.bf16.mxu0 %v6060_v6  ;;  %6125 = vmatprep.subr.bf16.mxu1 %v6124_v5  ;;  %v6076_v6 = vpack.c.bf16 %v1406_v34, %v1398_v33  ;;  %v6140_v5 = vpack.c.bf16 %v1408_v35, %v1400_v0  ;;  %v2098_v54 = vld [vmem:[%s12773_s3 + $0x158] sm:$0xff]  ;;  %v2097_v34 = vld [vmem:[%s12773_s3 + $0x150] sm:$0xff]  ;;  %v2104_v0 = vld [vmem:[%s12773_s3 + $0x188] sm:$0xff] }
 0x1a7   :  { %v2112_v35 = vld [vmem:[%s12773_s3 + $0x1c8] sm:$0xff] }
 0x1a9   :  { %6063 = vmatpush1.bf16.msra.mxu0 %v6062_v12  ;;  %6127 = vmatpush1.bf16.msra.mxu1 %v6126_v13  ;;  %v2064_v12 = vld [vmem:[%s12773_s3 + $0x48] sm:$0xff]  ;;  %v2058_v13 = vld [vmem:[%s12773_s3 + $0x18] sm:$0xff] }
 0x1aa   :  { %6065 = vmatprep.subr.bf16.mxu0 %v6064_v17  ;;  %6129 = vmatprep.subr.bf16.mxu1 %v6128_v19  ;;  %v6144_v15 = vpack.c.bf16 %v2064_v12, %v2056_v11  ;;  %v2055_v17 = vld [vmem:[%s12773_s3] sm:$0xff]  ;;  %v6208_v14 = vpack.c.bf16 %v2066_v16, %v2058_v13  ;;  %v2120_v11 = vld [vmem:[%s12773_s3 + $0x208] sm:$0xff]  ;;  %v2122_v13 = vld [vmem:[%s12773_s3 + $0x218] sm:$0xff] }
 0x1ab   :  { %v2063_v19 = vld [vmem:[%s12773_s3 + $0x40] sm:$0xff]  ;;  %v2128_v12 = vld [vmem:[%s12773_s3 + $0x248] sm:$0xff] }
 0x1ac   :  { %v6146_v20 = vpack.c.bf16 %v2063_v19, %v2055_v17  ;;  %v6160_v16 = vpack.c.bf16 %v2128_v12, %v2120_v11  ;;  %v2130_v17 = vld [vmem:[%s12773_s3 + $0x258] sm:$0xff]  ;;  %v2119_v19 = vld [vmem:[%s12773_s3 + $0x200] sm:$0xff] }
 0x1ad   :  { %6067 = vmatpush1.bf16.msra.mxu0 %v6066_v26  ;;  %6131 = vmatpush1.bf16.msra.mxu1 %v6130_v27  ;;  %v2080_v26 = vld [vmem:[%s12773_s3 + $0xc8] sm:$0xff]  ;;  %v2074_v27 = vld [vmem:[%s12773_s3 + $0x98] sm:$0xff] }
 0x1ae   :  { %6069 = vmatprep.subr.bf16.mxu0 %v6068_v22  ;;  %6133 = vmatprep.subr.bf16.mxu1 %v6132_v29  ;;  %v6148_v18 = vpack.c.bf16 %v2080_v26, %v2072_v25  ;;  %v2071_v22 = vld [vmem:[%s12773_s3 + $0x80] sm:$0xff]  ;;  %v6212_v31 = vpack.c.bf16 %v2082_v28, %v2074_v27  ;;  %v2144_v25 = vld [vmem:[%s12773_s3 + $0x2c8] sm:$0xff]  ;;  %v2138_v26 = vld [vmem:[%s12773_s3 + $0x298] sm:$0xff]  ;;  %v6226_v28 = vpack.c.bf16 %v2129_v24, %v2121_v23 }
 0x1af   :  { %v2079_v29 = vld [vmem:[%s12773_s3 + $0xc0] sm:$0xff]  ;;  %v2146_v27 = vld [vmem:[%s12773_s3 + $0x2d8] sm:$0xff]  ;;  %v2185_v24 = vld [vmem:[%s12773_s3 + $0x410] sm:$0xff] }
 0x1b0   :  { %v6150_v32 = vpack.c.bf16 %v2079_v29, %v2071_v22  ;;  %v2135_v29 = vld [vmem:[%s12773_s3 + $0x280] sm:$0xff]  ;;  %v6228_v41 = vpack.c.bf16 %v2146_v27, %v2138_v26  ;;  %v2200_v27 = vld [vmem:[%s12773_s3 + $0x488] sm:$0xff] }
 0x1b1   :  { %6071 = vmatpush1.bf16.msra.mxu0 %v6070_v53  ;;  %6135 = vmatpush1.bf16.msra.mxu1 %v6134_v52  ;;  %v2096_v53 = vld [vmem:[%s12773_s3 + $0x148] sm:$0xff]  ;;  %v2090_v52 = vld [vmem:[%s12773_s3 + $0x118] sm:$0xff]  ;;  %v2191_v23 = vld [vmem:[%s12773_s3 + $0x440] sm:$0xff] }
 0x1b2   :  { %6073 = vmatprep.subr.bf16.mxu0 %v6072_v60  ;;  %6137 = vmatprep.subr.bf16.mxu1 %v6136_v58  ;;  %v6152_v57 = vpack.c.bf16 %v2096_v53, %v2088_v62  ;;  %v6216_v60 = vpack.c.bf16 %v2098_v54, %v2090_v52  ;;  %v2087_v58 = vld [vmem:[%s12773_s3 + $0x100] sm:$0xff]  ;;  %v2152_v62 = vld [vmem:[%s12773_s3 + $0x308] sm:$0xff]  ;;  %v2154_v53 = vld [vmem:[%s12773_s3 + $0x318] sm:$0xff] }
 0x1b3   :  { %v6154_v33 = vpack.c.bf16 %v2095_v61, %v2087_v58  ;;  %v2162_v52 = vld [vmem:[%s12773_s3 + $0x358] sm:$0xff]  ;;  %v2151_v58 = vld [vmem:[%s12773_s3 + $0x300] sm:$0xff] }
 0x1b4   :  { %v2159_v61 = vld [vmem:[%s12773_s3 + $0x340] sm:$0xff] }
 0x1b5   :  { %6075 = vmatpush1.bf16.msra.mxu0 %v6074_v1  ;;  %6139 = vmatpush1.bf16.msra.mxu1 %v6138_v2  ;;  %v6218_v1 = vpack.c.bf16 %v2097_v34, %v2089_v63  ;;  %v6156_v2 = vpack.c.bf16 %v2112_v35, %v2104_v0  ;;  %v2153_v63 = vld [vmem:[%s12773_s3 + $0x310] sm:$0xff]  ;;  %v2168_v0 = vld [vmem:[%s12773_s3 + $0x388] sm:$0xff] }
 0x1b6   :  { %6077 = vmatprep.subr.bf16.mxu0 %v6076_v6  ;;  %6141 = vmatprep.subr.bf16.mxu1 %v6140_v5  ;;  %v2114_v6 = vld [vmem:[%s12773_s3 + $0x1d8] sm:$0xff]  ;;  %v2103_v5 = vld [vmem:[%s12773_s3 + $0x180] sm:$0xff]  ;;  %v2161_v34 = vld [vmem:[%s12773_s3 + $0x350] sm:$0xff] }
 0x1b7   :  { %v6220_v7 = vpack.c.bf16 %v2114_v6, %v2106_v55  ;;  %v2176_v35 = vld [vmem:[%s12773_s3 + $0x3c8] sm:$0xff]  ;;  %v6170_v55 = vpack.c.bf16 %v2159_v61, %v2151_v58  ;;  %v6234_v6 = vpack.c.bf16 %v2161_v34, %v2153_v63  ;;  %v2226_v58 = vld [vmem:[%s12773_s3 + $0x558] sm:$0xff]  ;;  %v2215_v61 = vld [vmem:[%s12773_s3 + $0x500] sm:$0xff] }
 0x1b8   :  { %v2223_v63 = vld [vmem:[%s12773_s3 + $0x540] sm:$0xff] }
 0x1b9   :  { %6079 = vmatpush1.bf16.msra.mxu0 %v6078_v9  ;;  %6143 = vmatpush1.bf16.msra.mxu1 %v6142_v10  ;;  %v2113_v9 = vld [vmem:[%s12773_s3 + $0x1d0] sm:$0xff]  ;;  %v6158_v10 = vpack.c.bf16 %v2111_v8, %v2103_v5  ;;  %v6172_v5 = vpack.c.bf16 %v2176_v35, %v2168_v0  ;;  %v2175_v8 = vld [vmem:[%s12773_s3 + $0x3c0] sm:$0xff]  ;;  %v6186_v34 = vpack.c.bf16 %v2223_v63, %v2215_v61  ;;  %v2290_v61 = vld [vmem:[%s12773_s3 + $0x758] sm:$0xff] }
 0x1ba   :  { %6145 = vmatprep.subr.bf16.mxu0 %v6144_v15  ;;  %6209 = vmatprep.subr.bf16.mxu1 %v6208_v14  ;;  %v6222_v15 = vpack.c.bf16 %v2113_v9, %v2105_v42  ;;  %v2127_v14 = vld [vmem:[%s12773_s3 + $0x240] sm:$0xff]  ;;  %v2169_v9 = vld [vmem:[%s12773_s3 + $0x390] sm:$0xff] }
 0x1bb   :  { %v2217_v0 = vld [vmem:[%s12773_s3 + $0x510] sm:$0xff]  ;;  %v2279_v63 = vld [vmem:[%s12773_s3 + $0x700] sm:$0xff] }
 0x1bc   :  { %1628 = vmatmul.mubr.f32.vlgmr.msra.gmra.mrb[12].mxu0 %v9122_v21  ;;  %1705 = vmatmul.mubr.f32.vlgmr.msra.gmra.mrb[12].mxu1 %v9122_v21  ;;  %v2225_v35 = vld [vmem:[%s12773_s3 + $0x550] sm:$0xff] }
 0x1bd   :  { %1633 = vmatprep.mubr.f32.mxu0 %v9154_v43  ;;  %1710 = vmatprep.mubr.f32.mxu1 %v9154_v43 }
 0x1be   :  { %6147 = vmatpush1.bf16.msra.mxu0 %v6146_v20  ;;  %6211 = vmatpush1.bf16.msra.mxu1 %v6210_v45  ;;  %v6224_v20 = vpack.c.bf16 %v2130_v17, %v2122_v13  ;;  %v2136_v45 = vld [vmem:[%s12773_s3 + $0x288] sm:$0xff] }
 0x1bf   :  { %6149 = vmatprep.subr.bf16.mxu0 %v6148_v18  ;;  %6213 = vmatprep.subr.bf16.mxu1 %v6212_v31  ;;  %v6162_v18 = vpack.c.bf16 %v2127_v14, %v2119_v19  ;;  %v6164_v22 = vpack.c.bf16 %v2144_v25, %v2136_v45  ;;  %v2143_v31 = vld [vmem:[%s12773_s3 + $0x2c0] sm:$0xff]  ;;  %v2184_v13 = vld [vmem:[%s12773_s3 + $0x408] sm:$0xff]  ;;  %v2194_v19 = vld [vmem:[%s12773_s3 + $0x458] sm:$0xff] }
 0x1c0   :  { %1634 = vmatmul.mubr.f32.gmra.mrb[14].mxu0 %v9143_v30  ;;  %1711 = vmatmul.mubr.f32.gmra.mrb[14].mxu1 %v9143_v30  ;;  %v6166_v54 = vpack.c.bf16 %v2143_v31, %v2135_v29  ;;  %v2193_v25 = vld [vmem:[%s12773_s3 + $0x450] sm:$0xff]  ;;  %v2210_v29 = vld [vmem:[%s12773_s3 + $0x4d8] sm:$0xff]  ;;  %v2199_v31 = vld [vmem:[%s12773_s3 + $0x480] sm:$0xff] }
 0x1c1   :  { %v6242_v26 = vpack.c.bf16 %v2193_v25, %v2185_v24  ;;  %v2249_v25 = vld [vmem:[%s12773_s3 + $0x610] sm:$0xff] }
 0x1c2   :  { %6151 = vmatpush1.bf16.msra.mxu0 %v6150_v32  ;;  %6215 = vmatpush1.bf16.msra.mxu1 %v6214_v51  ;;  %v2137_v32 = vld [vmem:[%s12773_s3 + $0x290] sm:$0xff]  ;;  %v2160_v51 = vld [vmem:[%s12773_s3 + $0x348] sm:$0xff] }
 0x1c3   :  { %6153 = vmatprep.subr.bf16.mxu0 %v6152_v57  ;;  %6217 = vmatprep.subr.bf16.mxu1 %v6216_v60  ;;  %v6230_v57 = vpack.c.bf16 %v2145_v50, %v2137_v32  ;;  %v6168_v60 = vpack.c.bf16 %v2160_v51, %v2152_v62  ;;  %v2207_v32 = vld [vmem:[%s12773_s3 + $0x4c0] sm:$0xff]  ;;  %v2201_v62 = vld [vmem:[%s12773_s3 + $0x490] sm:$0xff] }
 0x1c4   :  { %v6182_v50 = vpack.c.bf16 %v2207_v32, %v2199_v31  ;;  %v2209_v51 = vld [vmem:[%s12773_s3 + $0x4d0] sm:$0xff]  ;;  %v2274_v31 = vld [vmem:[%s12773_s3 + $0x6d8] sm:$0xff]  ;;  %v2263_v32 = vld [vmem:[%s12773_s3 + $0x680] sm:$0xff] }
 0x1c6   :  { %6155 = vmatpush1.bf16.msra.mxu0 %v6154_v33  ;;  %6219 = vmatpush1.bf16.msra.mxu1 %v6218_v1  ;;  %v6232_v33 = vpack.c.bf16 %v2162_v52, %v2154_v53  ;;  %v2170_v1 = vld [vmem:[%s12773_s3 + $0x398] sm:$0xff]  ;;  %v6246_v53 = vpack.c.bf16 %v2209_v51, %v2201_v62  ;;  %v2216_v52 = vld [vmem:[%s12773_s3 + $0x508] sm:$0xff]  ;;  %v2265_v51 = vld [vmem:[%s12773_s3 + $0x690] sm:$0xff] }
 0x1c7   :  { %6157 = vmatprep.subr.bf16.mxu0 %v6156_v2  ;;  %6221 = vmatprep.subr.bf16.mxu1 %v6220_v7  ;;  %v2178_v2 = vld [vmem:[%s12773_s3 + $0x3d8] sm:$0xff]  ;;  %v2167_v7 = vld [vmem:[%s12773_s3 + $0x380] sm:$0xff] }
 0x1c8   :  { %v6236_v42 = vpack.c.bf16 %v2178_v2, %v2170_v1  ;;  %v6174_v11 = vpack.c.bf16 %v2175_v8, %v2167_v7  ;;  %v6250_v1 = vpack.c.bf16 %v2225_v35, %v2217_v0  ;;  %v2232_v2 = vld [vmem:[%s12773_s3 + $0x588] sm:$0xff]  ;;  %v2242_v7 = vld [vmem:[%s12773_s3 + $0x5d8] sm:$0xff]  ;;  %v2231_v8 = vld [vmem:[%s12773_s3 + $0x580] sm:$0xff] }
 0x1c9   :  { %v2281_v35 = vld [vmem:[%s12773_s3 + $0x710] sm:$0xff] }
 0x1ca   :  { %6159 = vmatpush1.bf16.msra.mxu0 %v6158_v10  ;;  %6223 = vmatpush1.bf16.msra.mxu1 %v6222_v15  ;;  %v2177_v10 = vld [vmem:[%s12773_s3 + $0x3d0] sm:$0xff]  ;;  %v2192_v15 = vld [vmem:[%s12773_s3 + $0x448] sm:$0xff] }
 0x1cb   :  { %6161 = vmatprep.subr.bf16.mxu0 %v6160_v16  ;;  %6225 = vmatprep.subr.bf16.mxu1 %v6224_v20  ;;  %v6238_v12 = vpack.c.bf16 %v2177_v10, %v2169_v9  ;;  %v2186_v16 = vld [vmem:[%s12773_s3 + $0x418] sm:$0xff]  ;;  %v6176_v17 = vpack.c.bf16 %v2192_v15, %v2184_v13  ;;  %v2183_v20 = vld [vmem:[%s12773_s3 + $0x400] sm:$0xff]  ;;  %v2248_v15 = vld [vmem:[%s12773_s3 + $0x608] sm:$0xff] }
 0x1cc   :  { %v6240_v14 = vpack.c.bf16 %v2194_v19, %v2186_v16  ;;  %v6178_v45 = vpack.c.bf16 %v2191_v23, %v2183_v20  ;;  %v2256_v16 = vld [vmem:[%s12773_s3 + $0x648] sm:$0xff]  ;;  %v2247_v20 = vld [vmem:[%s12773_s3 + $0x600] sm:$0xff] }
 0x1cd   :  { %v6192_v19 = vpack.c.bf16 %v2256_v16, %v2248_v15  ;;  %v2255_v23 = vld [vmem:[%s12773_s3 + $0x640] sm:$0xff]  ;;  %v2060_v16 = vld [vmem:[%s12773_s3 + $0x28] sm:$0xff] }
 0x1ce   :  { %6163 = vmatpush1.bf16.msra.mxu0 %v6162_v18  ;;  %6227 = vmatpush1.bf16.msra.mxu1 %v6226_v28  ;;  %v2208_v18 = vld [vmem:[%s12773_s3 + $0x4c8] sm:$0xff]  ;;  %v2202_v28 = vld [vmem:[%s12773_s3 + $0x498] sm:$0xff] }
 0x1cf   :  { %6165 = vmatprep.subr.bf16.mxu0 %v6164_v22  ;;  %6229 = vmatprep.subr.bf16.mxu1 %v6228_v41  ;;  %v6180_v22 = vpack.c.bf16 %v2208_v18, %v2200_v27  ;;  %v6244_v41 = vpack.c.bf16 %v2210_v29, %v2202_v28  ;;  %v2264_v18 = vld [vmem:[%s12773_s3 + $0x688] sm:$0xff] }
 0x1d0   :  { %v2272_v28 = vld [vmem:[%s12773_s3 + $0x6c8] sm:$0xff] }
 0x1d1   :  { %v6196_v29 = vpack.c.bf16 %v2272_v28, %v2264_v18 }
 0x1d2   :  { %6167 = vmatpush1.bf16.msra.mxu0 %v6166_v54  ;;  %6231 = vmatpush1.bf16.msra.mxu1 %v6230_v57  ;;  %v2224_v54 = vld [vmem:[%s12773_s3 + $0x548] sm:$0xff]  ;;  %v2218_v57 = vld [vmem:[%s12773_s3 + $0x518] sm:$0xff] }
 0x1d3   :  { %6169 = vmatprep.subr.bf16.mxu0 %v6168_v60  ;;  %6233 = vmatprep.subr.bf16.mxu1 %v6232_v33  ;;  %v6184_v60 = vpack.c.bf16 %v2224_v54, %v2216_v52  ;;  %v6248_v33 = vpack.c.bf16 %v2226_v58, %v2218_v57  ;;  %v2280_v54 = vld [vmem:[%s12773_s3 + $0x708] sm:$0xff] }
 0x1d4   :  { %v2288_v57 = vld [vmem:[%s12773_s3 + $0x748] sm:$0xff] }
 0x1d5   :  { %v6200_v58 = vpack.c.bf16 %v2288_v57, %v2280_v54 }
 0x1d6   :  { %6171 = vmatpush1.bf16.msra.mxu0 %v6170_v55  ;;  %6235 = vmatpush1.bf16.msra.mxu1 %v6234_v6  ;;  %v2240_v55 = vld [vmem:[%s12773_s3 + $0x5c8] sm:$0xff]  ;;  %v2234_v6 = vld [vmem:[%s12773_s3 + $0x598] sm:$0xff] }
 0x1d7   :  { %6173 = vmatprep.subr.bf16.mxu0 %v6172_v5  ;;  %6237 = vmatprep.subr.bf16.mxu1 %v6236_v42  ;;  %v6188_v5 = vpack.c.bf16 %v2240_v55, %v2232_v2  ;;  %v2239_v42 = vld [vmem:[%s12773_s3 + $0x5c0] sm:$0xff]  ;;  %v6252_v9 = vpack.c.bf16 %v2242_v7, %v2234_v6  ;;  %v2296_v55 = vld [vmem:[%s12773_s3 + $0x788] sm:$0xff] }
 0x1d8   :  { %v6190_v10 = vpack.c.bf16 %v2239_v42, %v2231_v8  ;;  %v2304_v6 = vld [vmem:[%s12773_s3 + $0x7c8] sm:$0xff]  ;;  %v2306_v8 = vld [vmem:[%s12773_s3 + $0x7d8] sm:$0xff]  ;;  %v2295_v42 = vld [vmem:[%s12773_s3 + $0x780] sm:$0xff] }
 0x1d9   :  { %v6204_v7 = vpack.c.bf16 %v2304_v6, %v2296_v55 }
 0x1da   :  { %6175 = vmatpush1.bf16.msra.mxu0 %v6174_v11  ;;  %6239 = vmatpush1.bf16.msra.mxu1 %v6238_v12  ;;  %v2233_v11 = vld [vmem:[%s12773_s3 + $0x590] sm:$0xff] }
 0x1db   :  { %6177 = vmatprep.subr.bf16.mxu0 %v6176_v17  ;;  %6241 = vmatprep.subr.bf16.mxu1 %v6240_v14  ;;  %v2241_v12 = vld [vmem:[%s12773_s3 + $0x5d0] sm:$0xff]  ;;  %v2250_v17 = vld [vmem:[%s12773_s3 + $0x618] sm:$0xff] }
 0x1dc   :  { %v6254_v13 = vpack.c.bf16 %v2241_v12, %v2233_v11  ;;  %v2258_v14 = vld [vmem:[%s12773_s3 + $0x658] sm:$0xff]  ;;  %v2297_v12 = vld [vmem:[%s12773_s3 + $0x790] sm:$0xff] }
 0x1dd   :  { %v6256_v24 = vpack.c.bf16 %v2258_v14, %v2250_v17  ;;  %v2068_v17 = vld [vmem:[%s12773_s3 + $0x68] sm:$0xff] }
 0x1de   :  { %6179 = vmatpush1.bf16.msra.mxu0 %v6178_v45  ;;  %6243 = vmatpush1.bf16.msra.mxu1 %v6242_v26  ;;  %v6194_v45 = vpack.c.bf16 %v2255_v23, %v2247_v20  ;;  %v2257_v26 = vld [vmem:[%s12773_s3 + $0x650] sm:$0xff]  ;;  %v6272_v14 = vpack.c.bf16 %v2068_v17, %v2060_v16  ;;  %v2070_v20 = vld [vmem:[%s12773_s3 + $0x78] sm:$0xff] }
 0x1df   :  { %6181 = vmatprep.subr.bf16.mxu0 %v6180_v22  ;;  %6245 = vmatprep.subr.bf16.mxu1 %v6244_v41  ;;  %v6258_v27 = vpack.c.bf16 %v2257_v26, %v2249_v25  ;;  %v2266_v22 = vld [vmem:[%s12773_s3 + $0x698] sm:$0xff]  ;;  %v2271_v41 = vld [vmem:[%s12773_s3 + $0x6c0] sm:$0xff] }
 0x1e0   :  { %v6198_v62 = vpack.c.bf16 %v2271_v41, %v2263_v32 }
 0x1e2   :  { %6183 = vmatpush1.bf16.msra.mxu0 %v6182_v50  ;;  %6247 = vmatpush1.bf16.msra.mxu1 %v6246_v53  ;;  %v6260_v50 = vpack.c.bf16 %v2274_v31, %v2266_v22  ;;  %v2273_v53 = vld [vmem:[%s12773_s3 + $0x6d0] sm:$0xff]  ;;  %v9898_v31 = vld [vmem:[%s12776_s2 + $0x8] sm:$0xff] }
 0x1e3   :  { %6185 = vmatprep.subr.bf16.mxu0 %v6184_v60  ;;  %6249 = vmatprep.subr.bf16.mxu1 %v6248_v33  ;;  %v6262_v52 = vpack.c.bf16 %v2273_v53, %v2265_v51  ;;  %v2282_v60 = vld [vmem:[%s12773_s3 + $0x718] sm:$0xff]  ;;  %v2287_v33 = vld [vmem:[%s12773_s3 + $0x740] sm:$0xff]  ;;  %v1026_v41 = vrot.slane %v9898_v31, %v8954_v44  ;;  %v1034_v53 = vrot.slane %v9898_v31, %v8967_v47 }
 0x1e4   :  { %v6202_v0 = vpack.c.bf16 %v2287_v33, %v2279_v63  ;;  %v1030_v54 = vrot.slane %v9898_v31, %v8970_v48  ;;  %v9925_v63 = vld [vmem:[%s12776_s2 + $0x10] sm:$0xff] }
 0x1e6   :  { %6187 = vmatpush1.bf16.msra.mxu0 %v6186_v34  ;;  %6251 = vmatpush1.bf16.msra.mxu1 %v6250_v1  ;;  %v6264_v34 = vpack.c.bf16 %v2290_v61, %v2282_v60  ;;  %v2289_v1 = vld [vmem:[%s12773_s3 + $0x750] sm:$0xff]  ;;  %v1038_v60 = vrot.slane %v9898_v31, %v8973_v49 }
 0x1e7   :  { %6189 = vmatprep.subr.bf16.mxu0 %v6188_v5  ;;  %6253 = vmatprep.subr.bf16.mxu1 %v6252_v9  ;;  %v6266_v2 = vpack.c.bf16 %v2289_v1, %v2281_v35  ;;  %v2298_v5 = vld [vmem:[%s12773_s3 + $0x798] sm:$0xff]  ;;  %v2303_v9 = vld [vmem:[%s12773_s3 + $0x7c0] sm:$0xff] }
 0x1e8   :  { %v6206_v11 = vpack.c.bf16 %v2303_v9, %v2295_v42 }
 0x1ea   :  { %6191 = vmatpush1.bf16.msra.mxu0 %v6190_v10  ;;  %6255 = vmatpush1.bf16.msra.mxu1 %v6254_v13  ;;  %v6268_v10 = vpack.c.bf16 %v2306_v8, %v2298_v5  ;;  %v2305_v13 = vld [vmem:[%s12773_s3 + $0x7d0] sm:$0xff] }
 0x1eb   :  { %6193 = vmatprep.subr.bf16.mxu0 %v6192_v19  ;;  %6257 = vmatprep.subr.bf16.mxu1 %v6256_v24  ;;  %v6270_v15 = vpack.c.bf16 %v2305_v13, %v2297_v12  ;;  %v2062_v19 = vld [vmem:[%s12773_s3 + $0x38] sm:$0xff] }
 0x1ec   :  { %v6336_v23 = vpack.c.bf16 %v2070_v20, %v2062_v19 }
 0x1ee   :  { %6195 = vmatpush1.bf16.msra.mxu0 %v6194_v45  ;;  %6259 = vmatpush1.bf16.msra.mxu1 %v6258_v27 }
 0x1ef   :  { %6197 = vmatprep.subr.bf16.mxu0 %v6196_v29  ;;  %6261 = vmatprep.subr.bf16.mxu1 %v6260_v50  ;;  %v9893_v29 = vld [vmem:[%s12776_s2] sm:$0xff]  ;;  %v9904_v50 = vpop.permute.xlu1 %1014 }
 0x1f0   :  { %v958_v32 = vrot.slane %v9893_v29, %v8954_v44  ;;  %v966_v51 = vrot.slane %v9893_v29, %v8967_v47  ;;  %v970_v57 = vrot.slane %v9893_v29, %v8973_v49  ;;  %v1063_v61 = vmul.f32 %v1026_v41, %v9904_v50 }
 0x1f1   :  { %v1064_v35 = vmul.f32 %v1030_v54, %v9904_v50  ;;  %v1066_v6 = vmul.f32 %v1038_v60, %v9904_v50 }
 0x1f2   :  { %6199 = vmatpush1.bf16.msra.mxu0 %v6198_v62  ;;  %6263 = vmatpush1.bf16.msra.mxu1 %v6262_v52  ;;  %v9906_v62 = vpop.permute.xlu0 %946  ;;  %v962_v52 = vrot.slane %v9893_v29, %v8970_v48 }
 0x1f3   :  { %6201 = vmatprep.subr.bf16.mxu0 %v6200_v58  ;;  %6265 = vmatprep.subr.bf16.mxu1 %v6264_v34  ;;  %v995_v58 = vmul.f32 %v958_v32, %v9906_v62  ;;  %v997_v33 = vmul.f32 %v966_v51, %v9906_v62  ;;  %v1065_v34 = vmul.f32 %v1034_v53, %v9904_v50  ;;  %v9931_v1 = vpop.permute.xlu1 %1019 }
 0x1f4   :  { %v998_v55 = vmul.f32 %v970_v57, %v9906_v62  ;;  %v1071_v42 = vmul.f32 %v1026_v41, %v9931_v1  ;;  %v1073_v12 = vmul.f32 %v1034_v53, %v9931_v1  ;;  %v1072_v17 = vmul.f32 %v1030_v54, %v9931_v1 }
 0x1f5   :  { %v1079_v5 = vadd.f32 %v1063_v61, %v995_v58  ;;  %v1081_v9 = vadd.f32 %v1065_v34, %v997_v33 }
 0x1f6   :  { %6203 = vmatpush1.bf16.msra.mxu0 %v6202_v0  ;;  %6267 = vmatpush1.bf16.msra.mxu1 %v6266_v2  ;;  %v996_v0 = vmul.f32 %v962_v52, %v9906_v62  ;;  %v9933_v2 = vpop.permute.xlu0 %951  ;;  %v1082_v19 = vadd.f32 %v1066_v6, %v998_v55 }
 0x1f7   :  { %6205 = vmatprep.subr.bf16.mxu0 %v6204_v7  ;;  %6269 = vmatprep.subr.bf16.mxu1 %v6268_v10  ;;  %v1100_v7 = vrot.slane %v9925_v63, %v8954_v44  ;;  %v1003_v8 = vmul.f32 %v958_v32, %v9933_v2  ;;  %v1108_v10 = vrot.slane %v9925_v63, %v8967_v47 }
 0x1f8   :  { %v1080_v13 = vadd.f32 %v1064_v35, %v996_v0  ;;  %v1004_v16 = vmul.f32 %v962_v52, %v9933_v2  ;;  %v1006_v20 = vmul.f32 %v970_v57, %v9933_v2 }
 0x1f9   :  { %v1137_v32 = vadd.f32 %v1100_v7, %v1079_v5  ;;  %v1087_v41 = vadd.f32 %v1071_v42, %v1003_v8 }
 0x1fa   :  { %6207 = vmatpush1.bf16.msra.mxu0 %v6206_v11  ;;  %6271 = vmatpush1.bf16.msra.mxu1 %v6270_v15  ;;  %v1005_v11 = vmul.f32 %v966_v51, %v9933_v2  ;;  %v1104_v15 = vrot.slane %v9925_v63, %v8970_v48  ;;  %v1139_v51 = vadd.f32 %v1108_v10, %v1081_v9 }
 0x1fb   :  { %6273 = vmatprep.subr.bf16.mxu0 %v6272_v14  ;;  %6337 = vmatprep.subr.bf16.mxu1 %v6336_v23  ;;  %v1112_v14 = vrot.slane %v9925_v63, %v8973_v49  ;;  %v1074_v23 = vmul.f32 %v1038_v60, %v9931_v1  ;;  %v1088_v33 = vadd.f32 %v1072_v17, %v1004_v16 }
 0x1fc   :  { %v1089_v53 = vadd.f32 %v1073_v12, %v1005_v11  ;;  %v1138_v61 = vadd.f32 %v1104_v15, %v1080_v13  ;;  %v1145_v54 = vadd.f32 %v1100_v7, %v1087_v41  ;;  %v1120_v41 = vrot.slane %v9925_v63, %v9039_v38 }
 0x1fd   :  { %v1140_v0 = vadd.f32 %v1112_v14, %v1082_v19  ;;  %v1090_v52 = vadd.f32 %v1074_v23, %v1006_v20  ;;  %v1146_v46 = vadd.f32 %v1104_v15, %v1088_v33  ;;  %v1116_v23 = vrot.slane %v9925_v63, %v9033_v36 }
 0x1fe   :  { %v1147_v6 = vadd.f32 %v1108_v10, %v1089_v53 }
 0x1ff   :  { %v1148_v60 = vadd.f32 %v1112_v14, %v1090_v52 }
 0x24e   :  { %v1475_v24 = vpop.f32.mrb[8].mxu0  ;;  %v1552_v45 = vpop.f32.mrb[8].mxu1 }
 0x24f   :  { %v1477_v25 = vpop.f32.mrb[9].mxu0  ;;  %v1554_v26 = vpop.f32.mrb[9].mxu1  ;;  %v1717_v58 = vadd.f32 %v1475_v24, %v1137_v32  ;;  %v1719_v34 = vadd.f32 %v1552_v45, %v1139_v51  ;;  %v1124_v32 = vrot.slane %v9925_v63, %v9036_v37 }
 0x250   :  { %v1718_v35 = vadd.f32 %v1477_v25, %v1138_v61  ;;  %v1720_v55 = vadd.f32 %v1554_v26, %v1140_v0 }
 0x251   :  { %v5544_v3 = vmul.f32 -1.442695, %v1717_v58  ;;  %v5548_v57 = vmul.f32 -1.442695, %v1719_v34 }
 0x252   :  { %v5545_v5 = vmul.f32 -1.442695, %v1718_v35  ;;  %v5549_v42 = vmul.f32 -1.442695, %v1720_v55 }
 0x253   :  { %v1481_v27 = vpop.f32.mrb[10].mxu0  ;;  %v1558_v18 = vpop.f32.mrb[10].mxu1  ;;  %7300 = vpow2.f32 %v5544_v3  ;;  %v1050_v3 = vrot.slane %v9898_v31, %v9036_v37 }
 0x254   :  { %v1483_v28 = vpop.f32.mrb[11].mxu0  ;;  %v9888_v22 = vpop.f32.mrb[11].mxu1  ;;  %v1725_v43 = vadd.f32 %v1481_v27, %v1145_v54  ;;  %v1727_v30 = vadd.f32 %v1558_v18, %v1147_v6  ;;  %7302 = vpow2.f32 %v5548_v57  ;;  %v974_v27 = vrot.slane %v9893_v29, %v9033_v36 }
 0x255   :  { %v1726_v8 = vadd.f32 %v1483_v28, %v1146_v46  ;;  %v1728_v24 = vadd.f32 %v9888_v22, %v1148_v60  ;;  %7304 = vpow2.f32 %v5545_v5  ;;  %v1042_v46 = vrot.slane %v9898_v31, %v9033_v36 }
 0x256   :  { %v5546_v9 = vmul.f32 -1.442695, %v1725_v43  ;;  %v5550_v45 = vmul.f32 -1.442695, %v1727_v30  ;;  %7306 = vpow2.f32 %v5549_v42  ;;  %v982_v18 = vrot.slane %v9893_v29, %v9036_v37 }
 0x257   :  { %v5547_v25 = vmul.f32 -1.442695, %v1726_v8  ;;  %v5551_v26 = vmul.f32 -1.442695, %v1728_v24  ;;  %v978_v30 = vrot.slane %v9893_v29, %v9039_v38  ;;  %v1046_v43 = vrot.slane %v9898_v31, %v9039_v38 }
 0x258   :  { %7308 = vpow2.f32 %v5546_v9  ;;  %v986_v28 = vrot.slane %v9893_v29, %v9042_v39  ;;  %v1054_v22 = vrot.slane %v9898_v31, %v9042_v39  ;;  %v999_v10 = vmul.f32 %v974_v27, %v9906_v62 }
 0x259   :  { %7310 = vpow2.f32 %v5550_v45  ;;  %v1067_v11 = vmul.f32 %v1042_v46, %v9904_v50  ;;  %v1001_v12 = vmul.f32 %v982_v18, %v9906_v62  ;;  %v1069_v13 = vmul.f32 %v1050_v3, %v9904_v50 }
 0x25a   :  { %7312 = vpow2.f32 %v5547_v25  ;;  %v1000_v16 = vmul.f32 %v978_v30, %v9906_v62  ;;  %v1068_v17 = vmul.f32 %v1046_v43, %v9904_v50  ;;  %v1002_v29 = vmul.f32 %v986_v28, %v9906_v62 }
 0x25b   :  { %7314 = vpow2.f32 %v5551_v26  ;;  %v1070_v14 = vmul.f32 %v1054_v22, %v9904_v50  ;;  %v1083_v58 = vadd.f32 %v1067_v11, %v999_v10  ;;  %v1085_v61 = vadd.f32 %v1069_v13, %v1001_v12 }
 0x25c   :  { %v1128_v62 = vrot.slane %v9925_v63, %v9042_v39  ;;  %v1084_v34 = vadd.f32 %v1068_v17, %v1000_v16  ;;  %v1007_v0 = vmul.f32 %v974_v27, %v9933_v2  ;;  %v1075_v52 = vmul.f32 %v1042_v46, %v9931_v1 }
 0x25d   :  { %v7301_v7 = vpop.eup %7300  ;;  %v1086_v55 = vadd.f32 %v1070_v14, %v1002_v29  ;;  %v1009_v6 = vmul.f32 %v982_v18, %v9933_v2  ;;  %v1077_v57 = vmul.f32 %v1050_v3, %v9931_v1  ;;  %v1008_v8 = vmul.f32 %v978_v30, %v9933_v2 }
 0x25e   :  { %v7303_v15 = vpop.eup %7302  ;;  %v1745_v20 = vadd.f32 1.0, %v7301_v7  ;;  %v1076_v63 = vmul.f32 %v1046_v43, %v9931_v1  ;;  %v1010_v24 = vmul.f32 %v986_v28, %v9933_v2  ;;  %v1078_v9 = vmul.f32 %v1054_v22, %v9931_v1 }
 0x25f   :  { %v7305_v19 = vpop.eup %7304  ;;  %v1769_v53 = vadd.f32 1.0, %v7303_v15  ;;  %v1141_v26 = vadd.f32 %v1116_v23, %v1083_v58  ;;  %v1143_v27 = vadd.f32 %v1124_v32, %v1085_v61  ;;  %v1142_v46 = vadd.f32 %v1120_v41, %v1084_v34 }
 0x260   :  { %v7307_v31 = vpop.eup %7306  ;;  %v1746_v50 = vadd.f32 1.0, %v7305_v19  ;;  %7316 = vrcp.f32 %v1745_v20  ;;  %v1091_v18 = vadd.f32 %v1075_v52, %v1007_v0  ;;  %v1093_v3 = vadd.f32 %v1077_v57, %v1009_v6 }
 0x261   :  { %v1770_v54 = vadd.f32 1.0, %v7307_v31  ;;  %7318 = vrcp.f32 %v1769_v53  ;;  %v1144_v43 = vadd.f32 %v1128_v62, %v1086_v55  ;;  %v1092_v10 = vadd.f32 %v1076_v63, %v1008_v8 }
 0x262   :  { %v7309_v51 = vpop.eup %7308  ;;  %7320 = vrcp.f32 %v1746_v50  ;;  %v1094_v11 = vadd.f32 %v1078_v9, %v1010_v24  ;;  %v1149_v16 = vadd.f32 %v1116_v23, %v1091_v18  ;;  %v1151_v17 = vadd.f32 %v1124_v32, %v1093_v3 }
 0x263   :  { %v7311_v33 = vpop.eup %7310  ;;  %v1747_v5 = vadd.f32 1.0, %v7309_v51  ;;  %7322 = vrcp.f32 %v1770_v54  ;;  %v1150_v31 = vadd.f32 %v1120_v41, %v1092_v10 }
 0x264   :  { %v7313_v35 = vpop.eup %7312  ;;  %v1771_v42 = vadd.f32 1.0, %v7311_v33  ;;  %v1152_v20 = vadd.f32 %v1128_v62, %v1094_v11 }
 0x265   :  { %v7315_v60 = vpop.eup %7314  ;;  %v1748_v45 = vadd.f32 1.0, %v7313_v35  ;;  %7324 = vrcp.f32 %v1747_v5 }
 0x266   :  { %v1772_v25 = vadd.f32 1.0, %v7315_v60  ;;  %7326 = vrcp.f32 %v1771_v42 }
 0x267   :  { %7328 = vrcp.f32 %v1748_v45 }
 0x268   :  { %7330 = vrcp.f32 %v1772_v25 }
 0x26a   :  { %v7317_v51 = vpop.eup %7316 }
 0x26b   :  { %v7319_v50 = vpop.eup %7318 }
 0x26c   :  { %v7321_v52 = vpop.eup %7320  ;;  %v1809_v60 = vmul.f32 %v7319_v50, %v9084_v56 }
 0x26d   :  { %v7323_v32 = vpop.eup %7322 }
 0x26e   :  { %v1810_v63 = vmul.f32 %v7323_v32, %v9086_v59  ;;  %v2092_v32 = vld [vmem:[%s12773_s3 + $0x128] sm:$0xff] }
 0x26f   :  { %v7325_v54 = vpop.eup %7324 }
 0x270   :  { %v7327_v41 = vpop.eup %7326 }
 0x271   :  { %v7329_v62 = vpop.eup %7328  ;;  %v1811_v18 = vmul.f32 %v7327_v41, %v9090_v40  ;;  %v2094_v41 = vld [vmem:[%s12773_s3 + $0x138] sm:$0xff] }
 0x272   :  { %v7331_v55 = vpop.eup %7330 }
 0x28f   :  { %v1629_v30 = vpop.f32.mrb[12].mxu0  ;;  %v1706_v7 = vpop.f32.mrb[12].mxu1 }
 0x290   :  { %v1721_v2 = vadd.f32 %v1629_v30, %v1141_v26  ;;  %v1723_v28 = vadd.f32 %v1706_v7, %v1143_v27  ;;  %v1631_v1 = vpop.f32.mrb[13].mxu0  ;;  %v1708_v22 = vpop.f32.mrb[13].mxu1  ;;  %v1812_v30 = vmul.f32 %v7331_v55, %v9092_v4  ;;  %v2059_v4 = vld [vmem:[%s12773_s3 + $0x20] sm:$0xff] }
 0x291   :  { %v1722_v12 = vadd.f32 %v1631_v1, %v1142_v46  ;;  %v1724_v13 = vadd.f32 %v1708_v22, %v1144_v43  ;;  %v2061_v22 = vld [vmem:[%s12773_s3 + $0x30] sm:$0xff] }
 0x292   :  { %7332 = vtanh.f32 %v1721_v2  ;;  %v5552_v15 = vmul.f32 -1.442695, %v1723_v28  ;;  %v2067_v28 = vld [vmem:[%s12773_s3 + $0x60] sm:$0xff] }
 0x293   :  { %7334 = vtanh.f32 %v1722_v12  ;;  %v5553_v19 = vmul.f32 -1.442695, %v1724_v13  ;;  %v1635_v29 = vpop.f32.mrb[14].mxu0  ;;  %v1712_v14 = vpop.f32.mrb[14].mxu1  ;;  %v2069_v12 = vld [vmem:[%s12773_s3 + $0x70] sm:$0xff]  ;;  %v2076_v13 = vld [vmem:[%s12773_s3 + $0xa8] sm:$0xff] }
 0x294   :  { %7336 = vpow2.f32 %v5552_v15  ;;  %v1729_v53 = vadd.f32 %v1635_v29, %v1149_v16  ;;  %v1731_v58 = vadd.f32 %v1712_v14, %v1151_v17  ;;  %v1637_v61 = vpop.f32.mrb[15].mxu0  ;;  %v1714_v33 = vpop.f32.mrb[15].mxu1  ;;  %v2084_v16 = vld [vmem:[%s12773_s3 + $0xe8] sm:$0xff]  ;;  %v2078_v17 = vld [vmem:[%s12773_s3 + $0xb8] sm:$0xff] }
 0x295   :  { %7338 = vpow2.f32 %v5553_v19  ;;  %v1730_v34 = vadd.f32 %v1637_v61, %v1150_v31  ;;  %v1732_v0 = vadd.f32 %v1714_v33, %v1152_v20  ;;  %v2086_v19 = vld [vmem:[%s12773_s3 + $0xf8] sm:$0xff]  ;;  %v6274_v20 = vpack.c.bf16 %v2067_v28, %v2059_v4  ;;  %v2124_v4 = vld [vmem:[%s12773_s3 + $0x228] sm:$0xff] }
 0x296   :  { %7340 = vtanh.f32 %v1729_v53  ;;  %v5554_v23 = vmul.f32 -1.442695, %v1731_v58  ;;  %v2075_v53 = vld [vmem:[%s12773_s3 + $0xa0] sm:$0xff]  ;;  %v6276_v33 = vpack.c.bf16 %v2084_v16, %v2076_v13  ;;  %v6340_v50 = vpack.c.bf16 %v2086_v19, %v2078_v17  ;;  %v2132_v28 = vld [vmem:[%s12773_s3 + $0x268] sm:$0xff] }
 0x297   :  { %7342 = vtanh.f32 %v1730_v34  ;;  %v5555_v35 = vmul.f32 -1.442695, %v1732_v0  ;;  %v2083_v34 = vld [vmem:[%s12773_s3 + $0xe0] sm:$0xff]  ;;  %v2077_v0 = vld [vmem:[%s12773_s3 + $0xb0] sm:$0xff]  ;;  %v6288_v17 = vpack.c.bf16 %v2132_v28, %v2124_v4  ;;  %v2188_v28 = vld [vmem:[%s12773_s3 + $0x428] sm:$0xff] }
 0x298   :  { %7344 = vpow2.f32 %v5554_v23  ;;  %v2131_v16 = vld [vmem:[%s12773_s3 + $0x260] sm:$0xff]  ;;  %v2181_v4 = vld [vmem:[%s12773_s3 + $0x3f0] sm:$0xff] }
 0x299   :  { %7346 = vpow2.f32 %v5555_v35 }
 0x29c   :  { %v7333_v6 = vpop.eup %7332 }
 0x29d   :  { %v7335_v57 = vpop.eup %7334  ;;  %v1813_v5 = vmul.f32 %v7333_v6, %v7317_v51  ;;  %v6338_v51 = vpack.c.bf16 %v2069_v12, %v2061_v22  ;;  %v6278_v6 = vpack.c.bf16 %v2083_v34, %v2075_v53  ;;  %v2134_v22 = vld [vmem:[%s12773_s3 + $0x278] sm:$0xff]  ;;  %v2139_v34 = vld [vmem:[%s12773_s3 + $0x2a0] sm:$0xff] }
 0x29e   :  { %v7337_v8 = vpop.eup %7336  ;;  %v1814_v42 = vmul.f32 %v7335_v57, %v7321_v52  ;;  %v2085_v52 = vld [vmem:[%s12773_s3 + $0xf0] sm:$0xff]  ;;  %v2142_v53 = vld [vmem:[%s12773_s3 + $0x2b8] sm:$0xff] }
 0x29f   :  { %v7339_v24 = vpop.eup %7338  ;;  %v9996_v9 = vadd.f32 %v1813_v5, %v1809_v60  ;;  %v1797_v45 = vadd.f32 1.0, %v7337_v8  ;;  %v6342_v57 = vpack.c.bf16 %v2085_v52, %v2077_v0  ;;  %v2091_v60 = vld [vmem:[%s12773_s3 + $0x120] sm:$0xff] }
 0x2a0   :  { %v7341_v25 = vpop.eup %7340  ;;  %v9998_v26 = vadd.f32 %v1814_v42, %v1810_v63  ;;  %v1798_v27 = vadd.f32 1.0, %v7339_v24  ;;  %v2099_v5 = vld [vmem:[%s12773_s3 + $0x160] sm:$0xff]  ;;  %v2093_v63 = vld [vmem:[%s12773_s3 + $0x130] sm:$0xff]  ;;  %v2108_v24 = vld [vmem:[%s12773_s3 + $0x1a8] sm:$0xff] }
 0x2a1   :  { %v7343_v46 = vpop.eup %7342  ;;  %7348 = vtanh.f32 %v9996_v9  ;;  %v1815_v3 = vmul.f32 %v7341_v25, %v7325_v54  ;;  %v2100_v54 = vld [vmem:[%s12773_s3 + $0x168] sm:$0xff]  ;;  %v2101_v42 = vld [vmem:[%s12773_s3 + $0x170] sm:$0xff]  ;;  %v2147_v0 = vld [vmem:[%s12773_s3 + $0x2e0] sm:$0xff] }
 0x2a2   :  { %v7345_v56 = vpop.eup %7344  ;;  %7350 = vrcp.f32 %v1797_v45  ;;  %v1816_v59 = vmul.f32 %v7343_v46, %v7329_v62  ;;  %v2102_v62 = vld [vmem:[%s12773_s3 + $0x178] sm:$0xff]  ;;  %v6280_v45 = vpack.c.bf16 %v2100_v54, %v2092_v32  ;;  %v2141_v32 = vld [vmem:[%s12773_s3 + $0x2b0] sm:$0xff]  ;;  %v2156_v54 = vld [vmem:[%s12773_s3 + $0x328] sm:$0xff] }
 0x2a3   :  { %v7347_v7 = vpop.eup %7346  ;;  %7352 = vtanh.f32 %v9998_v26  ;;  %v10004_v43 = vadd.f32 %v1815_v3, %v1811_v18  ;;  %v1799_v10 = vadd.f32 1.0, %v7345_v56  ;;  %v6344_v25 = vpack.c.bf16 %v2102_v62, %v2094_v41  ;;  %v2110_v46 = vld [vmem:[%s12773_s3 + $0x1b8] sm:$0xff]  ;;  %v2164_v41 = vld [vmem:[%s12773_s3 + $0x368] sm:$0xff] }
 0x2a4   :  { %7354 = vrcp.f32 %v1798_v27  ;;  %v10006_v11 = vadd.f32 %v1816_v59, %v1812_v30  ;;  %v1800_v2 = vadd.f32 1.0, %v7347_v7  ;;  %v2116_v27 = vld [vmem:[%s12773_s3 + $0x1e8] sm:$0xff]  ;;  %v2118_v18 = vld [vmem:[%s12773_s3 + $0x1f8] sm:$0xff]  ;;  %v6282_v3 = vpack.c.bf16 %v2099_v5, %v2091_v60  ;;  %v2107_v30 = vld [vmem:[%s12773_s3 + $0x1a0] sm:$0xff] }
 0x2a5   :  { %7356 = vtanh.f32 %v10004_v43  ;;  %v6346_v56 = vpack.c.bf16 %v2101_v42, %v2093_v63  ;;  %v2115_v59 = vld [vmem:[%s12773_s3 + $0x1e0] sm:$0xff]  ;;  %v6284_v7 = vpack.c.bf16 %v2116_v27, %v2108_v24  ;;  %v2158_v62 = vld [vmem:[%s12773_s3 + $0x338] sm:$0xff]  ;;  %v6296_v42 = vpack.c.bf16 %v2164_v41, %v2156_v54  ;;  %v2172_v27 = vld [vmem:[%s12773_s3 + $0x3a8] sm:$0xff] }
 0x2a6   :  { %7358 = vrcp.f32 %v1799_v10  ;;  %v6348_v10 = vpack.c.bf16 %v2118_v18, %v2110_v46  ;;  %v6286_v12 = vpack.c.bf16 %v2115_v59, %v2107_v30  ;;  %v2155_v5 = vld [vmem:[%s12773_s3 + $0x320] sm:$0xff]  ;;  %v2180_v46 = vld [vmem:[%s12773_s3 + $0x3e8] sm:$0xff]  ;;  %v2174_v18 = vld [vmem:[%s12773_s3 + $0x3b8] sm:$0xff] }
 0x2a7   :  { %7360 = vtanh.f32 %v10006_v11  ;;  %v2163_v63 = vld [vmem:[%s12773_s3 + $0x360] sm:$0xff]  ;;  %v2213_v54 = vld [vmem:[%s12773_s3 + $0x4f0] sm:$0xff]  ;;  %v2220_v41 = vld [vmem:[%s12773_s3 + $0x528] sm:$0xff] }
 0x2a8   :  { %7362 = vrcp.f32 %v1800_v2  ;;  %v2109_v2 = vld [vmem:[%s12773_s3 + $0x1b0] sm:$0xff]  ;;  %v2171_v59 = vld [vmem:[%s12773_s3 + $0x3a0] sm:$0xff] }
 0x2ab   :  { %v7349_v40 = vpop.eup %7348 }
 0x2ac   :  { %v7351_v1 = vpop.eup %7350 }
 0x2ad   :  { %v7353_v15 = vpop.eup %7352  ;;  %v10039_v61 = vmul.f32 %v7351_v1, %v7349_v40  ;;  %v2117_v40 = vld [vmem:[%s12773_s3 + $0x1f0] sm:$0xff]  ;;  %v2126_v1 = vld [vmem:[%s12773_s3 + $0x238] sm:$0xff] }
 0x2ae   :  { %v7355_v29 = vpop.eup %7354  ;;  %v6350_v13 = vpack.c.bf16 %v2117_v40, %v2109_v2  ;;  %v6352_v19 = vpack.c.bf16 %v2134_v22, %v2126_v1  ;;  %v2173_v40 = vld [vmem:[%s12773_s3 + $0x3b0] sm:$0xff]  ;;  %v2196_v1 = vld [vmem:[%s12773_s3 + $0x468] sm:$0xff]  ;;  %v2190_v22 = vld [vmem:[%s12773_s3 + $0x438] sm:$0xff] }
 0x2af   :  { %v7357_v14 = vpop.eup %7356  ;;  %v10034_v31 = vmul.f32 %v7355_v29, %v7353_v15  ;;  %12819 = vst [vmem:[#allocation12_spill] sm:$0xff] %v10039_v61  ;;  %v2123_v15 = vld [vmem:[%s12773_s3 + $0x220] sm:$0xff]  ;;  %v2125_v29 = vld [vmem:[%s12773_s3 + $0x230] sm:$0xff] }
 0x2b0   :  { %v7359_v58 = vpop.eup %7358 }
 0x2b1   :  { %12818 = vst [vmem:[#allocation11_spill] sm:$0xff] %v10034_v31  ;;  %v7361_v23 = vpop.eup %7360  ;;  %2375 = vmatprep.mubr.f32.mxu0 %v10034_v31  ;;  %2452 = vmatprep.mubr.f32.mxu1 %v10034_v31  ;;  %v10074_v8 = vmul.f32 %v7359_v58, %v7357_v14  ;;  %v2133_v14 = vld [vmem:[%s12773_s3 + $0x270] sm:$0xff]  ;;  %v2150_v58 = vld [vmem:[%s12773_s3 + $0x2f8] sm:$0xff] }
 0x2b2   :  { %v7363_v35 = vpop.eup %7362  ;;  %2376 = vmatmul.mubr.f32.vlgmr.msra.gmra.mrb[16].mxu0 %v10039_v61  ;;  %2453 = vmatmul.mubr.f32.vlgmr.msra.gmra.mrb[16].mxu1 %v10039_v61 }
 0x2b3   :  { %v10066_v55 = vmul.f32 %v7363_v35, %v7361_v23  ;;  %6275 = vmatpush1.bf16.msra.mxu0 %v6274_v20  ;;  %6339 = vmatpush1.bf16.msra.mxu1 %v6338_v51  ;;  %12821 = vst [vmem:[#allocation14_spill] sm:$0xff] %v10074_v8  ;;  %v2140_v20 = vld [vmem:[%s12773_s3 + $0x2a8] sm:$0xff]  ;;  %v6356_v23 = vpack.c.bf16 %v2150_v58, %v2142_v53  ;;  %v2149_v35 = vld [vmem:[%s12773_s3 + $0x2f0] sm:$0xff]  ;;  %v2206_v58 = vld [vmem:[%s12773_s3 + $0x4b8] sm:$0xff] }
 0x2b4   :  { %6277 = vmatprep.subr.bf16.mxu0 %v6276_v33  ;;  %6341 = vmatprep.subr.bf16.mxu1 %v6340_v50  ;;  %v2148_v51 = vld [vmem:[%s12773_s3 + $0x2e8] sm:$0xff]  ;;  %v6290_v33 = vpack.c.bf16 %v2131_v16, %v2123_v15  ;;  %v6354_v50 = vpack.c.bf16 %v2133_v14, %v2125_v29  ;;  %v6358_v60 = vpack.c.bf16 %v2149_v35, %v2141_v32  ;;  %v2187_v16 = vld [vmem:[%s12773_s3 + $0x420] sm:$0xff]  ;;  %v2189_v14 = vld [vmem:[%s12773_s3 + $0x430] sm:$0xff] }
 0x2b5   :  { %12820 = vst [vmem:[#allocation13_spill] sm:$0xff] %v10066_v55  ;;  %2381 = vmatprep.mubr.f32.mxu0 %v10066_v55  ;;  %2458 = vmatprep.mubr.f32.mxu1 %v10066_v55  ;;  %v6292_v52 = vpack.c.bf16 %v2148_v51, %v2140_v20  ;;  %v6366_v15 = vpack.c.bf16 %v2181_v4, %v2173_v40  ;;  %v2197_v20 = vld [vmem:[%s12773_s3 + $0x470] sm:$0xff]  ;;  %v2204_v51 = vld [vmem:[%s12773_s3 + $0x4a8] sm:$0xff] }
 0x2b6   :  { %2382 = vmatmul.mubr.f32.gmra.mrb[18].mxu0 %v10074_v8  ;;  %2459 = vmatmul.mubr.f32.gmra.mrb[18].mxu1 %v10074_v8  ;;  %v2212_v53 = vld [vmem:[%s12773_s3 + $0x4e8] sm:$0xff]  ;;  %v2205_v35 = vld [vmem:[%s12773_s3 + $0x4b0] sm:$0xff] }
 0x2b7   :  { %6279 = vmatpush1.bf16.msra.mxu0 %v6278_v6  ;;  %6343 = vmatpush1.bf16.msra.mxu1 %v6342_v57  ;;  %v2166_v6 = vld [vmem:[%s12773_s3 + $0x378] sm:$0xff]  ;;  %v6294_v57 = vpack.c.bf16 %v2147_v0, %v2139_v34  ;;  %v6370_v34 = vpack.c.bf16 %v2197_v20, %v2189_v14  ;;  %v2203_v0 = vld [vmem:[%s12773_s3 + $0x4a0] sm:$0xff]  ;;  %v2237_v4 = vld [vmem:[%s12773_s3 + $0x5b0] sm:$0xff] }
 0x2b8   :  { %2529 = vmatprep.mubr.f32.mxu0 %v10034_v31  ;;  %2606 = vmatprep.mubr.f32.mxu1 %v10034_v31  ;;  %v6360_v24 = vpack.c.bf16 %v2166_v6, %v2158_v62  ;;  %v2228_v62 = vld [vmem:[%s12773_s3 + $0x568] sm:$0xff]  ;;  %v2222_v6 = vld [vmem:[%s12773_s3 + $0x538] sm:$0xff]  ;;  %v2253_v20 = vld [vmem:[%s12773_s3 + $0x630] sm:$0xff] }
 0x2b9   :  { %6281 = vmatprep.subr.bf16.mxu0 %v6280_v45  ;;  %6345 = vmatprep.subr.bf16.mxu1 %v6344_v25  ;;  %v2157_v45 = vld [vmem:[%s12773_s3 + $0x330] sm:$0xff] }
 0x2ba   :  { %v2165_v25 = vld [vmem:[%s12773_s3 + $0x370] sm:$0xff] }
 0x2bb   :  { %6283 = vmatpush1.bf16.msra.mxu0 %v6282_v3  ;;  %6347 = vmatpush1.bf16.msra.mxu1 %v6346_v56  ;;  %v2182_v3 = vld [vmem:[%s12773_s3 + $0x3f8] sm:$0xff]  ;;  %v6298_v56 = vpack.c.bf16 %v2163_v63, %v2155_v5  ;;  %v6362_v30 = vpack.c.bf16 %v2165_v25, %v2157_v45  ;;  %v6374_v5 = vpack.c.bf16 %v2213_v54, %v2205_v35  ;;  %v2219_v63 = vld [vmem:[%s12773_s3 + $0x520] sm:$0xff]  ;;  %v2221_v25 = vld [vmem:[%s12773_s3 + $0x530] sm:$0xff] }
 0x2bc   :  { %6285 = vmatprep.subr.bf16.mxu0 %v6284_v7  ;;  %6349 = vmatprep.subr.bf16.mxu1 %v6348_v10  ;;  %v2179_v7 = vld [vmem:[%s12773_s3 + $0x3e0] sm:$0xff]  ;;  %v6300_v10 = vpack.c.bf16 %v2180_v46, %v2172_v27  ;;  %v6364_v2 = vpack.c.bf16 %v2182_v3, %v2174_v18  ;;  %v2229_v27 = vld [vmem:[%s12773_s3 + $0x570] sm:$0xff]  ;;  %v2236_v46 = vld [vmem:[%s12773_s3 + $0x5a8] sm:$0xff] }
 0x2bd   :  { %v2244_v18 = vld [vmem:[%s12773_s3 + $0x5e8] sm:$0xff]  ;;  %v2238_v3 = vld [vmem:[%s12773_s3 + $0x5b8] sm:$0xff]  ;;  %v2269_v54 = vld [vmem:[%s12773_s3 + $0x6b0] sm:$0xff] }
 0x2bf   :  { %6287 = vmatpush1.bf16.msra.mxu0 %v6286_v12  ;;  %6351 = vmatpush1.bf16.msra.mxu1 %v6350_v13  ;;  %v2198_v12 = vld [vmem:[%s12773_s3 + $0x478] sm:$0xff]  ;;  %v6302_v13 = vpack.c.bf16 %v2179_v7, %v2171_v59  ;;  %v6378_v59 = vpack.c.bf16 %v2229_v27, %v2221_v25  ;;  %v2235_v7 = vld [vmem:[%s12773_s3 + $0x5a0] sm:$0xff]  ;;  %v2285_v27 = vld [vmem:[%s12773_s3 + $0x730] sm:$0xff] }
 0x2c0   :  { %6289 = vmatprep.subr.bf16.mxu0 %v6288_v17  ;;  %6353 = vmatprep.subr.bf16.mxu1 %v6352_v19  ;;  %v2195_v17 = vld [vmem:[%s12773_s3 + $0x460] sm:$0xff]  ;;  %v6304_v19 = vpack.c.bf16 %v2196_v1, %v2188_v28  ;;  %v6368_v29 = vpack.c.bf16 %v2198_v12, %v2190_v22  ;;  %v2245_v28 = vld [vmem:[%s12773_s3 + $0x5f0] sm:$0xff]  ;;  %v2252_v1 = vld [vmem:[%s12773_s3 + $0x628] sm:$0xff] }
 0x2c1   :  { %v2260_v22 = vld [vmem:[%s12773_s3 + $0x668] sm:$0xff]  ;;  %v2254_v12 = vld [vmem:[%s12773_s3 + $0x638] sm:$0xff] }
 0x2c3   :  { %6291 = vmatpush1.bf16.msra.mxu0 %v6290_v33  ;;  %6355 = vmatpush1.bf16.msra.mxu1 %v6354_v50  ;;  %v2214_v33 = vld [vmem:[%s12773_s3 + $0x4f8] sm:$0xff]  ;;  %v6306_v50 = vpack.c.bf16 %v2195_v17, %v2187_v16  ;;  %v6382_v16 = vpack.c.bf16 %v2245_v28, %v2237_v4  ;;  %v2251_v17 = vld [vmem:[%s12773_s3 + $0x620] sm:$0xff]  ;;  %v2301_v28 = vld [vmem:[%s12773_s3 + $0x7b0] sm:$0xff] }
 0x2c4   :  { %6293 = vmatprep.subr.bf16.mxu0 %v6292_v52  ;;  %6357 = vmatprep.subr.bf16.mxu1 %v6356_v23  ;;  %v2211_v52 = vld [vmem:[%s12773_s3 + $0x4e0] sm:$0xff]  ;;  %v6308_v23 = vpack.c.bf16 %v2212_v53, %v2204_v51  ;;  %v6372_v32 = vpack.c.bf16 %v2214_v33, %v2206_v58  ;;  %v2261_v51 = vld [vmem:[%s12773_s3 + $0x670] sm:$0xff]  ;;  %v2268_v53 = vld [vmem:[%s12773_s3 + $0x6a8] sm:$0xff] }
 0x2c5   :  { %v2276_v58 = vld [vmem:[%s12773_s3 + $0x6e8] sm:$0xff]  ;;  %v2270_v33 = vld [vmem:[%s12773_s3 + $0x6b8] sm:$0xff]  ;;  %v2307_v4 = vld [vmem:[%s12773_s3 + $0x7e0] sm:$0xff] }
 0x2c7   :  { %6295 = vmatpush1.bf16.msra.mxu0 %v6294_v57  ;;  %6359 = vmatpush1.bf16.msra.mxu1 %v6358_v60  ;;  %v2230_v57 = vld [vmem:[%s12773_s3 + $0x578] sm:$0xff]  ;;  %v6310_v60 = vpack.c.bf16 %v2211_v52, %v2203_v0  ;;  %v6386_v0 = vpack.c.bf16 %v2261_v51, %v2253_v20  ;;  %v2267_v52 = vld [vmem:[%s12773_s3 + $0x6a0] sm:$0xff] }
 0x2c8   :  { %6297 = vmatprep.subr.bf16.mxu0 %v6296_v42  ;;  %6361 = vmatprep.subr.bf16.mxu1 %v6360_v24  ;;  %v2227_v42 = vld [vmem:[%s12773_s3 + $0x560] sm:$0xff]  ;;  %v6312_v24 = vpack.c.bf16 %v2228_v62, %v2220_v41  ;;  %v6376_v45 = vpack.c.bf16 %v2230_v57, %v2222_v6  ;;  %v2277_v41 = vld [vmem:[%s12773_s3 + $0x6f0] sm:$0xff]  ;;  %v2284_v62 = vld [vmem:[%s12773_s3 + $0x728] sm:$0xff] }
 0x2c9   :  { %v2292_v6 = vld [vmem:[%s12773_s3 + $0x768] sm:$0xff]  ;;  %v2286_v57 = vld [vmem:[%s12773_s3 + $0x738] sm:$0xff] }
 0x2cb   :  { %6299 = vmatpush1.bf16.msra.mxu0 %v6298_v56  ;;  %6363 = vmatpush1.bf16.msra.mxu1 %v6362_v30  ;;  %v2246_v56 = vld [vmem:[%s12773_s3 + $0x5f8] sm:$0xff]  ;;  %v6314_v30 = vpack.c.bf16 %v2227_v42, %v2219_v63  ;;  %v6390_v63 = vpack.c.bf16 %v2277_v41, %v2269_v54  ;;  %v2283_v42 = vld [vmem:[%s12773_s3 + $0x720] sm:$0xff] }
 0x2cc   :  { %6301 = vmatprep.subr.bf16.mxu0 %v6300_v10  ;;  %6365 = vmatprep.subr.bf16.mxu1 %v6364_v2  ;;  %v2243_v10 = vld [vmem:[%s12773_s3 + $0x5e0] sm:$0xff]  ;;  %v6316_v2 = vpack.c.bf16 %v2244_v18, %v2236_v46  ;;  %v6380_v40 = vpack.c.bf16 %v2246_v56, %v2238_v3  ;;  %v2293_v46 = vld [vmem:[%s12773_s3 + $0x770] sm:$0xff]  ;;  %v2300_v18 = vld [vmem:[%s12773_s3 + $0x7a8] sm:$0xff] }
 0x2cd   :  { %v2308_v3 = vld [vmem:[%s12773_s3 + $0x7e8] sm:$0xff]  ;;  %v2302_v56 = vld [vmem:[%s12773_s3 + $0x7b8] sm:$0xff] }
 0x2cf   :  { %6303 = vmatpush1.bf16.msra.mxu0 %v6302_v13  ;;  %6367 = vmatpush1.bf16.msra.mxu1 %v6366_v15  ;;  %v2262_v13 = vld [vmem:[%s12773_s3 + $0x678] sm:$0xff]  ;;  %v6318_v15 = vpack.c.bf16 %v2243_v10, %v2235_v7  ;;  %v6394_v7 = vpack.c.bf16 %v2293_v46, %v2285_v27  ;;  %v2299_v10 = vld [vmem:[%s12773_s3 + $0x7a0] sm:$0xff]  ;;  %v2985_v46 = vld [vmem:[%s12773_s3 + $0x110] sm:$0xff] }
 0x2d0   :  { %6305 = vmatprep.subr.bf16.mxu0 %v6304_v19  ;;  %6369 = vmatprep.subr.bf16.mxu1 %v6368_v29  ;;  %v2259_v19 = vld [vmem:[%s12773_s3 + $0x660] sm:$0xff]  ;;  %v6320_v29 = vpack.c.bf16 %v2260_v22, %v2252_v1  ;;  %v6384_v14 = vpack.c.bf16 %v2262_v13, %v2254_v12  ;;  %v2309_v1 = vld [vmem:[%s12773_s3 + $0x7f0] sm:$0xff]  ;;  %v6334_v22 = vpack.c.bf16 %v2307_v4, %v2299_v10  ;;  %v2952_v13 = vld [vmem:[%s12773_s3 + $0x8] sm:$0xff] }
 0x2d1   :  { %v6398_v12 = vpack.c.bf16 %v2309_v1, %v2301_v28  ;;  %v2991_v27 = vld [vmem:[%s12773_s3 + $0x140] sm:$0xff]  ;;  %v3002_v10 = vld [vmem:[%s12773_s3 + $0x198] sm:$0xff]  ;;  %v3001_v1 = vld [vmem:[%s12773_s3 + $0x190] sm:$0xff] }
 0x2d2   :  { %v3007_v28 = vld [vmem:[%s12773_s3 + $0x1c0] sm:$0xff] }
 0x2d3   :  { %6307 = vmatpush1.bf16.msra.mxu0 %v6306_v50  ;;  %6371 = vmatpush1.bf16.msra.mxu1 %v6370_v34  ;;  %v2278_v50 = vld [vmem:[%s12773_s3 + $0x6f8] sm:$0xff]  ;;  %v6322_v34 = vpack.c.bf16 %v2259_v19, %v2251_v17 }
 0x2d4   :  { %6309 = vmatprep.subr.bf16.mxu0 %v6308_v23  ;;  %6373 = vmatprep.subr.bf16.mxu1 %v6372_v32  ;;  %v2275_v23 = vld [vmem:[%s12773_s3 + $0x6e0] sm:$0xff]  ;;  %v6324_v32 = vpack.c.bf16 %v2276_v58, %v2268_v53  ;;  %v6388_v35 = vpack.c.bf16 %v2278_v50, %v2270_v33  ;;  %v2962_v19 = vld [vmem:[%s12773_s3 + $0x58] sm:$0xff]  ;;  %v2953_v53 = vld [vmem:[%s12773_s3 + $0x10] sm:$0xff] }
 0x2d5   :  { %v2961_v58 = vld [vmem:[%s12773_s3 + $0x50] sm:$0xff]  ;;  %v2968_v50 = vld [vmem:[%s12773_s3 + $0x88] sm:$0xff] }
 0x2d6   :  { %v6466_v33 = vpack.c.bf16 %v2961_v58, %v2953_v53  ;;  %v3017_v53 = vld [vmem:[%s12773_s3 + $0x210] sm:$0xff] }
 0x2d7   :  { %6311 = vmatpush1.bf16.msra.mxu0 %v6310_v60  ;;  %6375 = vmatpush1.bf16.msra.mxu1 %v6374_v5  ;;  %v2294_v60 = vld [vmem:[%s12773_s3 + $0x778] sm:$0xff]  ;;  %v6326_v5 = vpack.c.bf16 %v2275_v23, %v2267_v52  ;;  %v3025_v58 = vld [vmem:[%s12773_s3 + $0x250] sm:$0xff] }
 0x2d8   :  { %6313 = vmatprep.subr.bf16.mxu0 %v6312_v24  ;;  %6377 = vmatprep.subr.bf16.mxu1 %v6376_v45  ;;  %v2291_v24 = vld [vmem:[%s12773_s3 + $0x760] sm:$0xff]  ;;  %v6328_v45 = vpack.c.bf16 %v2292_v6, %v2284_v62  ;;  %v6392_v25 = vpack.c.bf16 %v2294_v60, %v2286_v57  ;;  %v2978_v23 = vld [vmem:[%s12773_s3 + $0xd8] sm:$0xff]  ;;  %v2969_v62 = vld [vmem:[%s12773_s3 + $0x90] sm:$0xff] }
 0x2d9   :  { %v2977_v6 = vld [vmem:[%s12773_s3 + $0xd0] sm:$0xff]  ;;  %v2984_v57 = vld [vmem:[%s12773_s3 + $0x108] sm:$0xff] }
 0x2da   :  { %v6470_v60 = vpack.c.bf16 %v2977_v6, %v2969_v62  ;;  %v3041_v6 = vld [vmem:[%s12773_s3 + $0x2d0] sm:$0xff] }
 0x2db   :  { %6315 = vmatpush1.bf16.msra.mxu0 %v6314_v30  ;;  %6379 = vmatpush1.bf16.msra.mxu1 %v6378_v59  ;;  %v2310_v30 = vld [vmem:[%s12773_s3 + $0x7f8] sm:$0xff]  ;;  %v6330_v59 = vpack.c.bf16 %v2291_v24, %v2283_v42 }
 0x2dc   :  { %6317 = vmatprep.subr.bf16.mxu0 %v6316_v2  ;;  %6381 = vmatprep.subr.bf16.mxu1 %v6380_v40  ;;  %v6332_v2 = vpack.c.bf16 %v2308_v3, %v2300_v18  ;;  %v6396_v40 = vpack.c.bf16 %v2310_v30, %v2302_v56  ;;  %v2994_v42 = vld [vmem:[%s12773_s3 + $0x158] sm:$0xff]  ;;  %v2993_v3 = vld [vmem:[%s12773_s3 + $0x150] sm:$0xff]  ;;  %v3000_v56 = vld [vmem:[%s12773_s3 + $0x188] sm:$0xff] }
 0x2dd   :  { %v3008_v30 = vld [vmem:[%s12773_s3 + $0x1c8] sm:$0xff] }
 0x2df   :  { %6319 = vmatpush1.bf16.msra.mxu0 %v6318_v15  ;;  %6383 = vmatpush1.bf16.msra.mxu1 %v6382_v16  ;;  %v2960_v15 = vld [vmem:[%s12773_s3 + $0x48] sm:$0xff]  ;;  %v2954_v16 = vld [vmem:[%s12773_s3 + $0x18] sm:$0xff] }
 0x2e0   :  { %6321 = vmatprep.subr.bf16.mxu0 %v6320_v29  ;;  %6385 = vmatprep.subr.bf16.mxu1 %v6384_v14  ;;  %v6400_v17 = vpack.c.bf16 %v2960_v15, %v2952_v13  ;;  %v2951_v29 = vld [vmem:[%s12773_s3] sm:$0xff]  ;;  %v6464_v20 = vpack.c.bf16 %v2962_v19, %v2954_v16  ;;  %v3016_v13 = vld [vmem:[%s12773_s3 + $0x208] sm:$0xff]  ;;  %v3018_v16 = vld [vmem:[%s12773_s3 + $0x218] sm:$0xff] }
 0x2e1   :  { %v2959_v14 = vld [vmem:[%s12773_s3 + $0x40] sm:$0xff]  ;;  %v3024_v15 = vld [vmem:[%s12773_s3 + $0x248] sm:$0xff] }
 0x2e2   :  { %v6402_v51 = vpack.c.bf16 %v2959_v14, %v2951_v29  ;;  %v6416_v19 = vpack.c.bf16 %v3024_v15, %v3016_v13  ;;  %v3026_v29 = vld [vmem:[%s12773_s3 + $0x258] sm:$0xff]  ;;  %v3015_v14 = vld [vmem:[%s12773_s3 + $0x200] sm:$0xff] }
 0x2e3   :  { %6323 = vmatpush1.bf16.msra.mxu0 %v6322_v34  ;;  %6387 = vmatpush1.bf16.msra.mxu1 %v6386_v0  ;;  %v2976_v34 = vld [vmem:[%s12773_s3 + $0xc8] sm:$0xff]  ;;  %v2970_v0 = vld [vmem:[%s12773_s3 + $0x98] sm:$0xff] }
 0x2e4   :  { %6325 = vmatprep.subr.bf16.mxu0 %v6324_v32  ;;  %6389 = vmatprep.subr.bf16.mxu1 %v6388_v35  ;;  %v6404_v52 = vpack.c.bf16 %v2976_v34, %v2968_v50  ;;  %v2967_v32 = vld [vmem:[%s12773_s3 + $0x80] sm:$0xff]  ;;  %v6468_v54 = vpack.c.bf16 %v2978_v23, %v2970_v0  ;;  %v3040_v50 = vld [vmem:[%s12773_s3 + $0x2c8] sm:$0xff]  ;;  %v3034_v34 = vld [vmem:[%s12773_s3 + $0x298] sm:$0xff]  ;;  %v6482_v23 = vpack.c.bf16 %v3025_v58, %v3017_v53 }
 0x2e5   :  { %v2975_v35 = vld [vmem:[%s12773_s3 + $0xc0] sm:$0xff]  ;;  %v3042_v0 = vld [vmem:[%s12773_s3 + $0x2d8] sm:$0xff]  ;;  %v3081_v58 = vld [vmem:[%s12773_s3 + $0x410] sm:$0xff] }
 0x2e6   :  { %v6406_v41 = vpack.c.bf16 %v2975_v35, %v2967_v32  ;;  %v3031_v35 = vld [vmem:[%s12773_s3 + $0x280] sm:$0xff]  ;;  %v6484_v62 = vpack.c.bf16 %v3042_v0, %v3034_v34  ;;  %v3096_v0 = vld [vmem:[%s12773_s3 + $0x488] sm:$0xff] }
 0x2e7   :  { %6327 = vmatpush1.bf16.msra.mxu0 %v6326_v5  ;;  %6391 = vmatpush1.bf16.msra.mxu1 %v6390_v63  ;;  %v2992_v5 = vld [vmem:[%s12773_s3 + $0x148] sm:$0xff]  ;;  %v2986_v63 = vld [vmem:[%s12773_s3 + $0x118] sm:$0xff]  ;;  %v3087_v53 = vld [vmem:[%s12773_s3 + $0x440] sm:$0xff] }
 0x2e8   :  { %6329 = vmatprep.subr.bf16.mxu0 %v6328_v45  ;;  %6393 = vmatprep.subr.bf16.mxu1 %v6392_v25  ;;  %v6408_v24 = vpack.c.bf16 %v2992_v5, %v2984_v57  ;;  %v6472_v45 = vpack.c.bf16 %v2994_v42, %v2986_v63  ;;  %v2983_v25 = vld [vmem:[%s12773_s3 + $0x100] sm:$0xff]  ;;  %v3048_v57 = vld [vmem:[%s12773_s3 + $0x308] sm:$0xff]  ;;  %v3050_v5 = vld [vmem:[%s12773_s3 + $0x318] sm:$0xff] }
 0x2e9   :  { %v6410_v18 = vpack.c.bf16 %v2991_v27, %v2983_v25  ;;  %v3058_v63 = vld [vmem:[%s12773_s3 + $0x358] sm:$0xff]  ;;  %v3047_v25 = vld [vmem:[%s12773_s3 + $0x300] sm:$0xff] }
 0x2ea   :  { %v3055_v27 = vld [vmem:[%s12773_s3 + $0x340] sm:$0xff] }
 0x2eb   :  { %6331 = vmatpush1.bf16.msra.mxu0 %v6330_v59  ;;  %6395 = vmatpush1.bf16.msra.mxu1 %v6394_v7  ;;  %v6474_v59 = vpack.c.bf16 %v2993_v3, %v2985_v46  ;;  %v6412_v7 = vpack.c.bf16 %v3008_v30, %v3000_v56  ;;  %v3049_v46 = vld [vmem:[%s12773_s3 + $0x310] sm:$0xff]  ;;  %v3064_v56 = vld [vmem:[%s12773_s3 + $0x388] sm:$0xff] }
 0x2ec   :  { %6333 = vmatprep.subr.bf16.mxu0 %v6332_v2  ;;  %6397 = vmatprep.subr.bf16.mxu1 %v6396_v40  ;;  %v3010_v2 = vld [vmem:[%s12773_s3 + $0x1d8] sm:$0xff]  ;;  %v2999_v40 = vld [vmem:[%s12773_s3 + $0x180] sm:$0xff]  ;;  %v3057_v3 = vld [vmem:[%s12773_s3 + $0x350] sm:$0xff] }
 0x2ed   :  { %v6476_v4 = vpack.c.bf16 %v3010_v2, %v3002_v10  ;;  %v3072_v30 = vld [vmem:[%s12773_s3 + $0x3c8] sm:$0xff]  ;;  %v6426_v10 = vpack.c.bf16 %v3055_v27, %v3047_v25  ;;  %v6490_v2 = vpack.c.bf16 %v3057_v3, %v3049_v46  ;;  %v3122_v25 = vld [vmem:[%s12773_s3 + $0x558] sm:$0xff]  ;;  %v3111_v27 = vld [vmem:[%s12773_s3 + $0x500] sm:$0xff] }
 0x2ee   :  { %v3119_v46 = vld [vmem:[%s12773_s3 + $0x540] sm:$0xff] }
 0x2ef   :  { %6335 = vmatpush1.bf16.msra.mxu0 %v6334_v22  ;;  %6399 = vmatpush1.bf16.msra.mxu1 %v6398_v12  ;;  %v3009_v22 = vld [vmem:[%s12773_s3 + $0x1d0] sm:$0xff]  ;;  %v6414_v12 = vpack.c.bf16 %v3007_v28, %v2999_v40  ;;  %v6428_v40 = vpack.c.bf16 %v3072_v30, %v3064_v56  ;;  %v3071_v28 = vld [vmem:[%s12773_s3 + $0x3c0] sm:$0xff]  ;;  %v6442_v3 = vpack.c.bf16 %v3119_v46, %v3111_v27  ;;  %v3186_v27 = vld [vmem:[%s12773_s3 + $0x758] sm:$0xff] }
 0x2f0   :  { %6401 = vmatprep.subr.bf16.mxu0 %v6400_v17  ;;  %6465 = vmatprep.subr.bf16.mxu1 %v6464_v20  ;;  %v6478_v17 = vpack.c.bf16 %v3009_v22, %v3001_v1  ;;  %v3023_v20 = vld [vmem:[%s12773_s3 + $0x240] sm:$0xff]  ;;  %v3065_v22 = vld [vmem:[%s12773_s3 + $0x390] sm:$0xff] }
 0x2f1   :  { %v3113_v56 = vld [vmem:[%s12773_s3 + $0x510] sm:$0xff]  ;;  %v3175_v46 = vld [vmem:[%s12773_s3 + $0x700] sm:$0xff] }
 0x2f2   :  { %2530 = vmatmul.mubr.f32.vlgmr.msra.gmra.mrb[20].mxu0 %v10039_v61  ;;  %2607 = vmatmul.mubr.f32.vlgmr.msra.gmra.mrb[20].mxu1 %v10039_v61  ;;  %v3121_v30 = vld [vmem:[%s12773_s3 + $0x550] sm:$0xff] }
 0x2f3   :  { %2535 = vmatprep.mubr.f32.mxu0 %v10066_v55  ;;  %2612 = vmatprep.mubr.f32.mxu1 %v10066_v55 }
 0x2f4   :  { %6403 = vmatpush1.bf16.msra.mxu0 %v6402_v51  ;;  %6467 = vmatpush1.bf16.msra.mxu1 %v6466_v33  ;;  %v6480_v51 = vpack.c.bf16 %v3026_v29, %v3018_v16  ;;  %v3032_v33 = vld [vmem:[%s12773_s3 + $0x288] sm:$0xff] }
 0x2f5   :  { %6405 = vmatprep.subr.bf16.mxu0 %v6404_v52  ;;  %6469 = vmatprep.subr.bf16.mxu1 %v6468_v54  ;;  %v6418_v52 = vpack.c.bf16 %v3023_v20, %v3015_v14  ;;  %v6420_v32 = vpack.c.bf16 %v3040_v50, %v3032_v33  ;;  %v3039_v54 = vld [vmem:[%s12773_s3 + $0x2c0] sm:$0xff]  ;;  %v3080_v16 = vld [vmem:[%s12773_s3 + $0x408] sm:$0xff]  ;;  %v3090_v14 = vld [vmem:[%s12773_s3 + $0x458] sm:$0xff] }
 0x2f6   :  { %2536 = vmatmul.mubr.f32.gmra.mrb[22].mxu0 %v10074_v8  ;;  %2613 = vmatmul.mubr.f32.gmra.mrb[22].mxu1 %v10074_v8  ;;  %v6422_v42 = vpack.c.bf16 %v3039_v54, %v3031_v35  ;;  %v3089_v50 = vld [vmem:[%s12773_s3 + $0x450] sm:$0xff]  ;;  %v3106_v35 = vld [vmem:[%s12773_s3 + $0x4d8] sm:$0xff]  ;;  %v3095_v54 = vld [vmem:[%s12773_s3 + $0x480] sm:$0xff] }
 0x2f7   :  { %v6498_v34 = vpack.c.bf16 %v3089_v50, %v3081_v58  ;;  %v3145_v50 = vld [vmem:[%s12773_s3 + $0x610] sm:$0xff] }
 0x2f8   :  { %6407 = vmatpush1.bf16.msra.mxu0 %v6406_v41  ;;  %6471 = vmatpush1.bf16.msra.mxu1 %v6470_v60  ;;  %v3033_v41 = vld [vmem:[%s12773_s3 + $0x290] sm:$0xff]  ;;  %v3056_v60 = vld [vmem:[%s12773_s3 + $0x348] sm:$0xff] }
 0x2f9   :  { %6409 = vmatprep.subr.bf16.mxu0 %v6408_v24  ;;  %6473 = vmatprep.subr.bf16.mxu1 %v6472_v45  ;;  %v6486_v24 = vpack.c.bf16 %v3041_v6, %v3033_v41  ;;  %v6424_v45 = vpack.c.bf16 %v3056_v60, %v3048_v57  ;;  %v3103_v41 = vld [vmem:[%s12773_s3 + $0x4c0] sm:$0xff]  ;;  %v3097_v57 = vld [vmem:[%s12773_s3 + $0x490] sm:$0xff] }
 0x2fa   :  { %v6438_v6 = vpack.c.bf16 %v3103_v41, %v3095_v54  ;;  %v3105_v60 = vld [vmem:[%s12773_s3 + $0x4d0] sm:$0xff]  ;;  %v3170_v54 = vld [vmem:[%s12773_s3 + $0x6d8] sm:$0xff]  ;;  %v3159_v41 = vld [vmem:[%s12773_s3 + $0x680] sm:$0xff] }
 0x2fc   :  { %6411 = vmatpush1.bf16.msra.mxu0 %v6410_v18  ;;  %6475 = vmatpush1.bf16.msra.mxu1 %v6474_v59  ;;  %v6488_v18 = vpack.c.bf16 %v3058_v63, %v3050_v5  ;;  %v3066_v59 = vld [vmem:[%s12773_s3 + $0x398] sm:$0xff]  ;;  %v6502_v5 = vpack.c.bf16 %v3105_v60, %v3097_v57  ;;  %v3112_v63 = vld [vmem:[%s12773_s3 + $0x508] sm:$0xff]  ;;  %v3161_v60 = vld [vmem:[%s12773_s3 + $0x690] sm:$0xff] }
 0x2fd   :  { %6413 = vmatprep.subr.bf16.mxu0 %v6412_v7  ;;  %6477 = vmatprep.subr.bf16.mxu1 %v6476_v4  ;;  %v3074_v7 = vld [vmem:[%s12773_s3 + $0x3d8] sm:$0xff]  ;;  %v3063_v4 = vld [vmem:[%s12773_s3 + $0x380] sm:$0xff] }
 0x2fe   :  { %v6492_v1 = vpack.c.bf16 %v3074_v7, %v3066_v59  ;;  %v6430_v13 = vpack.c.bf16 %v3071_v28, %v3063_v4  ;;  %v6506_v59 = vpack.c.bf16 %v3121_v30, %v3113_v56  ;;  %v3128_v7 = vld [vmem:[%s12773_s3 + $0x588] sm:$0xff]  ;;  %v3138_v4 = vld [vmem:[%s12773_s3 + $0x5d8] sm:$0xff]  ;;  %v3127_v28 = vld [vmem:[%s12773_s3 + $0x580] sm:$0xff] }
 0x2ff   :  { %v3177_v30 = vld [vmem:[%s12773_s3 + $0x710] sm:$0xff] }
 0x300   :  { %6415 = vmatpush1.bf16.msra.mxu0 %v6414_v12  ;;  %6479 = vmatpush1.bf16.msra.mxu1 %v6478_v17  ;;  %v3073_v12 = vld [vmem:[%s12773_s3 + $0x3d0] sm:$0xff]  ;;  %v3088_v17 = vld [vmem:[%s12773_s3 + $0x448] sm:$0xff] }
 0x301   :  { %6417 = vmatprep.subr.bf16.mxu0 %v6416_v19  ;;  %6481 = vmatprep.subr.bf16.mxu1 %v6480_v51  ;;  %v6494_v15 = vpack.c.bf16 %v3073_v12, %v3065_v22  ;;  %v3082_v19 = vld [vmem:[%s12773_s3 + $0x418] sm:$0xff]  ;;  %v6432_v29 = vpack.c.bf16 %v3088_v17, %v3080_v16  ;;  %v3079_v51 = vld [vmem:[%s12773_s3 + $0x400] sm:$0xff]  ;;  %v3144_v17 = vld [vmem:[%s12773_s3 + $0x608] sm:$0xff] }
 0x302   :  { %v6496_v20 = vpack.c.bf16 %v3090_v14, %v3082_v19  ;;  %v6434_v33 = vpack.c.bf16 %v3087_v53, %v3079_v51  ;;  %v3152_v19 = vld [vmem:[%s12773_s3 + $0x648] sm:$0xff]  ;;  %v3143_v51 = vld [vmem:[%s12773_s3 + $0x600] sm:$0xff] }
 0x303   :  { %v6448_v14 = vpack.c.bf16 %v3152_v19, %v3144_v17  ;;  %v3151_v53 = vld [vmem:[%s12773_s3 + $0x640] sm:$0xff]  ;;  %v2956_v19 = vld [vmem:[%s12773_s3 + $0x28] sm:$0xff] }
 0x304   :  { %6419 = vmatpush1.bf16.msra.mxu0 %v6418_v52  ;;  %6483 = vmatpush1.bf16.msra.mxu1 %v6482_v23  ;;  %v3104_v52 = vld [vmem:[%s12773_s3 + $0x4c8] sm:$0xff]  ;;  %v3098_v23 = vld [vmem:[%s12773_s3 + $0x498] sm:$0xff] }
 0x305   :  { %6421 = vmatprep.subr.bf16.mxu0 %v6420_v32  ;;  %6485 = vmatprep.subr.bf16.mxu1 %v6484_v62  ;;  %v6436_v32 = vpack.c.bf16 %v3104_v52, %v3096_v0  ;;  %v6500_v62 = vpack.c.bf16 %v3106_v35, %v3098_v23  ;;  %v3160_v52 = vld [vmem:[%s12773_s3 + $0x688] sm:$0xff] }
 0x306   :  { %v3168_v23 = vld [vmem:[%s12773_s3 + $0x6c8] sm:$0xff] }
 0x307   :  { %v6452_v35 = vpack.c.bf16 %v3168_v23, %v3160_v52 }
 0x308   :  { %6423 = vmatpush1.bf16.msra.mxu0 %v6422_v42  ;;  %6487 = vmatpush1.bf16.msra.mxu1 %v6486_v24  ;;  %v3120_v42 = vld [vmem:[%s12773_s3 + $0x548] sm:$0xff]  ;;  %v3114_v24 = vld [vmem:[%s12773_s3 + $0x518] sm:$0xff] }
 0x309   :  { %6425 = vmatprep.subr.bf16.mxu0 %v6424_v45  ;;  %6489 = vmatprep.subr.bf16.mxu1 %v6488_v18  ;;  %v6440_v45 = vpack.c.bf16 %v3120_v42, %v3112_v63  ;;  %v6504_v18 = vpack.c.bf16 %v3122_v25, %v3114_v24  ;;  %v3176_v42 = vld [vmem:[%s12773_s3 + $0x708] sm:$0xff] }
 0x30a   :  { %v3184_v24 = vld [vmem:[%s12773_s3 + $0x748] sm:$0xff] }
 0x30b   :  { %v6456_v25 = vpack.c.bf16 %v3184_v24, %v3176_v42 }
 0x30c   :  { %6427 = vmatpush1.bf16.msra.mxu0 %v6426_v10  ;;  %6491 = vmatpush1.bf16.msra.mxu1 %v6490_v2  ;;  %v3136_v10 = vld [vmem:[%s12773_s3 + $0x5c8] sm:$0xff]  ;;  %v3130_v2 = vld [vmem:[%s12773_s3 + $0x598] sm:$0xff] }
 0x30d   :  { %6429 = vmatprep.subr.bf16.mxu0 %v6428_v40  ;;  %6493 = vmatprep.subr.bf16.mxu1 %v6492_v1  ;;  %v6444_v40 = vpack.c.bf16 %v3136_v10, %v3128_v7  ;;  %v3135_v1 = vld [vmem:[%s12773_s3 + $0x5c0] sm:$0xff]  ;;  %v6508_v22 = vpack.c.bf16 %v3138_v4, %v3130_v2  ;;  %v3192_v10 = vld [vmem:[%s12773_s3 + $0x788] sm:$0xff] }
 0x30e   :  { %v6446_v12 = vpack.c.bf16 %v3135_v1, %v3127_v28  ;;  %v3200_v2 = vld [vmem:[%s12773_s3 + $0x7c8] sm:$0xff]  ;;  %v3202_v28 = vld [vmem:[%s12773_s3 + $0x7d8] sm:$0xff]  ;;  %v3191_v1 = vld [vmem:[%s12773_s3 + $0x780] sm:$0xff] }
 0x30f   :  { %v6460_v4 = vpack.c.bf16 %v3200_v2, %v3192_v10 }
 0x310   :  { %6431 = vmatpush1.bf16.msra.mxu0 %v6430_v13  ;;  %6495 = vmatpush1.bf16.msra.mxu1 %v6494_v15  ;;  %v3129_v13 = vld [vmem:[%s12773_s3 + $0x590] sm:$0xff] }
 0x311   :  { %6433 = vmatprep.subr.bf16.mxu0 %v6432_v29  ;;  %6497 = vmatprep.subr.bf16.mxu1 %v6496_v20  ;;  %v3137_v15 = vld [vmem:[%s12773_s3 + $0x5d0] sm:$0xff]  ;;  %v3146_v29 = vld [vmem:[%s12773_s3 + $0x618] sm:$0xff] }
 0x312   :  { %v6510_v16 = vpack.c.bf16 %v3137_v15, %v3129_v13  ;;  %v3154_v20 = vld [vmem:[%s12773_s3 + $0x658] sm:$0xff]  ;;  %v3193_v15 = vld [vmem:[%s12773_s3 + $0x790] sm:$0xff] }
 0x313   :  { %v6512_v58 = vpack.c.bf16 %v3154_v20, %v3146_v29  ;;  %v2964_v29 = vld [vmem:[%s12773_s3 + $0x68] sm:$0xff] }
 0x314   :  { %6435 = vmatpush1.bf16.msra.mxu0 %v6434_v33  ;;  %6499 = vmatpush1.bf16.msra.mxu1 %v6498_v34  ;;  %v6450_v33 = vpack.c.bf16 %v3151_v53, %v3143_v51  ;;  %v3153_v34 = vld [vmem:[%s12773_s3 + $0x650] sm:$0xff]  ;;  %v6528_v20 = vpack.c.bf16 %v2964_v29, %v2956_v19  ;;  %v2966_v51 = vld [vmem:[%s12773_s3 + $0x78] sm:$0xff] }
 0x315   :  { %6437 = vmatprep.subr.bf16.mxu0 %v6436_v32  ;;  %6501 = vmatprep.subr.bf16.mxu1 %v6500_v62  ;;  %v6514_v0 = vpack.c.bf16 %v3153_v34, %v3145_v50  ;;  %v3162_v32 = vld [vmem:[%s12773_s3 + $0x698] sm:$0xff]  ;;  %v3167_v62 = vld [vmem:[%s12773_s3 + $0x6c0] sm:$0xff] }
 0x316   :  { %v6454_v57 = vpack.c.bf16 %v3167_v62, %v3159_v41 }
 0x318   :  { %6439 = vmatpush1.bf16.msra.mxu0 %v6438_v6  ;;  %6503 = vmatpush1.bf16.msra.mxu1 %v6502_v5  ;;  %v6516_v6 = vpack.c.bf16 %v3170_v54, %v3162_v32  ;;  %v3169_v5 = vld [vmem:[%s12773_s3 + $0x6d0] sm:$0xff]  ;;  %v10812_v54 = vld [vmem:[%s12776_s2 + $0x8] sm:$0xff] }
 0x319   :  { %6441 = vmatprep.subr.bf16.mxu0 %v6440_v45  ;;  %6505 = vmatprep.subr.bf16.mxu1 %v6504_v18  ;;  %v6518_v63 = vpack.c.bf16 %v3169_v5, %v3161_v60  ;;  %v3178_v45 = vld [vmem:[%s12773_s3 + $0x718] sm:$0xff]  ;;  %v3183_v18 = vld [vmem:[%s12773_s3 + $0x740] sm:$0xff]  ;;  %v1928_v62 = vrot.slane %v10812_v54, %v8954_v44  ;;  %v1936_v5 = vrot.slane %v10812_v54, %v8967_v47 }
 0x31a   :  { %v6458_v56 = vpack.c.bf16 %v3183_v18, %v3175_v46  ;;  %v1932_v42 = vrot.slane %v10812_v54, %v8970_v48  ;;  %v10839_v46 = vld [vmem:[%s12776_s2 + $0x10] sm:$0xff] }
 0x31c   :  { %6443 = vmatpush1.bf16.msra.mxu0 %v6442_v3  ;;  %6507 = vmatpush1.bf16.msra.mxu1 %v6506_v59  ;;  %v6520_v3 = vpack.c.bf16 %v3186_v27, %v3178_v45  ;;  %v3185_v59 = vld [vmem:[%s12773_s3 + $0x750] sm:$0xff]  ;;  %v1940_v45 = vrot.slane %v10812_v54, %v8973_v49 }
 0x31d   :  { %6445 = vmatprep.subr.bf16.mxu0 %v6444_v40  ;;  %6509 = vmatprep.subr.bf16.mxu1 %v6508_v22  ;;  %v6522_v7 = vpack.c.bf16 %v3185_v59, %v3177_v30  ;;  %v3194_v40 = vld [vmem:[%s12773_s3 + $0x798] sm:$0xff]  ;;  %v3199_v22 = vld [vmem:[%s12773_s3 + $0x7c0] sm:$0xff] }
 0x31e   :  { %v6462_v13 = vpack.c.bf16 %v3199_v22, %v3191_v1 }
 0x320   :  { %6447 = vmatpush1.bf16.msra.mxu0 %v6446_v12  ;;  %6511 = vmatpush1.bf16.msra.mxu1 %v6510_v16  ;;  %v6524_v12 = vpack.c.bf16 %v3202_v28, %v3194_v40  ;;  %v3201_v16 = vld [vmem:[%s12773_s3 + $0x7d0] sm:$0xff] }
 0x321   :  { %6449 = vmatprep.subr.bf16.mxu0 %v6448_v14  ;;  %6513 = vmatprep.subr.bf16.mxu1 %v6512_v58  ;;  %v6526_v17 = vpack.c.bf16 %v3201_v16, %v3193_v15  ;;  %v2958_v14 = vld [vmem:[%s12773_s3 + $0x38] sm:$0xff] }
 0x322   :  { %v6592_v53 = vpack.c.bf16 %v2966_v51, %v2958_v14 }
 0x324   :  { %6451 = vmatpush1.bf16.msra.mxu0 %v6450_v33  ;;  %6515 = vmatpush1.bf16.msra.mxu1 %v6514_v0 }
 0x325   :  { %6453 = vmatprep.subr.bf16.mxu0 %v6452_v35  ;;  %6517 = vmatprep.subr.bf16.mxu1 %v6516_v6  ;;  %v10807_v35 = vld [vmem:[%s12776_s2] sm:$0xff]  ;;  %v10818_v6 = vpop.permute.xlu1 %1916 }
 0x326   :  { %v1860_v41 = vrot.slane %v10807_v35, %v8954_v44  ;;  %v1868_v60 = vrot.slane %v10807_v35, %v8967_v47  ;;  %v1872_v24 = vrot.slane %v10807_v35, %v8973_v49  ;;  %v1965_v27 = vmul.f32 %v1928_v62, %v10818_v6 }
 0x327   :  { %v1966_v30 = vmul.f32 %v1932_v42, %v10818_v6  ;;  %v1968_v2 = vmul.f32 %v1940_v45, %v10818_v6 }
 0x328   :  { %6455 = vmatpush1.bf16.msra.mxu0 %v6454_v57  ;;  %6519 = vmatpush1.bf16.msra.mxu1 %v6518_v63  ;;  %v10820_v57 = vpop.permute.xlu0 %1848  ;;  %v1864_v63 = vrot.slane %v10807_v35, %v8970_v48 }
 0x329   :  { %6457 = vmatprep.subr.bf16.mxu0 %v6456_v25  ;;  %6521 = vmatprep.subr.bf16.mxu1 %v6520_v3  ;;  %v1897_v25 = vmul.f32 %v1860_v41, %v10820_v57  ;;  %v1899_v18 = vmul.f32 %v1868_v60, %v10820_v57  ;;  %v1967_v3 = vmul.f32 %v1936_v5, %v10818_v6  ;;  %v10845_v59 = vpop.permute.xlu1 %1921 }
 0x32a   :  { %v1900_v10 = vmul.f32 %v1872_v24, %v10820_v57  ;;  %v1973_v1 = vmul.f32 %v1928_v62, %v10845_v59  ;;  %v1975_v15 = vmul.f32 %v1936_v5, %v10845_v59  ;;  %v1974_v29 = vmul.f32 %v1932_v42, %v10845_v59 }
 0x32b   :  { %v1981_v40 = vadd.f32 %v1965_v27, %v1897_v25  ;;  %v1983_v22 = vadd.f32 %v1967_v3, %v1899_v18 }
 0x32c   :  { %6459 = vmatpush1.bf16.msra.mxu0 %v6458_v56  ;;  %6523 = vmatpush1.bf16.msra.mxu1 %v6522_v7  ;;  %v1898_v56 = vmul.f32 %v1864_v63, %v10820_v57  ;;  %v10847_v7 = vpop.permute.xlu0 %1853  ;;  %v1984_v14 = vadd.f32 %v1968_v2, %v1900_v10 }
 0x32d   :  { %6461 = vmatprep.subr.bf16.mxu0 %v6460_v4  ;;  %6525 = vmatprep.subr.bf16.mxu1 %v6524_v12  ;;  %v2002_v4 = vrot.slane %v10839_v46, %v8954_v44  ;;  %v1905_v28 = vmul.f32 %v1860_v41, %v10847_v7  ;;  %v2010_v12 = vrot.slane %v10839_v46, %v8967_v47 }
 0x32e   :  { %v1982_v16 = vadd.f32 %v1966_v30, %v1898_v56  ;;  %v1906_v19 = vmul.f32 %v1864_v63, %v10847_v7  ;;  %v1908_v51 = vmul.f32 %v1872_v24, %v10847_v7 }
 0x32f   :  { %v2039_v41 = vadd.f32 %v2002_v4, %v1981_v40  ;;  %v1989_v62 = vadd.f32 %v1973_v1, %v1905_v28 }
 0x330   :  { %6463 = vmatpush1.bf16.msra.mxu0 %v6462_v13  ;;  %6527 = vmatpush1.bf16.msra.mxu1 %v6526_v17  ;;  %v1907_v13 = vmul.f32 %v1868_v60, %v10847_v7  ;;  %v2006_v17 = vrot.slane %v10839_v46, %v8970_v48  ;;  %v2041_v60 = vadd.f32 %v2010_v12, %v1983_v22 }
 0x331   :  { %6529 = vmatprep.subr.bf16.mxu0 %v6528_v20  ;;  %6593 = vmatprep.subr.bf16.mxu1 %v6592_v53  ;;  %v2014_v20 = vrot.slane %v10839_v46, %v8973_v49  ;;  %v1976_v53 = vmul.f32 %v1940_v45, %v10845_v59  ;;  %v1990_v18 = vadd.f32 %v1974_v29, %v1906_v19 }
 0x332   :  { %v1991_v5 = vadd.f32 %v1975_v15, %v1907_v13  ;;  %v2040_v27 = vadd.f32 %v2006_v17, %v1982_v16  ;;  %v2047_v42 = vadd.f32 %v2002_v4, %v1989_v62  ;;  %v2026_v62 = vrot.slane %v10839_v46, %v9036_v37 }
 0x333   :  { %v2042_v56 = vadd.f32 %v2014_v20, %v1984_v14  ;;  %v1992_v63 = vadd.f32 %v1976_v53, %v1908_v51  ;;  %v2048_v8 = vadd.f32 %v2006_v17, %v1990_v18  ;;  %v2022_v18 = vrot.slane %v10839_v46, %v9039_v38 }
 0x334   :  { %v2049_v2 = vadd.f32 %v2010_v12, %v1991_v5 }
 0x335   :  { %v2050_v45 = vadd.f32 %v2014_v20, %v1992_v63 }
 0x385   :  { %v2377_v58 = vpop.f32.mrb[16].mxu0  ;;  %v2454_v33 = vpop.f32.mrb[16].mxu1 }
 0x386   :  { %v2379_v50 = vpop.f32.mrb[17].mxu0  ;;  %v2456_v34 = vpop.f32.mrb[17].mxu1  ;;  %v2619_v25 = vadd.f32 %v2377_v58, %v2039_v41  ;;  %v2621_v3 = vadd.f32 %v2454_v33, %v2041_v60  ;;  %v2018_v41 = vrot.slane %v10839_v46, %v9033_v36 }
 0x387   :  { %v2620_v30 = vadd.f32 %v2379_v50, %v2040_v27  ;;  %v2622_v10 = vadd.f32 %v2456_v34, %v2042_v56 }
 0x388   :  { %v5562_v55 = vmul.f32 -1.442695, %v2619_v25  ;;  %v5566_v24 = vmul.f32 -1.442695, %v2621_v3 }
 0x389   :  { %v2383_v0 = vpop.f32.mrb[18].mxu0  ;;  %v2460_v52 = vpop.f32.mrb[18].mxu1  ;;  %v5563_v40 = vmul.f32 -1.442695, %v2620_v30  ;;  %v5567_v1 = vmul.f32 -1.442695, %v2622_v10 }
 0x38a   :  { %v2385_v23 = vpop.f32.mrb[19].mxu0  ;;  %v10802_v32 = vpop.f32.mrb[19].mxu1  ;;  %v2627_v31 = vadd.f32 %v2383_v0, %v2047_v42  ;;  %v2629_v61 = vadd.f32 %v2460_v52, %v2049_v2  ;;  %7364 = vpow2.f32 %v5562_v55  ;;  %v1876_v0 = vrot.slane %v10807_v35, %v9033_v36 }
 0x38b   :  { %v2628_v28 = vadd.f32 %v2385_v23, %v2048_v8  ;;  %v2630_v58 = vadd.f32 %v10802_v32, %v2050_v45  ;;  %7366 = vpow2.f32 %v5566_v24  ;;  %v1944_v52 = vrot.slane %v10812_v54, %v9033_v36 }
 0x38c   :  { %v5564_v22 = vmul.f32 -1.442695, %v2627_v31  ;;  %v5568_v33 = vmul.f32 -1.442695, %v2629_v61  ;;  %7368 = vpow2.f32 %v5563_v40  ;;  %v1884_v8 = vrot.slane %v10807_v35, %v9036_v37 }
 0x38d   :  { %v5565_v50 = vmul.f32 -1.442695, %v2628_v28  ;;  %7370 = vpow2.f32 %v5567_v1  ;;  %v5569_v34 = vmul.f32 -1.442695, %v2630_v58  ;;  %v1952_v31 = vrot.slane %v10812_v54, %v9036_v37 }
 0x38e   :  { %7372 = vpow2.f32 %v5564_v22  ;;  %v1880_v61 = vrot.slane %v10807_v35, %v9039_v38  ;;  %v1948_v55 = vrot.slane %v10812_v54, %v9039_v38  ;;  %v1888_v23 = vrot.slane %v10807_v35, %v9042_v39 }
 0x38f   :  { %7374 = vpow2.f32 %v5568_v33  ;;  %v1956_v32 = vrot.slane %v10812_v54, %v9042_v39  ;;  %v1901_v4 = vmul.f32 %v1876_v0, %v10820_v57  ;;  %v1969_v12 = vmul.f32 %v1944_v52, %v10818_v6 }
 0x390   :  { %7376 = vpow2.f32 %v5565_v50  ;;  %v1903_v15 = vmul.f32 %v1884_v8, %v10820_v57  ;;  %v1971_v16 = vmul.f32 %v1952_v31, %v10818_v6  ;;  %v1902_v17 = vmul.f32 %v1880_v61, %v10820_v57 }
 0x391   :  { %7378 = vpow2.f32 %v5569_v34  ;;  %v1970_v19 = vmul.f32 %v1948_v55, %v10818_v6  ;;  %v1904_v35 = vmul.f32 %v1888_v23, %v10820_v57  ;;  %v1972_v20 = vmul.f32 %v1956_v32, %v10818_v6 }
 0x392   :  { %v1985_v53 = vadd.f32 %v1969_v12, %v1901_v4  ;;  %v1987_v25 = vadd.f32 %v1971_v16, %v1903_v15  ;;  %v2030_v6 = vrot.slane %v10839_v46, %v9042_v39  ;;  %v1909_v56 = vmul.f32 %v1876_v0, %v10847_v7 }
 0x393   :  { %v1986_v27 = vadd.f32 %v1970_v19, %v1902_v17  ;;  %v1977_v63 = vmul.f32 %v1944_v52, %v10845_v59  ;;  %v1988_v10 = vadd.f32 %v1972_v20, %v1904_v35  ;;  %v1911_v2 = vmul.f32 %v1884_v8, %v10847_v7 }
 0x394   :  { %v7365_v13 = vpop.eup %7364  ;;  %v1979_v24 = vmul.f32 %v1952_v31, %v10845_v59  ;;  %v1910_v28 = vmul.f32 %v1880_v61, %v10847_v7  ;;  %v1978_v1 = vmul.f32 %v1948_v55, %v10845_v59  ;;  %v1912_v58 = vmul.f32 %v1888_v23, %v10847_v7 }
 0x395   :  { %v7367_v29 = vpop.eup %7366  ;;  %v2647_v51 = vadd.f32 1.0, %v7365_v13  ;;  %v1980_v22 = vmul.f32 %v1956_v32, %v10845_v59  ;;  %v2043_v34 = vadd.f32 %v2018_v41, %v1985_v53  ;;  %v2045_v0 = vadd.f32 %v2026_v62, %v1987_v25 }
 0x396   :  { %v7369_v14 = vpop.eup %7368  ;;  %v2671_v5 = vadd.f32 1.0, %v7367_v29  ;;  %v2044_v52 = vadd.f32 %v2022_v18, %v1986_v27  ;;  %v1993_v8 = vadd.f32 %v1977_v63, %v1909_v56  ;;  %v1995_v31 = vadd.f32 %v1979_v24, %v1911_v2 }
 0x397   :  { %v7371_v54 = vpop.eup %7370  ;;  %v2648_v57 = vadd.f32 1.0, %v7369_v14  ;;  %7380 = vrcp.f32 %v2647_v51  ;;  %v2046_v55 = vadd.f32 %v2030_v6, %v1988_v10  ;;  %v1994_v12 = vadd.f32 %v1978_v1, %v1910_v28 }
 0x398   :  { %v7373_v60 = vpop.eup %7372  ;;  %v2672_v42 = vadd.f32 1.0, %v7371_v54  ;;  %7382 = vrcp.f32 %v2671_v5  ;;  %v1996_v13 = vadd.f32 %v1980_v22, %v1912_v58  ;;  %v2051_v19 = vadd.f32 %v2018_v41, %v1993_v8 }
 0x399   :  { %v7375_v3 = vpop.eup %7374  ;;  %v2649_v40 = vadd.f32 1.0, %v7373_v60  ;;  %7384 = vrcp.f32 %v2648_v57  ;;  %v2053_v29 = vadd.f32 %v2026_v62, %v1995_v31  ;;  %v2052_v54 = vadd.f32 %v2022_v18, %v1994_v12 }
 0x39a   :  { %v7377_v30 = vpop.eup %7376  ;;  %v2673_v46 = vadd.f32 1.0, %v7375_v3  ;;  %7386 = vrcp.f32 %v2672_v42  ;;  %v2054_v51 = vadd.f32 %v2030_v6, %v1996_v13 }
 0x39b   :  { %v7379_v45 = vpop.eup %7378  ;;  %v2650_v33 = vadd.f32 1.0, %v7377_v30  ;;  %7388 = vrcp.f32 %v2649_v40 }
 0x39c   :  { %v2674_v50 = vadd.f32 1.0, %v7379_v45  ;;  %7390 = vrcp.f32 %v2673_v46 }
 0x39d   :  { %7392 = vrcp.f32 %v2650_v33 }
 0x39e   :  { %7394 = vrcp.f32 %v2674_v50 }
 0x3a1   :  { %v7381_v53 = vpop.eup %7380 }
 0x3a2   :  { %v7383_v3 = vpop.eup %7382 }
 0x3a3   :  { %v7385_v63 = vpop.eup %7384  ;;  %v2711_v45 = vmul.f32 %v7383_v3, %v9996_v9 }
 0x3a4   :  { %v7387_v62 = vpop.eup %7386 }
 0x3a5   :  { %v7389_v42 = vpop.eup %7388  ;;  %v2712_v1 = vmul.f32 %v7387_v62, %v9998_v26  ;;  %v2988_v62 = vld [vmem:[%s12773_s3 + $0x128] sm:$0xff] }
 0x3a6   :  { %v7391_v18 = vpop.eup %7390 }
 0x3a7   :  { %v7393_v6 = vpop.eup %7392  ;;  %v2713_v8 = vmul.f32 %v7391_v18, %v10004_v43  ;;  %v2990_v18 = vld [vmem:[%s12773_s3 + $0x138] sm:$0xff] }
 0x3a8   :  { %v7395_v10 = vpop.eup %7394 }
 0x3c5   :  { %v2531_v61 = vpop.f32.mrb[20].mxu0  ;;  %v2608_v4 = vpop.f32.mrb[20].mxu1 }
 0x3c6   :  { %v2623_v7 = vadd.f32 %v2531_v61, %v2043_v34  ;;  %v2625_v23 = vadd.f32 %v2608_v4, %v2045_v0  ;;  %v2533_v59 = vpop.f32.mrb[21].mxu0  ;;  %v2610_v32 = vpop.f32.mrb[21].mxu1  ;;  %v2714_v61 = vmul.f32 %v7395_v10, %v10006_v11  ;;  %v2955_v11 = vld [vmem:[%s12773_s3 + $0x20] sm:$0xff] }
 0x3c7   :  { %v2624_v15 = vadd.f32 %v2533_v59, %v2044_v52  ;;  %v2626_v16 = vadd.f32 %v2610_v32, %v2046_v55  ;;  %v2957_v32 = vld [vmem:[%s12773_s3 + $0x30] sm:$0xff] }
 0x3c8   :  { %7396 = vtanh.f32 %v2623_v7  ;;  %v5570_v17 = vmul.f32 -1.442695, %v2625_v23  ;;  %v2963_v23 = vld [vmem:[%s12773_s3 + $0x60] sm:$0xff] }
 0x3c9   :  { %7398 = vtanh.f32 %v2624_v15  ;;  %v5571_v14 = vmul.f32 -1.442695, %v2626_v16  ;;  %v2537_v35 = vpop.f32.mrb[22].mxu0  ;;  %v2614_v20 = vpop.f32.mrb[22].mxu1  ;;  %v2965_v15 = vld [vmem:[%s12773_s3 + $0x70] sm:$0xff]  ;;  %v2972_v16 = vld [vmem:[%s12773_s3 + $0xa8] sm:$0xff] }
 0x3ca   :  { %7400 = vpow2.f32 %v5570_v17  ;;  %v2631_v60 = vadd.f32 %v2537_v35, %v2051_v19  ;;  %v2633_v5 = vadd.f32 %v2614_v20, %v2053_v29  ;;  %v2539_v25 = vpop.f32.mrb[23].mxu0  ;;  %v2616_v27 = vpop.f32.mrb[23].mxu1  ;;  %v2980_v19 = vld [vmem:[%s12773_s3 + $0xe8] sm:$0xff]  ;;  %v2974_v29 = vld [vmem:[%s12773_s3 + $0xb8] sm:$0xff] }
 0x3cb   :  { %7402 = vpow2.f32 %v5571_v14  ;;  %v2632_v57 = vadd.f32 %v2539_v25, %v2052_v54  ;;  %v2634_v56 = vadd.f32 %v2616_v27, %v2054_v51  ;;  %v2982_v14 = vld [vmem:[%s12773_s3 + $0xf8] sm:$0xff]  ;;  %v6530_v51 = vpack.c.bf16 %v2963_v23, %v2955_v11  ;;  %v3020_v11 = vld [vmem:[%s12773_s3 + $0x228] sm:$0xff] }
 0x3cc   :  { %7404 = vtanh.f32 %v2631_v60  ;;  %v5572_v41 = vmul.f32 -1.442695, %v2633_v5  ;;  %v2971_v60 = vld [vmem:[%s12773_s3 + $0xa0] sm:$0xff]  ;;  %v6532_v27 = vpack.c.bf16 %v2980_v19, %v2972_v16  ;;  %v6596_v3 = vpack.c.bf16 %v2982_v14, %v2974_v29  ;;  %v3028_v23 = vld [vmem:[%s12773_s3 + $0x268] sm:$0xff] }
 0x3cd   :  { %7406 = vtanh.f32 %v2632_v57  ;;  %v5573_v30 = vmul.f32 -1.442695, %v2634_v56  ;;  %v2979_v57 = vld [vmem:[%s12773_s3 + $0xe0] sm:$0xff]  ;;  %v2973_v56 = vld [vmem:[%s12773_s3 + $0xb0] sm:$0xff]  ;;  %v6544_v29 = vpack.c.bf16 %v3028_v23, %v3020_v11  ;;  %v3084_v23 = vld [vmem:[%s12773_s3 + $0x428] sm:$0xff] }
 0x3ce   :  { %7408 = vpow2.f32 %v5572_v41  ;;  %v3027_v19 = vld [vmem:[%s12773_s3 + $0x260] sm:$0xff]  ;;  %v3077_v11 = vld [vmem:[%s12773_s3 + $0x3f0] sm:$0xff] }
 0x3cf   :  { %7410 = vpow2.f32 %v5573_v30 }
 0x3d2   :  { %v7397_v2 = vpop.eup %7396 }
 0x3d3   :  { %v7399_v24 = vpop.eup %7398  ;;  %v2715_v40 = vmul.f32 %v7397_v2, %v7381_v53  ;;  %v6594_v53 = vpack.c.bf16 %v2965_v15, %v2957_v32  ;;  %v6534_v2 = vpack.c.bf16 %v2979_v57, %v2971_v60  ;;  %v3030_v32 = vld [vmem:[%s12773_s3 + $0x278] sm:$0xff]  ;;  %v3035_v57 = vld [vmem:[%s12773_s3 + $0x2a0] sm:$0xff] }
 0x3d4   :  { %v7401_v28 = vpop.eup %7400  ;;  %v2716_v46 = vmul.f32 %v7399_v24, %v7385_v63  ;;  %v2981_v63 = vld [vmem:[%s12773_s3 + $0xf0] sm:$0xff]  ;;  %v3038_v60 = vld [vmem:[%s12773_s3 + $0x2b8] sm:$0xff] }
 0x3d5   :  { %v7403_v58 = vpop.eup %7402  ;;  %v10910_v22 = vadd.f32 %v2715_v40, %v2711_v45  ;;  %v2699_v33 = vadd.f32 1.0, %v7401_v28  ;;  %v6598_v24 = vpack.c.bf16 %v2981_v63, %v2973_v56  ;;  %v2987_v45 = vld [vmem:[%s12773_s3 + $0x120] sm:$0xff] }
 0x3d6   :  { %v7405_v50 = vpop.eup %7404  ;;  %v10912_v34 = vadd.f32 %v2716_v46, %v2712_v1  ;;  %v2700_v0 = vadd.f32 1.0, %v7403_v58  ;;  %v2995_v40 = vld [vmem:[%s12773_s3 + $0x160] sm:$0xff]  ;;  %v2989_v1 = vld [vmem:[%s12773_s3 + $0x130] sm:$0xff]  ;;  %v3004_v58 = vld [vmem:[%s12773_s3 + $0x1a8] sm:$0xff] }
 0x3d7   :  { %v7407_v52 = vpop.eup %7406  ;;  %7412 = vtanh.f32 %v10910_v22  ;;  %v2717_v31 = vmul.f32 %v7405_v50, %v7389_v42  ;;  %v2996_v42 = vld [vmem:[%s12773_s3 + $0x168] sm:$0xff]  ;;  %v2997_v46 = vld [vmem:[%s12773_s3 + $0x170] sm:$0xff]  ;;  %v3043_v56 = vld [vmem:[%s12773_s3 + $0x2e0] sm:$0xff] }
 0x3d8   :  { %v7409_v9 = vpop.eup %7408  ;;  %7414 = vrcp.f32 %v2699_v33  ;;  %v2718_v26 = vmul.f32 %v7407_v52, %v7393_v6  ;;  %v2998_v6 = vld [vmem:[%s12773_s3 + $0x178] sm:$0xff]  ;;  %v6536_v33 = vpack.c.bf16 %v2996_v42, %v2988_v62  ;;  %v3037_v62 = vld [vmem:[%s12773_s3 + $0x2b0] sm:$0xff]  ;;  %v3052_v42 = vld [vmem:[%s12773_s3 + $0x328] sm:$0xff] }
 0x3d9   :  { %v7411_v4 = vpop.eup %7410  ;;  %7416 = vtanh.f32 %v10912_v34  ;;  %v10918_v55 = vadd.f32 %v2717_v31, %v2713_v8  ;;  %v2701_v12 = vadd.f32 1.0, %v7409_v9  ;;  %v6600_v50 = vpack.c.bf16 %v2998_v6, %v2990_v18  ;;  %v3006_v52 = vld [vmem:[%s12773_s3 + $0x1b8] sm:$0xff]  ;;  %v3060_v18 = vld [vmem:[%s12773_s3 + $0x368] sm:$0xff] }
 0x3da   :  { %7418 = vrcp.f32 %v2700_v0  ;;  %v10920_v13 = vadd.f32 %v2718_v26, %v2714_v61  ;;  %v2702_v7 = vadd.f32 1.0, %v7411_v4  ;;  %v3012_v0 = vld [vmem:[%s12773_s3 + $0x1e8] sm:$0xff]  ;;  %v3014_v8 = vld [vmem:[%s12773_s3 + $0x1f8] sm:$0xff]  ;;  %v6538_v31 = vpack.c.bf16 %v2995_v40, %v2987_v45  ;;  %v3003_v61 = vld [vmem:[%s12773_s3 + $0x1a0] sm:$0xff] }
 0x3db   :  { %7420 = vtanh.f32 %v10918_v55  ;;  %v6602_v9 = vpack.c.bf16 %v2997_v46, %v2989_v1  ;;  %v3011_v26 = vld [vmem:[%s12773_s3 + $0x1e0] sm:$0xff]  ;;  %v6540_v4 = vpack.c.bf16 %v3012_v0, %v3004_v58  ;;  %v3054_v6 = vld [vmem:[%s12773_s3 + $0x338] sm:$0xff]  ;;  %v6552_v46 = vpack.c.bf16 %v3060_v18, %v3052_v42  ;;  %v3068_v0 = vld [vmem:[%s12773_s3 + $0x3a8] sm:$0xff] }
 0x3dc   :  { %7422 = vrcp.f32 %v2701_v12  ;;  %v6604_v12 = vpack.c.bf16 %v3014_v8, %v3006_v52  ;;  %v6542_v15 = vpack.c.bf16 %v3011_v26, %v3003_v61  ;;  %v3051_v40 = vld [vmem:[%s12773_s3 + $0x320] sm:$0xff]  ;;  %v3076_v52 = vld [vmem:[%s12773_s3 + $0x3e8] sm:$0xff]  ;;  %v3070_v8 = vld [vmem:[%s12773_s3 + $0x3b8] sm:$0xff] }
 0x3dd   :  { %7424 = vtanh.f32 %v10920_v13  ;;  %v3059_v1 = vld [vmem:[%s12773_s3 + $0x360] sm:$0xff]  ;;  %v3109_v42 = vld [vmem:[%s12773_s3 + $0x4f0] sm:$0xff]  ;;  %v3116_v18 = vld [vmem:[%s12773_s3 + $0x528] sm:$0xff] }
 0x3de   :  { %7426 = vrcp.f32 %v2702_v7  ;;  %v3005_v7 = vld [vmem:[%s12773_s3 + $0x1b0] sm:$0xff]  ;;  %v3067_v26 = vld [vmem:[%s12773_s3 + $0x3a0] sm:$0xff] }
 0x3e1   :  { %v7413_v43 = vpop.eup %7412 }
 0x3e2   :  { %v7415_v59 = vpop.eup %7414 }
 0x3e3   :  { %v7417_v17 = vpop.eup %7416  ;;  %v10953_v25 = vmul.f32 %v7415_v59, %v7413_v43  ;;  %v3013_v43 = vld [vmem:[%s12773_s3 + $0x1f0] sm:$0xff]  ;;  %v3022_v59 = vld [vmem:[%s12773_s3 + $0x238] sm:$0xff] }
 0x3e4   :  { %v7419_v35 = vpop.eup %7418  ;;  %v6606_v16 = vpack.c.bf16 %v3013_v43, %v3005_v7  ;;  %v6608_v14 = vpack.c.bf16 %v3030_v32, %v3022_v59  ;;  %v3069_v43 = vld [vmem:[%s12773_s3 + $0x3b0] sm:$0xff]  ;;  %v3092_v59 = vld [vmem:[%s12773_s3 + $0x468] sm:$0xff]  ;;  %v3086_v32 = vld [vmem:[%s12773_s3 + $0x438] sm:$0xff] }
 0x3e5   :  { %v7421_v20 = vpop.eup %7420  ;;  %v10948_v54 = vmul.f32 %v7419_v35, %v7417_v17  ;;  %v3019_v17 = vld [vmem:[%s12773_s3 + $0x220] sm:$0xff]  ;;  %v3021_v35 = vld [vmem:[%s12773_s3 + $0x230] sm:$0xff] }
 0x3e6   :  { %v7423_v5 = vpop.eup %7422 }
 0x3e7   :  { %v7425_v41 = vpop.eup %7424  ;;  %3271 = vmatprep.mubr.f32.mxu0 %v10948_v54  ;;  %3348 = vmatprep.mubr.f32.mxu1 %v10948_v54  ;;  %v10988_v28 = vmul.f32 %v7423_v5, %v7421_v20  ;;  %v3029_v20 = vld [vmem:[%s12773_s3 + $0x270] sm:$0xff]  ;;  %v3046_v5 = vld [vmem:[%s12773_s3 + $0x2f8] sm:$0xff] }
 0x3e8   :  { %v7427_v30 = vpop.eup %7426  ;;  %3272 = vmatmul.mubr.f32.vlgmr.msra.gmra.mrb[24].mxu0 %v10953_v25  ;;  %3349 = vmatmul.mubr.f32.vlgmr.msra.gmra.mrb[24].mxu1 %v10953_v25 }
 0x3e9   :  { %v10980_v10 = vmul.f32 %v7427_v30, %v7425_v41  ;;  %6531 = vmatpush1.bf16.msra.mxu0 %v6530_v51  ;;  %6595 = vmatpush1.bf16.msra.mxu1 %v6594_v53  ;;  %v3036_v51 = vld [vmem:[%s12773_s3 + $0x2a8] sm:$0xff]  ;;  %v6612_v41 = vpack.c.bf16 %v3046_v5, %v3038_v60  ;;  %v3045_v30 = vld [vmem:[%s12773_s3 + $0x2f0] sm:$0xff]  ;;  %v3102_v5 = vld [vmem:[%s12773_s3 + $0x4b8] sm:$0xff] }
 0x3ea   :  { %6533 = vmatprep.subr.bf16.mxu0 %v6532_v27  ;;  %6597 = vmatprep.subr.bf16.mxu1 %v6596_v3  ;;  %v3044_v53 = vld [vmem:[%s12773_s3 + $0x2e8] sm:$0xff]  ;;  %v6546_v27 = vpack.c.bf16 %v3027_v19, %v3019_v17  ;;  %v6610_v3 = vpack.c.bf16 %v3029_v20, %v3021_v35  ;;  %v6614_v45 = vpack.c.bf16 %v3045_v30, %v3037_v62  ;;  %v3083_v19 = vld [vmem:[%s12773_s3 + $0x420] sm:$0xff]  ;;  %v3085_v20 = vld [vmem:[%s12773_s3 + $0x430] sm:$0xff] }
 0x3eb   :  { %3277 = vmatprep.mubr.f32.mxu0 %v10980_v10  ;;  %3354 = vmatprep.mubr.f32.mxu1 %v10980_v10  ;;  %v6548_v63 = vpack.c.bf16 %v3044_v53, %v3036_v51  ;;  %v6622_v17 = vpack.c.bf16 %v3077_v11, %v3069_v43  ;;  %v3093_v51 = vld [vmem:[%s12773_s3 + $0x470] sm:$0xff]  ;;  %v3100_v53 = vld [vmem:[%s12773_s3 + $0x4a8] sm:$0xff] }
 0x3ec   :  { %3278 = vmatmul.mubr.f32.gmra.mrb[26].mxu0 %v10988_v28  ;;  %3355 = vmatmul.mubr.f32.gmra.mrb[26].mxu1 %v10988_v28  ;;  %v3108_v60 = vld [vmem:[%s12773_s3 + $0x4e8] sm:$0xff]  ;;  %v3101_v30 = vld [vmem:[%s12773_s3 + $0x4b0] sm:$0xff] }
 0x3ed   :  { %6535 = vmatpush1.bf16.msra.mxu0 %v6534_v2  ;;  %6599 = vmatpush1.bf16.msra.mxu1 %v6598_v24  ;;  %v3062_v2 = vld [vmem:[%s12773_s3 + $0x378] sm:$0xff]  ;;  %v6550_v24 = vpack.c.bf16 %v3043_v56, %v3035_v57  ;;  %v6626_v57 = vpack.c.bf16 %v3093_v51, %v3085_v20  ;;  %v3099_v56 = vld [vmem:[%s12773_s3 + $0x4a0] sm:$0xff]  ;;  %v3133_v11 = vld [vmem:[%s12773_s3 + $0x5b0] sm:$0xff] }
 0x3ee   :  { %3425 = vmatprep.mubr.f32.mxu0 %v10948_v54  ;;  %3502 = vmatprep.mubr.f32.mxu1 %v10948_v54  ;;  %v6616_v58 = vpack.c.bf16 %v3062_v2, %v3054_v6  ;;  %v3124_v6 = vld [vmem:[%s12773_s3 + $0x568] sm:$0xff]  ;;  %v3118_v2 = vld [vmem:[%s12773_s3 + $0x538] sm:$0xff]  ;;  %v3149_v51 = vld [vmem:[%s12773_s3 + $0x630] sm:$0xff] }
 0x3ef   :  { %6537 = vmatprep.subr.bf16.mxu0 %v6536_v33  ;;  %6601 = vmatprep.subr.bf16.mxu1 %v6600_v50  ;;  %v3053_v33 = vld [vmem:[%s12773_s3 + $0x330] sm:$0xff] }
 0x3f0   :  { %v3061_v50 = vld [vmem:[%s12773_s3 + $0x370] sm:$0xff] }
 0x3f1   :  { %6539 = vmatpush1.bf16.msra.mxu0 %v6538_v31  ;;  %6603 = vmatpush1.bf16.msra.mxu1 %v6602_v9  ;;  %v3078_v31 = vld [vmem:[%s12773_s3 + $0x3f8] sm:$0xff]  ;;  %v6554_v9 = vpack.c.bf16 %v3059_v1, %v3051_v40  ;;  %v6618_v61 = vpack.c.bf16 %v3061_v50, %v3053_v33  ;;  %v6630_v40 = vpack.c.bf16 %v3109_v42, %v3101_v30  ;;  %v3115_v1 = vld [vmem:[%s12773_s3 + $0x520] sm:$0xff]  ;;  %v3117_v50 = vld [vmem:[%s12773_s3 + $0x530] sm:$0xff] }
 0x3f2   :  { %6541 = vmatprep.subr.bf16.mxu0 %v6540_v4  ;;  %6605 = vmatprep.subr.bf16.mxu1 %v6604_v12  ;;  %v3075_v4 = vld [vmem:[%s12773_s3 + $0x3e0] sm:$0xff]  ;;  %v6556_v12 = vpack.c.bf16 %v3076_v52, %v3068_v0  ;;  %v6620_v7 = vpack.c.bf16 %v3078_v31, %v3070_v8  ;;  %v3125_v0 = vld [vmem:[%s12773_s3 + $0x570] sm:$0xff]  ;;  %v3132_v52 = vld [vmem:[%s12773_s3 + $0x5a8] sm:$0xff] }
 0x3f3   :  { %v3140_v8 = vld [vmem:[%s12773_s3 + $0x5e8] sm:$0xff]  ;;  %v3134_v31 = vld [vmem:[%s12773_s3 + $0x5b8] sm:$0xff]  ;;  %v3165_v42 = vld [vmem:[%s12773_s3 + $0x6b0] sm:$0xff] }
 0x3f5   :  { %6543 = vmatpush1.bf16.msra.mxu0 %v6542_v15  ;;  %6607 = vmatpush1.bf16.msra.mxu1 %v6606_v16  ;;  %v3094_v15 = vld [vmem:[%s12773_s3 + $0x478] sm:$0xff]  ;;  %v6558_v16 = vpack.c.bf16 %v3075_v4, %v3067_v26  ;;  %v6634_v26 = vpack.c.bf16 %v3125_v0, %v3117_v50  ;;  %v3131_v4 = vld [vmem:[%s12773_s3 + $0x5a0] sm:$0xff]  ;;  %v3181_v0 = vld [vmem:[%s12773_s3 + $0x730] sm:$0xff] }
 0x3f6   :  { %6545 = vmatprep.subr.bf16.mxu0 %v6544_v29  ;;  %6609 = vmatprep.subr.bf16.mxu1 %v6608_v14  ;;  %v3091_v29 = vld [vmem:[%s12773_s3 + $0x460] sm:$0xff]  ;;  %v6560_v14 = vpack.c.bf16 %v3092_v59, %v3084_v23  ;;  %v6624_v35 = vpack.c.bf16 %v3094_v15, %v3086_v32  ;;  %v3141_v23 = vld [vmem:[%s12773_s3 + $0x5f0] sm:$0xff]  ;;  %v3148_v59 = vld [vmem:[%s12773_s3 + $0x628] sm:$0xff] }
 0x3f7   :  { %v3156_v32 = vld [vmem:[%s12773_s3 + $0x668] sm:$0xff]  ;;  %v3150_v15 = vld [vmem:[%s12773_s3 + $0x638] sm:$0xff] }
 0x3f9   :  { %6547 = vmatpush1.bf16.msra.mxu0 %v6546_v27  ;;  %6611 = vmatpush1.bf16.msra.mxu1 %v6610_v3  ;;  %v3110_v27 = vld [vmem:[%s12773_s3 + $0x4f8] sm:$0xff]  ;;  %v6562_v3 = vpack.c.bf16 %v3091_v29, %v3083_v19  ;;  %v6638_v19 = vpack.c.bf16 %v3141_v23, %v3133_v11  ;;  %v3147_v29 = vld [vmem:[%s12773_s3 + $0x620] sm:$0xff]  ;;  %v3197_v23 = vld [vmem:[%s12773_s3 + $0x7b0] sm:$0xff] }
 0x3fa   :  { %6549 = vmatprep.subr.bf16.mxu0 %v6548_v63  ;;  %6613 = vmatprep.subr.bf16.mxu1 %v6612_v41  ;;  %v3107_v63 = vld [vmem:[%s12773_s3 + $0x4e0] sm:$0xff]  ;;  %v6564_v41 = vpack.c.bf16 %v3108_v60, %v3100_v53  ;;  %v6628_v62 = vpack.c.bf16 %v3110_v27, %v3102_v5  ;;  %v3157_v53 = vld [vmem:[%s12773_s3 + $0x670] sm:$0xff]  ;;  %v3164_v60 = vld [vmem:[%s12773_s3 + $0x6a8] sm:$0xff] }
 0x3fb   :  { %v3172_v5 = vld [vmem:[%s12773_s3 + $0x6e8] sm:$0xff]  ;;  %v3166_v27 = vld [vmem:[%s12773_s3 + $0x6b8] sm:$0xff]  ;;  %v3203_v11 = vld [vmem:[%s12773_s3 + $0x7e0] sm:$0xff] }
 0x3fd   :  { %6551 = vmatpush1.bf16.msra.mxu0 %v6550_v24  ;;  %6615 = vmatpush1.bf16.msra.mxu1 %v6614_v45  ;;  %v3126_v24 = vld [vmem:[%s12773_s3 + $0x578] sm:$0xff]  ;;  %v6566_v45 = vpack.c.bf16 %v3107_v63, %v3099_v56  ;;  %v6642_v56 = vpack.c.bf16 %v3157_v53, %v3149_v51  ;;  %v3163_v63 = vld [vmem:[%s12773_s3 + $0x6a0] sm:$0xff] }
 0x3fe   :  { %6553 = vmatprep.subr.bf16.mxu0 %v6552_v46  ;;  %6617 = vmatprep.subr.bf16.mxu1 %v6616_v58  ;;  %v3123_v46 = vld [vmem:[%s12773_s3 + $0x560] sm:$0xff]  ;;  %v6568_v58 = vpack.c.bf16 %v3124_v6, %v3116_v18  ;;  %v6632_v33 = vpack.c.bf16 %v3126_v24, %v3118_v2  ;;  %v3173_v18 = vld [vmem:[%s12773_s3 + $0x6f0] sm:$0xff]  ;;  %v3180_v6 = vld [vmem:[%s12773_s3 + $0x728] sm:$0xff] }
 0x3ff   :  { %v3188_v2 = vld [vmem:[%s12773_s3 + $0x768] sm:$0xff]  ;;  %v3182_v24 = vld [vmem:[%s12773_s3 + $0x738] sm:$0xff] }
 0x401   :  { %6555 = vmatpush1.bf16.msra.mxu0 %v6554_v9  ;;  %6619 = vmatpush1.bf16.msra.mxu1 %v6618_v61  ;;  %v3142_v9 = vld [vmem:[%s12773_s3 + $0x5f8] sm:$0xff]  ;;  %v6570_v61 = vpack.c.bf16 %v3123_v46, %v3115_v1  ;;  %v6646_v1 = vpack.c.bf16 %v3173_v18, %v3165_v42  ;;  %v3179_v46 = vld [vmem:[%s12773_s3 + $0x720] sm:$0xff] }
 0x402   :  { %6557 = vmatprep.subr.bf16.mxu0 %v6556_v12  ;;  %6621 = vmatprep.subr.bf16.mxu1 %v6620_v7  ;;  %v3139_v12 = vld [vmem:[%s12773_s3 + $0x5e0] sm:$0xff]  ;;  %v6572_v7 = vpack.c.bf16 %v3140_v8, %v3132_v52  ;;  %v6636_v43 = vpack.c.bf16 %v3142_v9, %v3134_v31  ;;  %v3189_v52 = vld [vmem:[%s12773_s3 + $0x770] sm:$0xff]  ;;  %v3196_v8 = vld [vmem:[%s12773_s3 + $0x7a8] sm:$0xff] }
 0x403   :  { %v3204_v31 = vld [vmem:[%s12773_s3 + $0x7e8] sm:$0xff]  ;;  %v3198_v9 = vld [vmem:[%s12773_s3 + $0x7b8] sm:$0xff] }
 0x405   :  { %6559 = vmatpush1.bf16.msra.mxu0 %v6558_v16  ;;  %6623 = vmatpush1.bf16.msra.mxu1 %v6622_v17  ;;  %v3158_v16 = vld [vmem:[%s12773_s3 + $0x678] sm:$0xff]  ;;  %v6574_v17 = vpack.c.bf16 %v3139_v12, %v3131_v4  ;;  %v6650_v4 = vpack.c.bf16 %v3189_v52, %v3181_v0  ;;  %v3195_v12 = vld [vmem:[%s12773_s3 + $0x7a0] sm:$0xff]  ;;  %v3665_v52 = vld [vmem:[%s12777_s4 + $0x90] sm:$0xff] }
 0x406   :  { %6561 = vmatprep.subr.bf16.mxu0 %v6560_v14  ;;  %6625 = vmatprep.subr.bf16.mxu1 %v6624_v35  ;;  %v3155_v14 = vld [vmem:[%s12773_s3 + $0x660] sm:$0xff]  ;;  %v6576_v35 = vpack.c.bf16 %v3156_v32, %v3148_v59  ;;  %v6640_v20 = vpack.c.bf16 %v3158_v16, %v3150_v15  ;;  %v3205_v59 = vld [vmem:[%s12773_s3 + $0x7f0] sm:$0xff]  ;;  %v6590_v32 = vpack.c.bf16 %v3203_v11, %v3195_v12  ;;  %v3648_v16 = vld [vmem:[%s12777_s4 + $0x8] sm:$0xff] }
 0x407   :  { %v6654_v15 = vpack.c.bf16 %v3205_v59, %v3197_v23  ;;  %v3670_v0 = vld [vmem:[%s12777_s4 + $0xb8] sm:$0xff]  ;;  %v3671_v12 = vld [vmem:[%s12777_s4 + $0xc0] sm:$0xff]  ;;  %v3673_v23 = vld [vmem:[%s12777_s4 + $0xd0] sm:$0xff] }
 0x408   :  { %v3678_v11 = vld [vmem:[%s12777_s4 + $0xf8] sm:$0xff]  ;;  %v3677_v59 = vld [vmem:[%s12777_s4 + $0xf0] sm:$0xff] }
 0x409   :  { %6563 = vmatpush1.bf16.msra.mxu0 %v6562_v3  ;;  %6627 = vmatpush1.bf16.msra.mxu1 %v6626_v57  ;;  %v3174_v3 = vld [vmem:[%s12773_s3 + $0x6f8] sm:$0xff]  ;;  %v6578_v57 = vpack.c.bf16 %v3155_v14, %v3147_v29  ;;  %v3647_v14 = vld [vmem:[%s12777_s4] sm:$0xff] }
 0x40a   :  { %6565 = vmatprep.subr.bf16.mxu0 %v6564_v41  ;;  %6629 = vmatprep.subr.bf16.mxu1 %v6628_v62  ;;  %v3171_v41 = vld [vmem:[%s12773_s3 + $0x6e0] sm:$0xff]  ;;  %v6580_v62 = vpack.c.bf16 %v3172_v5, %v3164_v60  ;;  %v6644_v30 = vpack.c.bf16 %v3174_v3, %v3166_v27  ;;  %v3649_v60 = vld [vmem:[%s12777_s4 + $0x10] sm:$0xff]  ;;  %v3656_v3 = vld [vmem:[%s12777_s4 + $0x48] sm:$0xff] }
 0x40b   :  { %v3653_v5 = vld [vmem:[%s12777_s4 + $0x30] sm:$0xff] }
 0x40c   :  { %v6722_v27 = vpack.c.bf16 %v3653_v5, %v3649_v60  ;;  %v3681_v60 = vld [vmem:[%s12777_s4 + $0x110] sm:$0xff] }
 0x40d   :  { %6567 = vmatpush1.bf16.msra.mxu0 %v6566_v45  ;;  %6631 = vmatpush1.bf16.msra.mxu1 %v6630_v40  ;;  %v3190_v45 = vld [vmem:[%s12773_s3 + $0x778] sm:$0xff]  ;;  %v6582_v40 = vpack.c.bf16 %v3171_v41, %v3163_v63  ;;  %v3655_v41 = vld [vmem:[%s12777_s4 + $0x40] sm:$0xff]  ;;  %v3685_v5 = vld [vmem:[%s12777_s4 + $0x130] sm:$0xff] }
 0x40e   :  { %6569 = vmatprep.subr.bf16.mxu0 %v6568_v58  ;;  %6633 = vmatprep.subr.bf16.mxu1 %v6632_v33  ;;  %v3187_v58 = vld [vmem:[%s12773_s3 + $0x760] sm:$0xff]  ;;  %v6584_v33 = vpack.c.bf16 %v3188_v2, %v3180_v6  ;;  %v6648_v50 = vpack.c.bf16 %v3190_v45, %v3182_v24  ;;  %v3657_v6 = vld [vmem:[%s12777_s4 + $0x50] sm:$0xff]  ;;  %v3664_v24 = vld [vmem:[%s12777_s4 + $0x88] sm:$0xff] }
 0x40f   :  { %v3661_v2 = vld [vmem:[%s12777_s4 + $0x70] sm:$0xff] }
 0x410   :  { %v6726_v45 = vpack.c.bf16 %v3661_v2, %v3657_v6  ;;  %v3693_v2 = vld [vmem:[%s12777_s4 + $0x170] sm:$0xff] }
 0x411   :  { %6571 = vmatpush1.bf16.msra.mxu0 %v6570_v61  ;;  %6635 = vmatpush1.bf16.msra.mxu1 %v6634_v26  ;;  %v3206_v61 = vld [vmem:[%s12773_s3 + $0x7f8] sm:$0xff]  ;;  %v6586_v26 = vpack.c.bf16 %v3187_v58, %v3179_v46  ;;  %v3667_v46 = vld [vmem:[%s12777_s4 + $0xa0] sm:$0xff] }
 0x412   :  { %6573 = vmatprep.subr.bf16.mxu0 %v6572_v7  ;;  %6637 = vmatprep.subr.bf16.mxu1 %v6636_v43  ;;  %v6588_v7 = vpack.c.bf16 %v3204_v31, %v3196_v8  ;;  %v6652_v43 = vpack.c.bf16 %v3206_v61, %v3198_v9  ;;  %v3669_v31 = vld [vmem:[%s12777_s4 + $0xb0] sm:$0xff]  ;;  %v3672_v9 = vld [vmem:[%s12777_s4 + $0xc8] sm:$0xff] }
 0x413   :  { %v3676_v61 = vld [vmem:[%s12777_s4 + $0xe8] sm:$0xff] }
 0x415   :  { %6575 = vmatpush1.bf16.msra.mxu0 %v6574_v17  ;;  %6639 = vmatpush1.bf16.msra.mxu1 %v6638_v19  ;;  %v3652_v17 = vld [vmem:[%s12777_s4 + $0x28] sm:$0xff]  ;;  %v3650_v19 = vld [vmem:[%s12777_s4 + $0x18] sm:$0xff] }
 0x416   :  { %6577 = vmatprep.subr.bf16.mxu0 %v6576_v35  ;;  %6641 = vmatprep.subr.bf16.mxu1 %v6640_v20  ;;  %v6656_v29 = vpack.c.bf16 %v3652_v17, %v3648_v16  ;;  %v3651_v35 = vld [vmem:[%s12777_s4 + $0x20] sm:$0xff]  ;;  %v3654_v20 = vld [vmem:[%s12777_s4 + $0x38] sm:$0xff]  ;;  %v3680_v16 = vld [vmem:[%s12777_s4 + $0x108] sm:$0xff] }
 0x417   :  { %v6658_v51 = vpack.c.bf16 %v3651_v35, %v3647_v14  ;;  %v6720_v53 = vpack.c.bf16 %v3654_v20, %v3650_v19  ;;  %v3684_v17 = vld [vmem:[%s12777_s4 + $0x128] sm:$0xff]  ;;  %v3679_v19 = vld [vmem:[%s12777_s4 + $0x100] sm:$0xff]  ;;  %v3682_v20 = vld [vmem:[%s12777_s4 + $0x118] sm:$0xff] }
 0x418   :  { %v6672_v14 = vpack.c.bf16 %v3684_v17, %v3680_v16  ;;  %v3683_v35 = vld [vmem:[%s12777_s4 + $0x120] sm:$0xff] }
 0x419   :  { %6579 = vmatpush1.bf16.msra.mxu0 %v6578_v57  ;;  %6643 = vmatpush1.bf16.msra.mxu1 %v6642_v56  ;;  %v3660_v57 = vld [vmem:[%s12777_s4 + $0x68] sm:$0xff]  ;;  %v3658_v56 = vld [vmem:[%s12777_s4 + $0x58] sm:$0xff] }
 0x41a   :  { %6581 = vmatprep.subr.bf16.mxu0 %v6580_v62  ;;  %6645 = vmatprep.subr.bf16.mxu1 %v6644_v30  ;;  %v6660_v63 = vpack.c.bf16 %v3660_v57, %v3656_v3  ;;  %v3659_v62 = vld [vmem:[%s12777_s4 + $0x60] sm:$0xff]  ;;  %v3662_v30 = vld [vmem:[%s12777_s4 + $0x78] sm:$0xff]  ;;  %v3692_v3 = vld [vmem:[%s12777_s4 + $0x168] sm:$0xff]  ;;  %v6674_v57 = vpack.c.bf16 %v3683_v35, %v3679_v19 }
 0x41b   :  { %v6662_v42 = vpack.c.bf16 %v3659_v62, %v3655_v41  ;;  %v6724_v18 = vpack.c.bf16 %v3662_v30, %v3658_v56  ;;  %v3690_v56 = vld [vmem:[%s12777_s4 + $0x158] sm:$0xff]  ;;  %v6738_v41 = vpack.c.bf16 %v3685_v5, %v3681_v60  ;;  %v3687_v30 = vld [vmem:[%s12777_s4 + $0x140] sm:$0xff]  ;;  %v3712_v19 = vld [vmem:[%s12777_s4 + $0x208] sm:$0xff] }
 0x41c   :  { %v3714_v35 = vld [vmem:[%s12777_s4 + $0x218] sm:$0xff]  ;;  %v3713_v5 = vld [vmem:[%s12777_s4 + $0x210] sm:$0xff] }
 0x41d   :  { %6583 = vmatpush1.bf16.msra.mxu0 %v6582_v40  ;;  %6647 = vmatpush1.bf16.msra.mxu1 %v6646_v1  ;;  %v3668_v40 = vld [vmem:[%s12777_s4 + $0xa8] sm:$0xff]  ;;  %v3663_v1 = vld [vmem:[%s12777_s4 + $0x80] sm:$0xff] }
 0x41e   :  { %6585 = vmatprep.subr.bf16.mxu0 %v6584_v33  ;;  %6649 = vmatprep.subr.bf16.mxu1 %v6648_v50  ;;  %v6664_v58 = vpack.c.bf16 %v3668_v40, %v3664_v24  ;;  %v6666_v33 = vpack.c.bf16 %v3667_v46, %v3663_v1  ;;  %v3666_v50 = vld [vmem:[%s12777_s4 + $0x98] sm:$0xff]  ;;  %v3696_v24 = vld [vmem:[%s12777_s4 + $0x188] sm:$0xff] }
 0x41f   :  { %v6728_v8 = vpack.c.bf16 %v3670_v0, %v3666_v50  ;;  %v3698_v40 = vld [vmem:[%s12777_s4 + $0x198] sm:$0xff]  ;;  %v3695_v50 = vld [vmem:[%s12777_s4 + $0x180] sm:$0xff] }
 0x420   :  { %v3702_v1 = vld [vmem:[%s12777_s4 + $0x1b8] sm:$0xff]  ;;  %v3699_v0 = vld [vmem:[%s12777_s4 + $0x1a0] sm:$0xff] }
 0x421   :  { %6587 = vmatpush1.bf16.msra.mxu0 %v6586_v26  ;;  %6651 = vmatpush1.bf16.msra.mxu1 %v6650_v4  ;;  %v6730_v26 = vpack.c.bf16 %v3669_v31, %v3665_v52  ;;  %v6668_v4 = vpack.c.bf16 %v3676_v61, %v3672_v9  ;;  %v3697_v52 = vld [vmem:[%s12777_s4 + $0x190] sm:$0xff]  ;;  %v3704_v9 = vld [vmem:[%s12777_s4 + $0x1c8] sm:$0xff] }
 0x422   :  { %6589 = vmatprep.subr.bf16.mxu0 %v6588_v7  ;;  %6653 = vmatprep.subr.bf16.mxu1 %v6652_v43  ;;  %v3675_v7 = vld [vmem:[%s12777_s4 + $0xe0] sm:$0xff]  ;;  %v3674_v43 = vld [vmem:[%s12777_s4 + $0xd8] sm:$0xff]  ;;  %v3701_v31 = vld [vmem:[%s12777_s4 + $0x1b0] sm:$0xff] }
 0x423   :  { %v3708_v61 = vld [vmem:[%s12777_s4 + $0x1e8] sm:$0xff] }
 0x425   :  { %6591 = vmatpush1.bf16.msra.mxu0 %v6590_v32  ;;  %6655 = vmatpush1.bf16.msra.mxu1 %v6654_v15  ;;  %v6670_v32 = vpack.c.bf16 %v3675_v7, %v3671_v12  ;;  %v6732_v15 = vpack.c.bf16 %v3678_v11, %v3674_v43  ;;  %v6682_v12 = vpack.c.bf16 %v3699_v0, %v3695_v50  ;;  %v3703_v11 = vld [vmem:[%s12777_s4 + $0x1c0] sm:$0xff] }
 0x426   :  { %6657 = vmatprep.subr.bf16.mxu0 %v6656_v29  ;;  %6721 = vmatprep.subr.bf16.mxu1 %v6720_v53  ;;  %v6734_v29 = vpack.c.bf16 %v3677_v59, %v3673_v23  ;;  %v6746_v7 = vpack.c.bf16 %v3701_v31, %v3697_v52  ;;  %v6684_v43 = vpack.c.bf16 %v3708_v61, %v3704_v9  ;;  %v3707_v23 = vld [vmem:[%s12777_s4 + $0x1e0] sm:$0xff]  ;;  %v3734_v52 = vld [vmem:[%s12777_s4 + $0x2b8] sm:$0xff]  ;;  %v3729_v9 = vld [vmem:[%s12777_s4 + $0x290] sm:$0xff] }
 0x427   :  { %v6686_v16 = vpack.c.bf16 %v3707_v23, %v3703_v11  ;;  %v3727_v50 = vld [vmem:[%s12777_s4 + $0x280] sm:$0xff]  ;;  %v3733_v61 = vld [vmem:[%s12777_s4 + $0x2b0] sm:$0xff] }
 0x428   :  { %3426 = vmatmul.mubr.f32.vlgmr.msra.gmra.mrb[28].mxu0 %v10953_v25  ;;  %3503 = vmatmul.mubr.f32.vlgmr.msra.gmra.mrb[28].mxu1 %v10953_v25  ;;  %v3731_v0 = vld [vmem:[%s12777_s4 + $0x2a0] sm:$0xff] }
 0x429   :  { %3431 = vmatprep.mubr.f32.mxu0 %v10980_v10  ;;  %3508 = vmatprep.mubr.f32.mxu1 %v10980_v10  ;;  %v3735_v11 = vld [vmem:[%s12777_s4 + $0x2c0] sm:$0xff] }
 0x42a   :  { %6659 = vmatpush1.bf16.msra.mxu0 %v6658_v51  ;;  %6723 = vmatpush1.bf16.msra.mxu1 %v6722_v27  ;;  %v3686_v51 = vld [vmem:[%s12777_s4 + $0x138] sm:$0xff]  ;;  %v3688_v27 = vld [vmem:[%s12777_s4 + $0x148] sm:$0xff]  ;;  %v3739_v23 = vld [vmem:[%s12777_s4 + $0x2e0] sm:$0xff] }
 0x42b   :  { %6661 = vmatprep.subr.bf16.mxu0 %v6660_v63  ;;  %6725 = vmatprep.subr.bf16.mxu1 %v6724_v18  ;;  %v6736_v53 = vpack.c.bf16 %v3686_v51, %v3682_v20  ;;  %v3694_v63 = vld [vmem:[%s12777_s4 + $0x178] sm:$0xff]  ;;  %v6676_v62 = vpack.c.bf16 %v3692_v3, %v3688_v27  ;;  %v3689_v18 = vld [vmem:[%s12777_s4 + $0x150] sm:$0xff]  ;;  %v3711_v51 = vld [vmem:[%s12777_s4 + $0x200] sm:$0xff] }
 0x42c   :  { %3432 = vmatmul.mubr.f32.gmra.mrb[30].mxu0 %v10988_v28  ;;  %3509 = vmatmul.mubr.f32.gmra.mrb[30].mxu1 %v10988_v28  ;;  %v6740_v6 = vpack.c.bf16 %v3694_v63, %v3690_v56  ;;  %v3718_v20 = vld [vmem:[%s12777_s4 + $0x238] sm:$0xff]  ;;  %v3717_v3 = vld [vmem:[%s12777_s4 + $0x230] sm:$0xff]  ;;  %v3720_v56 = vld [vmem:[%s12777_s4 + $0x248] sm:$0xff] }
 0x42d   :  { %v6752_v60 = vpack.c.bf16 %v3718_v20, %v3714_v35  ;;  %v3724_v63 = vld [vmem:[%s12777_s4 + $0x268] sm:$0xff]  ;;  %v3746_v35 = vld [vmem:[%s12777_s4 + $0x318] sm:$0xff] }
 0x42e   :  { %6663 = vmatpush1.bf16.msra.mxu0 %v6662_v42  ;;  %6727 = vmatpush1.bf16.msra.mxu1 %v6726_v45  ;;  %v3691_v42 = vld [vmem:[%s12777_s4 + $0x160] sm:$0xff]  ;;  %v3700_v45 = vld [vmem:[%s12777_s4 + $0x1a8] sm:$0xff] }
 0x42f   :  { %6665 = vmatprep.subr.bf16.mxu0 %v6664_v58  ;;  %6729 = vmatprep.subr.bf16.mxu1 %v6728_v8  ;;  %v6678_v46 = vpack.c.bf16 %v3691_v42, %v3687_v30  ;;  %v6742_v58 = vpack.c.bf16 %v3693_v2, %v3689_v18  ;;  %v6744_v8 = vpack.c.bf16 %v3702_v1, %v3698_v40  ;;  %v3719_v30 = vld [vmem:[%s12777_s4 + $0x240] sm:$0xff]  ;;  %v3726_v18 = vld [vmem:[%s12777_s4 + $0x278] sm:$0xff]  ;;  %v3728_v1 = vld [vmem:[%s12777_s4 + $0x288] sm:$0xff] }
 0x430   :  { %v3723_v42 = vld [vmem:[%s12777_s4 + $0x260] sm:$0xff] }
 0x432   :  { %6667 = vmatpush1.bf16.msra.mxu0 %v6666_v33  ;;  %6731 = vmatpush1.bf16.msra.mxu1 %v6730_v26  ;;  %v6680_v33 = vpack.c.bf16 %v3700_v45, %v3696_v24  ;;  %v3706_v26 = vld [vmem:[%s12777_s4 + $0x1d8] sm:$0xff]  ;;  %v3721_v24 = vld [vmem:[%s12777_s4 + $0x250] sm:$0xff] }
 0x433   :  { %6669 = vmatprep.subr.bf16.mxu0 %v6668_v4  ;;  %6733 = vmatprep.subr.bf16.mxu1 %v6732_v15  ;;  %v3710_v4 = vld [vmem:[%s12777_s4 + $0x1f8] sm:$0xff]  ;;  %v3709_v15 = vld [vmem:[%s12777_s4 + $0x1f0] sm:$0xff] }
 0x434   :  { %v6748_v59 = vpack.c.bf16 %v3710_v4, %v3706_v26  ;;  %v3725_v45 = vld [vmem:[%s12777_s4 + $0x270] sm:$0xff]  ;;  %v6762_v26 = vpack.c.bf16 %v3733_v61, %v3729_v9  ;;  %v3736_v4 = vld [vmem:[%s12777_s4 + $0x2c8] sm:$0xff] }
 0x435   :  { %v6758_v40 = vpack.c.bf16 %v3725_v45, %v3721_v24  ;;  %v3753_v45 = vld [vmem:[%s12777_s4 + $0x350] sm:$0xff] }
 0x436   :  { %6671 = vmatpush1.bf16.msra.mxu0 %v6670_v32  ;;  %6735 = vmatpush1.bf16.msra.mxu1 %v6734_v29  ;;  %v3705_v32 = vld [vmem:[%s12777_s4 + $0x1d0] sm:$0xff]  ;;  %v3716_v29 = vld [vmem:[%s12777_s4 + $0x228] sm:$0xff] }
 0x437   :  { %6673 = vmatprep.subr.bf16.mxu0 %v6672_v14  ;;  %6737 = vmatprep.subr.bf16.mxu1 %v6736_v53  ;;  %v6750_v17 = vpack.c.bf16 %v3709_v15, %v3705_v32  ;;  %v6688_v14 = vpack.c.bf16 %v3716_v29, %v3712_v19  ;;  %v3715_v53 = vld [vmem:[%s12777_s4 + $0x220] sm:$0xff]  ;;  %v6702_v32 = vpack.c.bf16 %v3739_v23, %v3735_v11  ;;  %v3744_v29 = vld [vmem:[%s12777_s4 + $0x308] sm:$0xff]  ;;  %v3761_v61 = vld [vmem:[%s12777_s4 + $0x390] sm:$0xff] }
 0x438   :  { %v6690_v27 = vpack.c.bf16 %v3715_v53, %v3711_v51  ;;  %v3743_v51 = vld [vmem:[%s12777_s4 + $0x300] sm:$0xff] }
 0x439   :  { %v3747_v53 = vld [vmem:[%s12777_s4 + $0x320] sm:$0xff] }
 0x43a   :  { %6675 = vmatpush1.bf16.msra.mxu0 %v6674_v57  ;;  %6739 = vmatpush1.bf16.msra.mxu1 %v6738_v41  ;;  %v6754_v57 = vpack.c.bf16 %v3717_v3, %v3713_v5  ;;  %v3722_v41 = vld [vmem:[%s12777_s4 + $0x258] sm:$0xff]  ;;  %v6706_v5 = vpack.c.bf16 %v3747_v53, %v3743_v51  ;;  %v3745_v3 = vld [vmem:[%s12777_s4 + $0x310] sm:$0xff]  ;;  %v3771_v11 = vld [vmem:[%s12777_s4 + $0x3e0] sm:$0xff] }
 0x43b   :  { %6677 = vmatprep.subr.bf16.mxu0 %v6676_v62  ;;  %6741 = vmatprep.subr.bf16.mxu1 %v6740_v6  ;;  %v6692_v62 = vpack.c.bf16 %v3724_v63, %v3720_v56  ;;  %v6694_v6 = vpack.c.bf16 %v3723_v42, %v3719_v30  ;;  %v6756_v2 = vpack.c.bf16 %v3726_v18, %v3722_v41  ;;  %v3752_v63 = vld [vmem:[%s12777_s4 + $0x348] sm:$0xff]  ;;  %v3751_v42 = vld [vmem:[%s12777_s4 + $0x340] sm:$0xff]  ;;  %v4081_v53 = vld [vmem:[%s12778_s6 + $0x38] sm:$0xff] }
 0x43c   :  { %v3756_v41 = vld [vmem:[%s12777_s4 + $0x368] sm:$0xff]  ;;  %v3755_v18 = vld [vmem:[%s12777_s4 + $0x360] sm:$0xff] }
 0x43d   :  { %v6708_v30 = vpack.c.bf16 %v3756_v41, %v3752_v63 }
 0x43e   :  { %6679 = vmatpush1.bf16.msra.mxu0 %v6678_v46  ;;  %6743 = vmatpush1.bf16.msra.mxu1 %v6742_v58  ;;  %v3732_v46 = vld [vmem:[%s12777_s4 + $0x2a8] sm:$0xff]  ;;  %v3730_v58 = vld [vmem:[%s12777_s4 + $0x298] sm:$0xff] }
 0x43f   :  { %6681 = vmatprep.subr.bf16.mxu0 %v6680_v33  ;;  %6745 = vmatprep.subr.bf16.mxu1 %v6744_v8  ;;  %v6696_v33 = vpack.c.bf16 %v3732_v46, %v3728_v1  ;;  %v6698_v8 = vpack.c.bf16 %v3731_v0, %v3727_v50  ;;  %v6760_v31 = vpack.c.bf16 %v3734_v52, %v3730_v58  ;;  %v3760_v46 = vld [vmem:[%s12777_s4 + $0x388] sm:$0xff]  ;;  %v3759_v0 = vld [vmem:[%s12777_s4 + $0x380] sm:$0xff] }
 0x440   :  { %v3764_v58 = vld [vmem:[%s12777_s4 + $0x3a8] sm:$0xff]  ;;  %v3763_v52 = vld [vmem:[%s12777_s4 + $0x3a0] sm:$0xff] }
 0x441   :  { %v6712_v50 = vpack.c.bf16 %v3764_v58, %v3760_v46 }
 0x442   :  { %6683 = vmatpush1.bf16.msra.mxu0 %v6682_v12  ;;  %6747 = vmatpush1.bf16.msra.mxu1 %v6746_v7  ;;  %v3740_v12 = vld [vmem:[%s12777_s4 + $0x2e8] sm:$0xff]  ;;  %v3738_v7 = vld [vmem:[%s12777_s4 + $0x2d8] sm:$0xff] }
 0x443   :  { %6685 = vmatprep.subr.bf16.mxu0 %v6684_v43  ;;  %6749 = vmatprep.subr.bf16.mxu1 %v6748_v59  ;;  %v6700_v43 = vpack.c.bf16 %v3740_v12, %v3736_v4  ;;  %v3742_v59 = vld [vmem:[%s12777_s4 + $0x2f8] sm:$0xff]  ;;  %v3768_v4 = vld [vmem:[%s12777_s4 + $0x3c8] sm:$0xff] }
 0x444   :  { %v6764_v15 = vpack.c.bf16 %v3742_v59, %v3738_v7  ;;  %v3772_v7 = vld [vmem:[%s12777_s4 + $0x3e8] sm:$0xff] }
 0x445   :  { %v6716_v23 = vpack.c.bf16 %v3772_v7, %v3768_v4 }
 0x446   :  { %6687 = vmatpush1.bf16.msra.mxu0 %v6686_v16  ;;  %6751 = vmatpush1.bf16.msra.mxu1 %v6750_v17  ;;  %v3737_v16 = vld [vmem:[%s12777_s4 + $0x2d0] sm:$0xff] }
 0x447   :  { %6689 = vmatprep.subr.bf16.mxu0 %v6688_v14  ;;  %6753 = vmatprep.subr.bf16.mxu1 %v6752_v60  ;;  %v3741_v17 = vld [vmem:[%s12777_s4 + $0x2f0] sm:$0xff]  ;;  %v3748_v14 = vld [vmem:[%s12777_s4 + $0x328] sm:$0xff]  ;;  %v3750_v60 = vld [vmem:[%s12777_s4 + $0x338] sm:$0xff] }
 0x448   :  { %v6766_v19 = vpack.c.bf16 %v3741_v17, %v3737_v16  ;;  %v6704_v20 = vpack.c.bf16 %v3748_v14, %v3744_v29  ;;  %v3769_v16 = vld [vmem:[%s12777_s4 + $0x3d0] sm:$0xff]  ;;  %v4075_v14 = vld [vmem:[%s12778_s6 + $0x8] sm:$0xff] }
 0x44a   :  { %6691 = vmatpush1.bf16.msra.mxu0 %v6690_v27  ;;  %6755 = vmatpush1.bf16.msra.mxu1 %v6754_v57  ;;  %v6768_v27 = vpack.c.bf16 %v3750_v60, %v3746_v35  ;;  %v3749_v57 = vld [vmem:[%s12777_s4 + $0x330] sm:$0xff]  ;;  %v4079_v35 = vld [vmem:[%s12778_s6 + $0x28] sm:$0xff] }
 0x44b   :  { %6693 = vmatprep.subr.bf16.mxu0 %v6692_v62  ;;  %6757 = vmatprep.subr.bf16.mxu1 %v6756_v2  ;;  %v6770_v56 = vpack.c.bf16 %v3749_v57, %v3745_v3  ;;  %v3754_v62 = vld [vmem:[%s12777_s4 + $0x358] sm:$0xff]  ;;  %v6710_v2 = vpack.c.bf16 %v3755_v18, %v3751_v42  ;;  %v11713_v51 = vpack.c.bf16 %v4079_v35, %v4075_v14  ;;  %v11732_v42 = vld [vmem:[%s12776_s2 + $0x8] sm:$0xff]  ;;  %v11734_v18 = vpop.permute.xlu1 %2812 }
 0x44c   :  { %v2828_v46 = vrot.slane %v11732_v42, %v8970_v48 }
 0x44d   :  { %12822 = vst [vmem:[#allocation15_spill] sm:$0xff] %v11713_v51 }
 0x44e   :  { %6695 = vmatpush1.bf16.msra.mxu0 %v6694_v6  ;;  %6759 = vmatpush1.bf16.msra.mxu1 %v6758_v40  ;;  %v3758_v6 = vld [vmem:[%s12777_s4 + $0x378] sm:$0xff]  ;;  %v3757_v40 = vld [vmem:[%s12777_s4 + $0x370] sm:$0xff]  ;;  %v2862_v4 = vmul.f32 %v2828_v46, %v11734_v18 }
 0x44f   :  { %6697 = vmatprep.subr.bf16.mxu0 %v6696_v33  ;;  %6761 = vmatprep.subr.bf16.mxu1 %v6760_v31  ;;  %v6772_v24 = vpack.c.bf16 %v3758_v6, %v3754_v62  ;;  %v6774_v1 = vpack.c.bf16 %v3757_v40, %v3753_v45  ;;  %v3762_v33 = vld [vmem:[%s12777_s4 + $0x398] sm:$0xff]  ;;  %v6714_v31 = vpack.c.bf16 %v3763_v52, %v3759_v0  ;;  %v11736_v6 = vpop.permute.xlu0 %2744  ;;  %v11756_v52 = vpop.permute.xlu1 %2817 }
 0x450   :  { %v2832_v40 = vrot.slane %v11732_v42, %v8967_v47  ;;  %v2870_v35 = vmul.f32 %v2828_v46, %v11756_v52 }
 0x452   :  { %6699 = vmatpush1.bf16.msra.mxu0 %v6698_v8  ;;  %6763 = vmatpush1.bf16.msra.mxu1 %v6762_v26  ;;  %v3766_v8 = vld [vmem:[%s12777_s4 + $0x3b8] sm:$0xff]  ;;  %v3765_v26 = vld [vmem:[%s12777_s4 + $0x3b0] sm:$0xff] }
 0x453   :  { %6701 = vmatprep.subr.bf16.mxu0 %v6700_v43  ;;  %6765 = vmatprep.subr.bf16.mxu1 %v6764_v15  ;;  %v6776_v9 = vpack.c.bf16 %v3766_v8, %v3762_v33  ;;  %v6778_v12 = vpack.c.bf16 %v3765_v26, %v3761_v61  ;;  %v3767_v43 = vld [vmem:[%s12777_s4 + $0x3c0] sm:$0xff]  ;;  %v3774_v15 = vld [vmem:[%s12777_s4 + $0x3f8] sm:$0xff]  ;;  %v2836_v33 = vrot.slane %v11732_v42, %v8973_v49  ;;  %v11758_v8 = vpop.permute.xlu0 %2749 }
 0x454   :  { %v6718_v59 = vpack.c.bf16 %v3771_v11, %v3767_v43  ;;  %v2863_v61 = vmul.f32 %v2832_v40, %v11734_v18 }
 0x455   :  { %v2864_v7 = vmul.f32 %v2836_v33, %v11734_v18 }
 0x456   :  { %6703 = vmatpush1.bf16.msra.mxu0 %v6702_v32  ;;  %6767 = vmatpush1.bf16.msra.mxu1 %v6766_v19  ;;  %v3770_v32 = vld [vmem:[%s12777_s4 + $0x3d8] sm:$0xff]  ;;  %v3773_v19 = vld [vmem:[%s12777_s4 + $0x3f0] sm:$0xff] }
 0x457   :  { %6705 = vmatprep.subr.bf16.mxu0 %v6704_v20  ;;  %6769 = vmatprep.subr.bf16.mxu1 %v6768_v27  ;;  %v6780_v17 = vpack.c.bf16 %v3774_v15, %v3770_v32  ;;  %v6782_v29 = vpack.c.bf16 %v3773_v19, %v3769_v16  ;;  %v4077_v20 = vld [vmem:[%s12778_s6 + $0x18] sm:$0xff] }
 0x458   :  { %v11718_v60 = vpack.c.bf16 %v4081_v53, %v4077_v20 }
 0x45a   :  { %6707 = vmatpush1.bf16.msra.mxu0 %v6706_v5  ;;  %6771 = vmatpush1.bf16.msra.mxu1 %v6770_v56  ;;  %12823 = vst [vmem:[#allocation16_spill] sm:$0xff] %v11718_v60 }
 0x45b   :  { %6709 = vmatprep.subr.bf16.mxu0 %v6708_v30  ;;  %6773 = vmatprep.subr.bf16.mxu1 %v6772_v24  ;;  %v11727_v30 = vld [vmem:[%s12776_s2] sm:$0xff]  ;;  %v2824_v24 = vrot.slane %v11732_v42, %v8954_v44 }
 0x45c   :  { %v2764_v45 = vrot.slane %v11727_v30, %v8967_v47  ;;  %v2768_v58 = vrot.slane %v11727_v30, %v8973_v49 }
 0x45d   :  { %v2861_v0 = vmul.f32 %v2824_v24, %v11734_v18 }
 0x45e   :  { %6711 = vmatpush1.bf16.msra.mxu0 %v6710_v2  ;;  %6775 = vmatpush1.bf16.msra.mxu1 %v6774_v1  ;;  %v2756_v2 = vrot.slane %v11727_v30, %v8954_v44  ;;  %v2760_v1 = vrot.slane %v11727_v30, %v8970_v48  ;;  %v2803_v16 = vmul.f32 %v2764_v45, %v11758_v8 }
 0x45f   :  { %6713 = vmatprep.subr.bf16.mxu0 %v6712_v50  ;;  %6777 = vmatprep.subr.bf16.mxu1 %v6776_v9  ;;  %v2795_v9 = vmul.f32 %v2764_v45, %v11736_v6 }
 0x460   :  { %v2793_v50 = vmul.f32 %v2756_v2, %v11736_v6  ;;  %v2794_v26 = vmul.f32 %v2760_v1, %v11736_v6  ;;  %v2802_v14 = vmul.f32 %v2760_v1, %v11758_v8 }
 0x461   :  { %v2879_v32 = vadd.f32 %v2863_v61, %v2795_v9 }
 0x462   :  { %6715 = vmatpush1.bf16.msra.mxu0 %v6714_v31  ;;  %6779 = vmatpush1.bf16.msra.mxu1 %v6778_v12  ;;  %v11763_v31 = vld [vmem:[%s12776_s2 + $0x10] sm:$0xff]  ;;  %v2796_v12 = vmul.f32 %v2768_v58, %v11736_v6  ;;  %v2877_v43 = vadd.f32 %v2861_v0, %v2793_v50  ;;  %v2878_v19 = vadd.f32 %v2862_v4, %v2794_v26 }
 0x463   :  { %6717 = vmatprep.subr.bf16.mxu0 %v6716_v23  ;;  %6781 = vmatprep.subr.bf16.mxu1 %v6780_v17  ;;  %v2898_v11 = vrot.slane %v11763_v31, %v8954_v44  ;;  %v2801_v23 = vmul.f32 %v2756_v2, %v11758_v8  ;;  %v2906_v15 = vrot.slane %v11763_v31, %v8967_v47 }
 0x464   :  { %v2871_v17 = vmul.f32 %v2832_v40, %v11756_v52  ;;  %v2880_v20 = vadd.f32 %v2864_v7, %v2796_v12  ;;  %v2910_v53 = vrot.slane %v11763_v31, %v8973_v49  ;;  %v2804_v2 = vmul.f32 %v2768_v58, %v11758_v8 }
 0x465   :  { %v2935_v50 = vadd.f32 %v2898_v11, %v2877_v43  ;;  %v2937_v0 = vadd.f32 %v2906_v15, %v2879_v32  ;;  %v2886_v26 = vadd.f32 %v2870_v35, %v2802_v14 }
 0x466   :  { %6719 = vmatpush1.bf16.msra.mxu0 %v6718_v59  ;;  %6783 = vmatpush1.bf16.msra.mxu1 %v6782_v29  ;;  %v2869_v59 = vmul.f32 %v2824_v24, %v11756_v52  ;;  %v2902_v29 = vrot.slane %v11763_v31, %v8970_v48  ;;  %v2872_v24 = vmul.f32 %v2836_v33, %v11756_v52 }
 0x467   :  { %6785 = vmatprep.subr.bf16.mxu0 %v11713_v51  ;;  %6817 = vmatprep.subr.bf16.mxu1 %v11718_v60  ;;  %v2887_v40 = vadd.f32 %v2871_v17, %v2803_v16  ;;  %v2938_v47 = vadd.f32 %v2910_v53, %v2880_v20 }
 0x468   :  { %v2885_v45 = vadd.f32 %v2869_v59, %v2801_v23  ;;  %v2936_v61 = vadd.f32 %v2902_v29, %v2878_v19  ;;  %v2888_v1 = vadd.f32 %v2872_v24, %v2804_v2  ;;  %v2944_v60 = vadd.f32 %v2902_v29, %v2886_v26 }
 0x469   :  { %v2945_v7 = vadd.f32 %v2906_v15, %v2887_v40  ;;  %v2922_v2 = vrot.slane %v11763_v31, %v9036_v37  ;;  %v2918_v24 = vrot.slane %v11763_v31, %v9039_v38 }
 0x46a   :  { %v2943_v46 = vadd.f32 %v2898_v11, %v2885_v45  ;;  %v2946_v33 = vadd.f32 %v2910_v53, %v2888_v1  ;;  %v2914_v53 = vrot.slane %v11763_v31, %v9033_v36 }
 0x4bb   :  { %v3273_v5 = vpop.f32.mrb[24].mxu0  ;;  %v3350_v27 = vpop.f32.mrb[24].mxu1 }
 0x4bc   :  { %v3275_v3 = vpop.f32.mrb[25].mxu0  ;;  %v3352_v57 = vpop.f32.mrb[25].mxu1  ;;  %v3515_v9 = vadd.f32 %v3273_v5, %v2935_v50  ;;  %v3517_v4 = vadd.f32 %v3350_v27, %v2937_v0 }
 0x4bd   :  { %v3516_v48 = vadd.f32 %v3275_v3, %v2936_v61  ;;  %v3518_v12 = vadd.f32 %v3352_v57, %v2938_v47  ;;  %v2772_v57 = vrot.slane %v11727_v30, %v9033_v36 }
 0x4be   :  { %v5580_v44 = vmul.f32 -1.442695, %v3515_v9  ;;  %v5584_v58 = vmul.f32 -1.442695, %v3517_v4 }
 0x4bf   :  { %v3279_v56 = vpop.f32.mrb[26].mxu0  ;;  %v3356_v63 = vpop.f32.mrb[26].mxu1  ;;  %v5581_v43 = vmul.f32 -1.442695, %v3516_v48  ;;  %v5585_v59 = vmul.f32 -1.442695, %v3518_v12  ;;  %v2840_v48 = vrot.slane %v11732_v42, %v9033_v36  ;;  %v2805_v26 = vmul.f32 %v2772_v57, %v11758_v8 }
 0x4c0   :  { %v3281_v41 = vpop.f32.mrb[27].mxu0  ;;  %v11722_v62 = vpop.f32.mrb[27].mxu1  ;;  %v3523_v49 = vadd.f32 %v3279_v56, %v2943_v46  ;;  %v3525_v51 = vadd.f32 %v3356_v63, %v2945_v7  ;;  %7428 = vpow2.f32 %v5580_v44  ;;  %v2848_v44 = vrot.slane %v11732_v42, %v9036_v37 }
 0x4c1   :  { %v3524_v23 = vadd.f32 %v3281_v41, %v2944_v60  ;;  %v3526_v5 = vadd.f32 %v11722_v62, %v2946_v33  ;;  %7430 = vpow2.f32 %v5584_v58  ;;  %v2780_v60 = vrot.slane %v11727_v30, %v9036_v37 }
 0x4c2   :  { %v5582_v32 = vmul.f32 -1.442695, %v3523_v49  ;;  %v5586_v27 = vmul.f32 -1.442695, %v3525_v51  ;;  %7432 = vpow2.f32 %v5581_v43  ;;  %v2776_v49 = vrot.slane %v11727_v30, %v9039_v38 }
 0x4c3   :  { %v5583_v3 = vmul.f32 -1.442695, %v3524_v23  ;;  %7434 = vpow2.f32 %v5585_v59  ;;  %v5587_v47 = vmul.f32 -1.442695, %v3526_v5  ;;  %v2844_v51 = vrot.slane %v11732_v42, %v9039_v38 }
 0x4c4   :  { %7436 = vpow2.f32 %v5582_v32  ;;  %v2784_v56 = vrot.slane %v11727_v30, %v9042_v39  ;;  %v2852_v63 = vrot.slane %v11732_v42, %v9042_v39  ;;  %v2797_v62 = vmul.f32 %v2772_v57, %v11736_v6 }
 0x4c5   :  { %7438 = vpow2.f32 %v5586_v27  ;;  %v2865_v11 = vmul.f32 %v2840_v48, %v11734_v18  ;;  %v2799_v15 = vmul.f32 %v2780_v60, %v11736_v6  ;;  %v2867_v16 = vmul.f32 %v2848_v44, %v11734_v18 }
 0x4c6   :  { %7440 = vpow2.f32 %v5583_v3  ;;  %v2798_v19 = vmul.f32 %v2776_v49, %v11736_v6  ;;  %v2866_v29 = vmul.f32 %v2844_v51, %v11734_v18  ;;  %v2800_v30 = vmul.f32 %v2784_v56, %v11736_v6 }
 0x4c7   :  { %7442 = vpow2.f32 %v5587_v47  ;;  %v2868_v35 = vmul.f32 %v2852_v63, %v11734_v18  ;;  %v2881_v0 = vadd.f32 %v2865_v11, %v2797_v62  ;;  %v2883_v40 = vadd.f32 %v2867_v16, %v2799_v15 }
 0x4c8   :  { %v2926_v6 = vrot.slane %v11763_v31, %v9042_v39  ;;  %v2882_v61 = vadd.f32 %v2866_v29, %v2798_v19  ;;  %v2873_v36 = vmul.f32 %v2840_v48, %v11756_v52  ;;  %v2807_v46 = vmul.f32 %v2780_v60, %v11758_v8 }
 0x4c9   :  { %v2884_v37 = vadd.f32 %v2868_v35, %v2800_v30  ;;  %v2875_v38 = vmul.f32 %v2848_v44, %v11756_v52  ;;  %v2806_v58 = vmul.f32 %v2776_v49, %v11758_v8  ;;  %v2874_v39 = vmul.f32 %v2844_v51, %v11756_v52 }
 0x4ca   :  { %v7429_v41 = vpop.eup %7428  ;;  %v2808_v33 = vmul.f32 %v2784_v56, %v11758_v8  ;;  %v2876_v43 = vmul.f32 %v2852_v63, %v11756_v52  ;;  %v2939_v5 = vadd.f32 %v2914_v53, %v2881_v0  ;;  %v2941_v32 = vadd.f32 %v2922_v2, %v2883_v40 }
 0x4cb   :  { %v7431_v17 = vpop.eup %7430  ;;  %v3543_v20 = vadd.f32 1.0, %v7429_v41  ;;  %v2940_v27 = vadd.f32 %v2918_v24, %v2882_v61  ;;  %v2889_v3 = vadd.f32 %v2873_v36, %v2805_v26  ;;  %v2891_v47 = vadd.f32 %v2875_v38, %v2807_v46 }
 0x4cc   :  { %v7433_v14 = vpop.eup %7432  ;;  %v3567_v45 = vadd.f32 1.0, %v7431_v17  ;;  %v2942_v60 = vadd.f32 %v2926_v6, %v2884_v37  ;;  %v2890_v44 = vadd.f32 %v2874_v39, %v2806_v58  ;;  %v2892_v49 = vadd.f32 %v2876_v43, %v2808_v33 }
 0x4cd   :  { %v7435_v42 = vpop.eup %7434  ;;  %v3544_v18 = vadd.f32 1.0, %v7433_v14  ;;  %7444 = vrcp.f32 %v3543_v20  ;;  %v2947_v11 = vadd.f32 %v2914_v53, %v2889_v3  ;;  %v2949_v15 = vadd.f32 %v2922_v2, %v2891_v47 }
 0x4ce   :  { %v7437_v50 = vpop.eup %7436  ;;  %v3568_v1 = vadd.f32 1.0, %v7435_v42  ;;  %7446 = vrcp.f32 %v3567_v45  ;;  %v2948_v29 = vadd.f32 %v2918_v24, %v2890_v44  ;;  %v2950_v14 = vadd.f32 %v2926_v6, %v2892_v49  ;;  %v4076_v49 = vld [vmem:[%s12778_s6 + $0x10] sm:$0xff] }
 0x4cf   :  { %v7439_v9 = vpop.eup %7438  ;;  %v3545_v7 = vadd.f32 1.0, %v7437_v50  ;;  %7448 = vrcp.f32 %v3544_v18 }
 0x4d0   :  { %v7441_v4 = vpop.eup %7440  ;;  %v3569_v31 = vadd.f32 1.0, %v7439_v9  ;;  %7450 = vrcp.f32 %v3568_v1 }
 0x4d1   :  { %v7443_v12 = vpop.eup %7442  ;;  %v3546_v23 = vadd.f32 1.0, %v7441_v4  ;;  %7452 = vrcp.f32 %v3545_v7 }
 0x4d2   :  { %v3570_v59 = vadd.f32 1.0, %v7443_v12  ;;  %7454 = vrcp.f32 %v3569_v31 }
 0x4d3   :  { %7456 = vrcp.f32 %v3546_v23 }
 0x4d4   :  { %7458 = vrcp.f32 %v3570_v59 }
 0x4d7   :  { %v7445_v30 = vpop.eup %7444 }
 0x4d8   :  { %v7447_v45 = vpop.eup %7446 }
 0x4d9   :  { %v7449_v9 = vpop.eup %7448  ;;  %v3607_v1 = vmul.f32 %v7447_v45, %v10910_v22  ;;  %v4088_v45 = vld [vmem:[%s12778_s6 + $0x70] sm:$0xff] }
 0x4da   :  { %v7451_v2 = vpop.eup %7450 }
 0x4db   :  { %v7453_v61 = vpop.eup %7452  ;;  %v3608_v38 = vmul.f32 %v7451_v2, %v10912_v34  ;;  %v4093_v2 = vld [vmem:[%s12778_s6 + $0x98] sm:$0xff] }
 0x4dc   :  { %v7455_v24 = vpop.eup %7454 }
 0x4dd   :  { %v7457_v6 = vpop.eup %7456  ;;  %v3609_v59 = vmul.f32 %v7455_v24, %v10918_v55  ;;  %v4074_v55 = vld [vmem:[%s12778_s6] sm:$0xff] }
 0x4de   :  { %v7459_v26 = vpop.eup %7458 }
 0x4fb   :  { %v3427_v57 = vpop.f32.mrb[28].mxu0  ;;  %v3504_v48 = vpop.f32.mrb[28].mxu1 }
 0x4fc   :  { %v3519_v8 = vadd.f32 %v3427_v57, %v2939_v5  ;;  %v3521_v51 = vadd.f32 %v3504_v48, %v2941_v32  ;;  %v3429_v52 = vpop.f32.mrb[29].mxu0  ;;  %v3506_v56 = vpop.f32.mrb[29].mxu1 }
 0x4fd   :  { %v3520_v63 = vadd.f32 %v3429_v52, %v2940_v27  ;;  %v3522_v41 = vadd.f32 %v3506_v56, %v2942_v60  ;;  %v3610_v27 = vmul.f32 %v7459_v26, %v10920_v13  ;;  %v4078_v13 = vld [vmem:[%s12778_s6 + $0x20] sm:$0xff]  ;;  %v4087_v56 = vld [vmem:[%s12778_s6 + $0x68] sm:$0xff] }
 0x4fe   :  { %7460 = vtanh.f32 %v3519_v8  ;;  %v5588_v62 = vmul.f32 -1.442695, %v3521_v51  ;;  %v4080_v8 = vld [vmem:[%s12778_s6 + $0x30] sm:$0xff]  ;;  %v4083_v51 = vld [vmem:[%s12778_s6 + $0x48] sm:$0xff]  ;;  %v4094_v26 = vld [vmem:[%s12778_s6 + $0xa0] sm:$0xff] }
 0x4ff   :  { %7462 = vtanh.f32 %v3520_v63  ;;  %v5589_v16 = vmul.f32 -1.442695, %v3522_v41  ;;  %v3433_v17 = vpop.f32.mrb[30].mxu0  ;;  %v3510_v19 = vpop.f32.mrb[30].mxu1  ;;  %v4085_v63 = vld [vmem:[%s12778_s6 + $0x58] sm:$0xff] }
 0x500   :  { %7464 = vpow2.f32 %v5588_v62  ;;  %v3527_v35 = vadd.f32 %v3433_v17, %v2947_v11  ;;  %v3529_v42 = vadd.f32 %v3510_v19, %v2949_v15  ;;  %v3435_v20 = vpop.f32.mrb[31].mxu0  ;;  %v3512_v50 = vpop.f32.mrb[31].mxu1  ;;  %v4089_v41 = vld [vmem:[%s12778_s6 + $0x78] sm:$0xff]  ;;  %v11858_v17 = vpack.c.bf16 %v4078_v13, %v4074_v55 }
 0x501   :  { %7466 = vpow2.f32 %v5589_v16  ;;  %v3528_v0 = vadd.f32 %v3435_v20, %v2948_v29  ;;  %v3530_v40 = vadd.f32 %v3512_v50, %v2950_v14  ;;  %v11860_v19 = vpack.c.bf16 %v4080_v8, %v4076_v49  ;;  %v4084_v50 = vld [vmem:[%s12778_s6 + $0x50] sm:$0xff]  ;;  %v4115_v49 = vld [vmem:[%s12778_s6 + $0x148] sm:$0xff] }
 0x502   :  { %7468 = vtanh.f32 %v3527_v35  ;;  %v5590_v53 = vmul.f32 -1.442695, %v3529_v42  ;;  %v11862_v14 = vpack.c.bf16 %v4087_v56, %v4083_v51  ;;  %v4086_v35 = vld [vmem:[%s12778_s6 + $0x60] sm:$0xff]  ;;  %v11870_v42 = vpack.c.bf16 %v4089_v41, %v4085_v63  ;;  %v12826_v8 = vld [vmem:[#allocation14_spill] sm:$0xff]  ;;  %v4119_v51 = vld [vmem:[%s12778_s6 + $0x168] sm:$0xff] }
 0x503   :  { %7470 = vtanh.f32 %v3528_v0  ;;  %v5591_v18 = vmul.f32 -1.442695, %v3530_v40  ;;  %v4091_v0 = vld [vmem:[%s12778_s6 + $0x88] sm:$0xff]  ;;  %v4121_v56 = vld [vmem:[%s12778_s6 + $0x178] sm:$0xff] }
 0x504   :  { %7472 = vpow2.f32 %v5590_v53  ;;  %v4095_v53 = vld [vmem:[%s12778_s6 + $0xa8] sm:$0xff]  ;;  %v12827_v63 = vld [vmem:[#allocation11_spill] sm:$0xff] }
 0x505   :  { %7474 = vpow2.f32 %v5591_v18  ;;  %v4097_v18 = vld [vmem:[%s12778_s6 + $0xb8] sm:$0xff] }
 0x508   :  { %v7461_v36 = vpop.eup %7460 }
 0x509   :  { %v7463_v4 = vpop.eup %7462  ;;  %v3611_v37 = vmul.f32 %v7461_v36, %v7445_v30  ;;  %v4082_v30 = vld [vmem:[%s12778_s6 + $0x40] sm:$0xff]  ;;  %v11908_v36 = vpack.c.bf16 %v4095_v53, %v4091_v0  ;;  %v4125_v0 = vld [vmem:[%s12778_s6 + $0x198] sm:$0xff]  ;;  %v12828_v53 = vld [vmem:[#allocation13_spill] sm:$0xff] }
 0x50a   :  { %v7465_v46 = vpop.eup %7464  ;;  %v3612_v12 = vmul.f32 %v7463_v4, %v7449_v9  ;;  %v11896_v24 = vpack.c.bf16 %v4086_v35, %v4082_v30  ;;  %v11910_v4 = vpack.c.bf16 %v4097_v18, %v4093_v2  ;;  %v4116_v35 = vld [vmem:[%s12778_s6 + $0x150] sm:$0xff]  ;;  %v4122_v18 = vld [vmem:[%s12778_s6 + $0x180] sm:$0xff] }
 0x50b   :  { %v7467_v7 = vpop.eup %7466  ;;  %v3615_v58 = vadd.f32 %v3611_v37, %v3607_v1  ;;  %v3595_v39 = vadd.f32 1.0, %v7465_v46  ;;  %v4092_v1 = vld [vmem:[%s12778_s6 + $0x90] sm:$0xff]  ;;  %v4099_v46 = vld [vmem:[%s12778_s6 + $0xc8] sm:$0xff] }
 0x50c   :  { %v7469_v31 = vpop.eup %7468  ;;  %v3616_v33 = vadd.f32 %v3612_v12, %v3608_v38  ;;  %v3596_v43 = vadd.f32 1.0, %v7467_v7  ;;  %v4096_v37 = vld [vmem:[%s12778_s6 + $0xb0] sm:$0xff]  ;;  %v12824_v38 = vld [vmem:[#allocation9_spill] sm:$0xff]  ;;  %v4101_v7 = vld [vmem:[%s12778_s6 + $0xd8] sm:$0xff] }
 0x50d   :  { %v7471_v23 = vpop.eup %7470  ;;  %7476 = vtanh.f32 %v3615_v58  ;;  %v3613_v5 = vmul.f32 %v7469_v31, %v7453_v61  ;;  %v4103_v12 = vld [vmem:[%s12778_s6 + $0xe8] sm:$0xff]  ;;  %v4105_v58 = vld [vmem:[%s12778_s6 + $0xf8] sm:$0xff]  ;;  %v11938_v31 = vpack.c.bf16 %v4096_v37, %v4092_v1  ;;  %v4124_v1 = vld [vmem:[%s12778_s6 + $0x190] sm:$0xff] }
 0x50e   :  { %v7473_v32 = vpop.eup %7472  ;;  %7478 = vrcp.f32 %v3595_v39  ;;  %v3614_v22 = vmul.f32 %v7471_v23, %v7457_v6  ;;  %v4090_v6 = vld [vmem:[%s12778_s6 + $0x80] sm:$0xff]  ;;  %v11948_v23 = vpack.c.bf16 %v4103_v12, %v4099_v46  ;;  %v4128_v37 = vld [vmem:[%s12778_s6 + $0x1b0] sm:$0xff]  ;;  %v4131_v46 = vld [vmem:[%s12778_s6 + $0x1c8] sm:$0xff] }
 0x50f   :  { %v7475_v3 = vpop.eup %7474  ;;  %7480 = vtanh.f32 %v3616_v33  ;;  %v3617_v34 = vadd.f32 %v3613_v5, %v3609_v59  ;;  %v3597_v47 = vadd.f32 1.0, %v7473_v32  ;;  %v11934_v39 = vpack.c.bf16 %v4094_v26, %v4090_v6  ;;  %v4098_v33 = vld [vmem:[%s12778_s6 + $0xc0] sm:$0xff]  ;;  %v4104_v5 = vld [vmem:[%s12778_s6 + $0xf0] sm:$0xff]  ;;  %v4107_v32 = vld [vmem:[%s12778_s6 + $0x108] sm:$0xff] }
 0x510   :  { %7482 = vrcp.f32 %v3596_v43  ;;  %v3618_v57 = vadd.f32 %v3614_v22, %v3610_v27  ;;  %v3598_v48 = vadd.f32 1.0, %v7475_v3  ;;  %v4102_v43 = vld [vmem:[%s12778_s6 + $0xe0] sm:$0xff]  ;;  %v11950_v59 = vpack.c.bf16 %v4105_v58, %v4101_v7  ;;  %v4111_v22 = vld [vmem:[%s12778_s6 + $0x128] sm:$0xff]  ;;  %v4109_v3 = vld [vmem:[%s12778_s6 + $0x118] sm:$0xff] }
 0x511   :  { %7484 = vtanh.f32 %v3617_v34  ;;  %v12825_v27 = vld [vmem:[#allocation12_spill] sm:$0xff]  ;;  %v4113_v34 = vld [vmem:[%s12778_s6 + $0x138] sm:$0xff]  ;;  %v11988_v55 = vpack.c.bf16 %v4111_v22, %v4107_v32  ;;  %v4136_v22 = vld [vmem:[%s12778_s6 + $0x1f0] sm:$0xff] }
 0x512   :  { %7486 = vrcp.f32 %v3597_v47  ;;  %v11974_v47 = vpack.c.bf16 %v4102_v43, %v4098_v33  ;;  %v11990_v13 = vpack.c.bf16 %v4113_v34, %v4109_v3  ;;  %v4133_v12 = vld [vmem:[%s12778_s6 + $0x1d8] sm:$0xff]  ;;  %v12829_v58 = vld [vmem:[#allocation8_spill] sm:$0xff]  ;;  %v12830_v3 = vld [vmem:[#allocation10_spill] sm:$0xff] }
 0x513   :  { %7488 = vtanh.f32 %v3618_v57  ;;  %v4137_v7 = vld [vmem:[%s12778_s6 + $0x1f8] sm:$0xff]  ;;  %v4130_v43 = vld [vmem:[%s12778_s6 + $0x1c0] sm:$0xff] }
 0x514   :  { %7490 = vrcp.f32 %v3598_v48  ;;  %v4106_v48 = vld [vmem:[%s12778_s6 + $0x100] sm:$0xff]  ;;  %v12110_v32 = vpack.c.bf16 %v4137_v7, %v4133_v12 }
 0x517   :  { %v7477_v60 = vpop.eup %7476 }
 0x518   :  { %v7479_v44 = vpop.eup %7478 }
 0x519   :  { %v7481_v52 = vpop.eup %7480  ;;  %v11856_v62 = vmul.f32 %v7479_v44, %v7477_v60  ;;  %v4110_v60 = vld [vmem:[%s12778_s6 + $0x120] sm:$0xff]  ;;  %v4112_v44 = vld [vmem:[%s12778_s6 + $0x130] sm:$0xff] }
 0x51a   :  { %v7483_v11 = vpop.eup %7482  ;;  %v12014_v41 = vpack.c.bf16 %v4110_v60, %v4106_v48  ;;  %v12831_v60 = vmov 0.0  }
 0x51b   :  { %v7485_v15 = vpop.eup %7484  ;;  %v3624_v16 = vmul.f32 %v7483_v11, %v7481_v52  ;;  %v4117_v52 = vld [vmem:[%s12778_s6 + $0x158] sm:$0xff] }
 0x51c   :  { %v7487_v29 = vpop.eup %7486  ;;  %v12030_v30 = vpack.c.bf16 %v4121_v56, %v4117_v52  ;;  %v12835_v52 = vld [vmem:[#allocation6_spill] sm:$0xff] }
 0x51d   :  { %v7489_v20 = vpop.eup %7488  ;;  %3839 = vmatprep.mubr.f32.mxu0 %v3624_v16  ;;  %3952 = vmatprep.mubr.f32.mxu1 %v3624_v16  ;;  %v11881_v40 = vmul.f32 %v7487_v29, %v7485_v15  ;;  %v4114_v15 = vld [vmem:[%s12778_s6 + $0x140] sm:$0xff]  ;;  %v12028_v29 = vpack.c.bf16 %v4119_v51, %v4115_v49 }
 0x51e   :  { %v7491_v9 = vpop.eup %7490  ;;  %3840 = vmatmul.mubr.f32.vlgmr.msra.gmra.mrb[32].mxu0 %v9122_v21  ;;  %3953 = vmatmul.mubr.f32.vlgmr.msra.gmra.mrb[32].mxu1 %v9122_v21  ;;  %v11900_v21 = vpack.c.bf16 %v4088_v45, %v4084_v50  ;;  %v4118_v16 = vld [vmem:[%s12778_s6 + $0x160] sm:$0xff]  ;;  %v4123_v50 = vld [vmem:[%s12778_s6 + $0x188] sm:$0xff] }
 0x51f   :  { %6787 = vmatpush1.bf16.msra.mxu0 %v11858_v17  ;;  %6819 = vmatpush1.bf16.msra.mxu1 %v11860_v19  ;;  %v3626_v61 = vmul.f32 %v7491_v9, %v7489_v20  ;;  %v4120_v20 = vld [vmem:[%s12778_s6 + $0x170] sm:$0xff]  ;;  %v4127_v45 = vld [vmem:[%s12778_s6 + $0x1a8] sm:$0xff]  ;;  %v4129_v9 = vld [vmem:[%s12778_s6 + $0x1b8] sm:$0xff]  ;;  %v12054_v2 = vpack.c.bf16 %v4118_v16, %v4114_v15 }
 0x520   :  { %6789 = vmatprep.subr.bf16.mxu0 %v11862_v14  ;;  %6821 = vmatprep.subr.bf16.mxu1 %v11870_v42  ;;  %v12068_v6 = vpack.c.bf16 %v4127_v45, %v4123_v50  ;;  %v12070_v26 = vpack.c.bf16 %v4129_v9, %v4125_v0  ;;  %v4044_v49 = vld [vmem:[%s12779_s7] sm:$0xf]  ;;  %v12836_v9 = vld [vmem:[#allocation7_spill] sm:$0xff] }
 0x521   :  { %3845 = vmatprep.mubr.f32.mxu0 %v3626_v61  ;;  %3958 = vmatprep.mubr.f32.mxu1 %v3626_v61  ;;  %v4126_v61 = vld [vmem:[%s12778_s6 + $0x1a0] sm:$0xff]  ;;  %v12185_v56 = vrot.slane %v4044_v49, %v12835_v52 }
 0x522   :  { %3846 = vmatmul.mubr.f32.gmra.mrb[34].mxu0 %v12824_v38  ;;  %3959 = vmatmul.mubr.f32.gmra.mrb[34].mxu1 %v12824_v38  ;;  %v4135_v38 = vld [vmem:[%s12778_s6 + $0x1e8] sm:$0xff]  ;;  %v12094_v33 = vpack.c.bf16 %v4126_v61, %v4122_v18 }
 0x523   :  { %6791 = vmatpush1.bf16.msra.mxu0 %v11896_v24  ;;  %3851 = vmatprep.mubr.f32.mxu0 %v10948_v54 }
 0x524   :  { %3964 = vmatprep.mubr.f32.mxu1 %v10948_v54  ;;  %6823 = vmatpush1.bf16.msra.mxu1 %v11900_v21  ;;  %v4100_v54 = vld [vmem:[%s12778_s6 + $0xd0] sm:$0xff] }
 0x525   :  { %6793 = vmatprep.subr.bf16.mxu0 %v11908_v36  ;;  %6825 = vmatprep.subr.bf16.mxu1 %v11910_v4  ;;  %v11978_v57 = vpack.c.bf16 %v4104_v5, %v4100_v54  ;;  %v4134_v54 = vld [vmem:[%s12778_s6 + $0x1e0] sm:$0xff]  ;;  %v12108_v5 = vpack.c.bf16 %v4135_v38, %v4131_v46 }
 0x526   :  { %3852 = vmatmul.mubr.f32.gmra.mrb[36].mxu0 %v12825_v27  ;;  %3965 = vmatmul.mubr.f32.gmra.mrb[36].mxu1 %v12825_v27  ;;  %v4132_v27 = vld [vmem:[%s12778_s6 + $0x1d0] sm:$0xff]  ;;  %v12122_v34 = vpack.c.bf16 %v4134_v54, %v4130_v43  ;;  %v12837_v54 = vld [vmem:[#allocation5_spill] sm:$0xff] }
 0x527   :  { %6795 = vmatpush1.bf16.msra.mxu0 %v11934_v39  ;;  %3857 = vmatprep.mubr.f32.mxu0 %v10980_v10  ;;  %v12126_v48 = vpack.c.bf16 %v4136_v22, %v4132_v27  ;;  %v12196_v27 = vrot.slane %v4044_v49, %v12837_v54 }
 0x528   :  { %3970 = vmatprep.mubr.f32.mxu1 %v10980_v10  ;;  %6827 = vmatpush1.bf16.msra.mxu1 %v11938_v31  ;;  %v4108_v10 = vld [vmem:[%s12778_s6 + $0x110] sm:$0xff] }
 0x529   :  { %6797 = vmatprep.subr.bf16.mxu0 %v11948_v23  ;;  %6829 = vmatprep.subr.bf16.mxu1 %v11950_v59  ;;  %v12018_v11 = vpack.c.bf16 %v4112_v44, %v4108_v10  ;;  %v12832_v10 = vld [vmem:[#allocation15_spill] sm:$0xff]  ;;  %v12833_v44 = vld [vmem:[#allocation16_spill] sm:$0xff] }
 0x52a   :  { %3858 = vmatmul.mubr.f32.gmra.mrb[38].mxu0 %v12826_v8  ;;  %3971 = vmatmul.mubr.f32.gmra.mrb[38].mxu1 %v12826_v8  ;;  %v12834_v8 = vld [vmem:[#allocation4_spill] sm:$0xff] }
 0x52b   :  { %6799 = vmatpush1.bf16.msra.mxu0 %v11974_v47  ;;  %3863 = vmatprep.mubr.f32.mxu0 %v12827_v63  ;;  %v12182_v51 = vrot.slane %v4044_v49, %v12834_v8 }
 0x52c   :  { %3976 = vmatprep.mubr.f32.mxu1 %v12827_v63  ;;  %6831 = vmatpush1.bf16.msra.mxu1 %v11978_v57 }
 0x52d   :  { %6801 = vmatprep.subr.bf16.mxu0 %v11988_v55  ;;  %6833 = vmatprep.subr.bf16.mxu1 %v11990_v13 }
 0x52e   :  { %3864 = vmatmul.mubr.f32.gmra.mrb[40].mxu0 %v10953_v25  ;;  %3977 = vmatmul.mubr.f32.gmra.mrb[40].mxu1 %v10953_v25  ;;  %v12058_v25 = vpack.c.bf16 %v4120_v20, %v4116_v35 }
 0x52f   :  { %6803 = vmatpush1.bf16.msra.mxu0 %v12014_v41  ;;  %3869 = vmatprep.mubr.f32.mxu0 %v12828_v53 }
 0x530   :  { %3982 = vmatprep.mubr.f32.mxu1 %v12828_v53  ;;  %6835 = vmatpush1.bf16.msra.mxu1 %v12018_v11  ;;  %v12190_v53 = vrot.slane %v4044_v49, %v12836_v9 }
 0x531   :  { %6805 = vmatprep.subr.bf16.mxu0 %v12028_v29  ;;  %6837 = vmatprep.subr.bf16.mxu1 %v12030_v30 }
 0x532   :  { %3870 = vmatmul.mubr.f32.gmra.mrb[42].mxu0 %v10988_v28  ;;  %3983 = vmatmul.mubr.f32.gmra.mrb[42].mxu1 %v10988_v28  ;;  %v12098_v28 = vpack.c.bf16 %v4128_v37, %v4124_v1 }
 0x533   :  { %6807 = vmatpush1.bf16.msra.mxu0 %v12054_v2  ;;  %3875 = vmatprep.mubr.f32.mxu0 %v12829_v58 }
 0x534   :  { %3988 = vmatprep.mubr.f32.mxu1 %v12829_v58  ;;  %6839 = vmatpush1.bf16.msra.mxu1 %v12058_v25 }
 0x535   :  { %6809 = vmatprep.subr.bf16.mxu0 %v12068_v6  ;;  %6841 = vmatprep.subr.bf16.mxu1 %v12070_v26 }
 0x536   :  { %3876 = vmatmul.mubr.f32.gmra.mrb[44].mxu0 %v11856_v62  ;;  %3989 = vmatmul.mubr.f32.gmra.mrb[44].mxu1 %v11856_v62 }
 0x537   :  { %6811 = vmatpush1.bf16.msra.mxu0 %v12094_v33  ;;  %3881 = vmatprep.mubr.f32.mxu0 %v12830_v3 }
 0x538   :  { %3994 = vmatprep.mubr.f32.mxu1 %v12830_v3  ;;  %6843 = vmatpush1.bf16.msra.mxu1 %v12098_v28 }
 0x539   :  { %6813 = vmatprep.subr.bf16.mxu0 %v12108_v5  ;;  %6845 = vmatprep.subr.bf16.mxu1 %v12110_v32 }
 0x53a   :  { %3882 = vmatmul.mubr.f32.gmra.mrb[46].mxu0 %v11881_v40  ;;  %3995 = vmatmul.mubr.f32.gmra.mrb[46].mxu1 %v11881_v40 }
 0x53b   :  { %6815 = vmatpush1.bf16.msra.mxu0 %v12122_v34  ;;  %4202 = vmatprep.mubr.f32.mxu0 %v12831_v60 }
 0x53c   :  { %6847 = vmatpush1.bf16.msra.mxu1 %v12126_v48  ;;  %4279 = vmatprep.mubr.f32.mxu1 %v12831_v60 }
 0x53d   :  { %6849 = vmatprep.subr.bf16.mxu0 %v12832_v10  ;;  %6881 = vmatprep.subr.bf16.mxu1 %v12833_v44 }
 0x53e   :  { %4203 = vmatmul.mubr.f32.vlgmr.msra.gmra.mrb[32].mxu0 %v12831_v60 }
 0x53f   :  { %4280 = vmatmul.mubr.f32.vlgmr.msra.gmra.mrb[32].mxu1 %v12831_v60  ;;  %4208 = vmatprep.mubr.f32.mxu0 %v12831_v60 }
 0x540   :  { %4285 = vmatprep.mubr.f32.mxu1 %v12831_v60  ;;  %6851 = vmatpush1.bf16.msra.mxu0 %v11858_v17 }
 0x541   :  { %6883 = vmatpush1.bf16.msra.mxu1 %v11860_v19  ;;  %6853 = vmatprep.subr.bf16.mxu0 %v11862_v14 }
 0x542   :  { %4209 = vmatmul.mubr.f32.gmra.mrb[34].mxu0 %v12831_v60  ;;  %6885 = vmatprep.subr.bf16.mxu1 %v11870_v42 }
 0x543   :  { %4286 = vmatmul.mubr.f32.gmra.mrb[34].mxu1 %v12831_v60  ;;  %4431 = vmatprep.mubr.f32.mxu0 %v12831_v60 }
 0x544   :  { %6855 = vmatpush1.bf16.msra.mxu0 %v11896_v24  ;;  %4508 = vmatprep.mubr.f32.mxu1 %v12831_v60 }
 0x545   :  { %6887 = vmatpush1.bf16.msra.mxu1 %v11900_v21  ;;  %6857 = vmatprep.subr.bf16.mxu0 %v11908_v36 }
 0x546   :  { %6889 = vmatprep.subr.bf16.mxu1 %v11910_v4 }
 0x548   :  { %6859 = vmatpush1.bf16.msra.mxu0 %v11934_v39 }
 0x549   :  { %6891 = vmatpush1.bf16.msra.mxu1 %v11938_v31  ;;  %6861 = vmatprep.subr.bf16.mxu0 %v11948_v23 }
 0x54a   :  { %6893 = vmatprep.subr.bf16.mxu1 %v11950_v59 }
 0x54c   :  { %6863 = vmatpush1.bf16.msra.mxu0 %v11974_v47 }
 0x54d   :  { %6895 = vmatpush1.bf16.msra.mxu1 %v11978_v57  ;;  %6865 = vmatprep.subr.bf16.mxu0 %v11988_v55 }
 0x54e   :  { %6897 = vmatprep.subr.bf16.mxu1 %v11990_v13 }
 0x550   :  { %6867 = vmatpush1.bf16.msra.mxu0 %v12014_v41 }
 0x551   :  { %6899 = vmatpush1.bf16.msra.mxu1 %v12018_v11  ;;  %6869 = vmatprep.subr.bf16.mxu0 %v12028_v29 }
 0x552   :  { %6901 = vmatprep.subr.bf16.mxu1 %v12030_v30 }
 0x554   :  { %6871 = vmatpush1.bf16.msra.mxu0 %v12054_v2 }
 0x555   :  { %6903 = vmatpush1.bf16.msra.mxu1 %v12058_v25  ;;  %6873 = vmatprep.subr.bf16.mxu0 %v12068_v6 }
 0x556   :  { %6905 = vmatprep.subr.bf16.mxu1 %v12070_v26 }
 0x558   :  { %6875 = vmatpush1.bf16.msra.mxu0 %v12094_v33 }
 0x559   :  { %6907 = vmatpush1.bf16.msra.mxu1 %v12098_v28  ;;  %6877 = vmatprep.subr.bf16.mxu0 %v12108_v5 }
 0x55a   :  { %6909 = vmatprep.subr.bf16.mxu1 %v12110_v32 }
 0x55c   :  { %6879 = vmatpush1.bf16.msra.mxu0 %v12122_v34 }
 0x55d   :  { %6911 = vmatpush1.bf16.msra.mxu1 %v12126_v48  ;;  %6913 = vmatprep.subr.bf16.mxu0 %v12832_v10 }
 0x55e   :  { %6945 = vmatprep.subr.bf16.mxu1 %v12833_v44 }
 0x611   :  { %v4204_v63 = vpop.f32.mrb[32].mxu0 }
 0x612   :  { %v7168_v15 = vadd.f32 %v4204_v63, %v12182_v51  ;;  %v4281_v16 = vpop.f32.mrb[32].mxu1  ;;  %v4206_v35 = vpop.f32.mrb[33].mxu0 }
 0x613   :  { %v7169_v20 = vadd.f32 %v4206_v35, %v12185_v56  ;;  %v4283_v50 = vpop.f32.mrb[33].mxu1  ;;  %v7184_v63 = vadd.f32 %v4281_v16, %v12196_v27 }
 0x614   :  { %v5592_v45 = vmul.f32 -1.442695, %v7168_v15  ;;  %v7185_v7 = vadd.f32 %v4283_v50, %v12190_v53 }
 0x615   :  { %v5594_v0 = vmul.f32 -1.442695, %v7169_v20  ;;  %v4210_v18 = vpop.f32.mrb[34].mxu0 }
 0x616   :  { %7492 = vpow2.f32 %v5592_v45  ;;  %v7170_v61 = vadd.f32 %v4210_v18, %v12182_v51  ;;  %v4287_v1 = vpop.f32.mrb[34].mxu1  ;;  %v4212_v37 = vpop.f32.mrb[35].mxu0  ;;  %v5596_v22 = vmul.f32 -1.442695, %v7185_v7 }
 0x617   :  { %7494 = vpow2.f32 %v5594_v0  ;;  %v7171_v46 = vadd.f32 %v4212_v37, %v12185_v56  ;;  %v4289_v38 = vpop.f32.mrb[35].mxu1  ;;  %v7186_v50 = vadd.f32 %v4287_v1, %v12196_v27 }
 0x618   :  { %v5593_v12 = vmul.f32 -1.442695, %v7170_v61  ;;  %v7187_v52 = vadd.f32 %v4289_v38, %v12190_v53 }
 0x619   :  { %v5595_v43 = vmul.f32 -1.442695, %v7171_v46 }
 0x61a   :  { %7496 = vpow2.f32 %v5593_v12  ;;  %v5597_v45 = vmul.f32 -1.442695, %v7187_v52 }
 0x61b   :  { %7498 = vpow2.f32 %v5595_v43 }
 0x61c   :  { %7500 = vpow2.f32 %v5596_v22 }
 0x61d   :  { %7502 = vtanh.f32 %v7184_v63 }
 0x620   :  { %v7493_v15 = vpop.eup %7492 }
 0x621   :  { %v7495_v35 = vpop.eup %7494  ;;  %v4306_v20 = vadd.f32 1.0, %v7493_v15 }
 0x622   :  { %v4318_v0 = vadd.f32 1.0, %v7495_v35 }
 0x623   :  { %7504 = vrcp.f32 %v4306_v20 }
 0x624   :  { %v7497_v18 = vpop.eup %7496  ;;  %7506 = vrcp.f32 %v4318_v0 }
 0x625   :  { %v7499_v49 = vpop.eup %7498  ;;  %v4307_v61 = vadd.f32 1.0, %v7497_v18  ;;  %7508 = vpow2.f32 %v5597_v45 }
 0x626   :  { %7510 = vtanh.f32 %v7186_v50  ;;  %v4319_v37 = vadd.f32 1.0, %v7499_v49  ;;  %v7501_v16 = vpop.eup %7500 }
 0x627   :  { %7512 = vrcp.f32 %v4307_v61  ;;  %v7503_v46 = vpop.eup %7502  ;;  %v4332_v43 = vadd.f32 1.0, %v7501_v16 }
 0x628   :  { %7514 = vrcp.f32 %v4319_v37 }
 0x629   :  { %7516 = vrcp.f32 %v4332_v43 }
 0x62d   :  { %v7505_v38 = vpop.eup %7504 }
 0x62e   :  { %v7507_v12 = vpop.eup %7506  ;;  %v4340_v7 = vmul.f32 %v7505_v38, %v7503_v46 }
 0x62f   :  { %v7509_v22 = vpop.eup %7508  ;;  %v4338_v52 = vmul.f32 0.0, %v7507_v12 }
 0x630   :  { %v7511_v63 = vpop.eup %7510  ;;  %v4333_v45 = vadd.f32 1.0, %v7509_v22 }
 0x631   :  { %v7513_v1 = vpop.eup %7512  ;;  %v12201_v15 = vadd.f32 %v4340_v7, %v4338_v52 }
 0x632   :  { %v7515_v35 = vpop.eup %7514  ;;  %v4341_v20 = vmul.f32 %v7513_v1, %v7511_v63 }
 0x633   :  { %7518 = vtanh.f32 %v12201_v15  ;;  %v4339_v0 = vmul.f32 0.0, %v7515_v35  ;;  %v7517_v18 = vpop.eup %7516 }
 0x634   :  { %7520 = vrcp.f32 %v4333_v45 }
 0x635   :  { %v12204_v50 = vadd.f32 %v4341_v20, %v4339_v0 }
 0x637   :  { %7522 = vtanh.f32 %v12204_v50 }
 0x63d   :  { %v7519_v49 = vpop.eup %7518 }
 0x63e   :  { %v4346_v61 = vmul.f32 %v7519_v49, %v7517_v18  ;;  %v7521_v37 = vpop.eup %7520 }
 0x640   :  { %4432 = vmatmul.mubr.f32.vlgmr.msra.gmra.mrb[36].mxu0 %v4346_v61  ;;  %4509 = vmatmul.mubr.f32.vlgmr.msra.gmra.mrb[36].mxu1 %v4346_v61 }
 0x641   :  { %v7523_v16 = vpop.eup %7522  ;;  %4437 = vmatprep.mubr.f32.mxu0 %v12831_v60  ;;  %4514 = vmatprep.mubr.f32.mxu1 %v12831_v60 }
 0x642   :  { %v4347_v46 = vmul.f32 %v7523_v16, %v7521_v37  ;;  %6915 = vmatpush1.bf16.msra.mxu0 %v11858_v17  ;;  %6947 = vmatpush1.bf16.msra.mxu1 %v11860_v19 }
 0x643   :  { %6917 = vmatprep.subr.bf16.mxu0 %v11862_v14  ;;  %6949 = vmatprep.subr.bf16.mxu1 %v11870_v42 }
 0x644   :  { %4438 = vmatmul.mubr.f32.gmra.mrb[38].mxu0 %v4347_v46  ;;  %4515 = vmatmul.mubr.f32.gmra.mrb[38].mxu1 %v4347_v46 }
 0x645   :  { %4660 = vmatprep.mubr.f32.mxu0 %v12831_v60  ;;  %4737 = vmatprep.mubr.f32.mxu1 %v12831_v60 }
 0x646   :  { %6919 = vmatpush1.bf16.msra.mxu0 %v11896_v24  ;;  %6951 = vmatpush1.bf16.msra.mxu1 %v11900_v21 }
 0x647   :  { %6921 = vmatprep.subr.bf16.mxu0 %v11908_v36  ;;  %6953 = vmatprep.subr.bf16.mxu1 %v11910_v4 }
 0x64a   :  { %6923 = vmatpush1.bf16.msra.mxu0 %v11934_v39  ;;  %6955 = vmatpush1.bf16.msra.mxu1 %v11938_v31 }
 0x64b   :  { %6925 = vmatprep.subr.bf16.mxu0 %v11948_v23  ;;  %6957 = vmatprep.subr.bf16.mxu1 %v11950_v59 }
 0x64e   :  { %6927 = vmatpush1.bf16.msra.mxu0 %v11974_v47  ;;  %6959 = vmatpush1.bf16.msra.mxu1 %v11978_v57 }
 0x64f   :  { %6929 = vmatprep.subr.bf16.mxu0 %v11988_v55  ;;  %6961 = vmatprep.subr.bf16.mxu1 %v11990_v13 }
 0x652   :  { %6931 = vmatpush1.bf16.msra.mxu0 %v12014_v41  ;;  %6963 = vmatpush1.bf16.msra.mxu1 %v12018_v11 }
 0x653   :  { %6933 = vmatprep.subr.bf16.mxu0 %v12028_v29  ;;  %6965 = vmatprep.subr.bf16.mxu1 %v12030_v30 }
 0x656   :  { %6935 = vmatpush1.bf16.msra.mxu0 %v12054_v2  ;;  %6967 = vmatpush1.bf16.msra.mxu1 %v12058_v25 }
 0x657   :  { %6937 = vmatprep.subr.bf16.mxu0 %v12068_v6  ;;  %6969 = vmatprep.subr.bf16.mxu1 %v12070_v26 }
 0x65a   :  { %6939 = vmatpush1.bf16.msra.mxu0 %v12094_v33  ;;  %6971 = vmatpush1.bf16.msra.mxu1 %v12098_v28 }
 0x65b   :  { %6941 = vmatprep.subr.bf16.mxu0 %v12108_v5  ;;  %6973 = vmatprep.subr.bf16.mxu1 %v12110_v32 }
 0x65e   :  { %6943 = vmatpush1.bf16.msra.mxu0 %v12122_v34  ;;  %6975 = vmatpush1.bf16.msra.mxu1 %v12126_v48 }
 0x65f   :  { %6977 = vmatprep.subr.bf16.mxu0 %v12832_v10  ;;  %7009 = vmatprep.subr.bf16.mxu1 %v12833_v44 }
 0x713   :  { %v4433_v38 = vpop.f32.mrb[36].mxu0  ;;  %v4510_v12 = vpop.f32.mrb[36].mxu1 }
 0x714   :  { %v7172_v7 = vadd.f32 %v4433_v38, %v12182_v51  ;;  %v4435_v43 = vpop.f32.mrb[37].mxu0  ;;  %v4512_v22 = vpop.f32.mrb[37].mxu1  ;;  %v7188_v46 = vadd.f32 %v4510_v12, %v12196_v27 }
 0x715   :  { %v7173_v52 = vadd.f32 %v4435_v43, %v12185_v56  ;;  %v7189_v49 = vadd.f32 %v4512_v22, %v12190_v53 }
 0x716   :  { %v5598_v63 = vmul.f32 -1.442695, %v7172_v7 }
 0x717   :  { %v5600_v1 = vmul.f32 -1.442695, %v7173_v52  ;;  %v4439_v35 = vpop.f32.mrb[38].mxu0  ;;  %v4516_v20 = vpop.f32.mrb[38].mxu1  ;;  %v5602_v37 = vmul.f32 -1.442695, %v7189_v49 }
 0x718   :  { %7524 = vpow2.f32 %v5598_v63  ;;  %v7174_v45 = vadd.f32 %v4439_v35, %v12182_v51  ;;  %v4441_v0 = vpop.f32.mrb[39].mxu0  ;;  %v4518_v18 = vpop.f32.mrb[39].mxu1 }
 0x719   :  { %7526 = vpow2.f32 %v5600_v1  ;;  %v7175_v10 = vadd.f32 %v4441_v0, %v12185_v56  ;;  %v7191_v16 = vadd.f32 %v4518_v18, %v12190_v53  ;;  %v7190_v1 = vadd.f32 %v4516_v20, %v12196_v27 }
 0x71a   :  { %v5599_v44 = vmul.f32 -1.442695, %v7174_v45 }
 0x71b   :  { %v5601_v61 = vmul.f32 -1.442695, %v7175_v10  ;;  %v5603_v52 = vmul.f32 -1.442695, %v7191_v16 }
 0x71c   :  { %7528 = vpow2.f32 %v5599_v44 }
 0x71d   :  { %7530 = vpow2.f32 %v5601_v61 }
 0x71e   :  { %7532 = vpow2.f32 %v5602_v37 }
 0x71f   :  { %7534 = vtanh.f32 %v7188_v46 }
 0x722   :  { %v7525_v38 = vpop.eup %7524 }
 0x723   :  { %v7527_v7 = vpop.eup %7526  ;;  %v4535_v43 = vadd.f32 1.0, %v7525_v38 }
 0x724   :  { %v4547_v63 = vadd.f32 1.0, %v7527_v7 }
 0x725   :  { %7536 = vrcp.f32 %v4535_v43 }
 0x726   :  { %v7529_v35 = vpop.eup %7528  ;;  %7538 = vrcp.f32 %v4547_v63 }
 0x727   :  { %v7531_v22 = vpop.eup %7530  ;;  %v4536_v45 = vadd.f32 1.0, %v7529_v35  ;;  %7540 = vpow2.f32 %v5603_v52 }
 0x728   :  { %7542 = vtanh.f32 %v7190_v1  ;;  %v4548_v0 = vadd.f32 1.0, %v7531_v22  ;;  %v7533_v12 = vpop.eup %7532 }
 0x729   :  { %7544 = vrcp.f32 %v4536_v45  ;;  %v7535_v18 = vpop.eup %7534  ;;  %v4561_v61 = vadd.f32 1.0, %v7533_v12 }
 0x72a   :  { %7546 = vrcp.f32 %v4548_v0 }
 0x72b   :  { %7548 = vrcp.f32 %v4561_v61 }
 0x72f   :  { %v7537_v10 = vpop.eup %7536 }
 0x730   :  { %v7539_v44 = vpop.eup %7538  ;;  %v4569_v49 = vmul.f32 %v7537_v10, %v7535_v18 }
 0x731   :  { %v7541_v37 = vpop.eup %7540  ;;  %v4567_v16 = vmul.f32 %v7539_v44, %v12201_v15 }
 0x732   :  { %v7543_v20 = vpop.eup %7542  ;;  %v4562_v52 = vadd.f32 1.0, %v7541_v37 }
 0x733   :  { %v7545_v46 = vpop.eup %7544  ;;  %v12252_v38 = vadd.f32 %v4569_v49, %v4567_v16 }
 0x734   :  { %v7547_v7 = vpop.eup %7546  ;;  %v4570_v43 = vmul.f32 %v7545_v46, %v7543_v20 }
 0x735   :  { %7550 = vtanh.f32 %v12252_v38  ;;  %v4568_v63 = vmul.f32 %v7547_v7, %v12204_v50  ;;  %v7549_v35 = vpop.eup %7548 }
 0x736   :  { %7552 = vrcp.f32 %v4562_v52 }
 0x737   :  { %v12256_v1 = vadd.f32 %v4570_v43, %v4568_v63 }
 0x739   :  { %7554 = vtanh.f32 %v12256_v1 }
 0x73f   :  { %v7551_v22 = vpop.eup %7550 }
 0x740   :  { %v4575_v15 = vmul.f32 %v7551_v22, %v7549_v35  ;;  %v7553_v45 = vpop.eup %7552 }
 0x742   :  { %4661 = vmatmul.mubr.f32.vlgmr.msra.gmra.mrb[40].mxu0 %v4575_v15  ;;  %4738 = vmatmul.mubr.f32.vlgmr.msra.gmra.mrb[40].mxu1 %v4575_v15 }
 0x743   :  { %v7555_v0 = vpop.eup %7554  ;;  %4666 = vmatprep.mubr.f32.mxu0 %v12831_v60  ;;  %4743 = vmatprep.mubr.f32.mxu1 %v12831_v60 }
 0x744   :  { %v4576_v12 = vmul.f32 %v7555_v0, %v7553_v45  ;;  %6979 = vmatpush1.bf16.msra.mxu0 %v11858_v17  ;;  %7011 = vmatpush1.bf16.msra.mxu1 %v11860_v19  ;;  %v5040_v17 = vld [vmem:[%s12780_s5 + $0x8] sm:$0xff] }
 0x745   :  { %6981 = vmatprep.subr.bf16.mxu0 %v11862_v14  ;;  %7013 = vmatprep.subr.bf16.mxu1 %v11870_v42  ;;  %v5044_v19 = vld [vmem:[%s12780_s5 + $0x28] sm:$0xff]  ;;  %v5042_v14 = vld [vmem:[%s12780_s5 + $0x18] sm:$0xff] }
 0x746   :  { %4667 = vmatmul.mubr.f32.gmra.mrb[42].mxu0 %v4576_v12  ;;  %4744 = vmatmul.mubr.f32.gmra.mrb[42].mxu1 %v4576_v12  ;;  %v7040_v42 = vpack.c.bf16 %v5044_v19, %v5040_v17 }
 0x747   :  { %4889 = vmatprep.mubr.f32.mxu0 %v12831_v60  ;;  %4966 = vmatprep.mubr.f32.mxu1 %v12831_v60 }
 0x748   :  { %6983 = vmatpush1.bf16.msra.mxu0 %v11896_v24  ;;  %7015 = vmatpush1.bf16.msra.mxu1 %v11900_v21  ;;  %v5046_v24 = vld [vmem:[%s12780_s5 + $0x38] sm:$0xff] }
 0x749   :  { %6985 = vmatprep.subr.bf16.mxu0 %v11908_v36  ;;  %7017 = vmatprep.subr.bf16.mxu1 %v11910_v4  ;;  %v7104_v21 = vpack.c.bf16 %v5046_v24, %v5042_v14  ;;  %v5043_v14 = vld [vmem:[%s12780_s5 + $0x20] sm:$0xff]  ;;  %v5048_v24 = vld [vmem:[%s12780_s5 + $0x48] sm:$0xff] }
 0x74c   :  { %6987 = vmatpush1.bf16.msra.mxu0 %v11934_v39  ;;  %7019 = vmatpush1.bf16.msra.mxu1 %v11938_v31 }
 0x74d   :  { %6989 = vmatprep.subr.bf16.mxu0 %v11948_v23  ;;  %7021 = vmatprep.subr.bf16.mxu1 %v11950_v59 }
 0x750   :  { %6991 = vmatpush1.bf16.msra.mxu0 %v11974_v47  ;;  %7023 = vmatpush1.bf16.msra.mxu1 %v11978_v57 }
 0x751   :  { %6993 = vmatprep.subr.bf16.mxu0 %v11988_v55  ;;  %7025 = vmatprep.subr.bf16.mxu1 %v11990_v13 }
 0x754   :  { %6995 = vmatpush1.bf16.msra.mxu0 %v12014_v41  ;;  %7027 = vmatpush1.bf16.msra.mxu1 %v12018_v11 }
 0x755   :  { %6997 = vmatprep.subr.bf16.mxu0 %v12028_v29  ;;  %7029 = vmatprep.subr.bf16.mxu1 %v12030_v30 }
 0x758   :  { %6999 = vmatpush1.bf16.msra.mxu0 %v12054_v2  ;;  %7031 = vmatpush1.bf16.msra.mxu1 %v12058_v25 }
 0x759   :  { %7001 = vmatprep.subr.bf16.mxu0 %v12068_v6  ;;  %7033 = vmatprep.subr.bf16.mxu1 %v12070_v26 }
 0x75c   :  { %7003 = vmatpush1.bf16.msra.mxu0 %v12094_v33  ;;  %7035 = vmatpush1.bf16.msra.mxu1 %v12098_v28 }
 0x75d   :  { %7005 = vmatprep.subr.bf16.mxu0 %v12108_v5  ;;  %7037 = vmatprep.subr.bf16.mxu1 %v12110_v32 }
 0x760   :  { %7007 = vmatpush1.bf16.msra.mxu0 %v12122_v34  ;;  %7039 = vmatpush1.bf16.msra.mxu1 %v12126_v48 }
 0x761   :  { %7041 = vmatprep.subr.bf16.mxu0 %v7040_v42  ;;  %7105 = vmatprep.subr.bf16.mxu1 %v7104_v21  ;;  %v5041_v42 = vld [vmem:[%s12780_s5 + $0x10] sm:$0xff] }
 0x815   :  { %v4662_v36 = vpop.f32.mrb[40].mxu0  ;;  %v4739_v4 = vpop.f32.mrb[40].mxu1 }
 0x816   :  { %v7176_v39 = vadd.f32 %v4662_v36, %v12182_v51  ;;  %v4664_v31 = vpop.f32.mrb[41].mxu0  ;;  %v4741_v23 = vpop.f32.mrb[41].mxu1  ;;  %v7192_v28 = vadd.f32 %v4739_v4, %v12196_v27  ;;  %v5052_v36 = vld [vmem:[%s12780_s5 + $0x68] sm:$0xff]  ;;  %v5050_v4 = vld [vmem:[%s12780_s5 + $0x58] sm:$0xff] }
 0x817   :  { %v7177_v59 = vadd.f32 %v4664_v31, %v12185_v56  ;;  %v7193_v25 = vadd.f32 %v4741_v23, %v12190_v53 }
 0x818   :  { %v5604_v47 = vmul.f32 -1.442695, %v7176_v39  ;;  %v5054_v39 = vld [vmem:[%s12780_s5 + $0x78] sm:$0xff] }
 0x819   :  { %v5606_v57 = vmul.f32 -1.442695, %v7177_v59  ;;  %v4668_v55 = vpop.f32.mrb[42].mxu0  ;;  %v4745_v13 = vpop.f32.mrb[42].mxu1  ;;  %v5608_v26 = vmul.f32 -1.442695, %v7193_v25 }
 0x81a   :  { %7556 = vpow2.f32 %v5604_v47  ;;  %v7178_v41 = vadd.f32 %v4668_v55, %v12182_v51  ;;  %v4670_v11 = vpop.f32.mrb[43].mxu0  ;;  %v4747_v29 = vpop.f32.mrb[43].mxu1  ;;  %v7194_v18 = vadd.f32 %v4745_v13, %v12196_v27  ;;  %v5047_v47 = vld [vmem:[%s12780_s5 + $0x40] sm:$0xff]  ;;  %v5049_v13 = vld [vmem:[%s12780_s5 + $0x50] sm:$0xff]  ;;  %v5060_v25 = vld [vmem:[%s12780_s5 + $0xa8] sm:$0xff] }
 0x81b   :  { %7558 = vpow2.f32 %v5606_v57  ;;  %v7179_v30 = vadd.f32 %v4670_v11, %v12185_v56  ;;  %v7195_v33 = vadd.f32 %v4747_v29, %v12190_v53  ;;  %v5051_v55 = vld [vmem:[%s12780_s5 + $0x60] sm:$0xff]  ;;  %v7044_v11 = vpack.c.bf16 %v5052_v36, %v5048_v24  ;;  %v5073_v24 = vld [vmem:[%s12780_s5 + $0x110] sm:$0xff]  ;;  %v5080_v36 = vld [vmem:[%s12780_s5 + $0x148] sm:$0xff] }
 0x81c   :  { %v5605_v2 = vmul.f32 -1.442695, %v7178_v41  ;;  %v5053_v41 = vld [vmem:[%s12780_s5 + $0x70] sm:$0xff]  ;;  %v7108_v29 = vpack.c.bf16 %v5054_v39, %v5050_v4  ;;  %v5084_v4 = vld [vmem:[%s12780_s5 + $0x168] sm:$0xff]  ;;  %v5082_v39 = vld [vmem:[%s12780_s5 + $0x158] sm:$0xff] }
 0x81d   :  { %v5607_v6 = vmul.f32 -1.442695, %v7179_v30  ;;  %v5609_v48 = vmul.f32 -1.442695, %v7195_v33  ;;  %v5056_v30 = vld [vmem:[%s12780_s5 + $0x88] sm:$0xff] }
 0x81e   :  { %7560 = vpow2.f32 %v5605_v2 }
 0x81f   :  { %7562 = vpow2.f32 %v5607_v6  ;;  %v5058_v6 = vld [vmem:[%s12780_s5 + $0x98] sm:$0xff] }
 0x820   :  { %7564 = vpow2.f32 %v5608_v26  ;;  %v5062_v26 = vld [vmem:[%s12780_s5 + $0xb8] sm:$0xff] }
 0x821   :  { %7566 = vtanh.f32 %v7192_v28  ;;  %v7046_v28 = vpack.c.bf16 %v5051_v55, %v5047_v47  ;;  %v5079_v47 = vld [vmem:[%s12780_s5 + $0x140] sm:$0xff]  ;;  %v7060_v55 = vpack.c.bf16 %v5084_v4, %v5080_v36 }
 0x824   :  { %v7557_v5 = vpop.eup %7556 }
 0x825   :  { %v7559_v32 = vpop.eup %7558  ;;  %v4764_v34 = vadd.f32 1.0, %v7557_v5  ;;  %v7110_v5 = vpack.c.bf16 %v5053_v41, %v5049_v13  ;;  %v5081_v41 = vld [vmem:[%s12780_s5 + $0x150] sm:$0xff] }
 0x826   :  { %v4776_v50 = vadd.f32 1.0, %v7559_v32  ;;  %v5055_v32 = vld [vmem:[%s12780_s5 + $0x80] sm:$0xff] }
 0x827   :  { %7568 = vrcp.f32 %v4764_v34  ;;  %v5059_v34 = vld [vmem:[%s12780_s5 + $0xa0] sm:$0xff] }
 0x828   :  { %v7561_v10 = vpop.eup %7560  ;;  %7570 = vrcp.f32 %v4776_v50  ;;  %v5057_v50 = vld [vmem:[%s12780_s5 + $0x90] sm:$0xff] }
 0x829   :  { %v7563_v44 = vpop.eup %7562  ;;  %v4765_v49 = vadd.f32 1.0, %v7561_v10  ;;  %7572 = vpow2.f32 %v5609_v48  ;;  %v5064_v10 = vld [vmem:[%s12780_s5 + $0xc8] sm:$0xff] }
 0x82a   :  { %7574 = vtanh.f32 %v7194_v18  ;;  %v4777_v61 = vadd.f32 1.0, %v7563_v44  ;;  %v7565_v37 = vpop.eup %7564  ;;  %v5061_v18 = vld [vmem:[%s12780_s5 + $0xb0] sm:$0xff]  ;;  %v7048_v44 = vpack.c.bf16 %v5060_v25, %v5056_v30  ;;  %v5092_v30 = vld [vmem:[%s12780_s5 + $0x1a8] sm:$0xff]  ;;  %v5094_v25 = vld [vmem:[%s12780_s5 + $0x1b8] sm:$0xff] }
 0x82b   :  { %7576 = vrcp.f32 %v4765_v49  ;;  %v7567_v16 = vpop.eup %7566  ;;  %v4790_v43 = vadd.f32 1.0, %v7565_v37  ;;  %v7112_v49 = vpack.c.bf16 %v5062_v26, %v5058_v6  ;;  %v5070_v37 = vld [vmem:[%s12780_s5 + $0xf8] sm:$0xff] }
 0x82c   :  { %7578 = vrcp.f32 %v4777_v61  ;;  %v5066_v61 = vld [vmem:[%s12780_s5 + $0xd8] sm:$0xff] }
 0x82d   :  { %7580 = vrcp.f32 %v4790_v43 }
 0x831   :  { %v7569_v20 = vpop.eup %7568 }
 0x832   :  { %v7571_v46 = vpop.eup %7570  ;;  %v4798_v7 = vmul.f32 %v7569_v20, %v7567_v16  ;;  %v7050_v16 = vpack.c.bf16 %v5059_v34, %v5055_v32  ;;  %v7114_v20 = vpack.c.bf16 %v5061_v18, %v5057_v50  ;;  %v5089_v34 = vld [vmem:[%s12780_s5 + $0x190] sm:$0xff]  ;;  %v5096_v50 = vld [vmem:[%s12780_s5 + $0x1c8] sm:$0xff] }
 0x833   :  { %v7573_v52 = vpop.eup %7572  ;;  %v4796_v63 = vmul.f32 %v7571_v46, %v12252_v38  ;;  %v5039_v38 = vld [vmem:[%s12780_s5] sm:$0xff]  ;;  %v5100_v18 = vld [vmem:[%s12780_s5 + $0x1e8] sm:$0xff] }
 0x834   :  { %v7575_v35 = vpop.eup %7574  ;;  %v4791_v12 = vadd.f32 1.0, %v7573_v52  ;;  %v7042_v23 = vpack.c.bf16 %v5043_v14, %v5039_v38  ;;  %v5063_v46 = vld [vmem:[%s12780_s5 + $0xc0] sm:$0xff]  ;;  %v7116_v52 = vpack.c.bf16 %v5070_v37, %v5066_v61 }
 0x835   :  { %v7577_v22 = vpop.eup %7576  ;;  %v12314_v15 = vadd.f32 %v4798_v7, %v4796_v63  ;;  %v5067_v7 = vld [vmem:[%s12780_s5 + $0xe0] sm:$0xff]  ;;  %v5065_v63 = vld [vmem:[%s12780_s5 + $0xd0] sm:$0xff] }
 0x836   :  { %v7579_v45 = vpop.eup %7578  ;;  %v4799_v0 = vmul.f32 %v7577_v22, %v7575_v35  ;;  %v5069_v35 = vld [vmem:[%s12780_s5 + $0xf0] sm:$0xff]  ;;  %v5072_v22 = vld [vmem:[%s12780_s5 + $0x108] sm:$0xff]  ;;  %v5071_v38 = vld [vmem:[%s12780_s5 + $0x100] sm:$0xff] }
 0x837   :  { %7582 = vtanh.f32 %v12314_v15  ;;  %v4797_v17 = vmul.f32 %v7579_v45, %v12256_v1  ;;  %v5045_v1 = vld [vmem:[%s12780_s5 + $0x30] sm:$0xff]  ;;  %v7581_v21 = vpop.eup %7580  ;;  %v5074_v45 = vld [vmem:[%s12780_s5 + $0x118] sm:$0xff]  ;;  %v5075_v14 = vld [vmem:[%s12780_s5 + $0x120] sm:$0xff] }
 0x838   :  { %7584 = vrcp.f32 %v4791_v12  ;;  %v7106_v59 = vpack.c.bf16 %v5045_v1, %v5041_v42  ;;  %v7054_v12 = vpack.c.bf16 %v5067_v7, %v5063_v46  ;;  %v5095_v61 = vld [vmem:[%s12780_s5 + $0x1c0] sm:$0xff]  ;;  %v5097_v46 = vld [vmem:[%s12780_s5 + $0x1d0] sm:$0xff] }
 0x839   :  { %v12318_v19 = vadd.f32 %v4799_v0, %v4797_v17  ;;  %v5078_v0 = vld [vmem:[%s12780_s5 + $0x138] sm:$0xff]  ;;  %v7118_v17 = vpack.c.bf16 %v5069_v35, %v5065_v63  ;;  %v5099_v37 = vld [vmem:[%s12780_s5 + $0x1e0] sm:$0xff]  ;;  %v5101_v7 = vld [vmem:[%s12780_s5 + $0x1f0] sm:$0xff] }
 0x83a   :  { %v7120_v1 = vpack.c.bf16 %v5078_v0, %v5074_v45  ;;  %v5106_v63 = vld [vmem:[%s12780_s5 + $0x218] sm:$0xff]  ;;  %v5103_v45 = vld [vmem:[%s12780_s5 + $0x200] sm:$0xff] }
 0x83b   :  { %7586 = vtanh.f32 %v12318_v19  ;;  %v5110_v35 = vld [vmem:[%s12780_s5 + $0x238] sm:$0xff]  ;;  %v5107_v0 = vld [vmem:[%s12780_s5 + $0x220] sm:$0xff] }
 0x83c   :  { %v7074_v36 = vpack.c.bf16 %v5107_v0, %v5103_v45  ;;  %v5137_v45 = vld [vmem:[%s12780_s5 + $0x310] sm:$0xff] }
 0x83d   :  { %v5141_v0 = vld [vmem:[%s12780_s5 + $0x330] sm:$0xff] }
 0x841   :  { %v7583_v31 = vpop.eup %7582 }
 0x842   :  { %v4804_v57 = vmul.f32 %v7583_v31, %v7581_v21  ;;  %v7585_v2 = vpop.eup %7584  ;;  %v5077_v21 = vld [vmem:[%s12780_s5 + $0x130] sm:$0xff]  ;;  %v5086_v31 = vld [vmem:[%s12780_s5 + $0x178] sm:$0xff] }
 0x843   :  { %v7124_v13 = vpack.c.bf16 %v5086_v31, %v5082_v39  ;;  %v5111_v39 = vld [vmem:[%s12780_s5 + $0x240] sm:$0xff] }
 0x844   :  { %4890 = vmatmul.mubr.f32.vlgmr.msra.gmra.mrb[44].mxu0 %v4804_v57  ;;  %4967 = vmatmul.mubr.f32.vlgmr.msra.gmra.mrb[44].mxu1 %v4804_v57  ;;  %v5083_v57 = vld [vmem:[%s12780_s5 + $0x160] sm:$0xff] }
 0x845   :  { %v7587_v33 = vpop.eup %7586  ;;  %7043 = vmatpush1.bf16.msra.mxu0 %v7042_v23  ;;  %7107 = vmatpush1.bf16.msra.mxu1 %v7106_v59  ;;  %v7058_v23 = vpack.c.bf16 %v5075_v14, %v5071_v38  ;;  %v7122_v59 = vpack.c.bf16 %v5077_v21, %v5073_v24  ;;  %v7062_v6 = vpack.c.bf16 %v5083_v57, %v5079_v47  ;;  %v5105_v38 = vld [vmem:[%s12780_s5 + $0x210] sm:$0xff]  ;;  %v5114_v24 = vld [vmem:[%s12780_s5 + $0x258] sm:$0xff]  ;;  %v5115_v31 = vld [vmem:[%s12780_s5 + $0x260] sm:$0xff] }
 0x846   :  { %4895 = vmatprep.mubr.f32.mxu0 %v12831_v60  ;;  %4972 = vmatprep.mubr.f32.mxu1 %v12831_v60  ;;  %v4805_v48 = vmul.f32 %v7587_v33, %v7585_v2  ;;  %v5068_v60 = vld [vmem:[%s12780_s5 + $0xe8] sm:$0xff]  ;;  %v5090_v2 = vld [vmem:[%s12780_s5 + $0x198] sm:$0xff]  ;;  %v5087_v33 = vld [vmem:[%s12780_s5 + $0x180] sm:$0xff] }
 0x847   :  { %7045 = vmatprep.subr.bf16.mxu0 %v7044_v11  ;;  %7109 = vmatprep.subr.bf16.mxu1 %v7108_v29  ;;  %v7052_v43 = vpack.c.bf16 %v5068_v60, %v5064_v10  ;;  %v5085_v11 = vld [vmem:[%s12780_s5 + $0x170] sm:$0xff]  ;;  %v5088_v29 = vld [vmem:[%s12780_s5 + $0x188] sm:$0xff]  ;;  %v7128_v32 = vpack.c.bf16 %v5094_v25, %v5090_v2  ;;  %v5098_v10 = vld [vmem:[%s12780_s5 + $0x1d8] sm:$0xff] }
 0x848   :  { %4896 = vmatmul.mubr.f32.gmra.mrb[46].mxu0 %v4805_v48  ;;  %4973 = vmatmul.mubr.f32.gmra.mrb[46].mxu1 %v4805_v48  ;;  %v7126_v26 = vpack.c.bf16 %v5085_v11, %v5081_v41  ;;  %v5093_v48 = vld [vmem:[%s12780_s5 + $0x1b0] sm:$0xff]  ;;  %v5118_v21 = vld [vmem:[%s12780_s5 + $0x278] sm:$0xff]  ;;  %v5119_v2 = vld [vmem:[%s12780_s5 + $0x280] sm:$0xff] }
 0x849   :  { %7047 = vmatpush1.bf16.msra.mxu0 %v7046_v28  ;;  %7111 = vmatpush1.bf16.msra.mxu1 %v7110_v5  ;;  %v5091_v28 = vld [vmem:[%s12780_s5 + $0x1a0] sm:$0xff]  ;;  %v7064_v5 = vpack.c.bf16 %v5092_v30, %v5088_v29  ;;  %v7130_v60 = vpack.c.bf16 %v5093_v48, %v5089_v34  ;;  %v5109_v14 = vld [vmem:[%s12780_s5 + $0x230] sm:$0xff]  ;;  %v5122_v41 = vld [vmem:[%s12780_s5 + $0x298] sm:$0xff]  ;;  %v7078_v29 = vpack.c.bf16 %v5115_v31, %v5111_v39 }
 0x84a   :  { %5249 = vmatprep.mubr.f32.mxu0 %v12829_v58  ;;  %5324 = vmatprep.mubr.f32.mxu1 %v12829_v58  ;;  %v5076_v58 = vld [vmem:[%s12780_s5 + $0x128] sm:$0xff]  ;;  %v7138_v4 = vpack.c.bf16 %v5109_v14, %v5105_v38  ;;  %v5113_v47 = vld [vmem:[%s12780_s5 + $0x250] sm:$0xff]  ;;  %v5126_v11 = vld [vmem:[%s12780_s5 + $0x2b8] sm:$0xff] }
 0x84b   :  { %7049 = vmatprep.subr.bf16.mxu0 %v7048_v44  ;;  %7113 = vmatprep.subr.bf16.mxu1 %v7112_v49  ;;  %v7056_v42 = vpack.c.bf16 %v5076_v58, %v5072_v22  ;;  %v5102_v44 = vld [vmem:[%s12780_s5 + $0x1f8] sm:$0xff]  ;;  %v7066_v49 = vpack.c.bf16 %v5091_v28, %v5087_v33  ;;  %v7070_v22 = vpack.c.bf16 %v5099_v37, %v5095_v61  ;;  %v5117_v57 = vld [vmem:[%s12780_s5 + $0x270] sm:$0xff]  ;;  %v5123_v25 = vld [vmem:[%s12780_s5 + $0x2a0] sm:$0xff] }
 0x84c   :  { %v7134_v58 = vpack.c.bf16 %v5101_v7, %v5097_v46  ;;  %v7142_v30 = vpack.c.bf16 %v5117_v57, %v5113_v47  ;;  %v5121_v33 = vld [vmem:[%s12780_s5 + $0x290] sm:$0xff]  ;;  %v5130_v34 = vld [vmem:[%s12780_s5 + $0x2d8] sm:$0xff] }
 0x84d   :  { %7051 = vmatpush1.bf16.msra.mxu0 %v7050_v16  ;;  %7115 = vmatpush1.bf16.msra.mxu1 %v7114_v20  ;;  %v7068_v16 = vpack.c.bf16 %v5100_v18, %v5096_v50  ;;  %v7132_v20 = vpack.c.bf16 %v5102_v44, %v5098_v10  ;;  %v5125_v28 = vld [vmem:[%s12780_s5 + $0x2b0] sm:$0xff]  ;;  %v5134_v48 = vld [vmem:[%s12780_s5 + $0x2f8] sm:$0xff]  ;;  %v7082_v50 = vpack.c.bf16 %v5123_v25, %v5119_v2  ;;  %v5127_v10 = vld [vmem:[%s12780_s5 + $0x2c0] sm:$0xff] }
 0x84e   :  { %7053 = vmatprep.subr.bf16.mxu0 %v7052_v43  ;;  %7117 = vmatprep.subr.bf16.mxu1 %v7116_v52  ;;  %v5104_v43 = vld [vmem:[%s12780_s5 + $0x208] sm:$0xff]  ;;  %v7146_v18 = vpack.c.bf16 %v5125_v28, %v5121_v33  ;;  %v5131_v44 = vld [vmem:[%s12780_s5 + $0x2e0] sm:$0xff]  ;;  %v5129_v61 = vld [vmem:[%s12780_s5 + $0x2d0] sm:$0xff] }
 0x84f   :  { %v5108_v52 = vld [vmem:[%s12780_s5 + $0x228] sm:$0xff]  ;;  %v5133_v37 = vld [vmem:[%s12780_s5 + $0x2f0] sm:$0xff]  ;;  %v5138_v46 = vld [vmem:[%s12780_s5 + $0x318] sm:$0xff] }
 0x850   :  { %v5142_v7 = vld [vmem:[%s12780_s5 + $0x338] sm:$0xff]  ;;  %v5145_v39 = vld [vmem:[%s12780_s5 + $0x350] sm:$0xff] }
 0x851   :  { %7055 = vmatpush1.bf16.msra.mxu0 %v7054_v12  ;;  %7119 = vmatpush1.bf16.msra.mxu1 %v7118_v17  ;;  %v7072_v12 = vpack.c.bf16 %v5108_v52, %v5104_v43  ;;  %v7136_v17 = vpack.c.bf16 %v5110_v35, %v5106_v63  ;;  %v7086_v43 = vpack.c.bf16 %v5131_v44, %v5127_v10  ;;  %v5135_v63 = vld [vmem:[%s12780_s5 + $0x300] sm:$0xff]  ;;  %v5146_v38 = vld [vmem:[%s12780_s5 + $0x358] sm:$0xff]  ;;  %v5149_v31 = vld [vmem:[%s12780_s5 + $0x370] sm:$0xff] }
 0x852   :  { %7057 = vmatprep.subr.bf16.mxu0 %v7056_v42  ;;  %7121 = vmatprep.subr.bf16.mxu1 %v7120_v1  ;;  %v5112_v42 = vld [vmem:[%s12780_s5 + $0x248] sm:$0xff]  ;;  %v7150_v52 = vpack.c.bf16 %v5133_v37, %v5129_v61  ;;  %v5139_v35 = vld [vmem:[%s12780_s5 + $0x320] sm:$0xff]  ;;  %v5150_v14 = vld [vmem:[%s12780_s5 + $0x378] sm:$0xff] }
 0x853   :  { %v5116_v1 = vld [vmem:[%s12780_s5 + $0x268] sm:$0xff]  ;;  %v5154_v47 = vld [vmem:[%s12780_s5 + $0x398] sm:$0xff]  ;;  %v5153_v2 = vld [vmem:[%s12780_s5 + $0x390] sm:$0xff] }
 0x854   :  { %v5158_v57 = vld [vmem:[%s12780_s5 + $0x3b8] sm:$0xff]  ;;  %v5157_v25 = vld [vmem:[%s12780_s5 + $0x3b0] sm:$0xff] }
 0x855   :  { %7059 = vmatpush1.bf16.msra.mxu0 %v7058_v23  ;;  %7123 = vmatpush1.bf16.msra.mxu1 %v7122_v59  ;;  %v7076_v23 = vpack.c.bf16 %v5116_v1, %v5112_v42  ;;  %v7140_v59 = vpack.c.bf16 %v5118_v21, %v5114_v24  ;;  %v7090_v42 = vpack.c.bf16 %v5139_v35, %v5135_v63  ;;  %v5143_v24 = vld [vmem:[%s12780_s5 + $0x340] sm:$0xff]  ;;  %v5162_v33 = vld [vmem:[%s12780_s5 + $0x3d8] sm:$0xff]  ;;  %v5161_v10 = vld [vmem:[%s12780_s5 + $0x3d0] sm:$0xff] }
 0x856   :  { %7061 = vmatprep.subr.bf16.mxu0 %v7060_v55  ;;  %7125 = vmatprep.subr.bf16.mxu1 %v7124_v13  ;;  %v5120_v55 = vld [vmem:[%s12780_s5 + $0x288] sm:$0xff]  ;;  %v7154_v1 = vpack.c.bf16 %v5141_v0, %v5137_v45  ;;  %v5147_v21 = vld [vmem:[%s12780_s5 + $0x360] sm:$0xff]  ;;  %v5166_v28 = vld [vmem:[%s12780_s5 + $0x3f8] sm:$0xff] }
 0x857   :  { %v5124_v13 = vld [vmem:[%s12780_s5 + $0x2a8] sm:$0xff]  ;;  %v5165_v44 = vld [vmem:[%s12780_s5 + $0x3f0] sm:$0xff] }
 0x859   :  { %7063 = vmatpush1.bf16.msra.mxu0 %v7062_v6  ;;  %7127 = vmatpush1.bf16.msra.mxu1 %v7126_v26  ;;  %v7080_v6 = vpack.c.bf16 %v5124_v13, %v5120_v55  ;;  %v7144_v26 = vpack.c.bf16 %v5126_v11, %v5122_v41  ;;  %v7094_v55 = vpack.c.bf16 %v5147_v21, %v5143_v24  ;;  %v5151_v41 = vld [vmem:[%s12780_s5 + $0x380] sm:$0xff] }
 0x85a   :  { %7065 = vmatprep.subr.bf16.mxu0 %v7064_v5  ;;  %7129 = vmatprep.subr.bf16.mxu1 %v7128_v32  ;;  %v5128_v5 = vld [vmem:[%s12780_s5 + $0x2c8] sm:$0xff]  ;;  %v7158_v13 = vpack.c.bf16 %v5149_v31, %v5145_v39  ;;  %v5155_v11 = vld [vmem:[%s12780_s5 + $0x3a0] sm:$0xff] }
 0x85b   :  { %v5132_v32 = vld [vmem:[%s12780_s5 + $0x2e8] sm:$0xff] }
 0x85d   :  { %7067 = vmatpush1.bf16.msra.mxu0 %v7066_v49  ;;  %7131 = vmatpush1.bf16.msra.mxu1 %v7130_v60  ;;  %v7084_v49 = vpack.c.bf16 %v5132_v32, %v5128_v5  ;;  %v7148_v60 = vpack.c.bf16 %v5134_v48, %v5130_v34  ;;  %v7098_v5 = vpack.c.bf16 %v5155_v11, %v5151_v41  ;;  %v5159_v34 = vld [vmem:[%s12780_s5 + $0x3c0] sm:$0xff] }
 0x85e   :  { %7069 = vmatprep.subr.bf16.mxu0 %v7068_v16  ;;  %7133 = vmatprep.subr.bf16.mxu1 %v7132_v20  ;;  %v5136_v16 = vld [vmem:[%s12780_s5 + $0x308] sm:$0xff]  ;;  %v7162_v32 = vpack.c.bf16 %v5157_v25, %v5153_v2 }
 0x85f   :  { %v5140_v20 = vld [vmem:[%s12780_s5 + $0x328] sm:$0xff] }
 0x861   :  { %7071 = vmatpush1.bf16.msra.mxu0 %v7070_v22  ;;  %7135 = vmatpush1.bf16.msra.mxu1 %v7134_v58  ;;  %v7088_v22 = vpack.c.bf16 %v5140_v20, %v5136_v16  ;;  %v7152_v58 = vpack.c.bf16 %v5142_v7, %v5138_v46 }
 0x862   :  { %7073 = vmatprep.subr.bf16.mxu0 %v7072_v12  ;;  %7137 = vmatprep.subr.bf16.mxu1 %v7136_v17  ;;  %v5144_v12 = vld [vmem:[%s12780_s5 + $0x348] sm:$0xff] }
 0x863   :  { %v5148_v17 = vld [vmem:[%s12780_s5 + $0x368] sm:$0xff] }
 0x865   :  { %7075 = vmatpush1.bf16.msra.mxu0 %v7074_v36  ;;  %7139 = vmatpush1.bf16.msra.mxu1 %v7138_v4  ;;  %v7092_v36 = vpack.c.bf16 %v5148_v17, %v5144_v12  ;;  %v7156_v4 = vpack.c.bf16 %v5150_v14, %v5146_v38 }
 0x866   :  { %7077 = vmatprep.subr.bf16.mxu0 %v7076_v23  ;;  %7141 = vmatprep.subr.bf16.mxu1 %v7140_v59  ;;  %v5152_v23 = vld [vmem:[%s12780_s5 + $0x388] sm:$0xff] }
 0x867   :  { %v5156_v59 = vld [vmem:[%s12780_s5 + $0x3a8] sm:$0xff] }
 0x869   :  { %7079 = vmatpush1.bf16.msra.mxu0 %v7078_v29  ;;  %7143 = vmatpush1.bf16.msra.mxu1 %v7142_v30  ;;  %v7096_v29 = vpack.c.bf16 %v5156_v59, %v5152_v23  ;;  %v7160_v30 = vpack.c.bf16 %v5158_v57, %v5154_v47 }
 0x86a   :  { %7081 = vmatprep.subr.bf16.mxu0 %v7080_v6  ;;  %7145 = vmatprep.subr.bf16.mxu1 %v7144_v26  ;;  %v5160_v6 = vld [vmem:[%s12780_s5 + $0x3c8] sm:$0xff] }
 0x86b   :  { %v5164_v26 = vld [vmem:[%s12780_s5 + $0x3e8] sm:$0xff] }
 0x86c   :  { %v7100_v48 = vpack.c.bf16 %v5164_v26, %v5160_v6 }
 0x86d   :  { %7083 = vmatpush1.bf16.msra.mxu0 %v7082_v50  ;;  %7147 = vmatpush1.bf16.msra.mxu1 %v7146_v18  ;;  %v7164_v50 = vpack.c.bf16 %v5166_v28, %v5162_v33  ;;  %v5163_v18 = vld [vmem:[%s12780_s5 + $0x3e0] sm:$0xff] }
 0x86e   :  { %7085 = vmatprep.subr.bf16.mxu0 %v7084_v49  ;;  %7149 = vmatprep.subr.bf16.mxu1 %v7148_v60  ;;  %v7102_v49 = vpack.c.bf16 %v5163_v18, %v5159_v34  ;;  %v7166_v60 = vpack.c.bf16 %v5165_v44, %v5161_v10  ;;  %v5616_v34 = vld [vmem:[%s12779_s7 + $0x4] sm:$0xf] }
 0x86f   :  { %v5181_v44 = vrot.slane %v5616_v34, %v12836_v9 }
 0x871   :  { %7087 = vmatpush1.bf16.msra.mxu0 %v7086_v43  ;;  %7151 = vmatpush1.bf16.msra.mxu1 %v7150_v52 }
 0x872   :  { %7089 = vmatprep.subr.bf16.mxu0 %v7088_v22  ;;  %7153 = vmatprep.subr.bf16.mxu1 %v7152_v58 }
 0x875   :  { %7091 = vmatpush1.bf16.msra.mxu0 %v7090_v42  ;;  %7155 = vmatpush1.bf16.msra.mxu1 %v7154_v1 }
 0x876   :  { %7093 = vmatprep.subr.bf16.mxu0 %v7092_v36  ;;  %7157 = vmatprep.subr.bf16.mxu1 %v7156_v4 }
 0x879   :  { %7095 = vmatpush1.bf16.msra.mxu0 %v7094_v55  ;;  %7159 = vmatpush1.bf16.msra.mxu1 %v7158_v13 }
 0x87a   :  { %7097 = vmatprep.subr.bf16.mxu0 %v7096_v29  ;;  %7161 = vmatprep.subr.bf16.mxu1 %v7160_v30 }
 0x87d   :  { %7099 = vmatpush1.bf16.msra.mxu0 %v7098_v5  ;;  %7163 = vmatpush1.bf16.msra.mxu1 %v7162_v32 }
 0x87e   :  { %7101 = vmatprep.subr.bf16.mxu0 %v7100_v48  ;;  %7165 = vmatprep.subr.bf16.mxu1 %v7164_v50  ;;  %v5173_v48 = vrot.slane %v5616_v34, %v12834_v8 }
 0x881   :  { %7103 = vmatpush1.bf16.msra.mxu0 %v7102_v49  ;;  %7167 = vmatpush1.bf16.msra.mxu1 %v7166_v60 }
 0x884   :  { %5250 = vmatmul.mubr.f32.vlgmr.msra.gmra.mrb[48].mxu0 %v11856_v62  ;;  %5325 = vmatmul.mubr.f32.vlgmr.msra.gmra.mrb[48].mxu1 %v11856_v62 }
 0x885   :  { %5254 = vmatprep.mubr.f32.mxu0 %v12830_v3  ;;  %5330 = vmatprep.mubr.f32.mxu1 %v12830_v3 }
 0x888   :  { %5255 = vmatmul.mubr.f32.gmra.mrb[50].mxu0 %v11881_v40  ;;  %5331 = vmatmul.mubr.f32.gmra.mrb[50].mxu1 %v11881_v40 }
 0x917   :  { %v4891_v61 = vpop.f32.mrb[44].mxu0  ;;  %v4968_v37 = vpop.f32.mrb[44].mxu1 }
 0x918   :  { %v7180_v16 = vadd.f32 %v4891_v61, %v12182_v51  ;;  %v4893_v20 = vpop.f32.mrb[45].mxu0  ;;  %v4970_v46 = vpop.f32.mrb[45].mxu1  ;;  %v7196_v38 = vadd.f32 %v4968_v37, %v12196_v27 }
 0x919   :  { %v7181_v7 = vadd.f32 %v4893_v20, %v12185_v56  ;;  %v7197_v45 = vadd.f32 %v4970_v46, %v12190_v53 }
 0x91a   :  { %v5610_v43 = vmul.f32 -1.442695, %v7180_v16 }
 0x91b   :  { %v5612_v52 = vmul.f32 -1.442695, %v7181_v7  ;;  %v4897_v63 = vpop.f32.mrb[46].mxu0  ;;  %v4974_v62 = vpop.f32.mrb[46].mxu1  ;;  %v5614_v12 = vmul.f32 -1.442695, %v7197_v45 }
 0x91c   :  { %7588 = vpow2.f32 %v5610_v43  ;;  %v7182_v35 = vadd.f32 %v4897_v63, %v12182_v51  ;;  %v4899_v3 = vpop.f32.mrb[47].mxu0  ;;  %v4976_v22 = vpop.f32.mrb[47].mxu1 }
 0x91d   :  { %7590 = vpow2.f32 %v5612_v52  ;;  %v7183_v40 = vadd.f32 %v4899_v3, %v12185_v56  ;;  %v7199_v17 = vadd.f32 %v4976_v22, %v12190_v53  ;;  %v7198_v56 = vadd.f32 %v4974_v62, %v12196_v27 }
 0x91e   :  { %v5611_v58 = vmul.f32 -1.442695, %v7182_v35  ;;  %v5177_v52 = vrot.slane %v5616_v34, %v12837_v54 }
 0x91f   :  { %v5613_v0 = vmul.f32 -1.442695, %v7183_v40  ;;  %v5615_v51 = vmul.f32 -1.442695, %v7199_v17 }
 0x920   :  { %7592 = vpow2.f32 %v5611_v58 }
 0x921   :  { %7594 = vpow2.f32 %v5613_v0 }
 0x922   :  { %7596 = vpow2.f32 %v5614_v12 }
 0x923   :  { %7598 = vtanh.f32 %v7196_v38 }
 0x926   :  { %v7589_v14 = vpop.eup %7588 }
 0x927   :  { %v7591_v42 = vpop.eup %7590  ;;  %v4993_v1 = vadd.f32 1.0, %v7589_v14 }
 0x928   :  { %v5005_v24 = vadd.f32 1.0, %v7591_v42 }
 0x929   :  { %7600 = vrcp.f32 %v4993_v1 }
 0x92a   :  { %v7593_v21 = vpop.eup %7592  ;;  %7602 = vrcp.f32 %v5005_v24  ;;  %v5621_v24 = vld [vmem:[%s12781_s8 + $0x10] sm:$0xff] }
 0x92b   :  { %v7595_v36 = vpop.eup %7594  ;;  %v4994_v4 = vadd.f32 1.0, %v7593_v21  ;;  %7604 = vpow2.f32 %v5615_v51  ;;  %v5622_v21 = vld [vmem:[%s12781_s8 + $0x18] sm:$0xff] }
 0x92c   :  { %7606 = vtanh.f32 %v7198_v56  ;;  %v5006_v39 = vadd.f32 1.0, %v7595_v36  ;;  %v7597_v53 = vpop.eup %7596  ;;  %v5369_v36 = vld [vmem:[%s12781_s8] sm:$0xff] }
 0x92d   :  { %7608 = vrcp.f32 %v4994_v4  ;;  %v7599_v31 = vpop.eup %7598  ;;  %v5019_v57 = vadd.f32 1.0, %v7597_v53  ;;  %v5624_v4 = vld [vmem:[%s12781_s8 + $0x20] sm:$0xff]  ;;  %v5370_v53 = vld [vmem:[%s12781_s8 + $0x8] sm:$0xff] }
 0x92e   :  { %7610 = vrcp.f32 %v5006_v39 }
 0x92f   :  { %7612 = vrcp.f32 %v5019_v57 }
 0x933   :  { %v7601_v23 = vpop.eup %7600 }
 0x934   :  { %v7603_v59 = vpop.eup %7602  ;;  %v5027_v47 = vmul.f32 %v7601_v23, %v7599_v31  ;;  %v5625_v31 = vld [vmem:[%s12781_s8 + $0x28] sm:$0xff]  ;;  %v5628_v23 = vld [vmem:[%s12781_s8 + $0x38] sm:$0xff] }
 0x935   :  { %v7605_v55 = vpop.eup %7604  ;;  %v5025_v13 = vmul.f32 %v7603_v59, %v12314_v15 }
 0x936   :  { %v7607_v27 = vpop.eup %7606  ;;  %v5020_v2 = vadd.f32 1.0, %v7605_v55 }
 0x937   :  { %v7609_v41 = vpop.eup %7608  ;;  %v5029_v11 = vadd.f32 %v5027_v47, %v5025_v13  ;;  %v5627_v47 = vld [vmem:[%s12781_s8 + $0x30] sm:$0xff] }
 0x938   :  { %v7611_v29 = vpop.eup %7610  ;;  %v5028_v30 = vmul.f32 %v7609_v41, %v7607_v27 }
 0x939   :  { %7614 = vtanh.f32 %v5029_v11  ;;  %v5026_v25 = vmul.f32 %v7611_v29, %v12318_v19  ;;  %v7613_v26 = vpop.eup %7612 }
 0x93a   :  { %7616 = vrcp.f32 %v5020_v2 }
 0x93b   :  { %v5030_v6 = vadd.f32 %v5028_v30, %v5026_v25 }
 0x93d   :  { %7618 = vtanh.f32 %v5030_v6 }
 0x943   :  { %v7615_v33 = vpop.eup %7614 }
 0x944   :  { %v12713_v28 = vmul.f32 %v7615_v33, %v7613_v26  ;;  %v7617_v5 = vpop.eup %7616 }
 0x946   :  { %v5389_v57 = vmul.f32 %v5621_v24, %v12713_v28  ;;  %v5371_v55 = vmul.f32 %v5369_v36, %v12713_v28  ;;  %v5408_v13 = vmul.f32 %v5624_v4, %v12713_v28  ;;  %v5427_v25 = vmul.f32 %v5627_v47, %v12713_v28 }
 0x947   :  { %v7619_v32 = vpop.eup %7618 }
 0x948   :  { %v12715_v15 = vmul.f32 %v7619_v32, %v7617_v5 }
 0x94a   :  { %v5443_v32 = vmul.f32 %v5369_v36, %v12715_v15 }
 0x957   :  { %v5251_v50 = vpop.f32.mrb[48].mxu0  ;;  %v5326_v18 = vpop.f32.mrb[48].mxu1 }
 0x958   :  { %v5252_v19 = vadd.f32 %v5251_v50, %v5173_v48  ;;  %v5253_v10 = vpop.f32.mrb[49].mxu0  ;;  %v5328_v49 = vpop.f32.mrb[49].mxu1  ;;  %v5327_v62 = vadd.f32 %v5326_v18, %v5177_v52  ;;  %v5471_v50 = vmul.f32 %v5624_v4, %v12715_v15 }
 0x959   :  { %v5329_v16 = vadd.f32 %v5328_v49, %v5181_v44 }
 0x95a   :  { %v5617_v60 = vmul.f32 -1.442695, %v5252_v19 }
 0x95b   :  { %v5256_v61 = vpop.f32.mrb[50].mxu0  ;;  %v5332_v37 = vpop.f32.mrb[50].mxu1  ;;  %v5619_v63 = vmul.f32 -1.442695, %v5329_v16 }
 0x95c   :  { %7620 = vpow2.f32 %v5617_v60  ;;  %v5257_v20 = vadd.f32 %v5256_v61, %v5173_v48  ;;  %v5258_v46 = vpop.f32.mrb[51].mxu0  ;;  %v5334_v7 = vpop.f32.mrb[51].mxu1  ;;  %v5333_v22 = vadd.f32 %v5332_v37, %v5177_v52  ;;  %v5457_v48 = vmul.f32 %v5621_v24, %v12715_v15 }
 0x95d   :  { %v5335_v8 = vadd.f32 %v5334_v7, %v5181_v44  ;;  %v5485_v44 = vmul.f32 %v5627_v47, %v12715_v15 }
 0x95e   :  { %v5618_v43 = vmul.f32 -1.442695, %v5257_v20 }
 0x95f   :  { %v5620_v35 = vmul.f32 -1.442695, %v5335_v8 }
 0x960   :  { %7622 = vpow2.f32 %v5618_v43 }
 0x961   :  { %7624 = vpow2.f32 %v5619_v63 }
 0x962   :  { %7626 = vtanh.f32 %v5327_v62 }
 0x963   :  { %7628 = vpow2.f32 %v5620_v35 }
 0x966   :  { %v7621_v3 = vpop.eup %7620 }
 0x967   :  { %v5343_v9 = vadd.f32 1.0, %v7621_v3 }
 0x969   :  { %7630 = vrcp.f32 %v5343_v9 }
 0x96a   :  { %v7623_v40 = vpop.eup %7622  ;;  %7632 = vtanh.f32 %v5333_v22 }
 0x96b   :  { %v5344_v58 = vadd.f32 1.0, %v7623_v40  ;;  %v7625_v45 = vpop.eup %7624 }
 0x96c   :  { %v7627_v0 = vpop.eup %7626  ;;  %v5357_v12 = vadd.f32 1.0, %v7625_v45 }
 0x96d   :  { %7634 = vrcp.f32 %v5344_v58  ;;  %v7629_v54 = vpop.eup %7628 }
 0x96e   :  { %7636 = vrcp.f32 %v5357_v12  ;;  %v5358_v14 = vadd.f32 1.0, %v7629_v54 }
 0x973   :  { %v7631_v17 = vpop.eup %7630 }
 0x974   :  { %v5363_v38 = vmul.f32 %v7631_v17, %v7627_v0  ;;  %v7633_v42 = vpop.eup %7632 }
 0x976   :  { %7638 = vtanh.f32 %v5363_v38 }
 0x977   :  { %v7635_v1 = vpop.eup %7634  ;;  %7640 = vrcp.f32 %v5358_v14 }
 0x978   :  { %v5364_v51 = vmul.f32 %v7635_v1, %v7633_v42  ;;  %v7637_v56 = vpop.eup %7636 }
 0x97a   :  { %7642 = vtanh.f32 %v5364_v51 }
 0x980   :  { %v7639_v39 = vpop.eup %7638 }
 0x981   :  { %v5367_v59 = vmul.f32 %v7639_v39, %v7637_v56  ;;  %v7641_v27 = vpop.eup %7640 }
 0x983   :  { %v5390_v41 = vmul.f32 %v5622_v21, %v5367_v59  ;;  %v5372_v11 = vmul.f32 %v5370_v53, %v5367_v59  ;;  %v5409_v29 = vmul.f32 %v5625_v31, %v5367_v59  ;;  %v5428_v30 = vmul.f32 %v5628_v23, %v5367_v59 }
 0x984   :  { %v7643_v2 = vpop.eup %7642 }
 0x985   :  { %v5391_v6 = vadd.f32 %v5390_v41, %v5389_v57  ;;  %v5373_v26 = vadd.f32 %v5372_v11, %v5371_v55  ;;  %v5410_v33 = vadd.f32 %v5409_v29, %v5408_v13  ;;  %v5368_v5 = vmul.f32 %v7643_v2, %v7641_v27  ;;  %v5383_v55 = vld [vmem:[%s12782_s9] sm:$0xff] }
 0x986   :  { %v5429_v34 = vadd.f32 %v5428_v30, %v5427_v25  ;;  %v5626_v25 = vld [vmem:[%s12782_s9 + $0x10] sm:$0xff] }
 0x987   :  { %5392 = vadd.xlane.f32.xlu1 %v5391_v6  ;;  %5374 = vadd.xlane.f32.xlu0 %v5373_v26  ;;  %v5444_v18 = vmul.f32 %v5370_v53, %v5368_v5  ;;  %v5458_v19 = vmul.f32 %v5622_v21, %v5368_v5  ;;  %v5472_v10 = vmul.f32 %v5625_v31, %v5368_v5  ;;  %v5623_v31 = vld [vmem:[%s12782_s9 + $0x8] sm:$0xff] }
 0x988   :  { %v5486_v49 = vmul.f32 %v5628_v23, %v5368_v5 }
 0x989   :  { %v5445_v28 = vadd.f32 %v5444_v18, %v5443_v32  ;;  %v5459_v60 = vadd.f32 %v5458_v19, %v5457_v48  ;;  %v5473_v61 = vadd.f32 %v5472_v10, %v5471_v50 }
 0x98a   :  { %v5487_v37 = vadd.f32 %v5486_v49, %v5485_v44  ;;  %v5629_v49 = vld [vmem:[%s12782_s9 + $0x18] sm:$0xff] }
 0x98b   :  { %5411 = vadd.xlane.f32.xlu1 %v5410_v33  ;;  %5446 = vadd.xlane.f32.xlu0 %v5445_v28 }
 0x98f   :  { %5430 = vadd.xlane.f32.xlu1 %v5429_v34  ;;  %5460 = vadd.xlane.f32.xlu0 %v5459_v60 }
 0x993   :  { %5474 = vadd.xlane.f32.xlu0 %v5473_v61 }
 0x997   :  { %5488 = vadd.xlane.f32.xlu0 %v5487_v37 }
 0xa14   :  { %v5393_v16 = vpop.xlane.xlu1 %5392  ;;  %v5375_v20 = vpop.xlane.xlu0 %5374 }
 0xa15   :  { %v5394_v46 = vrot.slane %v5393_v16, 4  ;;  %v5376_v7 = vrot.slane %v5375_v20, 4 }
 0xa17   :  { %v5395_v43 = vadd.f32 %v5394_v46, %v5393_v16  ;;  %v5377_v52 = vadd.f32 %v5376_v7, %v5375_v20 }
 0xa18   :  { %v5412_v63 = vpop.xlane.xlu1 %5411  ;;  %v5447_v8 = vpop.xlane.xlu0 %5446 }
 0xa19   :  { %v5396_v15 = vrot.slane %v5395_v43, 2  ;;  %v5378_v62 = vrot.slane %v5377_v52, 2  ;;  %v5413_v35 = vrot.slane %v5412_v63, 4  ;;  %v5448_v3 = vrot.slane %v5447_v8, 4 }
 0xa1b   :  { %v5397_v9 = vadd.f32 %v5396_v15, %v5395_v43  ;;  %v5379_v22 = vadd.f32 %v5378_v62, %v5377_v52  ;;  %v5414_v40 = vadd.f32 %v5413_v35, %v5412_v63  ;;  %v5449_v58 = vadd.f32 %v5448_v3, %v5447_v8 }
 0xa1c   :  { %v5431_v45 = vpop.xlane.xlu1 %5430  ;;  %v5461_v0 = vpop.xlane.xlu0 %5460 }
 0xa1d   :  { %v5398_v12 = vrot.slane %v5397_v9, 1  ;;  %v5380_v54 = vrot.slane %v5379_v22, 1  ;;  %v5415_v17 = vrot.slane %v5414_v40, 2  ;;  %v5450_v38 = vrot.slane %v5449_v58, 2 }
 0xa1e   :  { %v5432_v14 = vrot.slane %v5431_v45, 4  ;;  %v5462_v42 = vrot.slane %v5461_v0, 4 }
 0xa1f   :  { %v5399_v1 = vadd.f32 %v5398_v12, %v5397_v9  ;;  %v5381_v51 = vadd.f32 %v5380_v54, %v5379_v22  ;;  %v5416_v24 = vadd.f32 %v5415_v17, %v5414_v40  ;;  %v5451_v56 = vadd.f32 %v5450_v38, %v5449_v58 }
 0xa20   :  { %v5433_v21 = vadd.f32 %v5432_v14, %v5431_v45  ;;  %v5463_v36 = vadd.f32 %v5462_v42, %v5461_v0  ;;  %v5475_v4 = vpop.xlane.xlu0 %5474 }
 0xa21   :  { %v5400_v39 = vmax.f32 %v5399_v1, 0.0  ;;  %v5417_v53 = vrot.slane %v5416_v24, 1  ;;  %v5382_v23 = vmax.f32 %v5381_v51, 0.0  ;;  %v5476_v57 = vrot.slane %v5475_v4, 4 }
 0xa22   :  { %v5434_v59 = vrot.slane %v5433_v21, 2  ;;  %v5464_v47 = vrot.slane %v5463_v36, 2  ;;  %v5452_v27 = vrot.slane %v5451_v56, 1 }
 0xa23   :  { %v5418_v13 = vadd.f32 %v5417_v53, %v5416_v24  ;;  %v5477_v29 = vadd.f32 %v5476_v57, %v5475_v4  ;;  %v5403_v2 = vmul.f32 %v5623_v31, %v5400_v39  ;;  %v5384_v33 = vmul.f32 %v5383_v55, %v5382_v23 }
 0xa24   :  { %v5435_v41 = vadd.f32 %v5434_v59, %v5433_v21  ;;  %v5465_v11 = vadd.f32 %v5464_v47, %v5463_v36  ;;  %v5489_v30 = vpop.xlane.xlu0 %5488  ;;  %v5453_v48 = vadd.f32 %v5452_v27, %v5451_v56 }
 0xa25   :  { %v5419_v6 = vmax.f32 %v5418_v13, 0.0  ;;  %v5490_v26 = vrot.slane %v5489_v30, 4  ;;  %v5478_v34 = vrot.slane %v5477_v29, 2  ;;  %v5404_v60 = vadd.f32 %v5403_v2, %v5384_v33 }
 0xa26   :  { %v5436_v5 = vrot.slane %v5435_v41, 1  ;;  %v5466_v32 = vrot.slane %v5465_v11, 1  ;;  %v5454_v20 = vmax.f32 %v5453_v48, 0.0 }
 0xa27   :  { %v5491_v50 = vadd.f32 %v5490_v26, %v5489_v30  ;;  %v5422_v18 = vmul.f32 %v5626_v25, %v5419_v6  ;;  %v5479_v44 = vadd.f32 %v5478_v34, %v5477_v29 }
 0xa28   :  { %v5437_v19 = vadd.f32 %v5436_v5, %v5435_v41  ;;  %v5467_v10 = vadd.f32 %v5466_v32, %v5465_v11  ;;  %v5455_v35 = vmul.f32 %v5454_v20, %v5383_v55 }
 0xa29   :  { %v5492_v28 = vrot.slane %v5491_v50, 2  ;;  %v5480_v16 = vrot.slane %v5479_v44, 1  ;;  %v5423_v7 = vadd.f32 %v5422_v18, %v5404_v60 }
 0xa2a   :  { %v5438_v61 = vmax.f32 %v5437_v19, 0.0  ;;  %v5468_v37 = vmax.f32 %v5467_v10, 0.0 }
 0xa2b   :  { %v5493_v46 = vadd.f32 %v5492_v28, %v5491_v50  ;;  %v5481_v52 = vadd.f32 %v5480_v16, %v5479_v44 }
 0xa2c   :  { %v5441_v43 = vmul.f32 %v5629_v49, %v5438_v61  ;;  %v5469_v63 = vmul.f32 %v5623_v31, %v5468_v37 }
 0xa2d   :  { %v5494_v8 = vrot.slane %v5493_v46, 1  ;;  %v5482_v62 = vmax.f32 %v5481_v52, 0.0 }
 0xa2e   :  { %v5442_v15 = vadd.f32 %v5441_v43, %v5423_v7  ;;  %v5470_v40 = vadd.f32 %v5469_v63, %v5455_v35 }
 0xa2f   :  { %v5495_v3 = vadd.f32 %v5494_v8, %v5493_v46  ;;  %v5483_v22 = vmul.f32 %v5626_v25, %v5482_v62 }
 0xa30   :  { %v5630_v9 = vmul.f32 -1.442695, %v5442_v15 }
 0xa31   :  { %v5496_v58 = vmax.f32 %v5495_v3, 0.0  ;;  %v5484_v45 = vadd.f32 %v5483_v22, %v5470_v40 }
 0xa32   :  { %7644 = vpow2.f32 %v5630_v9 }
 0xa33   :  { %v5497_v0 = vmul.f32 %v5629_v49, %v5496_v58 }
 0xa35   :  { %v5498_v12 = vadd.f32 %v5497_v0, %v5484_v45 }
 0xa37   :  { %v5631_v54 = vmul.f32 -1.442695, %v5498_v12 }
 0xa39   :  { %7646 = vpow2.f32 %v5631_v54 }
 0xa3c   :  { %v7645_v17 = vpop.eup %7644 }
 0xa3d   :  { %v5505_v38 = vadd.f32 1.0, %v7645_v17 }
 0xa3f   :  { %7648 = vrcp.f32 %v5505_v38 }
 0xa43   :  { %v7647_v14 = vpop.eup %7646 }
 0xa44   :  { %v5506_v42 = vadd.f32 1.0, %v7647_v14 }
 0xa46   :  { %7650 = vrcp.f32 %v5506_v42 }
 0xa49   :  { %v7649_v1 = vpop.eup %7648 }
 0xa4a   :  { %5512 = vst.msk [vmem:[%s12783_s10] sm:$0xff] %vm5511_vm0, %v7649_v1 }
 0xa50   :  { %v7651_v51 = vpop.eup %7650 }
 0xa51   :  { %5513 = vst.msk [vmem:[%s12783_s10 + $0x8] sm:$0xff] %vm5511_vm0, %v7651_v51 }

</bundles_post_ra>
